<compile_context>
chip_gen: v5e
topology: v5e:2x2
jax: 0.10.0
libtpu: 0.0.40
codegen_flags: <defaults>
</compile_context>

<pallas_src>
import functools
import math

import jax
import jax.numpy as jnp
from jax.experimental import pallas as pl
from jax.experimental.pallas import tpu as pltpu

# ----------------------------- model hyper-params (small, synthetic) ---------------
VOCAB = 50
MAX_SEQ_LEN = 16      # module's max_seq_length (scaled down from 128)
DIM = 32              # module's self.dim (scaled down from 768)
NUM_HEADS = 4
HEAD_DIM = DIM // NUM_HEADS
FFN_DIM = 64
NUM_LAYERS = 2
LN_EPS = 1e-5

_VMEM = pl.BlockSpec(memory_space=pltpu.MemorySpace.VMEM)


# ----------------------------- fused encoder kernel --------------------------------
def _encoder_kernel(ids_ref, mask_ref, nrow_ref, ncol_ref,
                    wemb_ref, pos_ref, eg_ref, eb_ref,
                    wqkv_ref, bqkv_ref, wo_ref, bo_ref, g1_ref, b1_ref,
                    wi_ref, bi_ref, wf_ref, bf_ref, g2_ref, b2_ref,
                    pw_ref, pb_ref, out_ref, *, num_nodes, seq):
    rows = num_nodes * seq

    def ln(x, g, b):
        mu = jnp.mean(x, axis=-1, keepdims=True)
        var = jnp.mean(jnp.square(x - mu), axis=-1, keepdims=True)
        return (x - mu) * jax.lax.rsqrt(var + LN_EPS) * g + b

    # ---- embeddings: one-hot gather matmul + (pre-tiled) positions, then LayerNorm
    onehot = (ids_ref[...] ==
              jax.lax.broadcasted_iota(jnp.int32, (rows, VOCAB), 1)).astype(jnp.float32)
    h = jnp.dot(onehot, wemb_ref[...], preferred_element_type=jnp.float32) + pos_ref[...]
    h = ln(h, eg_ref[...], eb_ref[...])

    # ---- additive attention bias: block-diagonal (same node) AND key-valid.
    #      Computed once, reused by every layer.
    allow = (nrow_ref[...] == ncol_ref[...]) & (mask_ref[...] > 0.5)     # (rows, rows)
    bias = jnp.where(allow, 0.0, -1e9).astype(jnp.float32)

    # ---- transformer layers (NUM_LAYERS is tiny and static -> unrolled) ----
    for li in range(NUM_LAYERS):
        # fused QKV projection (attention scale already folded into Wq at init)
        qkv = jnp.dot(h, wqkv_ref[li], preferred_element_type=jnp.float32) + bqkv_ref[li]

        ctx_heads = []
        for hh in range(NUM_HEADS):
            lo = hh * HEAD_DIM
            qh = qkv[:, lo:lo + HEAD_DIM]                      # (rows, HEAD_DIM)
            kh = qkv[:, DIM + lo:DIM + lo + HEAD_DIM]
            vh = qkv[:, 2 * DIM + lo:2 * DIM + lo + HEAD_DIM]
            # scores = qh @ kh^T  (block-diagonal masked)
            scores = jax.lax.dot_general(
                qh, kh, (((1,), (1,)), ((), ())),
                preferred_element_type=jnp.float32) + bias     # (rows, rows)
            m = jnp.max(scores, axis=-1, keepdims=True)
            p = jnp.exp(scores - m)
            denom = jnp.sum(p, axis=-1, keepdims=True)
            probs = p * pl.reciprocal(denom, approx=True)
            ctx_heads.append(jnp.dot(probs, vh, preferred_element_type=jnp.float32))
        ctx = jnp.concatenate(ctx_heads, axis=-1)              # (rows, DIM)

        attn_out = jnp.dot(ctx, wo_ref[li], preferred_element_type=jnp.float32) + bo_ref[li]
        h = ln(attn_out + h, g1_ref[li], b1_ref[li])

        inter = jax.nn.gelu(
            jnp.dot(h, wi_ref[li], preferred_element_type=jnp.float32) + bi_ref[li],
            approximate=True)
        ffn = jnp.dot(inter, wf_ref[li], preferred_element_type=jnp.float32) + bf_ref[li]
        h = ln(ffn + h, g2_ref[li], b2_ref[li])

    # ---- pooler: tanh(dense(CLS rows)) ----
    cls = jnp.concatenate([h[n * seq:n * seq + 1, :] for n in range(num_nodes)], axis=0)
    pooled = jnp.tanh(
        jnp.dot(cls, pw_ref[...], preferred_element_type=jnp.float32) + pb_ref[...])
    out_ref[...] = pooled.astype(out_ref.dtype)


@jax.jit
def encode_feature(input_ids, attn_mask, params):
    """RobertaModel(input_ids, attention_mask) -> pooled_output (tanh(dense(CLS)))."""
    nn_, s = input_ids.shape
    rows = nn_ * s

    # lane-friendly kernel inputs (no head-dim-last transposes anywhere)
    ids_col = input_ids.reshape(rows, 1).astype(jnp.int32)
    mask_row = attn_mask.reshape(1, rows).astype(jnp.float32)
    node_idx = jnp.repeat(jnp.arange(nn_, dtype=jnp.int32), s)
    node_row = node_idx.reshape(rows, 1)
    node_col = node_idx.reshape(1, rows)
    pos_tiled = jnp.tile(params["pos_emb"], (nn_, 1))          # (rows, DIM)

    kernel = functools.partial(_encoder_kernel, num_nodes=nn_, seq=s)
    return pl.pallas_call(
        kernel,
        out_shape=jax.ShapeDtypeStruct((nn_, DIM), jnp.float32),
        in_specs=[_VMEM] * 22,
        out_specs=_VMEM,
    )(ids_col, mask_row, node_row, node_col,
      params["word_emb"], pos_tiled, params["emb_ln_g"], params["emb_ln_b"],
      params["wqkv"], params["bqkv"], params["wo"], params["bo"],
      params["ln1_g"], params["ln1_b"], params["wi"], params["bi"],
      params["wf"], params["bf"], params["ln2_g"], params["ln2_b"],
      params["pool_w"], params["pool_b"])


# ----------------------------- LRM_Roberta.forward ---------------------------------
def lrm_roberta_forward(batch_data, params):
    """batch_data: list of dicts with 'input_ids' (n_i, S) int32, 'attention_mask'
    (n_i, S) float32, 'labels' list[int].  Returns (features, label, mask) like the
    PyTorch module: (B, max_n, DIM) float32, (B, max_n) float32, (B, max_n) float32."""
    max_n = max(len(bd["labels"]) for bd in batch_data)

    # run the fused encoder once over all nodes of all batch elements
    all_ids = jnp.concatenate([bd["input_ids"] for bd in batch_data], axis=0)
    all_mask = jnp.concatenate([bd["attention_mask"] for bd in batch_data], axis=0)
    pooled = encode_feature(all_ids, all_mask, params)           # (total_nodes, DIM)

    feats, labels, masks = [], [], []
    off = 0
    for bd in batch_data:
        n = len(bd["labels"])
        f = pooled[off:off + n]
        off += n
        f = jnp.concatenate(
            [f, jnp.zeros((max_n - n, f.shape[1]), dtype=jnp.float32)], axis=0)
        feats.append(f)
        labels.append(list(bd["labels"]) + [-10] * (max_n - n))
        masks.append([1] * n + [0] * (max_n - n))
    features = jnp.stack(feats, axis=0)
    label = jnp.array(labels, dtype=jnp.float32)
    mask = jnp.array(masks, dtype=jnp.float32)
    return features, label, mask


# ----------------------------- deterministic parameter init ------------------------
def init_params(key):
    def nrm(k, shape):
        return (0.02 * jax.random.normal(k, shape)).astype(jnp.float32)

    scale = 1.0 / math.sqrt(HEAD_DIM)
    keys = jax.random.split(key, 4 + NUM_LAYERS)
    params = {
        "word_emb": nrm(keys[0], (VOCAB, DIM)),
        "pos_emb": nrm(keys[1], (MAX_SEQ_LEN, DIM)),
        "emb_ln_g": jnp.ones((1, DIM), jnp.float32),
        "emb_ln_b": jnp.zeros((1, DIM), jnp.float32),
        "pool_w": nrm(keys[2], (DIM, DIM)),
        "pool_b": jnp.zeros((1, DIM), jnp.float32),
    }
    wqkv, bqkv, wo, bo = [], [], [], []
    ln1g, ln1b, wi, bi, wf, bf, ln2g, ln2b = [], [], [], [], [], [], [], []
    for li in range(NUM_LAYERS):
        lk = jax.random.split(keys[4 + li], 6)
        wq = nrm(lk[0], (DIM, DIM)) * scale        # fold 1/sqrt(head_dim) into Wq
        wk = nrm(lk[1], (DIM, DIM))
        wv = nrm(lk[2], (DIM, DIM))
        wqkv.append(jnp.concatenate([wq, wk, wv], axis=1))       # (DIM, 3*DIM)
        bqkv.append(jnp.zeros((1, 3 * DIM), jnp.float32))        # (bq scaled too: zeros)
        wo.append(nrm(lk[3], (DIM, DIM)))
        bo.append(jnp.zeros((1, DIM), jnp.float32))
        ln1g.append(jnp.ones((1, DIM), jnp.float32))
        ln1b.append(jnp.zeros((1, DIM), jnp.float32))
        wi.append(nrm(lk[4], (DIM, FFN_DIM)))
        bi.append(jnp.zeros((1, FFN_DIM), jnp.float32))
        wf.append(nrm(lk[5], (FFN_DIM, DIM)))
        bf.append(jnp.zeros((1, DIM), jnp.float32))
        ln2g.append(jnp.ones((1, DIM), jnp.float32))
        ln2b.append(jnp.zeros((1, DIM), jnp.float32))
    params.update(
        wqkv=jnp.stack(wqkv), bqkv=jnp.stack(bqkv),
        wo=jnp.stack(wo), bo=jnp.stack(bo),
        ln1_g=jnp.stack(ln1g), ln1_b=jnp.stack(ln1b),
        wi=jnp.stack(wi), bi=jnp.stack(bi),
        wf=jnp.stack(wf), bf=jnp.stack(bf),
        ln2_g=jnp.stack(ln2g), ln2_b=jnp.stack(ln2b),
    )
    return params


# ----------------------------- synthetic batch construction ------------------------
def make_node(key, n_tok, n_desc):
    """Mimics encode_feature token assembly: <s> tokens </s> desc </s> + padding."""
    k1, k2 = jax.random.split(key)
    toks = jax.random.randint(k1, (n_tok,), 3, VOCAB)
    desc = jax.random.randint(k2, (n_desc,), 3, VOCAB)
    sep = jnp.array([2], dtype=jnp.int32)
    cls = jnp.array([1], dtype=jnp.int32)
    ids = jnp.concatenate([cls, toks.astype(jnp.int32), sep, desc.astype(jnp.int32), sep])
    length = ids.shape[0]
    ids = jnp.pad(ids, (0, MAX_SEQ_LEN - length))
    msk = jnp.pad(jnp.ones((length,), jnp.float32), (0, MAX_SEQ_LEN - length))
    return ids, msk


def make_batch_data(key):
    # batch of 2 "documents", with 3 and 2 candidate nodes respectively
    node_counts = [3, 2]
    labels_all = [[1, 0, 1], [0, 1]]
    batch_data = []
    keys = jax.random.split(key, sum(node_counts))
    ki = 0
    for b, n_nodes in enumerate(node_counts):
        ids_list, mask_list = [], []
        for j in range(n_nodes):
            ids, msk = make_node(keys[ki], n_tok=5 + j, n_desc=4)
            ki += 1
            ids_list.append(ids)
            mask_list.append(msk)
        batch_data.append({
            "input_ids": jnp.stack(ids_list, axis=0),
            "attention_mask": jnp.stack(mask_list, axis=0),
            "labels": labels_all[b],
        })
    return batch_data


# ----------------------------- main -------------------------------------------------
if __name__ == "__main__":
    root = jax.random.PRNGKey(0)
    k_params, k_data = jax.random.split(root)

    params = init_params(k_params)
    batch_data = make_batch_data(k_data)

    features, label, mask = lrm_roberta_forward(batch_data, params)
    jax.block_until_ready((features, label, mask))

    assert features.shape == (2, 3, DIM), features.shape
    assert label.shape == (2, 3), label.shape
    assert mask.shape == (2, 3), mask.shape
    assert bool(jnp.all(jnp.isfinite(features)))
    print("KERNEL_OK")
</pallas_src>

<mosaic_0001>
module attributes {stable_mosaic.version = 11 : i64} {
  func.func @_encoder_kernel(%arg0: memref<80x1xi32, #tpu.memory_space<vmem>>, %arg1: memref<1x80xf32, #tpu.memory_space<vmem>>, %arg2: memref<80x1xi32, #tpu.memory_space<vmem>>, %arg3: memref<1x80xi32, #tpu.memory_space<vmem>>, %arg4: memref<50x32xf32, #tpu.memory_space<vmem>>, %arg5: memref<80x32xf32, #tpu.memory_space<vmem>>, %arg6: memref<1x32xf32, #tpu.memory_space<vmem>>, %arg7: memref<1x32xf32, #tpu.memory_space<vmem>>, %arg8: memref<2x32x96xf32, #tpu.memory_space<vmem>>, %arg9: memref<2x1x96xf32, #tpu.memory_space<vmem>>, %arg10: memref<2x32x32xf32, #tpu.memory_space<vmem>>, %arg11: memref<2x1x32xf32, #tpu.memory_space<vmem>>, %arg12: memref<2x1x32xf32, #tpu.memory_space<vmem>>, %arg13: memref<2x1x32xf32, #tpu.memory_space<vmem>>, %arg14: memref<2x32x64xf32, #tpu.memory_space<vmem>>, %arg15: memref<2x1x64xf32, #tpu.memory_space<vmem>>, %arg16: memref<2x64x32xf32, #tpu.memory_space<vmem>>, %arg17: memref<2x1x32xf32, #tpu.memory_space<vmem>>, %arg18: memref<2x1x32xf32, #tpu.memory_space<vmem>>, %arg19: memref<2x1x32xf32, #tpu.memory_space<vmem>>, %arg20: memref<32x32xf32, #tpu.memory_space<vmem>>, %arg21: memref<1x32xf32, #tpu.memory_space<vmem>>, %arg22: memref<5x32xf32, #tpu.memory_space<vmem>>) attributes {dimension_semantics = [], scalar_prefetch = 0 : i64, scratch_operands = 0 : i64, tpu.core_type = #tpu.core_type<tc>} {
    %c0 = arith.constant 0 : index
    %c0_0 = arith.constant 0 : index
    %0 = vector.load %arg0[%c0, %c0_0] : memref<80x1xi32, #tpu.memory_space<vmem>>, vector<80x1xi32>
    %1 = tpu.iota {dimensions = array<i32: 1>} : vector<80x50xi32>
    %2 = vector.broadcast %0 : vector<80x1xi32> to vector<80x50xi32>
    %3 = arith.cmpi eq, %2, %1 : vector<80x50xi32>
    %4 = arith.extui %3 : vector<80x50xi1> to vector<80x50xi32>
    %5 = arith.sitofp %4 : vector<80x50xi32> to vector<80x50xf32>
    %c0_1 = arith.constant 0 : index
    %c0_2 = arith.constant 0 : index
    %6 = vector.load %arg4[%c0_1, %c0_2] : memref<50x32xf32, #tpu.memory_space<vmem>>, vector<50x32xf32>
    %cst = arith.constant dense<0.000000e+00> : vector<80x32xf32>
    %7 = tpu.matmul %5, %6, %cst {dimension_numbers = #tpu.dot_dimension_numbers<[1], [0], [0], [1], [0, 0, 1, 1], [], []>} : vector<80x50xf32>, vector<50x32xf32>, vector<80x32xf32> -> vector<80x32xf32>
    %c0_3 = arith.constant 0 : index
    %c0_4 = arith.constant 0 : index
    %8 = vector.load %arg5[%c0_3, %c0_4] : memref<80x32xf32, #tpu.memory_space<vmem>>, vector<80x32xf32>
    %9 = arith.addf %7, %8 : vector<80x32xf32>
    %c0_5 = arith.constant 0 : index
    %c0_6 = arith.constant 0 : index
    %10 = vector.load %arg6[%c0_5, %c0_6] : memref<1x32xf32, #tpu.memory_space<vmem>>, vector<1x32xf32>
    %c0_7 = arith.constant 0 : index
    %c0_8 = arith.constant 0 : index
    %11 = vector.load %arg7[%c0_7, %c0_8] : memref<1x32xf32, #tpu.memory_space<vmem>>, vector<1x32xf32>
    %cst_9 = arith.constant dense<0.000000e+00> : vector<80xf32>
    %12 = vector.multi_reduction <add>, %9, %cst_9 [1] : vector<80x32xf32> to vector<80xf32>
    %13 = vector.shape_cast %12 : vector<80xf32> to vector<80x1xf32>
    %cst_10 = arith.constant 3.200000e+01 : f32
    %14 = vector.broadcast %cst_10 : f32 to vector<80x1xf32>
    %15 = arith.divf %13, %14 : vector<80x1xf32>
    %16 = vector.broadcast %15 : vector<80x1xf32> to vector<80x32xf32>
    %17 = arith.subf %9, %16 : vector<80x32xf32>
    %18 = arith.mulf %17, %17 : vector<80x32xf32>
    %cst_11 = arith.constant dense<0.000000e+00> : vector<80xf32>
    %19 = vector.multi_reduction <add>, %18, %cst_11 [1] : vector<80x32xf32> to vector<80xf32>
    %20 = vector.shape_cast %19 : vector<80xf32> to vector<80x1xf32>
    %cst_12 = arith.constant 3.200000e+01 : f32
    %21 = vector.broadcast %cst_12 : f32 to vector<80x1xf32>
    %22 = arith.divf %20, %21 : vector<80x1xf32>
    %23 = vector.broadcast %15 : vector<80x1xf32> to vector<80x32xf32>
    %24 = arith.subf %9, %23 : vector<80x32xf32>
    %cst_13 = arith.constant 9.99999974E-6 : f32
    %25 = vector.broadcast %cst_13 : f32 to vector<80x1xf32>
    %26 = arith.addf %22, %25 : vector<80x1xf32>
    %27 = math.rsqrt %26 : vector<80x1xf32>
    %28 = vector.broadcast %27 : vector<80x1xf32> to vector<80x32xf32>
    %29 = arith.mulf %24, %28 : vector<80x32xf32>
    %30 = vector.broadcast %10 : vector<1x32xf32> to vector<80x32xf32>
    %31 = arith.mulf %29, %30 : vector<80x32xf32>
    %32 = vector.broadcast %11 : vector<1x32xf32> to vector<80x32xf32>
    %33 = arith.addf %31, %32 : vector<80x32xf32>
    %c0_14 = arith.constant 0 : index
    %c0_15 = arith.constant 0 : index
    %34 = vector.load %arg2[%c0_14, %c0_15] : memref<80x1xi32, #tpu.memory_space<vmem>>, vector<80x1xi32>
    %c0_16 = arith.constant 0 : index
    %c0_17 = arith.constant 0 : index
    %35 = vector.load %arg3[%c0_16, %c0_17] : memref<1x80xi32, #tpu.memory_space<vmem>>, vector<1x80xi32>
    %36 = vector.broadcast %34 : vector<80x1xi32> to vector<80x80xi32>
    %37 = vector.broadcast %35 : vector<1x80xi32> to vector<80x80xi32>
    %38 = arith.cmpi eq, %36, %37 : vector<80x80xi32>
    %c0_18 = arith.constant 0 : index
    %c0_19 = arith.constant 0 : index
    %39 = vector.load %arg1[%c0_18, %c0_19] : memref<1x80xf32, #tpu.memory_space<vmem>>, vector<1x80xf32>
    %cst_20 = arith.constant 5.000000e-01 : f32
    %40 = vector.broadcast %cst_20 : f32 to vector<1x80xf32>
    %41 = arith.cmpf ogt, %39, %40 : vector<1x80xf32>
    %42 = vector.broadcast %41 : vector<1x80xi1> to vector<80x80xi1>
    %43 = arith.andi %38, %42 : vector<80x80xi1>
    %cst_21 = arith.constant 0.000000e+00 : f32
    %cst_22 = arith.constant -1.000000e+09 : f32
    %44 = vector.broadcast %cst_21 : f32 to vector<80x80xf32>
    %45 = vector.broadcast %cst_22 : f32 to vector<80x80xf32>
    %46 = arith.select %43, %44, %45 : vector<80x80xi1>, vector<80x80xf32>
    %c0_23 = arith.constant 0 : index
    %c0_24 = arith.constant 0 : index
    %c0_25 = arith.constant 0 : index
    %47 = vector.load %arg8[%c0_23, %c0_24, %c0_25] : memref<2x32x96xf32, #tpu.memory_space<vmem>>, vector<1x32x96xf32>
    %48 = vector.shape_cast %47 : vector<1x32x96xf32> to vector<32x96xf32>
    %cst_26 = arith.constant dense<0.000000e+00> : vector<80x96xf32>
    %49 = tpu.matmul %33, %48, %cst_26 {dimension_numbers = #tpu.dot_dimension_numbers<[1], [0], [0], [1], [0, 0, 1, 1], [], []>} : vector<80x32xf32>, vector<32x96xf32>, vector<80x96xf32> -> vector<80x96xf32>
    %c0_27 = arith.constant 0 : index
    %c0_28 = arith.constant 0 : index
    %c0_29 = arith.constant 0 : index
    %50 = vector.load %arg9[%c0_27, %c0_28, %c0_29] : memref<2x1x96xf32, #tpu.memory_space<vmem>>, vector<1x1x96xf32>
    %51 = vector.shape_cast %50 : vector<1x1x96xf32> to vector<1x96xf32>
    %52 = vector.broadcast %51 : vector<1x96xf32> to vector<80x96xf32>
    %53 = arith.addf %49, %52 : vector<80x96xf32>
    %54 = vector.extract_strided_slice %53 {offsets = [0, 0], sizes = [80, 8], strides = [1, 1]} : vector<80x96xf32> to vector<80x8xf32>
    %55 = vector.extract_strided_slice %53 {offsets = [0, 32], sizes = [80, 8], strides = [1, 1]} : vector<80x96xf32> to vector<80x8xf32>
    %56 = vector.extract_strided_slice %53 {offsets = [0, 64], sizes = [80, 8], strides = [1, 1]} : vector<80x96xf32> to vector<80x8xf32>
    %cst_30 = arith.constant dense<0.000000e+00> : vector<80x80xf32>
    %57 = tpu.matmul %54, %55, %cst_30 {dimension_numbers = #tpu.dot_dimension_numbers<[1], [1], [0], [0], [0, 0, 1, 0], [], []>} : vector<80x8xf32>, vector<80x8xf32>, vector<80x80xf32> -> vector<80x80xf32>
    %58 = arith.addf %57, %46 : vector<80x80xf32>
    %cst_31 = arith.constant dense<0xFF800000> : vector<80xf32>
    %59 = vector.multi_reduction <maximumf>, %58, %cst_31 [1] : vector<80x80xf32> to vector<80xf32>
    %60 = vector.shape_cast %59 : vector<80xf32> to vector<80x1xf32>
    %61 = vector.broadcast %60 : vector<80x1xf32> to vector<80x80xf32>
    %62 = arith.subf %58, %61 : vector<80x80xf32>
    %63 = math.exp %62 : vector<80x80xf32>
    %cst_32 = arith.constant dense<0.000000e+00> : vector<80xf32>
    %64 = vector.multi_reduction <add>, %63, %cst_32 [1] : vector<80x80xf32> to vector<80xf32>
    %65 = vector.shape_cast %64 : vector<80xf32> to vector<80x1xf32>
    %66 = tpu.reciprocal %65 {approx = true} : vector<80x1xf32> -> vector<80x1xf32>
    %67 = vector.broadcast %66 : vector<80x1xf32> to vector<80x80xf32>
    %68 = arith.mulf %63, %67 : vector<80x80xf32>
    %cst_33 = arith.constant dense<0.000000e+00> : vector<80x8xf32>
    %69 = tpu.matmul %68, %56, %cst_33 {dimension_numbers = #tpu.dot_dimension_numbers<[1], [0], [0], [1], [0, 0, 1, 1], [], []>} : vector<80x80xf32>, vector<80x8xf32>, vector<80x8xf32> -> vector<80x8xf32>
    %70 = vector.extract_strided_slice %53 {offsets = [0, 8], sizes = [80, 8], strides = [1, 1]} : vector<80x96xf32> to vector<80x8xf32>
    %71 = vector.extract_strided_slice %53 {offsets = [0, 40], sizes = [80, 8], strides = [1, 1]} : vector<80x96xf32> to vector<80x8xf32>
    %72 = vector.extract_strided_slice %53 {offsets = [0, 72], sizes = [80, 8], strides = [1, 1]} : vector<80x96xf32> to vector<80x8xf32>
    %cst_34 = arith.constant dense<0.000000e+00> : vector<80x80xf32>
    %73 = tpu.matmul %70, %71, %cst_34 {dimension_numbers = #tpu.dot_dimension_numbers<[1], [1], [0], [0], [0, 0, 1, 0], [], []>} : vector<80x8xf32>, vector<80x8xf32>, vector<80x80xf32> -> vector<80x80xf32>
    %74 = arith.addf %73, %46 : vector<80x80xf32>
    %cst_35 = arith.constant dense<0xFF800000> : vector<80xf32>
    %75 = vector.multi_reduction <maximumf>, %74, %cst_35 [1] : vector<80x80xf32> to vector<80xf32>
    %76 = vector.shape_cast %75 : vector<80xf32> to vector<80x1xf32>
    %77 = vector.broadcast %76 : vector<80x1xf32> to vector<80x80xf32>
    %78 = arith.subf %74, %77 : vector<80x80xf32>
    %79 = math.exp %78 : vector<80x80xf32>
    %cst_36 = arith.constant dense<0.000000e+00> : vector<80xf32>
    %80 = vector.multi_reduction <add>, %79, %cst_36 [1] : vector<80x80xf32> to vector<80xf32>
    %81 = vector.shape_cast %80 : vector<80xf32> to vector<80x1xf32>
    %82 = tpu.reciprocal %81 {approx = true} : vector<80x1xf32> -> vector<80x1xf32>
    %83 = vector.broadcast %82 : vector<80x1xf32> to vector<80x80xf32>
    %84 = arith.mulf %79, %83 : vector<80x80xf32>
    %cst_37 = arith.constant dense<0.000000e+00> : vector<80x8xf32>
    %85 = tpu.matmul %84, %72, %cst_37 {dimension_numbers = #tpu.dot_dimension_numbers<[1], [0], [0], [1], [0, 0, 1, 1], [], []>} : vector<80x80xf32>, vector<80x8xf32>, vector<80x8xf32> -> vector<80x8xf32>
    %86 = vector.extract_strided_slice %53 {offsets = [0, 16], sizes = [80, 8], strides = [1, 1]} : vector<80x96xf32> to vector<80x8xf32>
    %87 = vector.extract_strided_slice %53 {offsets = [0, 48], sizes = [80, 8], strides = [1, 1]} : vector<80x96xf32> to vector<80x8xf32>
    %88 = vector.extract_strided_slice %53 {offsets = [0, 80], sizes = [80, 8], strides = [1, 1]} : vector<80x96xf32> to vector<80x8xf32>
    %cst_38 = arith.constant dense<0.000000e+00> : vector<80x80xf32>
    %89 = tpu.matmul %86, %87, %cst_38 {dimension_numbers = #tpu.dot_dimension_numbers<[1], [1], [0], [0], [0, 0, 1, 0], [], []>} : vector<80x8xf32>, vector<80x8xf32>, vector<80x80xf32> -> vector<80x80xf32>
    %90 = arith.addf %89, %46 : vector<80x80xf32>
    %cst_39 = arith.constant dense<0xFF800000> : vector<80xf32>
    %91 = vector.multi_reduction <maximumf>, %90, %cst_39 [1] : vector<80x80xf32> to vector<80xf32>
    %92 = vector.shape_cast %91 : vector<80xf32> to vector<80x1xf32>
    %93 = vector.broadcast %92 : vector<80x1xf32> to vector<80x80xf32>
    %94 = arith.subf %90, %93 : vector<80x80xf32>
    %95 = math.exp %94 : vector<80x80xf32>
    %cst_40 = arith.constant dense<0.000000e+00> : vector<80xf32>
    %96 = vector.multi_reduction <add>, %95, %cst_40 [1] : vector<80x80xf32> to vector<80xf32>
    %97 = vector.shape_cast %96 : vector<80xf32> to vector<80x1xf32>
    %98 = tpu.reciprocal %97 {approx = true} : vector<80x1xf32> -> vector<80x1xf32>
    %99 = vector.broadcast %98 : vector<80x1xf32> to vector<80x80xf32>
    %100 = arith.mulf %95, %99 : vector<80x80xf32>
    %cst_41 = arith.constant dense<0.000000e+00> : vector<80x8xf32>
    %101 = tpu.matmul %100, %88, %cst_41 {dimension_numbers = #tpu.dot_dimension_numbers<[1], [0], [0], [1], [0, 0, 1, 1], [], []>} : vector<80x80xf32>, vector<80x8xf32>, vector<80x8xf32> -> vector<80x8xf32>
    %102 = vector.extract_strided_slice %53 {offsets = [0, 24], sizes = [80, 8], strides = [1, 1]} : vector<80x96xf32> to vector<80x8xf32>
    %103 = vector.extract_strided_slice %53 {offsets = [0, 56], sizes = [80, 8], strides = [1, 1]} : vector<80x96xf32> to vector<80x8xf32>
    %104 = vector.extract_strided_slice %53 {offsets = [0, 88], sizes = [80, 8], strides = [1, 1]} : vector<80x96xf32> to vector<80x8xf32>
    %cst_42 = arith.constant dense<0.000000e+00> : vector<80x80xf32>
    %105 = tpu.matmul %102, %103, %cst_42 {dimension_numbers = #tpu.dot_dimension_numbers<[1], [1], [0], [0], [0, 0, 1, 0], [], []>} : vector<80x8xf32>, vector<80x8xf32>, vector<80x80xf32> -> vector<80x80xf32>
    %106 = arith.addf %105, %46 : vector<80x80xf32>
    %cst_43 = arith.constant dense<0xFF800000> : vector<80xf32>
    %107 = vector.multi_reduction <maximumf>, %106, %cst_43 [1] : vector<80x80xf32> to vector<80xf32>
    %108 = vector.shape_cast %107 : vector<80xf32> to vector<80x1xf32>
    %109 = vector.broadcast %108 : vector<80x1xf32> to vector<80x80xf32>
    %110 = arith.subf %106, %109 : vector<80x80xf32>
    %111 = math.exp %110 : vector<80x80xf32>
    %cst_44 = arith.constant dense<0.000000e+00> : vector<80xf32>
    %112 = vector.multi_reduction <add>, %111, %cst_44 [1] : vector<80x80xf32> to vector<80xf32>
    %113 = vector.shape_cast %112 : vector<80xf32> to vector<80x1xf32>
    %114 = tpu.reciprocal %113 {approx = true} : vector<80x1xf32> -> vector<80x1xf32>
    %115 = vector.broadcast %114 : vector<80x1xf32> to vector<80x80xf32>
    %116 = arith.mulf %111, %115 : vector<80x80xf32>
    %cst_45 = arith.constant dense<0.000000e+00> : vector<80x8xf32>
    %117 = tpu.matmul %116, %104, %cst_45 {dimension_numbers = #tpu.dot_dimension_numbers<[1], [0], [0], [1], [0, 0, 1, 1], [], []>} : vector<80x80xf32>, vector<80x8xf32>, vector<80x8xf32> -> vector<80x8xf32>
    %118 = tpu.concatenate %69, %85, %101, %117 in 1 : vector<80x8xf32>, vector<80x8xf32>, vector<80x8xf32>, vector<80x8xf32> -> vector<80x32xf32>
    %c0_46 = arith.constant 0 : index
    %c0_47 = arith.constant 0 : index
    %c0_48 = arith.constant 0 : index
    %119 = vector.load %arg10[%c0_46, %c0_47, %c0_48] : memref<2x32x32xf32, #tpu.memory_space<vmem>>, vector<1x32x32xf32>
    %120 = vector.shape_cast %119 : vector<1x32x32xf32> to vector<32x32xf32>
    %cst_49 = arith.constant dense<0.000000e+00> : vector<80x32xf32>
    %121 = tpu.matmul %118, %120, %cst_49 {dimension_numbers = #tpu.dot_dimension_numbers<[1], [0], [0], [1], [0, 0, 1, 1], [], []>} : vector<80x32xf32>, vector<32x32xf32>, vector<80x32xf32> -> vector<80x32xf32>
    %c0_50 = arith.constant 0 : index
    %c0_51 = arith.constant 0 : index
    %c0_52 = arith.constant 0 : index
    %122 = vector.load %arg11[%c0_50, %c0_51, %c0_52] : memref<2x1x32xf32, #tpu.memory_space<vmem>>, vector<1x1x32xf32>
    %123 = vector.shape_cast %122 : vector<1x1x32xf32> to vector<1x32xf32>
    %124 = vector.broadcast %123 : vector<1x32xf32> to vector<80x32xf32>
    %125 = arith.addf %121, %124 : vector<80x32xf32>
    %126 = arith.addf %125, %33 : vector<80x32xf32>
    %c0_53 = arith.constant 0 : index
    %c0_54 = arith.constant 0 : index
    %c0_55 = arith.constant 0 : index
    %127 = vector.load %arg12[%c0_53, %c0_54, %c0_55] : memref<2x1x32xf32, #tpu.memory_space<vmem>>, vector<1x1x32xf32>
    %128 = vector.shape_cast %127 : vector<1x1x32xf32> to vector<1x32xf32>
    %c0_56 = arith.constant 0 : index
    %c0_57 = arith.constant 0 : index
    %c0_58 = arith.constant 0 : index
    %129 = vector.load %arg13[%c0_56, %c0_57, %c0_58] : memref<2x1x32xf32, #tpu.memory_space<vmem>>, vector<1x1x32xf32>
    %130 = vector.shape_cast %129 : vector<1x1x32xf32> to vector<1x32xf32>
    %cst_59 = arith.constant dense<0.000000e+00> : vector<80xf32>
    %131 = vector.multi_reduction <add>, %126, %cst_59 [1] : vector<80x32xf32> to vector<80xf32>
    %132 = vector.shape_cast %131 : vector<80xf32> to vector<80x1xf32>
    %cst_60 = arith.constant 3.200000e+01 : f32
    %133 = vector.broadcast %cst_60 : f32 to vector<80x1xf32>
    %134 = arith.divf %132, %133 : vector<80x1xf32>
    %135 = vector.broadcast %134 : vector<80x1xf32> to vector<80x32xf32>
    %136 = arith.subf %126, %135 : vector<80x32xf32>
    %137 = arith.mulf %136, %136 : vector<80x32xf32>
    %cst_61 = arith.constant dense<0.000000e+00> : vector<80xf32>
    %138 = vector.multi_reduction <add>, %137, %cst_61 [1] : vector<80x32xf32> to vector<80xf32>
    %139 = vector.shape_cast %138 : vector<80xf32> to vector<80x1xf32>
    %cst_62 = arith.constant 3.200000e+01 : f32
    %140 = vector.broadcast %cst_62 : f32 to vector<80x1xf32>
    %141 = arith.divf %139, %140 : vector<80x1xf32>
    %142 = vector.broadcast %134 : vector<80x1xf32> to vector<80x32xf32>
    %143 = arith.subf %126, %142 : vector<80x32xf32>
    %cst_63 = arith.constant 9.99999974E-6 : f32
    %144 = vector.broadcast %cst_63 : f32 to vector<80x1xf32>
    %145 = arith.addf %141, %144 : vector<80x1xf32>
    %146 = math.rsqrt %145 : vector<80x1xf32>
    %147 = vector.broadcast %146 : vector<80x1xf32> to vector<80x32xf32>
    %148 = arith.mulf %143, %147 : vector<80x32xf32>
    %149 = vector.broadcast %128 : vector<1x32xf32> to vector<80x32xf32>
    %150 = arith.mulf %148, %149 : vector<80x32xf32>
    %151 = vector.broadcast %130 : vector<1x32xf32> to vector<80x32xf32>
    %152 = arith.addf %150, %151 : vector<80x32xf32>
    %c0_64 = arith.constant 0 : index
    %c0_65 = arith.constant 0 : index
    %c0_66 = arith.constant 0 : index
    %153 = vector.load %arg14[%c0_64, %c0_65, %c0_66] : memref<2x32x64xf32, #tpu.memory_space<vmem>>, vector<1x32x64xf32>
    %154 = vector.shape_cast %153 : vector<1x32x64xf32> to vector<32x64xf32>
    %cst_67 = arith.constant dense<0.000000e+00> : vector<80x64xf32>
    %155 = tpu.matmul %152, %154, %cst_67 {dimension_numbers = #tpu.dot_dimension_numbers<[1], [0], [0], [1], [0, 0, 1, 1], [], []>} : vector<80x32xf32>, vector<32x64xf32>, vector<80x64xf32> -> vector<80x64xf32>
    %c0_68 = arith.constant 0 : index
    %c0_69 = arith.constant 0 : index
    %c0_70 = arith.constant 0 : index
    %156 = vector.load %arg15[%c0_68, %c0_69, %c0_70] : memref<2x1x64xf32, #tpu.memory_space<vmem>>, vector<1x1x64xf32>
    %157 = vector.shape_cast %156 : vector<1x1x64xf32> to vector<1x64xf32>
    %158 = vector.broadcast %157 : vector<1x64xf32> to vector<80x64xf32>
    %159 = arith.addf %155, %158 : vector<80x64xf32>
    %160 = arith.mulf %159, %159 : vector<80x64xf32>
    %161 = arith.mulf %159, %160 : vector<80x64xf32>
    %cst_71 = arith.constant 4.471500e-02 : f32
    %162 = vector.broadcast %cst_71 : f32 to vector<80x64xf32>
    %163 = arith.mulf %162, %161 : vector<80x64xf32>
    %164 = arith.addf %159, %163 : vector<80x64xf32>
    %cst_72 = arith.constant 0.797884583 : f32
    %165 = vector.broadcast %cst_72 : f32 to vector<80x64xf32>
    %166 = arith.mulf %165, %164 : vector<80x64xf32>
    %167 = math.tanh %166 : vector<80x64xf32>
    %cst_73 = arith.constant 1.000000e+00 : f32
    %168 = vector.broadcast %cst_73 : f32 to vector<80x64xf32>
    %169 = arith.addf %168, %167 : vector<80x64xf32>
    %cst_74 = arith.constant 5.000000e-01 : f32
    %170 = vector.broadcast %cst_74 : f32 to vector<80x64xf32>
    %171 = arith.mulf %170, %169 : vector<80x64xf32>
    %172 = arith.mulf %159, %171 : vector<80x64xf32>
    %c0_75 = arith.constant 0 : index
    %c0_76 = arith.constant 0 : index
    %c0_77 = arith.constant 0 : index
    %173 = vector.load %arg16[%c0_75, %c0_76, %c0_77] : memref<2x64x32xf32, #tpu.memory_space<vmem>>, vector<1x64x32xf32>
    %174 = vector.shape_cast %173 : vector<1x64x32xf32> to vector<64x32xf32>
    %cst_78 = arith.constant dense<0.000000e+00> : vector<80x32xf32>
    %175 = tpu.matmul %172, %174, %cst_78 {dimension_numbers = #tpu.dot_dimension_numbers<[1], [0], [0], [1], [0, 0, 1, 1], [], []>} : vector<80x64xf32>, vector<64x32xf32>, vector<80x32xf32> -> vector<80x32xf32>
    %c0_79 = arith.constant 0 : index
    %c0_80 = arith.constant 0 : index
    %c0_81 = arith.constant 0 : index
    %176 = vector.load %arg17[%c0_79, %c0_80, %c0_81] : memref<2x1x32xf32, #tpu.memory_space<vmem>>, vector<1x1x32xf32>
    %177 = vector.shape_cast %176 : vector<1x1x32xf32> to vector<1x32xf32>
    %178 = vector.broadcast %177 : vector<1x32xf32> to vector<80x32xf32>
    %179 = arith.addf %175, %178 : vector<80x32xf32>
    %180 = arith.addf %179, %152 : vector<80x32xf32>
    %c0_82 = arith.constant 0 : index
    %c0_83 = arith.constant 0 : index
    %c0_84 = arith.constant 0 : index
    %181 = vector.load %arg18[%c0_82, %c0_83, %c0_84] : memref<2x1x32xf32, #tpu.memory_space<vmem>>, vector<1x1x32xf32>
    %182 = vector.shape_cast %181 : vector<1x1x32xf32> to vector<1x32xf32>
    %c0_85 = arith.constant 0 : index
    %c0_86 = arith.constant 0 : index
    %c0_87 = arith.constant 0 : index
    %183 = vector.load %arg19[%c0_85, %c0_86, %c0_87] : memref<2x1x32xf32, #tpu.memory_space<vmem>>, vector<1x1x32xf32>
    %184 = vector.shape_cast %183 : vector<1x1x32xf32> to vector<1x32xf32>
    %cst_88 = arith.constant dense<0.000000e+00> : vector<80xf32>
    %185 = vector.multi_reduction <add>, %180, %cst_88 [1] : vector<80x32xf32> to vector<80xf32>
    %186 = vector.shape_cast %185 : vector<80xf32> to vector<80x1xf32>
    %cst_89 = arith.constant 3.200000e+01 : f32
    %187 = vector.broadcast %cst_89 : f32 to vector<80x1xf32>
    %188 = arith.divf %186, %187 : vector<80x1xf32>
    %189 = vector.broadcast %188 : vector<80x1xf32> to vector<80x32xf32>
    %190 = arith.subf %180, %189 : vector<80x32xf32>
    %191 = arith.mulf %190, %190 : vector<80x32xf32>
    %cst_90 = arith.constant dense<0.000000e+00> : vector<80xf32>
    %192 = vector.multi_reduction <add>, %191, %cst_90 [1] : vector<80x32xf32> to vector<80xf32>
    %193 = vector.shape_cast %192 : vector<80xf32> to vector<80x1xf32>
    %cst_91 = arith.constant 3.200000e+01 : f32
    %194 = vector.broadcast %cst_91 : f32 to vector<80x1xf32>
    %195 = arith.divf %193, %194 : vector<80x1xf32>
    %196 = vector.broadcast %188 : vector<80x1xf32> to vector<80x32xf32>
    %197 = arith.subf %180, %196 : vector<80x32xf32>
    %cst_92 = arith.constant 9.99999974E-6 : f32
    %198 = vector.broadcast %cst_92 : f32 to vector<80x1xf32>
    %199 = arith.addf %195, %198 : vector<80x1xf32>
    %200 = math.rsqrt %199 : vector<80x1xf32>
    %201 = vector.broadcast %200 : vector<80x1xf32> to vector<80x32xf32>
    %202 = arith.mulf %197, %201 : vector<80x32xf32>
    %203 = vector.broadcast %182 : vector<1x32xf32> to vector<80x32xf32>
    %204 = arith.mulf %202, %203 : vector<80x32xf32>
    %205 = vector.broadcast %184 : vector<1x32xf32> to vector<80x32xf32>
    %206 = arith.addf %204, %205 : vector<80x32xf32>
    %c1 = arith.constant 1 : index
    %c0_93 = arith.constant 0 : index
    %c0_94 = arith.constant 0 : index
    %207 = vector.load %arg8[%c1, %c0_93, %c0_94] : memref<2x32x96xf32, #tpu.memory_space<vmem>>, vector<1x32x96xf32>
    %208 = vector.shape_cast %207 : vector<1x32x96xf32> to vector<32x96xf32>
    %cst_95 = arith.constant dense<0.000000e+00> : vector<80x96xf32>
    %209 = tpu.matmul %206, %208, %cst_95 {dimension_numbers = #tpu.dot_dimension_numbers<[1], [0], [0], [1], [0, 0, 1, 1], [], []>} : vector<80x32xf32>, vector<32x96xf32>, vector<80x96xf32> -> vector<80x96xf32>
    %c1_96 = arith.constant 1 : index
    %c0_97 = arith.constant 0 : index
    %c0_98 = arith.constant 0 : index
    %210 = vector.load %arg9[%c1_96, %c0_97, %c0_98] : memref<2x1x96xf32, #tpu.memory_space<vmem>>, vector<1x1x96xf32>
    %211 = vector.shape_cast %210 : vector<1x1x96xf32> to vector<1x96xf32>
    %212 = vector.broadcast %211 : vector<1x96xf32> to vector<80x96xf32>
    %213 = arith.addf %209, %212 : vector<80x96xf32>
    %214 = vector.extract_strided_slice %213 {offsets = [0, 0], sizes = [80, 8], strides = [1, 1]} : vector<80x96xf32> to vector<80x8xf32>
    %215 = vector.extract_strided_slice %213 {offsets = [0, 32], sizes = [80, 8], strides = [1, 1]} : vector<80x96xf32> to vector<80x8xf32>
    %216 = vector.extract_strided_slice %213 {offsets = [0, 64], sizes = [80, 8], strides = [1, 1]} : vector<80x96xf32> to vector<80x8xf32>
    %cst_99 = arith.constant dense<0.000000e+00> : vector<80x80xf32>
    %217 = tpu.matmul %214, %215, %cst_99 {dimension_numbers = #tpu.dot_dimension_numbers<[1], [1], [0], [0], [0, 0, 1, 0], [], []>} : vector<80x8xf32>, vector<80x8xf32>, vector<80x80xf32> -> vector<80x80xf32>
    %218 = arith.addf %217, %46 : vector<80x80xf32>
    %cst_100 = arith.constant dense<0xFF800000> : vector<80xf32>
    %219 = vector.multi_reduction <maximumf>, %218, %cst_100 [1] : vector<80x80xf32> to vector<80xf32>
    %220 = vector.shape_cast %219 : vector<80xf32> to vector<80x1xf32>
    %221 = vector.broadcast %220 : vector<80x1xf32> to vector<80x80xf32>
    %222 = arith.subf %218, %221 : vector<80x80xf32>
    %223 = math.exp %222 : vector<80x80xf32>
    %cst_101 = arith.constant dense<0.000000e+00> : vector<80xf32>
    %224 = vector.multi_reduction <add>, %223, %cst_101 [1] : vector<80x80xf32> to vector<80xf32>
    %225 = vector.shape_cast %224 : vector<80xf32> to vector<80x1xf32>
    %226 = tpu.reciprocal %225 {approx = true} : vector<80x1xf32> -> vector<80x1xf32>
    %227 = vector.broadcast %226 : vector<80x1xf32> to vector<80x80xf32>
    %228 = arith.mulf %223, %227 : vector<80x80xf32>
    %cst_102 = arith.constant dense<0.000000e+00> : vector<80x8xf32>
    %229 = tpu.matmul %228, %216, %cst_102 {dimension_numbers = #tpu.dot_dimension_numbers<[1], [0], [0], [1], [0, 0, 1, 1], [], []>} : vector<80x80xf32>, vector<80x8xf32>, vector<80x8xf32> -> vector<80x8xf32>
    %230 = vector.extract_strided_slice %213 {offsets = [0, 8], sizes = [80, 8], strides = [1, 1]} : vector<80x96xf32> to vector<80x8xf32>
    %231 = vector.extract_strided_slice %213 {offsets = [0, 40], sizes = [80, 8], strides = [1, 1]} : vector<80x96xf32> to vector<80x8xf32>
    %232 = vector.extract_strided_slice %213 {offsets = [0, 72], sizes = [80, 8], strides = [1, 1]} : vector<80x96xf32> to vector<80x8xf32>
    %cst_103 = arith.constant dense<0.000000e+00> : vector<80x80xf32>
    %233 = tpu.matmul %230, %231, %cst_103 {dimension_numbers = #tpu.dot_dimension_numbers<[1], [1], [0], [0], [0, 0, 1, 0], [], []>} : vector<80x8xf32>, vector<80x8xf32>, vector<80x80xf32> -> vector<80x80xf32>
    %234 = arith.addf %233, %46 : vector<80x80xf32>
    %cst_104 = arith.constant dense<0xFF800000> : vector<80xf32>
    %235 = vector.multi_reduction <maximumf>, %234, %cst_104 [1] : vector<80x80xf32> to vector<80xf32>
    %236 = vector.shape_cast %235 : vector<80xf32> to vector<80x1xf32>
    %237 = vector.broadcast %236 : vector<80x1xf32> to vector<80x80xf32>
    %238 = arith.subf %234, %237 : vector<80x80xf32>
    %239 = math.exp %238 : vector<80x80xf32>
    %cst_105 = arith.constant dense<0.000000e+00> : vector<80xf32>
    %240 = vector.multi_reduction <add>, %239, %cst_105 [1] : vector<80x80xf32> to vector<80xf32>
    %241 = vector.shape_cast %240 : vector<80xf32> to vector<80x1xf32>
    %242 = tpu.reciprocal %241 {approx = true} : vector<80x1xf32> -> vector<80x1xf32>
    %243 = vector.broadcast %242 : vector<80x1xf32> to vector<80x80xf32>
    %244 = arith.mulf %239, %243 : vector<80x80xf32>
    %cst_106 = arith.constant dense<0.000000e+00> : vector<80x8xf32>
    %245 = tpu.matmul %244, %232, %cst_106 {dimension_numbers = #tpu.dot_dimension_numbers<[1], [0], [0], [1], [0, 0, 1, 1], [], []>} : vector<80x80xf32>, vector<80x8xf32>, vector<80x8xf32> -> vector<80x8xf32>
    %246 = vector.extract_strided_slice %213 {offsets = [0, 16], sizes = [80, 8], strides = [1, 1]} : vector<80x96xf32> to vector<80x8xf32>
    %247 = vector.extract_strided_slice %213 {offsets = [0, 48], sizes = [80, 8], strides = [1, 1]} : vector<80x96xf32> to vector<80x8xf32>
    %248 = vector.extract_strided_slice %213 {offsets = [0, 80], sizes = [80, 8], strides = [1, 1]} : vector<80x96xf32> to vector<80x8xf32>
    %cst_107 = arith.constant dense<0.000000e+00> : vector<80x80xf32>
    %249 = tpu.matmul %246, %247, %cst_107 {dimension_numbers = #tpu.dot_dimension_numbers<[1], [1], [0], [0], [0, 0, 1, 0], [], []>} : vector<80x8xf32>, vector<80x8xf32>, vector<80x80xf32> -> vector<80x80xf32>
    %250 = arith.addf %249, %46 : vector<80x80xf32>
    %cst_108 = arith.constant dense<0xFF800000> : vector<80xf32>
    %251 = vector.multi_reduction <maximumf>, %250, %cst_108 [1] : vector<80x80xf32> to vector<80xf32>
    %252 = vector.shape_cast %251 : vector<80xf32> to vector<80x1xf32>
    %253 = vector.broadcast %252 : vector<80x1xf32> to vector<80x80xf32>
    %254 = arith.subf %250, %253 : vector<80x80xf32>
    %255 = math.exp %254 : vector<80x80xf32>
    %cst_109 = arith.constant dense<0.000000e+00> : vector<80xf32>
    %256 = vector.multi_reduction <add>, %255, %cst_109 [1] : vector<80x80xf32> to vector<80xf32>
    %257 = vector.shape_cast %256 : vector<80xf32> to vector<80x1xf32>
    %258 = tpu.reciprocal %257 {approx = true} : vector<80x1xf32> -> vector<80x1xf32>
    %259 = vector.broadcast %258 : vector<80x1xf32> to vector<80x80xf32>
    %260 = arith.mulf %255, %259 : vector<80x80xf32>
    %cst_110 = arith.constant dense<0.000000e+00> : vector<80x8xf32>
    %261 = tpu.matmul %260, %248, %cst_110 {dimension_numbers = #tpu.dot_dimension_numbers<[1], [0], [0], [1], [0, 0, 1, 1], [], []>} : vector<80x80xf32>, vector<80x8xf32>, vector<80x8xf32> -> vector<80x8xf32>
    %262 = vector.extract_strided_slice %213 {offsets = [0, 24], sizes = [80, 8], strides = [1, 1]} : vector<80x96xf32> to vector<80x8xf32>
    %263 = vector.extract_strided_slice %213 {offsets = [0, 56], sizes = [80, 8], strides = [1, 1]} : vector<80x96xf32> to vector<80x8xf32>
    %264 = vector.extract_strided_slice %213 {offsets = [0, 88], sizes = [80, 8], strides = [1, 1]} : vector<80x96xf32> to vector<80x8xf32>
    %cst_111 = arith.constant dense<0.000000e+00> : vector<80x80xf32>
    %265 = tpu.matmul %262, %263, %cst_111 {dimension_numbers = #tpu.dot_dimension_numbers<[1], [1], [0], [0], [0, 0, 1, 0], [], []>} : vector<80x8xf32>, vector<80x8xf32>, vector<80x80xf32> -> vector<80x80xf32>
    %266 = arith.addf %265, %46 : vector<80x80xf32>
    %cst_112 = arith.constant dense<0xFF800000> : vector<80xf32>
    %267 = vector.multi_reduction <maximumf>, %266, %cst_112 [1] : vector<80x80xf32> to vector<80xf32>
    %268 = vector.shape_cast %267 : vector<80xf32> to vector<80x1xf32>
    %269 = vector.broadcast %268 : vector<80x1xf32> to vector<80x80xf32>
    %270 = arith.subf %266, %269 : vector<80x80xf32>
    %271 = math.exp %270 : vector<80x80xf32>
    %cst_113 = arith.constant dense<0.000000e+00> : vector<80xf32>
    %272 = vector.multi_reduction <add>, %271, %cst_113 [1] : vector<80x80xf32> to vector<80xf32>
    %273 = vector.shape_cast %272 : vector<80xf32> to vector<80x1xf32>
    %274 = tpu.reciprocal %273 {approx = true} : vector<80x1xf32> -> vector<80x1xf32>
    %275 = vector.broadcast %274 : vector<80x1xf32> to vector<80x80xf32>
    %276 = arith.mulf %271, %275 : vector<80x80xf32>
    %cst_114 = arith.constant dense<0.000000e+00> : vector<80x8xf32>
    %277 = tpu.matmul %276, %264, %cst_114 {dimension_numbers = #tpu.dot_dimension_numbers<[1], [0], [0], [1], [0, 0, 1, 1], [], []>} : vector<80x80xf32>, vector<80x8xf32>, vector<80x8xf32> -> vector<80x8xf32>
    %278 = tpu.concatenate %229, %245, %261, %277 in 1 : vector<80x8xf32>, vector<80x8xf32>, vector<80x8xf32>, vector<80x8xf32> -> vector<80x32xf32>
    %c1_115 = arith.constant 1 : index
    %c0_116 = arith.constant 0 : index
    %c0_117 = arith.constant 0 : index
    %279 = vector.load %arg10[%c1_115, %c0_116, %c0_117] : memref<2x32x32xf32, #tpu.memory_space<vmem>>, vector<1x32x32xf32>
    %280 = vector.shape_cast %279 : vector<1x32x32xf32> to vector<32x32xf32>
    %cst_118 = arith.constant dense<0.000000e+00> : vector<80x32xf32>
    %281 = tpu.matmul %278, %280, %cst_118 {dimension_numbers = #tpu.dot_dimension_numbers<[1], [0], [0], [1], [0, 0, 1, 1], [], []>} : vector<80x32xf32>, vector<32x32xf32>, vector<80x32xf32> -> vector<80x32xf32>
    %c1_119 = arith.constant 1 : index
    %c0_120 = arith.constant 0 : index
    %c0_121 = arith.constant 0 : index
    %282 = vector.load %arg11[%c1_119, %c0_120, %c0_121] : memref<2x1x32xf32, #tpu.memory_space<vmem>>, vector<1x1x32xf32>
    %283 = vector.shape_cast %282 : vector<1x1x32xf32> to vector<1x32xf32>
    %284 = vector.broadcast %283 : vector<1x32xf32> to vector<80x32xf32>
    %285 = arith.addf %281, %284 : vector<80x32xf32>
    %286 = arith.addf %285, %206 : vector<80x32xf32>
    %c1_122 = arith.constant 1 : index
    %c0_123 = arith.constant 0 : index
    %c0_124 = arith.constant 0 : index
    %287 = vector.load %arg12[%c1_122, %c0_123, %c0_124] : memref<2x1x32xf32, #tpu.memory_space<vmem>>, vector<1x1x32xf32>
    %288 = vector.shape_cast %287 : vector<1x1x32xf32> to vector<1x32xf32>
    %c1_125 = arith.constant 1 : index
    %c0_126 = arith.constant 0 : index
    %c0_127 = arith.constant 0 : index
    %289 = vector.load %arg13[%c1_125, %c0_126, %c0_127] : memref<2x1x32xf32, #tpu.memory_space<vmem>>, vector<1x1x32xf32>
    %290 = vector.shape_cast %289 : vector<1x1x32xf32> to vector<1x32xf32>
    %cst_128 = arith.constant dense<0.000000e+00> : vector<80xf32>
    %291 = vector.multi_reduction <add>, %286, %cst_128 [1] : vector<80x32xf32> to vector<80xf32>
    %292 = vector.shape_cast %291 : vector<80xf32> to vector<80x1xf32>
    %cst_129 = arith.constant 3.200000e+01 : f32
    %293 = vector.broadcast %cst_129 : f32 to vector<80x1xf32>
    %294 = arith.divf %292, %293 : vector<80x1xf32>
    %295 = vector.broadcast %294 : vector<80x1xf32> to vector<80x32xf32>
    %296 = arith.subf %286, %295 : vector<80x32xf32>
    %297 = arith.mulf %296, %296 : vector<80x32xf32>
    %cst_130 = arith.constant dense<0.000000e+00> : vector<80xf32>
    %298 = vector.multi_reduction <add>, %297, %cst_130 [1] : vector<80x32xf32> to vector<80xf32>
    %299 = vector.shape_cast %298 : vector<80xf32> to vector<80x1xf32>
    %cst_131 = arith.constant 3.200000e+01 : f32
    %300 = vector.broadcast %cst_131 : f32 to vector<80x1xf32>
    %301 = arith.divf %299, %300 : vector<80x1xf32>
    %302 = vector.broadcast %294 : vector<80x1xf32> to vector<80x32xf32>
    %303 = arith.subf %286, %302 : vector<80x32xf32>
    %cst_132 = arith.constant 9.99999974E-6 : f32
    %304 = vector.broadcast %cst_132 : f32 to vector<80x1xf32>
    %305 = arith.addf %301, %304 : vector<80x1xf32>
    %306 = math.rsqrt %305 : vector<80x1xf32>
    %307 = vector.broadcast %306 : vector<80x1xf32> to vector<80x32xf32>
    %308 = arith.mulf %303, %307 : vector<80x32xf32>
    %309 = vector.broadcast %288 : vector<1x32xf32> to vector<80x32xf32>
    %310 = arith.mulf %308, %309 : vector<80x32xf32>
    %311 = vector.broadcast %290 : vector<1x32xf32> to vector<80x32xf32>
    %312 = arith.addf %310, %311 : vector<80x32xf32>
    %c1_133 = arith.constant 1 : index
    %c0_134 = arith.constant 0 : index
    %c0_135 = arith.constant 0 : index
    %313 = vector.load %arg14[%c1_133, %c0_134, %c0_135] : memref<2x32x64xf32, #tpu.memory_space<vmem>>, vector<1x32x64xf32>
    %314 = vector.shape_cast %313 : vector<1x32x64xf32> to vector<32x64xf32>
    %cst_136 = arith.constant dense<0.000000e+00> : vector<80x64xf32>
    %315 = tpu.matmul %312, %314, %cst_136 {dimension_numbers = #tpu.dot_dimension_numbers<[1], [0], [0], [1], [0, 0, 1, 1], [], []>} : vector<80x32xf32>, vector<32x64xf32>, vector<80x64xf32> -> vector<80x64xf32>
    %c1_137 = arith.constant 1 : index
    %c0_138 = arith.constant 0 : index
    %c0_139 = arith.constant 0 : index
    %316 = vector.load %arg15[%c1_137, %c0_138, %c0_139] : memref<2x1x64xf32, #tpu.memory_space<vmem>>, vector<1x1x64xf32>
    %317 = vector.shape_cast %316 : vector<1x1x64xf32> to vector<1x64xf32>
    %318 = vector.broadcast %317 : vector<1x64xf32> to vector<80x64xf32>
    %319 = arith.addf %315, %318 : vector<80x64xf32>
    %320 = arith.mulf %319, %319 : vector<80x64xf32>
    %321 = arith.mulf %319, %320 : vector<80x64xf32>
    %cst_140 = arith.constant 4.471500e-02 : f32
    %322 = vector.broadcast %cst_140 : f32 to vector<80x64xf32>
    %323 = arith.mulf %322, %321 : vector<80x64xf32>
    %324 = arith.addf %319, %323 : vector<80x64xf32>
    %cst_141 = arith.constant 0.797884583 : f32
    %325 = vector.broadcast %cst_141 : f32 to vector<80x64xf32>
    %326 = arith.mulf %325, %324 : vector<80x64xf32>
    %327 = math.tanh %326 : vector<80x64xf32>
    %cst_142 = arith.constant 1.000000e+00 : f32
    %328 = vector.broadcast %cst_142 : f32 to vector<80x64xf32>
    %329 = arith.addf %328, %327 : vector<80x64xf32>
    %cst_143 = arith.constant 5.000000e-01 : f32
    %330 = vector.broadcast %cst_143 : f32 to vector<80x64xf32>
    %331 = arith.mulf %330, %329 : vector<80x64xf32>
    %332 = arith.mulf %319, %331 : vector<80x64xf32>
    %c1_144 = arith.constant 1 : index
    %c0_145 = arith.constant 0 : index
    %c0_146 = arith.constant 0 : index
    %333 = vector.load %arg16[%c1_144, %c0_145, %c0_146] : memref<2x64x32xf32, #tpu.memory_space<vmem>>, vector<1x64x32xf32>
    %334 = vector.shape_cast %333 : vector<1x64x32xf32> to vector<64x32xf32>
    %cst_147 = arith.constant dense<0.000000e+00> : vector<80x32xf32>
    %335 = tpu.matmul %332, %334, %cst_147 {dimension_numbers = #tpu.dot_dimension_numbers<[1], [0], [0], [1], [0, 0, 1, 1], [], []>} : vector<80x64xf32>, vector<64x32xf32>, vector<80x32xf32> -> vector<80x32xf32>
    %c1_148 = arith.constant 1 : index
    %c0_149 = arith.constant 0 : index
    %c0_150 = arith.constant 0 : index
    %336 = vector.load %arg17[%c1_148, %c0_149, %c0_150] : memref<2x1x32xf32, #tpu.memory_space<vmem>>, vector<1x1x32xf32>
    %337 = vector.shape_cast %336 : vector<1x1x32xf32> to vector<1x32xf32>
    %338 = vector.broadcast %337 : vector<1x32xf32> to vector<80x32xf32>
    %339 = arith.addf %335, %338 : vector<80x32xf32>
    %340 = arith.addf %339, %312 : vector<80x32xf32>
    %c1_151 = arith.constant 1 : index
    %c0_152 = arith.constant 0 : index
    %c0_153 = arith.constant 0 : index
    %341 = vector.load %arg18[%c1_151, %c0_152, %c0_153] : memref<2x1x32xf32, #tpu.memory_space<vmem>>, vector<1x1x32xf32>
    %342 = vector.shape_cast %341 : vector<1x1x32xf32> to vector<1x32xf32>
    %c1_154 = arith.constant 1 : index
    %c0_155 = arith.constant 0 : index
    %c0_156 = arith.constant 0 : index
    %343 = vector.load %arg19[%c1_154, %c0_155, %c0_156] : memref<2x1x32xf32, #tpu.memory_space<vmem>>, vector<1x1x32xf32>
    %344 = vector.shape_cast %343 : vector<1x1x32xf32> to vector<1x32xf32>
    %cst_157 = arith.constant dense<0.000000e+00> : vector<80xf32>
    %345 = vector.multi_reduction <add>, %340, %cst_157 [1] : vector<80x32xf32> to vector<80xf32>
    %346 = vector.shape_cast %345 : vector<80xf32> to vector<80x1xf32>
    %cst_158 = arith.constant 3.200000e+01 : f32
    %347 = vector.broadcast %cst_158 : f32 to vector<80x1xf32>
    %348 = arith.divf %346, %347 : vector<80x1xf32>
    %349 = vector.broadcast %348 : vector<80x1xf32> to vector<80x32xf32>
    %350 = arith.subf %340, %349 : vector<80x32xf32>
    %351 = arith.mulf %350, %350 : vector<80x32xf32>
    %cst_159 = arith.constant dense<0.000000e+00> : vector<80xf32>
    %352 = vector.multi_reduction <add>, %351, %cst_159 [1] : vector<80x32xf32> to vector<80xf32>
    %353 = vector.shape_cast %352 : vector<80xf32> to vector<80x1xf32>
    %cst_160 = arith.constant 3.200000e+01 : f32
    %354 = vector.broadcast %cst_160 : f32 to vector<80x1xf32>
    %355 = arith.divf %353, %354 : vector<80x1xf32>
    %356 = vector.broadcast %348 : vector<80x1xf32> to vector<80x32xf32>
    %357 = arith.subf %340, %356 : vector<80x32xf32>
    %cst_161 = arith.constant 9.99999974E-6 : f32
    %358 = vector.broadcast %cst_161 : f32 to vector<80x1xf32>
    %359 = arith.addf %355, %358 : vector<80x1xf32>
    %360 = math.rsqrt %359 : vector<80x1xf32>
    %361 = vector.broadcast %360 : vector<80x1xf32> to vector<80x32xf32>
    %362 = arith.mulf %357, %361 : vector<80x32xf32>
    %363 = vector.broadcast %342 : vector<1x32xf32> to vector<80x32xf32>
    %364 = arith.mulf %362, %363 : vector<80x32xf32>
    %365 = vector.broadcast %344 : vector<1x32xf32> to vector<80x32xf32>
    %366 = arith.addf %364, %365 : vector<80x32xf32>
    %367 = vector.extract_strided_slice %366 {offsets = [0, 0], sizes = [1, 32], strides = [1, 1]} : vector<80x32xf32> to vector<1x32xf32>
    %368 = vector.extract_strided_slice %366 {offsets = [16, 0], sizes = [1, 32], strides = [1, 1]} : vector<80x32xf32> to vector<1x32xf32>
    %369 = vector.extract_strided_slice %366 {offsets = [32, 0], sizes = [1, 32], strides = [1, 1]} : vector<80x32xf32> to vector<1x32xf32>
    %370 = vector.extract_strided_slice %366 {offsets = [48, 0], sizes = [1, 32], strides = [1, 1]} : vector<80x32xf32> to vector<1x32xf32>
    %371 = vector.extract_strided_slice %366 {offsets = [64, 0], sizes = [1, 32], strides = [1, 1]} : vector<80x32xf32> to vector<1x32xf32>
    %372 = tpu.concatenate %367, %368, %369, %370, %371 in 0 : vector<1x32xf32>, vector<1x32xf32>, vector<1x32xf32>, vector<1x32xf32>, vector<1x32xf32> -> vector<5x32xf32>
    %c0_162 = arith.constant 0 : index
    %c0_163 = arith.constant 0 : index
    %373 = vector.load %arg20[%c0_162, %c0_163] : memref<32x32xf32, #tpu.memory_space<vmem>>, vector<32x32xf32>
    %cst_164 = arith.constant dense<0.000000e+00> : vector<5x32xf32>
    %374 = tpu.matmul %372, %373, %cst_164 {dimension_numbers = #tpu.dot_dimension_numbers<[1], [0], [0], [1], [0, 0, 1, 1], [], []>} : vector<5x32xf32>, vector<32x32xf32>, vector<5x32xf32> -> vector<5x32xf32>
    %c0_165 = arith.constant 0 : index
    %c0_166 = arith.constant 0 : index
    %375 = vector.load %arg21[%c0_165, %c0_166] : memref<1x32xf32, #tpu.memory_space<vmem>>, vector<1x32xf32>
    %376 = vector.broadcast %375 : vector<1x32xf32> to vector<5x32xf32>
    %377 = arith.addf %374, %376 : vector<5x32xf32>
    %378 = math.tanh %377 : vector<5x32xf32>
    %c0_167 = arith.constant 0 : index
    %c0_168 = arith.constant 0 : index
    %379 = vector.load %arg22[%c0_167, %c0_168] : memref<5x32xf32, #tpu.memory_space<vmem>>, vector<5x32xf32>
    tpu.vector_store %arg22[%c0_167, %c0_168], %378 {strides = array<i32>} : memref<5x32xf32, #tpu.memory_space<vmem>>, vector<5x32xf32>,
    return
  }
}

</mosaic_0001>

<bundles_post_ra>
// kernel: encode_feature.1
= control target key start
LH: loop header
LB: loop body
LE: loop exit
PB: predicated region body
PF: predicated region fallthrough
CT: control target
= control target key end

     0   :  { %s10257_s0 = inlined_call_operand.vmem [shape: s32[80,1], index: 0, kind: input, shape index: {}]   ;;  %s10258_s1 = inlined_call_operand.vmem [shape: f32[1,80], index: 1, kind: input, shape index: {}]   ;;  %s10259_s2 = inlined_call_operand.vmem [shape: s32[80,1], index: 2, kind: input, shape index: {}]   ;;  %s10260_s3 = inlined_call_operand.vmem [shape: s32[1,80], index: 3, kind: input, shape index: {}]   ;;  %s10261_s4 = inlined_call_operand.vmem [shape: f32[50,32], index: 4, kind: input, shape index: {}]   ;;  %s10262_s5 = inlined_call_operand.vmem [shape: f32[80,32], index: 5, kind: input, shape index: {}]   ;;  %s10263_s6 = inlined_call_operand.vmem [shape: f32[1,32], index: 6, kind: input, shape index: {}]   ;;  %s10264_s7 = inlined_call_operand.vmem [shape: f32[1,32], index: 7, kind: input, shape index: {}]   ;;  %s10265_s8 = inlined_call_operand.vmem [shape: f32[2,32,96], index: 8, kind: input, shape index: {}]   ;;  %s10266_s9 = inlined_call_operand.vmem [shape: f32[2,1,96], index: 9, kind: input, shape index: {}]   ;;  %s10267_s10 = inlined_call_operand.vmem [shape: f32[2,32,32], index: 10, kind: input, shape index: {}]   ;;  %s10268_s11 = inlined_call_operand.vmem [shape: f32[2,1,32], index: 11, kind: input, shape index: {}]   ;;  %s10269_s12 = inlined_call_operand.vmem [shape: f32[2,1,32], index: 12, kind: input, shape index: {}]   ;;  %s10270_s13 = inlined_call_operand.vmem [shape: f32[2,1,32], index: 13, kind: input, shape index: {}]   ;;  %s10271_s14 = inlined_call_operand.vmem [shape: f32[2,32,64], index: 14, kind: input, shape index: {}]   ;;  %s10272_s15 = inlined_call_operand.vmem [shape: f32[2,1,64], index: 15, kind: input, shape index: {}]   ;;  %s10273_s16 = inlined_call_operand.vmem [shape: f32[2,64,32], index: 16, kind: input, shape index: {}]   ;;  %s10274_s17 = inlined_call_operand.vmem [shape: f32[2,1,32], index: 17, kind: input, shape index: {}]   ;;  %s10275_s18 = inlined_call_operand.vmem [shape: f32[2,1,32], index: 18, kind: input, shape index: {}]   ;;  %s10276_s19 = inlined_call_operand.vmem [shape: f32[2,1,32], index: 19, kind: input, shape index: {}]   ;;  %s10277_s20 = inlined_call_operand.vmem [shape: f32[32,32], index: 20, kind: input, shape index: {}]   ;;  %s10278_s21 = inlined_call_operand.vmem [shape: f32[1,32], index: 21, kind: input, shape index: {}]   ;;  %s10279_s22 = inlined_call_operand.hbm [shape: f32[5,32], index: 22, kind: output, shape index: {}]  }
   0x1   :  { %10354 = sst [smem:[#allocation39_spill]] %s10257_s0 }
   0x2   :  { %10355 = sst [smem:[#allocation40_spill]] %s10258_s1 }
   0x3   :  { %10356 = sst [smem:[#allocation41_spill]] %s10259_s2 }
   0x4   :  { %10357 = sst [smem:[#allocation42_spill]] %s10260_s3 }
   0x5   :  { %10358 = sst [smem:[#allocation43_spill]] %s10261_s4 }
   0x6   :  { %10359 = sst [smem:[#allocation44_spill]] %s10262_s5 }
   0x7   :  { %10360 = sst [smem:[#allocation45_spill]] %s10263_s6 }
   0x8   :  { %s10361_s29 = sld [smem:[#allocation39_spill]]  ;;  %v10284_v2 = vmov 0   ;;  %vm192_vm0 = vcmask 1041408  }
   0x9   :  { %5870 = vset.pattern.permute.xlu1 %v10284_v2  ;;  %5869 = vset.pattern.permute.xlu0 %v10284_v2  ;;  %s10362_s24 = sld [smem:[#allocation43_spill]] }
   0xa   :  { %5871 = vset.pattern.permute.xlu2 %v10284_v2 }
   0xe   :  { %v74_v0 = vld [vmem:[%s10361_s29 + $0x10] sm:$0xff]  ;;  %v72_v1 = vld [vmem:[%s10361_s29] sm:$0xff]  ;;  %v75_v6 = vld [vmem:[%s10361_s29 + $0x18] sm:$0xff] }
   0xf   :  { %91 = vperm.xlu1 %5870, %v74_v0   ;;  %85 = vperm.xlu0 %5869, %v72_v1   ;;  %v76_v3 = vld [vmem:[%s10361_s29 + $0x20] sm:$0xff]  ;;  %v150_v4 = vld [vmem:[%s10362_s24 + $0x30] sm:$0x3]  ;;  %v149_v5 = vld [vmem:[%s10362_s24 + $0x28] sm:$0xff] }
  0x10   :  { %97 = vperm.xlu2 %5871, %v76_v3   ;;  %5474 = vmatpush.msk.msra.mxu0 %vm192_vm0, %v150_v4  ;;  %v73_v7 = vld [vmem:[%s10361_s29 + $0x8] sm:$0xff]  ;;  %v148_v8 = vld [vmem:[%s10362_s24 + $0x20] sm:$0xff]  ;;  %v147_v9 = vld [vmem:[%s10362_s24 + $0x18] sm:$0xff] }
  0x11   :  { %v77_v10 = vld [vmem:[%s10361_s29 + $0x28] sm:$0xff]  ;;  %v146_v11 = vld [vmem:[%s10362_s24 + $0x10] sm:$0xff] }
  0x12   :  { %206 = vmatpush.msra.mxu0 %v149_v5  ;;  %v145_v12 = vld [vmem:[%s10362_s24 + $0x8] sm:$0xff] }
  0x14   :  { %207 = vmatpush.msra.mxu0 %v148_v8 }
  0x16   :  { %208 = vmatpush.msra.mxu0 %v147_v9 }
  0x17   :  { %94 = vperm.xlu1 %5870, %v75_v6   ;;  %88 = vperm.xlu0 %5869, %v73_v7  }
  0x18   :  { %100 = vperm.xlu2 %5871, %v77_v10  }
  0x19   :  { %27 = vsyncpa [#allocation3], 0  ;;  %209 = vmatpush.msra.mxu0 %v146_v11  ;;  %v79_v13 = vld [vmem:[%s10361_s29 + $0x38] sm:$0xff]  ;;  %v78_v14 = vld [vmem:[%s10361_s29 + $0x30] sm:$0xff]  ;;  %v82_v20 = vlaneseq  ;;  %vm161_vm2 = vcmask 408576   ;;  %v6573_v24 = vmov 0.0  }
  0x1a   :  { %v80_v15 = vld [vmem:[%s10361_s29 + $0x40] sm:$0xff]  ;;  %v81_v16 = vld [vmem:[%s10361_s29 + $0x48] sm:$0xff]  ;;  %s10363_s6 = sld [smem:[#allocation44_spill]]  ;;  %vm245_vm12 = vcmask 261120   ;;  %s6575_s27 = smov 96  }
  0x1b   :  { %210 = vmatpush.msra.mxu0 %v145_v12  ;;  %v144_v17 = vld [vmem:[%s10362_s24] sm:$0xff]  ;;  %v83_v22 = vand.u32 127, %v82_v20  ;;  %s10365_s24 = sld [smem:[#allocation45_spill]]  ;;  %s10311_s25 = smov 64  }
  0x1c   :  { %s10376_s28 = sld [smem:[#allocation41_spill]]  ;;  %s6577_s2 = smov 88  }
  0x1d   :  { %211 = vmatpush.msra.mxu0 %v144_v17  ;;  %s6579_s4 = smov 80   ;;  %s6581_s26 = smov 72  }
  0x1e   :  { %s10388_s0 = sld [smem:[#allocation40_spill]]  ;;  %s10313_s29 = smov 56  }
  0x1f   :  { %106 = vperm.xlu1 %5870, %v79_v13   ;;  %103 = vperm.xlu0 %5869, %v78_v14   ;;  %s10390_s5 = sld [smem:[#allocation42_spill]]  ;;  %s10307_s3 = smov 40  }
  0x20   :  { %109 = vperm.xlu2 %5871, %v80_v15   ;;  %v156_v46 = vld [vmem:[%s10363_s6 + $0x28] sm:$0xff]  ;;  %v151_v50 = vld [vmem:[%s10363_s6] sm:$0xff]  ;;  %v157_v51 = vld [vmem:[%s10363_s6 + $0x30] sm:$0xff]  ;;  %v6574_v15 = vmov 32.0   ;;  %s6587_s30 = smov 8   ;;  %s10317_s23 = smov 24  }
  0x21   :  { %v153_v57 = vld [vmem:[%s10363_s6 + $0x10] sm:$0xff]  ;;  %v158_v58 = vld [vmem:[%s10363_s6 + $0x38] sm:$0xff]  ;;  %v152_v0 = vld [vmem:[%s10363_s6 + $0x8] sm:$0xff]  ;;  %6092 = vrcp.f32 %v6574_v15 }
  0x22   :  { %v159_v1 = vld [vmem:[%s10363_s6 + $0x40] sm:$0xff]  ;;  %v154_v8 = vld [vmem:[%s10363_s6 + $0x18] sm:$0xff]  ;;  %v160_v9 = vld [vmem:[%s10363_s6 + $0x48] sm:$0xff] }
  0x27   :  { %112 = vperm.xlu0 %5869, %v81_v16   ;;  %v6093_v16 = vpop.eup %6092 }
  0x28   :  { %v277_v17 = vmul.f32 32.0, %v6093_v16  ;;  %vm281_vm13 = vweird.f32 %v6093_v16 }
  0x6a   :  { %v98_v18 = vpop.permute.xlu2 %97 }
  0x6b   :  { %vm118_vm8 = vcmp.eq.s32.totalorder %v98_v18, %v83_v22  ;;  %v278_v18 = vsub.f32 1.0, %v277_v17 }
  0x6c   :  { %v5468_v36 = vsel %vm118_vm8, 1.0, %v6573_v24 }
  0x72   :  { %v101_v19 = vpop.permute.xlu2 %100 }
  0x73   :  { %vm119_vm9 = vcmp.eq.s32.totalorder %v101_v19, %v83_v22  ;;  %v279_v19 = vmul.f32 %v6093_v16, %v278_v18 }
  0x74   :  { %v5469_v37 = vsel %vm119_vm9, 1.0, %v6573_v24 }
  0x75   :  { %v280_v20 = vadd.f32 %v6093_v16, %v279_v19 }
  0x7a   :  { %v110_v21 = vpop.permute.xlu2 %109 }
  0x7b   :  { %vm122_vm1 = vcmp.eq.s32.totalorder %v110_v21, %v83_v22  ;;  %v6813_v21 = vsel %vm281_vm13, %v6093_v16, %v280_v20 }
  0x7c   :  { %v5472_v26 = vsel %vm122_vm1, 1.0, %v6573_v24  ;;  %10364 = vst [vmem:[#allocation5_spill] sm:$0xff] %v6813_v21 }
  0x81   :  { %v86_v23 = vpop.permute.xlu0 %85  ;;  %v92_v29 = vpop.permute.xlu1 %91 }
  0x82   :  { %vm114_vm3 = vcmp.eq.s32.totalorder %v86_v23, %v83_v22  ;;  %vm116_vm5 = vcmp.eq.s32.totalorder %v92_v29, %v83_v22 }
  0x83   :  { %v5464_v25 = vsel %vm114_vm3, 1.0, %v6573_v24  ;;  %v5466_v31 = vsel %vm116_vm5, 1.0, %v6573_v24 }
  0x84   :  { %5475 = vmatmul.msk.f32.vlgmr.msra.gmra.mxu0 %vm161_vm2, %v5464_v25 }
  0x89   :  { %v89_v27 = vpop.permute.xlu0 %88  ;;  %v95_v32 = vpop.permute.xlu1 %94 }
  0x8a   :  { %vm115_vm4 = vcmp.eq.s32.totalorder %v89_v27, %v83_v22  ;;  %vm117_vm6 = vcmp.eq.s32.totalorder %v95_v32, %v83_v22  ;;  %v155_v27 = vld [vmem:[%s10363_s6 + $0x20] sm:$0xff]  ;;  %s6578_s6 = smov 120  }
  0x8b   :  { %v5465_v28 = vsel %vm115_vm4, 1.0, %v6573_v24  ;;  %v5467_v34 = vsel %vm117_vm6, 1.0, %v6573_v24 }
  0x8c   :  { %5476 = vmatmul.msk.f32.gmra.mxu0 %vm161_vm2, %v5465_v28 }
  0x91   :  { %v104_v30 = vpop.permute.xlu0 %103  ;;  %v107_v39 = vpop.permute.xlu1 %106 }
  0x92   :  { %vm120_vm10 = vcmp.eq.s32.totalorder %v104_v30, %v83_v22  ;;  %vm121_vm11 = vcmp.eq.s32.totalorder %v107_v39, %v83_v22 }
  0x93   :  { %v5470_v38 = vsel %vm120_vm10, 1.0, %v6573_v24  ;;  %v5471_v40 = vsel %vm121_vm11, 1.0, %v6573_v24 }
  0x94   :  { %5477 = vmatmul.msk.f32.gmra.mxu0 %vm161_vm2, %v5466_v31 }
  0x99   :  { %v113_v33 = vpop.permute.xlu0 %112 }
  0x9a   :  { %vm123_vm7 = vcmp.eq.s32.totalorder %v113_v33, %v83_v22 }
  0x9b   :  { %v5473_v35 = vsel %vm123_vm7, 1.0, %v6573_v24 }
  0x9c   :  { %5478 = vmatmul.msk.f32.gmra.mxu0 %vm161_vm2, %v5467_v34 }
  0xa4   :  { %5479 = vmatmul.msk.f32.gmra.mxu0 %vm161_vm2, %v5468_v36 }
  0xac   :  { %5480 = vmatmul.msk.f32.gmra.mxu0 %vm161_vm2, %v5469_v37 }
  0xb4   :  { %5481 = vmatmul.msk.f32.gmra.mxu0 %vm161_vm2, %v5470_v38 }
  0xbc   :  { %5482 = vmatmul.msk.f32.gmra.mxu0 %vm161_vm2, %v5471_v40 }
  0xc4   :  { %5483 = vmatmul.msk.f32.gmra.mxu0 %vm161_vm2, %v5472_v26 }
  0xcc   :  { %5484 = vmatmul.msk.f32.gmra.mxu0 %vm161_vm2, %v5473_v35 }
 0x101   :  { %v213_v41 = vpop.f32.mrf.mxu0 }
 0x102   :  { %v214_v52 = vadd.f32 %v213_v41, %v151_v50 }
 0x104   :  { %v246_v55 = vsel %vm245_vm12, %v214_v52, 0.0 }
 0x109   :  { %v216_v42 = vpop.f32.mrf.mxu0 }
 0x10a   :  { %v6797_v3 = vadd.f32 %v216_v42, %v152_v0 }
 0x10c   :  { %v249_v6 = vsel %vm245_vm12, %v6797_v3, 0.0 }
 0x111   :  { %v219_v43 = vpop.f32.mrf.mxu0 }
 0x112   :  { %v220_v59 = vadd.f32 %v219_v43, %v153_v57 }
 0x114   :  { %v252_v62 = vsel %vm245_vm12, %v220_v59, 0.0 }
 0x119   :  { %v222_v44 = vpop.f32.mrf.mxu0 }
 0x11a   :  { %v6808_v10 = vadd.f32 %v222_v44, %v154_v8  ;;  %v578_v8 = vld [vmem:[%s10265_s8 + $0x10] sm:$0xff] }
 0x11c   :  { %v255_v13 = vsel %vm245_vm12, %v6808_v10, 0.0 }
 0x121   :  { %v225_v45 = vpop.f32.mrf.mxu0 }
 0x122   :  { %v6825_v31 = vadd.f32 %v225_v45, %v155_v27 }
 0x124   :  { %v258_v37 = vsel %vm245_vm12, %v6825_v31, 0.0 }
 0x129   :  { %v228_v47 = vpop.f32.mrf.mxu0 }
 0x12a   :  { %v229_v48 = vadd.f32 %v228_v47, %v156_v46 }
 0x12c   :  { %v261_v49 = vsel %vm245_vm12, %v229_v48, 0.0 }
 0x12d   :  { %262 = vadd.xlane.f32.xlu1 %v261_v49 }
 0x131   :  { %v231_v53 = vpop.f32.mrf.mxu0 }
 0x132   :  { %v232_v54 = vadd.f32 %v231_v53, %v157_v51 }
 0x134   :  { %v264_v56 = vsel %vm245_vm12, %v232_v54, 0.0 }
 0x135   :  { %247 = vadd.xlane.f32.xlu1 %v246_v55  ;;  %265 = vadd.xlane.f32.xlu2 %v264_v56 }
 0x139   :  { %v234_v60 = vpop.f32.mrf.mxu0 }
 0x13a   :  { %v235_v61 = vadd.f32 %v234_v60, %v158_v58 }
 0x13c   :  { %v267_v63 = vsel %vm245_vm12, %v235_v61, 0.0 }
 0x13d   :  { %253 = vadd.xlane.f32.xlu1 %v252_v62  ;;  %268 = vadd.xlane.f32.xlu0 %v267_v63 }
 0x141   :  { %v237_v4 = vpop.f32.mrf.mxu0 }
 0x142   :  { %v238_v5 = vadd.f32 %v237_v4, %v159_v1 }
 0x144   :  { %v270_v7 = vsel %vm245_vm12, %v238_v5, 0.0 }
 0x145   :  { %250 = vadd.xlane.f32.xlu0 %v249_v6  ;;  %271 = vadd.xlane.f32.xlu2 %v270_v7  ;;  %v579_v7 = vld [vmem:[%s10265_s8 + $0x18] sm:$0xff] }
 0x146   :  { %5834 = vmatpush.msra.mxu3 %v579_v7  ;;  %626 = vmatpush.msra.mxu1 %v579_v7 }
 0x148   :  { %5835 = vmatpush.msra.mxu3 %v578_v8  ;;  %627 = vmatpush.msra.mxu1 %v578_v8 }
 0x149   :  { %v240_v11 = vpop.f32.mrf.mxu0 }
 0x14a   :  { %v241_v12 = vadd.f32 %v240_v11, %v160_v9  ;;  %v577_v9 = vld [vmem:[%s10265_s8 + $0x8] sm:$0xff] }
 0x14b   :  { %5836 = vmatpush.msra.mxu3 %v577_v9  ;;  %628 = vmatpush.msra.mxu1 %v577_v9 }
 0x14c   :  { %v273_v14 = vsel %vm245_vm12, %v241_v12, 0.0 }
 0x14d   :  { %256 = vadd.xlane.f32.xlu0 %v255_v13  ;;  %274 = vadd.xlane.f32.xlu2 %v273_v14 }
 0x1a0   :  { %v263_v22 = vpop.xlane.xlu1 %262 }
 0x1a1   :  { %v288_v23 = vmul.f32 %v6813_v21, %v263_v22 }
 0x1a3   :  { %v6816_v24 = vsub.f32 %v229_v48, %v288_v23 }
 0x1a5   :  { %v308_v25 = vmul.f32 %v6816_v24, %v6816_v24 }
 0x1a7   :  { %v328_v26 = vsel %vm245_vm12, %v308_v25, 0.0 }
 0x1a8   :  { %v248_v28 = vpop.xlane.xlu1 %247  ;;  %v266_v29 = vpop.xlane.xlu2 %265  ;;  %329 = vadd.xlane.f32.xlu2 %v328_v26 }
 0x1a9   :  { %v289_v30 = vmul.f32 %v6813_v21, %v266_v29  ;;  %v283_v32 = vmul.f32 %v6813_v21, %v248_v28 }
 0x1ab   :  { %v6828_v33 = vsub.f32 %v232_v54, %v289_v30  ;;  %v6832_v35 = vsub.f32 %v214_v52, %v283_v32 }
 0x1ad   :  { %v309_v34 = vmul.f32 %v6828_v33, %v6828_v33  ;;  %v303_v43 = vmul.f32 %v6832_v35, %v6832_v35 }
 0x1af   :  { %v331_v36 = vsel %vm245_vm12, %v309_v34, 0.0  ;;  %v313_v46 = vsel %vm245_vm12, %v303_v43, 0.0 }
 0x1b0   :  { %v254_v38 = vpop.xlane.xlu1 %253  ;;  %332 = vadd.xlane.f32.xlu1 %v331_v36  ;;  %259 = vadd.xlane.f32.xlu2 %v258_v37  ;;  %v269_v39 = vpop.xlane.xlu0 %268 }
 0x1b1   :  { %v290_v40 = vmul.f32 %v6813_v21, %v269_v39  ;;  %v285_v41 = vmul.f32 %v6813_v21, %v254_v38 }
 0x1b3   :  { %v6839_v42 = vsub.f32 %v235_v61, %v290_v40  ;;  %v6845_v45 = vsub.f32 %v220_v59, %v285_v41  ;;  %v6904_v40 = vld [vmem:[%s10365_s24] ss:$0 sm:$0xff]  ;;  %s10309_s24 = smov 48  }
 0x1b5   :  { %v310_v44 = vmul.f32 %v6839_v42, %v6839_v42  ;;  %v305_v53 = vmul.f32 %v6845_v45, %v6845_v45 }
 0x1b7   :  { %v334_v47 = vsel %vm245_vm12, %v310_v44, 0.0  ;;  %v319_v57 = vsel %vm245_vm12, %v305_v53, 0.0 }
 0x1b8   :  { %v272_v48 = vpop.xlane.xlu2 %271  ;;  %314 = vadd.xlane.f32.xlu2 %v313_v46  ;;  %335 = vadd.xlane.f32.xlu0 %v334_v47  ;;  %v251_v49 = vpop.xlane.xlu0 %250  ;;  %v6910_v46 = vld [vmem:[%s10264_s7] ss:$0 sm:$0xff]  ;;  %s6582_s7 = smov 104  }
 0x1b9   :  { %v291_v50 = vmul.f32 %v6813_v21, %v272_v48  ;;  %v284_v52 = vmul.f32 %v6813_v21, %v251_v49 }
 0x1bb   :  { %v6850_v51 = vsub.f32 %v238_v5, %v291_v50  ;;  %v6858_v55 = vsub.f32 %v6797_v3, %v284_v52 }
 0x1bd   :  { %v311_v54 = vmul.f32 %v6850_v51, %v6850_v51  ;;  %v304_v63 = vmul.f32 %v6858_v55, %v6858_v55 }
 0x1bf   :  { %v337_v56 = vsel %vm245_vm12, %v311_v54, 0.0  ;;  %v316_v4 = vsel %vm245_vm12, %v304_v63, 0.0 }
 0x1c0   :  { %338 = vadd.xlane.f32.xlu1 %v337_v56  ;;  %320 = vadd.xlane.f32.xlu2 %v319_v57  ;;  %v275_v58 = vpop.xlane.xlu2 %274  ;;  %v257_v59 = vpop.xlane.xlu0 %256 }
 0x1c1   :  { %v292_v60 = vmul.f32 %v6813_v21, %v275_v58  ;;  %v286_v62 = vmul.f32 %v6813_v21, %v257_v59 }
 0x1c3   :  { %v6863_v61 = vsub.f32 %v241_v12, %v292_v60  ;;  %v6871_v1 = vsub.f32 %v6808_v10, %v286_v62  ;;  %v576_v10 = vld [vmem:[%s10265_s8] sm:$0xff] }
 0x1c4   :  { %5837 = vmatpush.msra.mxu3 %v576_v10  ;;  %629 = vmatpush.msra.mxu1 %v576_v10 }
 0x1c5   :  { %v312_v0 = vmul.f32 %v6863_v61, %v6863_v61  ;;  %v306_v5 = vmul.f32 %v6871_v1, %v6871_v1 }
 0x1c7   :  { %v340_v3 = vsel %vm245_vm12, %v312_v0, 0.0  ;;  %v322_v6 = vsel %vm245_vm12, %v306_v5, 0.0 }
 0x1c8   :  { %341 = vadd.xlane.f32.xlu0 %v340_v3  ;;  %317 = vadd.xlane.f32.xlu1 %v316_v4 }
 0x1d0   :  { %323 = vadd.xlane.f32.xlu0 %v322_v6 }
 0x21b   :  { %v330_v11 = vpop.xlane.xlu2 %329 }
 0x21c   :  { %v348_v12 = vmul.f32 %v330_v11, %v6813_v21 }
 0x21e   :  { %v358_v13 = vadd.f32 1e-05, %v348_v12 }
 0x220   :  { %6094 = vrsqrt.f32 %v358_v13  ;;  %vm419_vm15 = vweird.f32 %v358_v13 }
 0x223   :  { %v333_v14 = vpop.xlane.xlu1 %332  ;;  %v260_v15 = vpop.xlane.xlu2 %259 }
 0x224   :  { %v349_v16 = vmul.f32 %v333_v14, %v6813_v21  ;;  %v287_v17 = vmul.f32 %v6813_v21, %v260_v15 }
 0x226   :  { %v6095_v18 = vpop.eup %6094  ;;  %v359_v19 = vadd.f32 1e-05, %v349_v16  ;;  %v6894_v20 = vsub.f32 %v6825_v31, %v287_v17 }
 0x227   :  { %v414_v22 = vmul.f32 %v6095_v18, %v358_v13  ;;  %vm420_vm14 = vweird.f32 %v6095_v18 }
 0x228   :  { %6096 = vrsqrt.f32 %v359_v19  ;;  %v307_v23 = vmul.f32 %v6894_v20, %v6894_v20  ;;  %vm421_vm1 = vmor %vm419_vm15, %vm420_vm14  ;;  %vm429_vm3 = vweird.f32 %v359_v19 }
 0x229   :  { %v415_v25 = vmul.f32 %v6095_v18, %v414_v22 }
 0x22a   :  { %v325_v26 = vsel %vm245_vm12, %v307_v23, 0.0 }
 0x22b   :  { %v416_v27 = vmul.f32 0.5, %v415_v25  ;;  %v315_v28 = vpop.xlane.xlu2 %314  ;;  %326 = vadd.xlane.f32.xlu1 %v325_v26  ;;  %v336_v29 = vpop.xlane.xlu0 %335 }
 0x22c   :  { %v343_v30 = vmul.f32 %v315_v28, %v6813_v21  ;;  %v350_v32 = vmul.f32 %v336_v29, %v6813_v21 }
 0x22d   :  { %v417_v34 = vsub.f32 1.5, %v416_v27 }
 0x22e   :  { %v6097_v31 = vpop.eup %6096  ;;  %v353_v36 = vadd.f32 1e-05, %v343_v30  ;;  %v360_v37 = vadd.f32 1e-05, %v350_v32 }
 0x22f   :  { %v418_v38 = vmul.f32 %v6095_v18, %v417_v34  ;;  %v424_v39 = vmul.f32 %v6097_v31, %v359_v19  ;;  %vm430_vm2 = vweird.f32 %v6097_v31 }
 0x230   :  { %6098 = vrsqrt.f32 %v353_v36  ;;  %vm431_vm4 = vmor %vm429_vm3, %vm430_vm2  ;;  %vm369_vm7 = vweird.f32 %v353_v36  ;;  %vm439_vm9 = vweird.f32 %v360_v37 }
 0x231   :  { %v425_v41 = vmul.f32 %v6097_v31, %v424_v39  ;;  %6100 = vrsqrt.f32 %v360_v37  ;;  %v422_v43 = vsel %vm421_vm1, %v6095_v18, %v418_v38 }
 0x232   :  { %v468_v44 = vmul.f32 %v422_v43, %v6816_v24 }
 0x233   :  { %v426_v47 = vmul.f32 0.5, %v425_v41  ;;  %v339_v48 = vpop.xlane.xlu1 %338  ;;  %v321_v49 = vpop.xlane.xlu2 %320 }
 0x234   :  { %v351_v50 = vmul.f32 %v339_v48, %v6813_v21  ;;  %v345_v52 = vmul.f32 %v321_v49, %v6813_v21  ;;  %v481_v53 = vmul.f32 %v6904_v40, %v468_v44 }
 0x235   :  { %v427_v54 = vsub.f32 1.5, %v426_v47 }
 0x236   :  { %v6099_v56 = vpop.eup %6098  ;;  %v6915_v57 = vadd.f32 1e-05, %v351_v50  ;;  %v6917_v24 = vadd.f32 1e-05, %v345_v52  ;;  %v6920_v58 = vadd.f32 %v6910_v46, %v481_v53 }
 0x237   :  { %v6101_v59 = vpop.eup %6100  ;;  %v428_v60 = vmul.f32 %v6097_v31, %v427_v54  ;;  %v364_v62 = vmul.f32 %v6099_v56, %v353_v36  ;;  %vm370_vm5 = vweird.f32 %v6099_v56 }
 0x238   :  { %10366 = vst [vmem:[#allocation6_spill] sm:$0xff] %v6920_v58  ;;  %v434_v63 = vmul.f32 %v6101_v59, %v360_v37  ;;  %6102 = vrsqrt.f32 %v6915_v57  ;;  %5490 = vmatmul.msk.f32.vlgmr.msra.gmra.mxu3 %vm245_vm12, %v6920_v58  ;;  %vm440_vm6 = vweird.f32 %v6101_v59  ;;  %vm371_vm8 = vmor %vm369_vm7, %vm370_vm5  ;;  %vm449_vm13 = vweird.f32 %v6915_v57 }
 0x239   :  { %v365_v0 = vmul.f32 %v6099_v56, %v364_v62  ;;  %6104 = vrsqrt.f32 %v6917_v24  ;;  %v432_v3 = vsel %vm431_vm4, %v6097_v31, %v428_v60  ;;  %vm441_vm10 = vmor %vm439_vm9, %vm440_vm6  ;;  %vm389_vm6 = vweird.f32 %v6917_v24 }
 0x23a   :  { %v435_v4 = vmul.f32 %v6101_v59, %v434_v63  ;;  %v469_v5 = vmul.f32 %v432_v3, %v6828_v33 }
 0x23b   :  { %v366_v6 = vmul.f32 0.5, %v365_v0  ;;  %v318_v7 = vpop.xlane.xlu1 %317  ;;  %v342_v8 = vpop.xlane.xlu0 %341 }
 0x23c   :  { %v436_v9 = vmul.f32 0.5, %v435_v4  ;;  %v344_v10 = vmul.f32 %v318_v7, %v6813_v21  ;;  %v352_v11 = vmul.f32 %v342_v8, %v6813_v21  ;;  %v482_v12 = vmul.f32 %v6904_v40, %v469_v5 }
 0x23d   :  { %v367_v13 = vsub.f32 1.5, %v366_v6 }
 0x23e   :  { %v6103_v14 = vpop.eup %6102  ;;  %v437_v15 = vsub.f32 1.5, %v436_v9  ;;  %v354_v16 = vadd.f32 1e-05, %v344_v10  ;;  %v6930_v17 = vadd.f32 1e-05, %v352_v11  ;;  %v6933_v33 = vadd.f32 %v6910_v46, %v482_v12 }
 0x23f   :  { %v6935_v18 = vpop.eup %6104  ;;  %v368_v19 = vmul.f32 %v6099_v56, %v367_v13  ;;  %v444_v22 = vmul.f32 %v6103_v14, %v6915_v57  ;;  %vm450_vm11 = vweird.f32 %v6103_v14 }
 0x240   :  { %10367 = vst [vmem:[#allocation7_spill] sm:$0xff] %v6933_v33  ;;  %v438_v23 = vmul.f32 %v6101_v59, %v437_v15  ;;  %v384_v25 = vmul.f32 %v6935_v18, %v6917_v24  ;;  %6106 = vrsqrt.f32 %v354_v16  ;;  %5491 = vmatmul.msk.f32.gmra.mxu3 %vm245_vm12, %v6933_v33  ;;  %vm451_vm14 = vmor %vm449_vm13, %vm450_vm11  ;;  %vm390_vm1 = vweird.f32 %v6935_v18 }
 0x241   :  { %v445_v26 = vmul.f32 %v6103_v14, %v444_v22  ;;  %6108 = vrsqrt.f32 %v6930_v17  ;;  %v372_v27 = vsel %vm371_vm8, %v6099_v56, %v368_v19  ;;  %vm379_vm2 = vweird.f32 %v354_v16  ;;  %vm391_vm8 = vmor %vm389_vm6, %vm390_vm1 }
 0x242   :  { %v442_v28 = vsel %vm441_vm10, %v6101_v59, %v438_v23  ;;  %v385_v30 = vmul.f32 %v6935_v18, %v384_v25  ;;  %v463_v34 = vmul.f32 %v372_v27, %v6832_v35  ;;  %vm459_vm5 = vweird.f32 %v6930_v17 }
 0x243   :  { %v446_v29 = vmul.f32 0.5, %v445_v26  ;;  %v324_v32 = vpop.xlane.xlu0 %323  ;;  %v470_v31 = vmul.f32 %v442_v28, %v6839_v42  ;;  %vm691_vm1 = vcmask 64512   ;;  %vm779_vm6 = vcmask 654336  }
 0x244   :  { %v346_v36 = vmul.f32 %v324_v32, %v6813_v21  ;;  %v476_v38 = vmul.f32 %v6904_v40, %v463_v34  ;;  %v386_v48 = vmul.f32 0.5, %v385_v30 }
 0x245   :  { %v447_v37 = vsub.f32 1.5, %v446_v29  ;;  %v483_v39 = vmul.f32 %v6904_v40, %v470_v31 }
 0x246   :  { %v6107_v41 = vpop.eup %6106  ;;  %v356_v43 = vadd.f32 1e-05, %v346_v36  ;;  %v6952_v35 = vadd.f32 %v6910_v46, %v476_v38  ;;  %v387_v57 = vsub.f32 1.5, %v386_v48 }
 0x247   :  { %v6109_v44 = vpop.eup %6108  ;;  %v448_v47 = vmul.f32 %v6103_v14, %v447_v37  ;;  %v374_v49 = vmul.f32 %v6107_v41, %v354_v16  ;;  %v6958_v52 = vadd.f32 %v6910_v46, %v483_v39  ;;  %vm380_vm15 = vweird.f32 %v6107_v41 }
 0x248   :  { %10368 = vst [vmem:[#allocation8_spill] sm:$0xff] %v6952_v35  ;;  %v454_v42 = vmul.f32 %v6109_v44, %v6930_v17  ;;  %6110 = vrsqrt.f32 %v356_v43  ;;  %5485 = vmatmul.msk.f32.vlgmr.msra.gmra.mxu1 %vm245_vm12, %v6952_v35  ;;  %vm460_vm3 = vweird.f32 %v6109_v44  ;;  %v388_v4 = vmul.f32 %v6935_v18, %v387_v57  ;;  %vm381_vm4 = vmor %vm379_vm2, %vm380_vm15 }
 0x249   :  { %v375_v50 = vmul.f32 %v6107_v41, %v374_v49  ;;  %10369 = vst [vmem:[#allocation9_spill] sm:$0xff] %v6958_v52  ;;  %v452_v53 = vsel %vm451_vm14, %v6103_v14, %v448_v47  ;;  %5492 = vmatmul.msk.f32.gmra.mxu3 %vm245_vm12, %v6958_v52  ;;  %vm461_vm7 = vmor %vm459_vm5, %vm460_vm3  ;;  %vm399_vm10 = vweird.f32 %v356_v43 }
 0x24a   :  { %v455_v54 = vmul.f32 %v6109_v44, %v454_v42  ;;  %v471_v56 = vmul.f32 %v452_v53, %v6850_v51  ;;  %v392_v14 = vsel %vm391_vm8, %v6935_v18, %v388_v4 }
 0x24b   :  { %v376_v59 = vmul.f32 0.5, %v375_v50  ;;  %v465_v19 = vmul.f32 %v392_v14, %v6845_v45 }
 0x24c   :  { %v456_v60 = vmul.f32 0.5, %v455_v54  ;;  %v484_v62 = vmul.f32 %v6904_v40, %v471_v56 }
 0x24d   :  { %v377_v63 = vsub.f32 1.5, %v376_v59  ;;  %v499_v59 = vld [vmem:[%s10376_s28] sm:$0xff] }
 0x24e   :  { %v6111_v0 = vpop.eup %6110  ;;  %v457_v3 = vsub.f32 1.5, %v456_v60  ;;  %v6967_v6 = vadd.f32 %v6910_v46, %v484_v62  ;;  %v502_v62 = vld [vmem:[%s10376_s28 + $0x18] sm:$0xff] }
 0x24f   :  { %v378_v5 = vmul.f32 %v6107_v41, %v377_v63  ;;  %v394_v51 = vmul.f32 %v6111_v0, %v356_v43  ;;  %vm400_vm9 = vweird.f32 %v6111_v0 }
 0x250   :  { %10370 = vst [vmem:[#allocation10_spill] sm:$0xff] %v6967_v6  ;;  %v458_v7 = vmul.f32 %v6109_v44, %v457_v3  ;;  %vm401_vm11 = vmor %vm399_vm10, %vm400_vm9  ;;  %v501_v3 = vld [vmem:[%s10376_s28 + $0x10] sm:$0xff] }
 0x251   :  { %v395_v8 = vmul.f32 %v6111_v0, %v394_v51  ;;  %v382_v9 = vsel %vm381_vm4, %v6107_v41, %v378_v5  ;;  %5493 = vmatmul.msk.f32.gmra.mxu3 %vm245_vm12, %v6967_v6  ;;  %v7010_v41 = vld [vmem:[%s10266_s9] ss:$0 sm:$0xff]  ;;  %v504_v5 = vld [vmem:[%s10376_s28 + $0x28] sm:$0xff] }
 0x252   :  { %v464_v10 = vmul.f32 %v382_v9, %v6858_v55  ;;  %v462_v11 = vsel %vm461_vm7, %v6109_v44, %v458_v7  ;;  %v508_v51 = vld [vmem:[%s10376_s28 + $0x48] sm:$0xff] }
 0x253   :  { %v396_v12 = vmul.f32 0.5, %v395_v8  ;;  %v472_v13 = vmul.f32 %v462_v11, %v6863_v61  ;;  %v478_v61 = vmul.f32 %v6904_v40, %v465_v19  ;;  %v500_v11 = vld [vmem:[%s10376_s28 + $0x8] sm:$0xff] }
 0x254   :  { %v477_v15 = vmul.f32 %v6904_v40, %v464_v10 }
 0x255   :  { %v397_v24 = vsub.f32 1.5, %v396_v12  ;;  %v485_v16 = vmul.f32 %v6904_v40, %v472_v13  ;;  %v6993_v23 = vadd.f32 %v6910_v46, %v478_v61  ;;  %v503_v13 = vld [vmem:[%s10376_s28 + $0x20] sm:$0xff] }
 0x256   :  { %v6981_v17 = vadd.f32 %v6910_v46, %v477_v15  ;;  %v505_v15 = vld [vmem:[%s10376_s28 + $0x30] sm:$0xff] }
 0x257   :  { %v398_v55 = vmul.f32 %v6111_v0, %v397_v24  ;;  %v6985_v22 = vadd.f32 %v6910_v46, %v485_v16  ;;  %10373 = vst [vmem:[#allocation13_spill] sm:$0xff] %v6993_v23  ;;  %v506_v16 = vld [vmem:[%s10376_s28 + $0x38] sm:$0xff] }
 0x258   :  { %10371 = vst [vmem:[#allocation11_spill] sm:$0xff] %v6981_v17  ;;  %5486 = vmatmul.msk.f32.gmra.mxu1 %vm245_vm12, %v6981_v17 }
 0x259   :  { %10372 = vst [vmem:[#allocation12_spill] sm:$0xff] %v6985_v22  ;;  %5494 = vmatmul.msk.f32.gmra.mxu3 %vm245_vm12, %v6985_v22  ;;  %v402_v18 = vsel %vm401_vm11, %v6111_v0, %v398_v55  ;;  %v507_v0 = vld [vmem:[%s10376_s28 + $0x40] sm:$0xff]  ;;  %s6580_s28 = smov 112  }
 0x25a   :  { %v466_v45 = vmul.f32 %v402_v18, %v6871_v1 }
 0x25c   :  { %v479_v25 = vmul.f32 %v6904_v40, %v466_v45 }
 0x25e   :  { %v7000_v26 = vadd.f32 %v6910_v46, %v479_v25 }
 0x260   :  { %5487 = vmatmul.msk.f32.gmra.mxu1 %vm245_vm12, %v6993_v23  ;;  %10374 = vst [vmem:[#allocation14_spill] sm:$0xff] %v7000_v26 }
 0x268   :  { %5488 = vmatmul.msk.f32.gmra.mxu1 %vm245_vm12, %v7000_v26 }
 0x29e   :  { %v327_v27 = vpop.xlane.xlu1 %326 }
 0x29f   :  { %v347_v28 = vmul.f32 %v327_v27, %v6813_v21 }
 0x2a1   :  { %v357_v29 = vadd.f32 1e-05, %v347_v28 }
 0x2a3   :  { %6112 = vrsqrt.f32 %v357_v29  ;;  %vm409_vm14 = vweird.f32 %v357_v29 }
 0x2a9   :  { %v6113_v30 = vpop.eup %6112 }
 0x2aa   :  { %v404_v32 = vmul.f32 %v6113_v30, %v357_v29  ;;  %vm410_vm13 = vweird.f32 %v6113_v30 }
 0x2ab   :  { %vm411_vm15 = vmor %vm409_vm14, %vm410_vm13 }
 0x2ac   :  { %v405_v34 = vmul.f32 %v6113_v30, %v404_v32 }
 0x2ae   :  { %v406_v1 = vmul.f32 0.5, %v405_v34 }
 0x2b0   :  { %v407_v31 = vsub.f32 1.5, %v406_v1 }
 0x2b2   :  { %v408_v36 = vmul.f32 %v6113_v30, %v407_v31 }
 0x2b4   :  { %v412_v37 = vsel %vm411_vm15, %v6113_v30, %v408_v36 }
 0x2b5   :  { %v467_v38 = vmul.f32 %v412_v37, %v6894_v20 }
 0x2b7   :  { %v480_v39 = vmul.f32 %v6904_v40, %v467_v38 }
 0x2b9   :  { %v7013_v43 = vadd.f32 %v6910_v46, %v480_v39 }
 0x2bb   :  { %10375 = vst [vmem:[#allocation15_spill] sm:$0xff] %v7013_v43  ;;  %5489 = vmatmul.msk.f32.gmra.mxu1 %vm245_vm12, %v7013_v43  ;;  %v646_v44 = vpop.f32.mrf.mxu3 }
 0x2bc   :  { %v7018_v47 = vadd.f32 %v7010_v41, %v646_v44 }
 0x2be   :  { %681 = vrot.lane.b32.xlu2 %v7018_v47, %s6575_s27 }
 0x2c3   :  { %v649_v20 = vpop.f32.mrf.mxu3 }
 0x2c4   :  { %v7036_v56 = vadd.f32 %v7010_v41, %v649_v20 }
 0x2c5   :  { %v631_v40 = vpop.f32.mrf.mxu1 }
 0x2c6   :  { %v7054_v63 = vadd.f32 %v7010_v41, %v631_v40 }
 0x2cc   :  { %v652_v48 = vpop.f32.mrf.mxu3 }
 0x2cd   :  { %v7023_v49 = vadd.f32 %v7010_v41, %v652_v48 }
 0x2cf   :  { %685 = vrot.lane.b32.xlu1 %v7023_v49, %s6575_s27  ;;  %v7066_v4 = vpack.i.bf16 %v7036_v56, %v7023_v49 }
 0x2d1   :  { %10377 = vst [vmem:[#allocation16_spill] sm:$0xff] %v7066_v4 }
 0x2d4   :  { %v655_v42 = vpop.f32.mrf.mxu3 }
 0x2d5   :  { %v634_v46 = vpop.f32.mrf.mxu1  ;;  %v7028_v50 = vadd.f32 %v7010_v41, %v655_v42 }
 0x2d6   :  { %v7092_v10 = vadd.f32 %v7010_v41, %v634_v46 }
 0x2d7   :  { %687 = vrot.lane.b32.xlu0 %v7028_v50, %s6575_s27 }
 0x2d8   :  { %v7150_v18 = vpack.i.bf16 %v7054_v63, %v7092_v10 }
 0x2da   :  { %10380 = vst [vmem:[#allocation19_spill] sm:$0xff] %v7150_v18 }
 0x2dc   :  { %v658_v30 = vpop.f32.mrf.mxu3 }
 0x2dd   :  { %v637_v53 = vpop.f32.mrf.mxu1  ;;  %v7181_v32 = vadd.f32 %v7010_v41, %v658_v30 }
 0x2de   :  { %v7033_v54 = vadd.f32 %v7010_v41, %v637_v53 }
 0x2df   :  { %683 = vrot.lane.b32.xlu0 %v7036_v56, %s6575_s27  ;;  %v7233_v48 = vpack.i.bf16 %v7028_v50, %v7181_v32 }
 0x2e0   :  { %675 = vrot.lane.b32.xlu2 %v7033_v54, %s6575_s27 }
 0x2e1   :  { %10381 = vst [vmem:[#allocation20_spill] sm:$0xff] %v7233_v48 }
 0x2e5   :  { %v640_v57 = vpop.f32.mrf.mxu1 }
 0x2e6   :  { %v7046_v60 = vadd.f32 %v7010_v41, %v640_v57 }
 0x2e8   :  { %511 = vperm.xlu2 %5871, %v499_v59   ;;  %677 = vrot.lane.b32.xlu0 %v7046_v60, %s6575_s27  ;;  %v7107_v12 = vpack.i.bf16 %v7033_v54, %v7046_v60 }
 0x2ea   :  { %10379 = vst [vmem:[#allocation18_spill] sm:$0xff] %v7107_v12 }
 0x2f0   :  { %520 = vperm.xlu2 %5871, %v502_v62   ;;  %671 = vrot.lane.b32.xlu0 %v7054_v63, %s6575_s27 }
 0x2f8   :  { %535 = vperm.xlu2 %5871, %v507_v0   ;;  %517 = vperm.xlu0 %5869, %v501_v3  }
 0x300   :  { %5873 = vrot.lane.b32.xlu2 %v7066_v4, %s10311_s25  ;;  %526 = vperm.xlu0 %5869, %v504_v5  }
 0x308   :  { %1029 = vrot.lane.b32.xlu2 %v7036_v56, %s6577_s2  ;;  %538 = vperm.xlu0 %5869, %v508_v51  }
 0x318   :  { %v7116_v14 = vpop.permute.xlu2 %681 }
 0x338   :  { %v643_v7 = vpop.f32.mrf.mxu1 }
 0x339   :  { %v7079_v8 = vadd.f32 %v7010_v41, %v643_v7 }
 0x33a   :  { %v7125_v24 = vpop.permute.xlu2 %675 }
 0x33b   :  { %679 = vrot.lane.b32.xlu1 %v7079_v8, %s6575_s27  ;;  %1025 = vrot.lane.b32.xlu0 %v7079_v8, %s6577_s2  ;;  %v7087_v9 = vpack.i.bf16 %v7079_v8, %v7018_v47 }
 0x33d   :  { %10378 = vst [vmem:[#allocation17_spill] sm:$0xff] %v7087_v9  ;;  %5878 = vrot.lane.b32.xlu2 %v7087_v9, %s10311_s25 }
 0x341   :  { %v686_v38 = vpop.permute.xlu1 %685 }
 0x342   :  { %v7136_v19 = vpop.permute.xlu2 %511 }
 0x343   :  { %673 = vrot.lane.b32.xlu1 %v7092_v10, %s6575_s27  ;;  %997 = vrot.lane.b32.xlu0 %v7054_v63, %s6578_s6 }
 0x345   :  { %1027 = vrot.lane.b32.xlu2 %v7018_v47, %s6577_s2 }
 0x349   :  { %v7138_v55 = vpop.permute.xlu0 %687 }
 0x34a   :  { %v7146_v61 = vpop.permute.xlu2 %520 }
 0x34b   :  { %514 = vperm.xlu1 %5870, %v500_v11   ;;  %1377 = vrot.lane.b32.xlu0 %v7028_v50, %s6579_s4 }
 0x34d   :  { %5883 = vrot.lane.b32.xlu2 %v7107_v12, %s10311_s25 }
 0x351   :  { %v7156_v45 = vpop.permute.xlu0 %683 }
 0x352   :  { %v7160_v25 = vpop.permute.xlu2 %535 }
 0x353   :  { %523 = vperm.xlu1 %5870, %v503_v13   ;;  %1007 = vrot.lane.b32.xlu0 %v7018_v47, %s6578_s6 }
 0x355   :  { %1023 = vrot.lane.b32.xlu2 %v7046_v60, %s6577_s2 }
 0x35a   :  { %v7166_v27 = vpop.permute.xlu0 %677  ;;  %v7174_v28 = vpop.permute.xlu2 %5873 }
 0x35b   :  { %529 = vperm.xlu1 %5870, %v505_v15   ;;  %1367 = vrot.lane.b32.xlu0 %v7046_v60, %s6579_s4  ;;  %v5875_v9 = vunpack.i.l.bf16 %v7174_v28 }
 0x35d   :  { %1021 = vrot.lane.b32.xlu2 %v7033_v54, %s6577_s2 }
 0x362   :  { %v7178_v29 = vpop.permute.xlu0 %671  ;;  %v7189_v34 = vpop.permute.xlu2 %1029 }
 0x363   :  { %532 = vperm.xlu1 %5870, %v506_v16   ;;  %1365 = vrot.lane.b32.xlu0 %v7033_v54, %s6579_s4 }
 0x365   :  { %1019 = vrot.lane.b32.xlu2 %v7092_v10, %s6577_s2 }
 0x36a   :  { %v7191_v1 = vpop.permute.xlu0 %517 }
 0x36b   :  { %1031 = vrot.lane.b32.xlu1 %v7023_v49, %s6577_s2  ;;  %1363 = vrot.lane.b32.xlu0 %v7092_v10, %s6579_s4 }
 0x36d   :  { %1017 = vrot.lane.b32.xlu2 %v7054_v63, %s6577_s2 }
 0x372   :  { %v7201_v36 = vpop.permute.xlu0 %526 }
 0x373   :  { %5888 = vrot.lane.b32.xlu1 %v7150_v18, %s10311_s25  ;;  %1013 = vrot.lane.b32.xlu0 %v7028_v50, %s6578_s6 }
 0x375   :  { %999 = vrot.lane.b32.xlu2 %v7092_v10, %s6578_s6 }
 0x37a   :  { %v7215_v39 = vpop.permute.xlu0 %538 }
 0x37b   :  { %1003 = vrot.lane.b32.xlu1 %v7046_v60, %s6578_s6  ;;  %1341 = vrot.lane.b32.xlu0 %v7054_v63, %s6580_s28 }
 0x37d   :  { %1001 = vrot.lane.b32.xlu2 %v7033_v54, %s6578_s6 }
 0x383   :  { %1005 = vrot.lane.b32.xlu1 %v7079_v8, %s6578_s6  ;;  %1343 = vrot.lane.b32.xlu0 %v7092_v10, %s6580_s28 }
 0x385   :  { %1033 = vrot.lane.b32.xlu2 %v7028_v50, %s6577_s2 }
 0x38b   :  { %1721 = vrot.lane.b32.xlu1 %v7028_v50, %s6581_s26  ;;  %1345 = vrot.lane.b32.xlu0 %v7033_v54, %s6580_s28 }
 0x38d   :  { %689 = vrot.lane.b32.xlu2 %v7181_v32, %s6575_s27 }
 0x393   :  { %1719 = vrot.lane.b32.xlu1 %v7023_v49, %s6581_s26  ;;  %1689 = vrot.lane.b32.xlu0 %v7033_v54, %s6582_s7 }
 0x395   :  { %1375 = vrot.lane.b32.xlu2 %v7023_v49, %s6579_s4 }
 0x397   :  { %v7199_v31 = vpop.permute.xlu2 %5878 }
 0x39b   :  { %1717 = vrot.lane.b32.xlu1 %v7036_v56, %s6581_s26  ;;  %1351 = vrot.lane.b32.xlu0 %v7018_v47, %s6580_s28 }
 0x39d   :  { %1373 = vrot.lane.b32.xlu2 %v7036_v56, %s6579_s4 }
 0x39f   :  { %v7209_v37 = vpop.permute.xlu2 %1027 }
 0x3a3   :  { %1011 = vrot.lane.b32.xlu1 %v7023_v49, %s6578_s6  ;;  %1695 = vrot.lane.b32.xlu0 %v7018_v47, %s6582_s7 }
 0x3a5   :  { %1371 = vrot.lane.b32.xlu2 %v7018_v47, %s6579_s4 }
 0x3a7   :  { %v7219_v41 = vpop.permute.xlu2 %5883 }
 0x3ab   :  { %1715 = vrot.lane.b32.xlu1 %v7018_v47, %s6581_s26  ;;  %1357 = vrot.lane.b32.xlu0 %v7028_v50, %s6580_s28 }
 0x3ad   :  { %v680_v44 = vpop.permute.xlu1 %679  ;;  %1009 = vrot.lane.b32.xlu2 %v7036_v56, %s6578_s6  ;;  %v7227_v20 = vpop.permute.xlu0 %1025 }
 0x3af   :  { %v7229_v40 = vpop.permute.xlu2 %1023 }
 0x3b3   :  { %1713 = vrot.lane.b32.xlu1 %v7079_v8, %s6581_s26  ;;  %5893 = vrot.lane.b32.xlu0 %v7233_v48, %s10311_s25 }
 0x3b5   :  { %v7239_v46 = vpop.permute.xlu1 %673  ;;  %1369 = vrot.lane.b32.xlu2 %v7079_v8, %s6579_s4  ;;  %v7243_v42 = vpop.permute.xlu0 %997 }
 0x3b7   :  { %v7245_v53 = vpop.permute.xlu2 %1021 }
 0x3bb   :  { %1711 = vrot.lane.b32.xlu1 %v7046_v60, %s6581_s26  ;;  %1015 = vrot.lane.b32.xlu0 %v7181_v32, %s6578_s6 }
 0x3bd   :  { %v7251_v57 = vpop.permute.xlu1 %514  ;;  %1361 = vrot.lane.b32.xlu2 %v7054_v63, %s6579_s4  ;;  %v7255_v59 = vpop.permute.xlu0 %1377 }
 0x3bf   :  { %v7257_v62 = vpop.permute.xlu2 %1019 }
 0x3c3   :  { %1709 = vrot.lane.b32.xlu1 %v7033_v54, %s6581_s26 }
 0x3c5   :  { %v7261_v0 = vpop.permute.xlu1 %523  ;;  %1705 = vrot.lane.b32.xlu2 %v7054_v63, %s6581_s26  ;;  %v7265_v3 = vpop.permute.xlu0 %1007 }
 0x3c7   :  { %v7267_v5 = vpop.permute.xlu2 %1017 }
 0x3cb   :  { %1707 = vrot.lane.b32.xlu1 %v7092_v10, %s6581_s26 }
 0x3cd   :  { %v7271_v51 = vpop.permute.xlu1 %529  ;;  %1687 = vrot.lane.b32.xlu2 %v7092_v10, %s6582_s7  ;;  %v7275_v7 = vpop.permute.xlu0 %1367 }
 0x3cf   :  { %v7277_v11 = vpop.permute.xlu2 %999 }
 0x3d3   :  { %1685 = vrot.lane.b32.xlu1 %v7054_v63, %s6582_s7 }
 0x3d5   :  { %v7281_v13 = vpop.permute.xlu1 %532  ;;  %1349 = vrot.lane.b32.xlu2 %v7079_v8, %s6580_s28  ;;  %v7285_v15 = vpop.permute.xlu0 %1365 }
 0x3d7   :  { %v7287_v16 = vpop.permute.xlu2 %1001 }
 0x3db   :  { %1347 = vrot.lane.b32.xlu1 %v7046_v60, %s6580_s28 }
 0x3dd   :  { %v7291_v30 = vpop.permute.xlu1 %1031  ;;  %1693 = vrot.lane.b32.xlu2 %v7079_v8, %s6582_s7  ;;  %v7295_v2 = vpop.permute.xlu0 %1363 }
 0x3df   :  { %v7297_v22 = vpop.permute.xlu2 %1033 }
 0x3e3   :  { %1691 = vrot.lane.b32.xlu1 %v7046_v60, %s6582_s7 }
 0x3e5   :  { %v7301_v6 = vpop.permute.xlu1 %5888  ;;  %1355 = vrot.lane.b32.xlu2 %v7023_v49, %s6580_s28  ;;  %v7305_v52 = vpop.permute.xlu0 %1013 }
 0x3e7   :  { %v690_v21 = vpop.permute.xlu2 %689 }
 0x3e8   :  { %5495 = vmatpush.xpose.msk.msra.mxu2 %vm691_vm1, %v690_v21 }
 0x3eb   :  { %1353 = vrot.lane.b32.xlu1 %v7036_v56, %s6580_s28 }
 0x3ec   :  { %5496 = vmatpush.xpose.msk.msra.mxu2 %vm691_vm1, %v7138_v55 }
 0x3ed   :  { %v7312_v33 = vpop.permute.xlu1 %1003  ;;  %1699 = vrot.lane.b32.xlu2 %v7023_v49, %s6582_s7  ;;  %v7316_v58 = vpop.permute.xlu0 %1341 }
 0x3ee   :  { %10382 = vst [vmem:[#allocation21_spill] sm:$0xff] %v7316_v58 }
 0x3ef   :  { %v7318_v43 = vpop.permute.xlu2 %1375 }
 0x3f0   :  { %5497 = vmatpush.xpose.msk.msra.mxu2 %vm691_vm1, %v686_v38 }
 0x3f3   :  { %1697 = vrot.lane.b32.xlu1 %v7036_v56, %s6582_s7 }
 0x3f4   :  { %5498 = vmatpush.xpose.msk.msra.mxu2 %vm691_vm1, %v7156_v45 }
 0x3f5   :  { %v7325_v21 = vpop.permute.xlu1 %1005  ;;  %1035 = vrot.lane.b32.xlu2 %v7181_v32, %s6577_s2  ;;  %v7329_v55 = vpop.permute.xlu0 %1343 }
 0x3f6   :  { %10383 = vst [vmem:[#allocation22_spill] sm:$0xff] %v7329_v55 }
 0x3f7   :  { %v7331_v26 = vpop.permute.xlu2 %1373 }
 0x3f8   :  { %5499 = vmatpush.xpose.msk.msra.mxu2 %vm691_vm1, %v7116_v14 }
 0x3fb   :  { %1379 = vrot.lane.b32.xlu1 %v7181_v32, %s6579_s4 }
 0x3fc   :  { %5500 = vmatpush.xpose.msk.msra.mxu2 %vm691_vm1, %v680_v44 }
 0x3fd   :  { %v7338_v38 = vpop.permute.xlu1 %1721  ;;  %1723 = vrot.lane.b32.xlu2 %v7181_v32, %s6581_s26  ;;  %v7342_v45 = vpop.permute.xlu0 %1345 }
 0x3fe   :  { %10384 = vst [vmem:[#allocation23_spill] sm:$0xff] %v7342_v45 }
 0x3ff   :  { %v7344_v23 = vpop.permute.xlu2 %1371 }
 0x400   :  { %5501 = vmatpush.xpose.msk.msra.mxu2 %vm691_vm1, %v7166_v27 }
 0x403   :  { %1359 = vrot.lane.b32.xlu1 %v7181_v32, %s6580_s28 }
 0x404   :  { %5502 = vmatpush.xpose.msk.msra.mxu2 %vm691_vm1, %v7125_v24 }
 0x405   :  { %v7352_v14 = vpop.permute.xlu1 %1719  ;;  %v7354_v44 = vpop.permute.xlu0 %1689 }
 0x407   :  { %v7356_v17 = vpop.permute.xlu2 %1009 }
 0x408   :  { %5503 = vmatpush.xpose.msk.msra.mxu2 %vm691_vm1, %v7239_v46 }
 0x40c   :  { %5504 = vmatpush.xpose.msk.msra.mxu2 %vm691_vm1, %v7178_v29 }
 0x40d   :  { %v7362_v35 = vpop.permute.xlu1 %1717  ;;  %v7364_v27 = vpop.permute.xlu0 %1351 }
 0x40e   :  { %10385 = vst [vmem:[#allocation24_spill] sm:$0xff] %v7364_v27 }
 0x40f   :  { %v7366_v45 = vpop.permute.xlu2 %1369  ;;  %5505 = vmatmul.msk.f32.vlgmr.msra.gmra.mxu2 %vm691_vm1, %v7054_v63 }
 0x415   :  { %v7370_v24 = vpop.permute.xlu1 %1011  ;;  %v7372_v55 = vpop.permute.xlu0 %1695 }
 0x416   :  { %10386 = vst [vmem:[#allocation25_spill] sm:$0xff] %v7372_v55 }
 0x417   :  { %v7374_v58 = vpop.permute.xlu2 %1361  ;;  %5506 = vmatmul.msk.f32.gmra.mxu2 %vm691_vm1, %v7092_v10 }
 0x41d   :  { %v7378_v46 = vpop.permute.xlu1 %1715  ;;  %v7380_v29 = vpop.permute.xlu0 %1357 }
 0x41e   :  { %10387 = vst [vmem:[#allocation26_spill] sm:$0xff] %v7380_v29  ;;  %v5876_v29 = vunpack.i.h.bf16 %v7174_v28 }
 0x41f   :  { %v7382_v18 = vpop.permute.xlu2 %1705  ;;  %5507 = vmatmul.msk.f32.gmra.mxu2 %vm691_vm1, %v7033_v54  ;;  %v5880_v54 = vunpack.i.l.bf16 %v7199_v31 }
 0x425   :  { %v7386_v27 = vpop.permute.xlu1 %1713  ;;  %v5894_v63 = vpop.permute.xlu0 %5893 }
 0x426   :  { %v5895_v4 = vunpack.i.l.bf16 %v5894_v63  ;;  %v5896_v10 = vunpack.i.h.bf16 %v5894_v63 }
 0x427   :  { %v7388_v12 = vpop.permute.xlu2 %1687  ;;  %5508 = vmatmul.msk.f32.gmra.mxu2 %vm691_vm1, %v7046_v60  ;;  %v5881_v60 = vunpack.i.h.bf16 %v7199_v31 }
 0x428   :  { %956 = vmatpush.msrb.mxu3 %v5895_v4  ;;  %v5885_v4 = vunpack.i.l.bf16 %v7219_v41 }
 0x42a   :  { %957 = vmatpush.msrb.mxu3 %v5896_v10 }
 0x42c   :  { %958 = vmatpush.msrb.mxu3 %v5875_v9  ;;  %v5886_v9 = vunpack.i.h.bf16 %v7219_v41 }
 0x42d   :  { %v7394_v48 = vpop.permute.xlu1 %1711 }
 0x42e   :  { %959 = vmatpush.msrb.mxu3 %v5876_v29  ;;  %v5890_v29 = vunpack.i.l.bf16 %v7301_v6 }
 0x42f   :  { %v7397_v55 = vpop.permute.xlu2 %1349  ;;  %5509 = vmatmul.msk.f32.gmra.mxu2 %vm691_vm1, %v7079_v8  ;;  %v5891_v8 = vunpack.i.h.bf16 %v7301_v6 }
 0x430   :  { %960 = vmatpush.msrb.mxu3 %v5880_v54 }
 0x432   :  { %961 = vmatpush.msrb.mxu3 %v5881_v60 }
 0x434   :  { %962 = vmatpush.msrb.mxu3 %v5885_v4 }
 0x435   :  { %v1710_v28 = vpop.permute.xlu1 %1709 }
 0x436   :  { %963 = vmatpush.msrb.mxu3 %v5886_v9 }
 0x437   :  { %v7405_v63 = vpop.permute.xlu2 %1693  ;;  %5510 = vmatmul.msk.f32.gmra.mxu2 %vm691_vm1, %v7018_v47 }
 0x438   :  { %964 = vmatpush.msrb.mxu3 %v5890_v29 }
 0x43a   :  { %965 = vmatpush.msrb.mxu3 %v5891_v8 }
 0x43d   :  { %v1708_v31 = vpop.permute.xlu1 %1707 }
 0x43f   :  { %v7410_v10 = vpop.permute.xlu2 %1355  ;;  %5511 = vmatmul.msk.f32.gmra.mxu2 %vm691_vm1, %v7036_v56 }
 0x445   :  { %v7414_v41 = vpop.permute.xlu1 %1685 }
 0x447   :  { %v7416_v54 = vpop.permute.xlu2 %1699  ;;  %5512 = vmatmul.msk.f32.gmra.mxu2 %vm691_vm1, %v7023_v49 }
 0x44d   :  { %v7420_v60 = vpop.permute.xlu1 %1347 }
 0x44f   :  { %v1036_v47 = vpop.permute.xlu2 %1035  ;;  %5513 = vmatmul.msk.f32.gmra.mxu2 %vm691_vm1, %v7028_v50 }
 0x450   :  { %5525 = vmatpush.xpose.msk.msrb.mxu1 %vm691_vm1, %v1036_v47 }
 0x454   :  { %5526 = vmatpush.xpose.msk.msrb.mxu1 %vm691_vm1, %v7297_v22 }
 0x455   :  { %v7427_v6 = vpop.permute.xlu1 %1691 }
 0x457   :  { %5514 = vmatmul.msk.f32.gmra.mxu2 %vm691_vm1, %v7181_v32 }
 0x458   :  { %5527 = vmatpush.xpose.msk.msrb.mxu1 %vm691_vm1, %v7291_v30 }
 0x45c   :  { %5528 = vmatpush.xpose.msk.msrb.mxu1 %vm691_vm1, %v7189_v34  ;;  %v1724_v34 = vpop.permute.xlu2 %1723 }
 0x45d   :  { %v7435_v49 = vpop.permute.xlu1 %1353 }
 0x460   :  { %5529 = vmatpush.xpose.msk.msrb.mxu1 %vm691_vm1, %v7209_v37  ;;  %v551_v37 = vld [vmem:[%s10388_s0] sm:$0x1]  ;;  %s10315_s0 = smov 16  }
 0x461   :  { %vm552_vm2 = vcmp.gt.f32.partialorder %v551_v37, 0.5 }
 0x464   :  { %5530 = vmatpush.xpose.msk.msrb.mxu1 %vm691_vm1, %v7227_v20 }
 0x465   :  { %v7441_v22 = vpop.permute.xlu1 %1697 }
 0x468   :  { %5531 = vmatpush.xpose.msk.msrb.mxu1 %vm691_vm1, %v7229_v40  ;;  %v6583_v40 = vmov -1e+09  }
 0x46c   :  { %5532 = vmatpush.xpose.msk.msrb.mxu1 %vm691_vm1, %v7245_v53 }
 0x46d   :  { %v1380_v56 = vpop.permute.xlu1 %1379 }
 0x46e   :  { %5555 = vmatpush.xpose.msk.msra.mxu3 %vm691_vm1, %v1380_v56 }
 0x470   :  { %5533 = vmatpush.xpose.msk.msrb.mxu1 %vm691_vm1, %v7257_v62 }
 0x472   :  { %5556 = vmatpush.xpose.msk.msra.mxu3 %vm691_vm1, %v7255_v59 }
 0x474   :  { %5534 = vmatpush.xpose.msk.msrb.mxu1 %vm691_vm1, %v7267_v5 }
 0x476   :  { %5557 = vmatpush.xpose.msk.msra.mxu3 %vm691_vm1, %v7318_v43 }
 0x477   :  { %5535 = vmatmul.msk.f32.vlgmr.msrb.gmra.mxu1 %vm691_vm1, %v7243_v42 }
 0x478   :  { %5585 = vmatpush.xpose.msk.msra.mxu1 %vm691_vm1, %v1724_v34 }
 0x47a   :  { %5558 = vmatpush.xpose.msk.msra.mxu3 %vm691_vm1, %v7331_v26  ;;  %v10389_v26 = vmov 0  }
 0x47b   :  { %v553_v43 = vsel %vm552_vm2, 1, %v10389_v26 }
 0x47c   :  { %5586 = vmatpush.xpose.msk.msra.mxu1 %vm691_vm1, %v7338_v38  ;;  %v1016_v38 = vpop.permute.xlu0 %1015 }
 0x47e   :  { %5559 = vmatpush.xpose.msk.msra.mxu3 %vm691_vm1, %v7344_v23  ;;  %v554_v23 = vperm.slane %v553_v43, 0 }
 0x47f   :  { %5536 = vmatmul.msk.f32.gmra.mxu1 %vm691_vm1, %v7277_v11 }
 0x480   :  { %5587 = vmatpush.xpose.msk.msra.mxu1 %vm691_vm1, %v7352_v14  ;;  %vm7492_vm3 = vcmp.eq.s32.totalorder %v554_v23, 1 }
 0x482   :  { %5560 = vmatpush.xpose.msk.msra.mxu3 %vm691_vm1, %v7366_v45 }
 0x484   :  { %5588 = vmatpush.xpose.msk.msra.mxu1 %vm691_vm1, %v7362_v35  ;;  %v7486_v35 = vld [vmem:[%s10390_s5] ss:$0 sm:$0xff] }
 0x485   :  { %vm541_vm4 = vcmp.eq.s32.totalorder %v7136_v19, %v7486_v35  ;;  %vm542_vm7 = vcmp.eq.s32.totalorder %v7251_v57, %v7486_v35  ;;  %vm543_vm9 = vcmp.eq.s32.totalorder %v7191_v1, %v7486_v35  ;;  %vm544_vm11 = vcmp.eq.s32.totalorder %v7146_v61, %v7486_v35 }
 0x486   :  { %5561 = vmatpush.xpose.msk.msra.mxu3 %vm691_vm1, %v7275_v7  ;;  %vm556_vm5 = vmand %vm541_vm4, %vm7492_vm3  ;;  %vm545_vm14 = vcmp.eq.s32.totalorder %v7261_v0, %v7486_v35  ;;  %vm546_vm2 = vcmp.eq.s32.totalorder %v7201_v36, %v7486_v35 }
 0x487   :  { %5537 = vmatmul.msk.f32.gmra.mxu1 %vm691_vm1, %v7287_v16  ;;  %v7508_v42 = vsel %vm556_vm5, 0.0, %v6583_v40  ;;  %vm557_vm8 = vmand %vm542_vm7, %vm7492_vm3  ;;  %vm547_vm5 = vcmp.eq.s32.totalorder %v7271_v51, %v7486_v35 }
 0x488   :  { %5589 = vmatpush.xpose.msk.msra.mxu1 %vm691_vm1, %v7378_v46  ;;  %10393 = vst [vmem:[#allocation27_spill] sm:$0xff] %v7508_v42  ;;  %vm558_vm10 = vmand %vm543_vm9, %vm7492_vm3 }
 0x489   :  { %vm559_vm13 = vmand %vm544_vm11, %vm7492_vm3 }
 0x48a   :  { %5562 = vmatpush.xpose.msk.msra.mxu3 %vm691_vm1, %v7285_v15  ;;  %vm560_vm15 = vmand %vm545_vm14, %vm7492_vm3 }
 0x48b   :  { %vm561_vm4 = vmand %vm546_vm2, %vm7492_vm3 }
 0x48c   :  { %5590 = vmatpush.xpose.msk.msra.mxu1 %vm691_vm1, %v7386_v27  ;;  %v7583_v16 = vsel %vm561_vm4, 0.0, %v6583_v40  ;;  %vm562_vm7 = vmand %vm547_vm5, %vm7492_vm3 }
 0x48d   :  { %10398 = vst [vmem:[#allocation32_spill] sm:$0xff] %v7583_v16 }
 0x48e   :  { %5563 = vmatpush.xpose.msk.msra.mxu3 %vm691_vm1, %v7295_v2 }
 0x48f   :  { %5538 = vmatmul.msk.f32.gmra.mxu1 %vm691_vm1, %v7312_v33 }
 0x490   :  { %5591 = vmatpush.xpose.msk.msra.mxu1 %vm691_vm1, %v7394_v48 }
 0x492   :  { %v749_v53 = vpop.f32.mrf.mxu2  ;;  %5564 = vmatpush.xpose.msk.msra.mxu3 %vm691_vm1, %v7374_v58  ;;  %v7527_v58 = vsel %vm557_vm8, 0.0, %v6583_v40  ;;  %vm548_vm8 = vcmp.eq.s32.totalorder %v7281_v13, %v7486_v35 }
 0x493   :  { %v7513_v19 = vadd.f32 %v749_v53, %v7508_v42  ;;  %10394 = vst [vmem:[#allocation28_spill] sm:$0xff] %v7527_v58  ;;  %vm563_vm9 = vmand %vm548_vm8, %vm7492_vm3 }
 0x494   :  { %5592 = vmatpush.xpose.msk.msra.mxu1 %vm691_vm1, %v1710_v28  ;;  %v7610_v27 = vsel %vm563_vm9, 0.0, %v6583_v40 }
 0x495   :  { %v780_v2 = vsel %vm779_vm6, %v7513_v19, -inf  ;;  %10400 = vst [vmem:[#allocation34_spill] sm:$0xff] %v7610_v27 }
 0x496   :  { %781 = vmax.xlane.f32.xlu2 %v780_v2 }
 0x497   :  { %5539 = vmatmul.msk.f32.gmra.mxu1 %vm691_vm1, %v7325_v21 }
 0x498   :  { %5593 = vmatpush.xpose.msk.msra.mxu1 %vm691_vm1, %v1708_v31 }
 0x49a   :  { %v752_v33 = vpop.f32.mrf.mxu2 }
 0x49b   :  { %v7530_v48 = vadd.f32 %v752_v33, %v7527_v58 }
 0x49c   :  { %5594 = vmatpush.xpose.msk.msra.mxu1 %vm691_vm1, %v7382_v18  ;;  %v7541_v18 = vsel %vm558_vm10, 0.0, %v6583_v40  ;;  %vm549_vm10 = vcmp.eq.s32.totalorder %v7160_v25, %v7486_v35 }
 0x49d   :  { %v783_v57 = vsel %vm779_vm6, %v7530_v48, -inf  ;;  %10395 = vst [vmem:[#allocation29_spill] sm:$0xff] %v7541_v18  ;;  %vm564_vm11 = vmand %vm549_vm10, %vm7492_vm3 }
 0x49e   :  { %784 = vmax.xlane.f32.xlu0 %v783_v57  ;;  %v7624_v4 = vsel %vm564_vm11, 0.0, %v6583_v40 }
 0x49f   :  { %5540 = vmatmul.msk.f32.gmra.mxu1 %vm691_vm1, %v7265_v3  ;;  %v7555_v3 = vsel %vm559_vm13, 0.0, %v6583_v40  ;;  %10401 = vst [vmem:[#allocation35_spill] sm:$0xff] %v7624_v4  ;;  %vm550_vm13 = vcmp.eq.s32.totalorder %v7215_v39, %v7486_v35 }
 0x4a0   :  { %10396 = vst [vmem:[#allocation30_spill] sm:$0xff] %v7555_v3  ;;  %vm565_vm14 = vmand %vm550_vm13, %vm7492_vm3  ;;  %vm2159_vm3 = vcmask 130048  }
 0x4a2   :  { %v755_v59 = vpop.f32.mrf.mxu2 }
 0x4a3   :  { %v7544_v62 = vadd.f32 %v755_v59, %v7541_v18 }
 0x4a5   :  { %v786_v1 = vsel %vm779_vm6, %v7544_v62, -inf }
 0x4a6   :  { %787 = vmax.xlane.f32.xlu1 %v786_v1 }
 0x4a7   :  { %5541 = vmatmul.msk.f32.gmra.mxu1 %vm691_vm1, %v7356_v17  ;;  %v7569_v17 = vsel %vm560_vm15, 0.0, %v6583_v40  ;;  %vm2170_vm15 = vcmask 195584  }
 0x4a8   :  { %10397 = vst [vmem:[#allocation31_spill] sm:$0xff] %v7569_v17 }
 0x4aa   :  { %v758_v5 = vpop.f32.mrf.mxu2 }
 0x4ab   :  { %v7558_v7 = vadd.f32 %v758_v5, %v7555_v3 }
 0x4ad   :  { %v789_v61 = vsel %vm779_vm6, %v7558_v7, -inf }
 0x4ae   :  { %790 = vmax.xlane.f32.xlu0 %v789_v61 }
 0x4af   :  { %5542 = vmatmul.msk.f32.gmra.mxu1 %vm691_vm1, %v7370_v24 }
 0x4b2   :  { %v761_v11 = vpop.f32.mrf.mxu2 }
 0x4b3   :  { %v7572_v15 = vadd.f32 %v761_v11, %v7569_v17 }
 0x4b5   :  { %v792_v0 = vsel %vm779_vm6, %v7572_v15, -inf }
 0x4b6   :  { %793 = vmax.xlane.f32.xlu1 %v792_v0 }
 0x4b7   :  { %5543 = vmatmul.msk.f32.gmra.mxu1 %vm691_vm1, %v7305_v52  ;;  %v7596_v52 = vsel %vm562_vm7, 0.0, %v6583_v40 }
 0x4b8   :  { %10399 = vst [vmem:[#allocation33_spill] sm:$0xff] %v7596_v52 }
 0x4ba   :  { %v764_v30 = vpop.f32.mrf.mxu2 }
 0x4bb   :  { %v7586_v21 = vadd.f32 %v764_v30, %v7583_v16 }
 0x4bd   :  { %v795_v36 = vsel %vm779_vm6, %v7586_v21, -inf }
 0x4be   :  { %796 = vmax.xlane.f32.xlu1 %v795_v36 }
 0x4bf   :  { %5544 = vmatmul.msk.f32.gmra.mxu1 %vm691_vm1, %v1016_v38 }
 0x4c2   :  { %v767_v45 = vpop.f32.mrf.mxu2 }
 0x4c3   :  { %v7599_v14 = vadd.f32 %v767_v45, %v7596_v52 }
 0x4c5   :  { %v798_v51 = vsel %vm779_vm6, %v7599_v14, -inf }
 0x4c6   :  { %799 = vmax.xlane.f32.xlu0 %v798_v51 }
 0x4c7   :  { %5595 = vmatmul.msk.f32.vlgmr.msra.gmra.mxu1 %vm691_vm1, %v7414_v41 }
 0x4ca   :  { %v770_v24 = vpop.f32.mrf.mxu2 }
 0x4cb   :  { %v7613_v46 = vadd.f32 %v770_v24, %v7610_v27 }
 0x4cd   :  { %v801_v13 = vsel %vm779_vm6, %v7613_v46, -inf }
 0x4ce   :  { %802 = vmax.xlane.f32.xlu2 %v801_v13 }
 0x4cf   :  { %5596 = vmatmul.msk.f32.gmra.mxu1 %vm691_vm1, %v7388_v12  ;;  %v7638_v12 = vsel %vm565_vm14, 0.0, %v6583_v40 }
 0x4d0   :  { %10402 = vst [vmem:[#allocation36_spill] sm:$0xff] %v7638_v12 }
 0x4d2   :  { %v773_v9 = vpop.f32.mrf.mxu2 }
 0x4d3   :  { %v7627_v28 = vadd.f32 %v773_v9, %v7624_v4 }
 0x4d5   :  { %v804_v25 = vsel %vm779_vm6, %v7627_v28, -inf }
 0x4d6   :  { %805 = vmax.xlane.f32.xlu1 %v804_v25 }
 0x4d7   :  { %5597 = vmatmul.msk.f32.gmra.mxu1 %vm691_vm1, %v7354_v44  ;;  %v10403_v44 = vld [vmem:[#allocation25_spill] sm:$0xff] }
 0x4da   :  { %v776_v29 = vpop.f32.mrf.mxu2 }
 0x4db   :  { %v7641_v8 = vadd.f32 %v776_v29, %v7638_v12 }
 0x4dd   :  { %v807_v39 = vsel %vm779_vm6, %v7641_v8, -inf }
 0x4de   :  { %808 = vmax.xlane.f32.xlu0 %v807_v39 }
 0x4df   :  { %5598 = vmatmul.msk.f32.gmra.mxu1 %vm691_vm1, %v7427_v6  ;;  %v7658_v6 = vpop.permute.xlu1 %1359 }
 0x4e6   :  { %1703 = vrot.lane.b32.xlu2 %v7181_v32, %s6582_s7 }
 0x4e7   :  { %5599 = vmatmul.msk.f32.gmra.mxu1 %vm691_vm1, %v7405_v63 }
 0x4ef   :  { %5600 = vmatmul.msk.f32.gmra.mxu1 %vm691_vm1, %v10403_v44 }
 0x4f7   :  { %5601 = vmatmul.msk.f32.gmra.mxu1 %vm691_vm1, %v7441_v22 }
 0x4ff   :  { %5602 = vmatmul.msk.f32.gmra.mxu1 %vm691_vm1, %v7416_v54  ;;  %v1094_v54 = vpop.f32.mrf.mxu1 }
 0x500   :  { %v7688_v36 = vadd.f32 %v1094_v54, %v7508_v42 }
 0x502   :  { %v1124_v13 = vsel %vm779_vm6, %v7688_v36, -inf }
 0x509   :  { %v782_v31 = vpop.xlane.xlu2 %781 }
 0x50a   :  { %v810_v41 = vsub.f32 %v7513_v19, %v782_v31  ;;  %v7673_v19 = vpop.f32.mrf.mxu1 }
 0x50c   :  { %v820_v47 = vmul.f32 1.442695, %v810_v41 }
 0x50e   :  { %6114 = vpow2.f32 %v820_v47 }
 0x511   :  { %v785_v32 = vpop.xlane.xlu0 %784 }
 0x512   :  { %v811_v56 = vsub.f32 %v7530_v48, %v785_v32  ;;  %v1100_v5 = vpop.f32.mrf.mxu1 }
 0x513   :  { %v7703_v31 = vadd.f32 %v1100_v5, %v7541_v18 }
 0x514   :  { %v7661_v63 = vpop.eup %6114  ;;  %v822_v34 = vmul.f32 1.442695, %v811_v56 }
 0x515   :  { %v840_v37 = vsel %vm779_vm6, %v7661_v63, 0.0 }
 0x516   :  { %6116 = vpow2.f32 %v822_v34  ;;  %841 = vadd.xlane.f32.xlu1 %v840_v37 }
 0x519   :  { %v788_v22 = vpop.xlane.xlu1 %787 }
 0x51a   :  { %v812_v26 = vsub.f32 %v7544_v62, %v788_v22 }
 0x51c   :  { %v7666_v43 = vpop.eup %6116  ;;  %v824_v23 = vmul.f32 1.442695, %v812_v26 }
 0x51d   :  { %v843_v35 = vsel %vm779_vm6, %v7666_v43, 0.0 }
 0x51e   :  { %6118 = vpow2.f32 %v824_v23  ;;  %844 = vadd.xlane.f32.xlu0 %v843_v35 }
 0x521   :  { %v791_v20 = vpop.xlane.xlu0 %790 }
 0x522   :  { %v813_v40 = vsub.f32 %v7558_v7, %v791_v20 }
 0x524   :  { %v7671_v53 = vpop.eup %6118  ;;  %v826_v2 = vmul.f32 1.442695, %v813_v40  ;;  %v10404_v40 = vld [vmem:[#allocation20_spill] sm:$0xff] }
 0x525   :  { %v846_v33 = vsel %vm779_vm6, %v7671_v53, 0.0 }
 0x526   :  { %6120 = vpow2.f32 %v826_v2  ;;  %847 = vadd.xlane.f32.xlu0 %v846_v33  ;;  %v10405_v2 = vld [vmem:[#allocation17_spill] sm:$0xff]  ;;  %v10406_v33 = vld [vmem:[#allocation18_spill] sm:$0xff] }
 0x529   :  { %v794_v48 = vpop.xlane.xlu1 %793 }
 0x52a   :  { %v814_v57 = vsub.f32 %v7572_v15, %v794_v48  ;;  %v1103_v15 = vpop.f32.mrf.mxu1 }
 0x52b   :  { %v7712_v56 = vadd.f32 %v1103_v15, %v7555_v3 }
 0x52c   :  { %v7678_v59 = vpop.eup %6120  ;;  %v828_v62 = vmul.f32 1.442695, %v814_v57 }
 0x52d   :  { %v849_v1 = vsel %vm779_vm6, %v7678_v59, 0.0  ;;  %v1133_v37 = vsel %vm779_vm6, %v7712_v56, -inf }
 0x52e   :  { %6122 = vpow2.f32 %v828_v62  ;;  %850 = vadd.xlane.f32.xlu1 %v849_v1 }
 0x531   :  { %v797_v7 = vpop.xlane.xlu1 %796 }
 0x532   :  { %v815_v61 = vsub.f32 %v7586_v21, %v797_v7  ;;  %v1106_v25 = vpop.f32.mrf.mxu1 }
 0x533   :  { %v7746_v1 = vadd.f32 %v1106_v25, %v7569_v17 }
 0x534   :  { %v7683_v11 = vpop.eup %6122  ;;  %v830_v0 = vmul.f32 1.442695, %v815_v61 }
 0x535   :  { %v852_v30 = vsel %vm779_vm6, %v7683_v11, 0.0  ;;  %v1136_v61 = vsel %vm779_vm6, %v7746_v1, -inf }
 0x536   :  { %6124 = vpow2.f32 %v830_v0  ;;  %853 = vadd.xlane.f32.xlu1 %v852_v30 }
 0x539   :  { %v800_v38 = vpop.xlane.xlu0 %799 }
 0x53a   :  { %v816_v45 = vsub.f32 %v7599_v14, %v800_v38  ;;  %v1109_v47 = vpop.f32.mrf.mxu1 }
 0x53b   :  { %v7715_v34 = vadd.f32 %v1109_v47, %v7583_v16 }
 0x53c   :  { %v7691_v51 = vpop.eup %6124  ;;  %v832_v24 = vmul.f32 1.442695, %v816_v45 }
 0x53d   :  { %v855_v21 = vsel %vm779_vm6, %v7691_v51, 0.0  ;;  %v1139_v22 = vsel %vm779_vm6, %v7715_v34, -inf }
 0x53e   :  { %6126 = vpow2.f32 %v832_v24  ;;  %856 = vadd.xlane.f32.xlu0 %v855_v21  ;;  %1125 = vmax.xlane.f32.xlu1 %v1124_v13 }
 0x541   :  { %v803_v9 = vpop.xlane.xlu2 %802 }
 0x542   :  { %v817_v29 = vsub.f32 %v7613_v46, %v803_v9  ;;  %v1130_v46 = vsel %vm779_vm6, %v7703_v31, -inf  ;;  %v1112_v54 = vpop.f32.mrf.mxu1 }
 0x543   :  { %v7724_v26 = vadd.f32 %v1112_v54, %v7596_v52 }
 0x544   :  { %v7698_v39 = vpop.eup %6126  ;;  %v834_v44 = vmul.f32 1.442695, %v817_v29 }
 0x545   :  { %v858_v14 = vsel %vm779_vm6, %v7698_v39, 0.0  ;;  %v1142_v23 = vsel %vm779_vm6, %v7724_v26, -inf }
 0x546   :  { %6128 = vpow2.f32 %v834_v44  ;;  %859 = vadd.xlane.f32.xlu2 %v858_v14  ;;  %v10407_v44 = vld [vmem:[#allocation16_spill] sm:$0xff] }
 0x549   :  { %v806_v35 = vpop.xlane.xlu1 %805 }
 0x54a   :  { %v818_v20 = vsub.f32 %v7627_v28, %v806_v35  ;;  %v7741_v28 = vadd.f32 %v7673_v19, %v7527_v58  ;;  %v1115_v0 = vpop.f32.mrf.mxu1 }
 0x54c   :  { %v7705_v41 = vpop.eup %6128  ;;  %v1127_v62 = vsel %vm779_vm6, %v7741_v28, -inf }
 0x54d   :  { %v861_v32 = vsel %vm779_vm6, %v7705_v41, 0.0 }
 0x54e   :  { %862 = vadd.xlane.f32.xlu1 %v861_v32  ;;  %1131 = vmax.xlane.f32.xlu2 %v1130_v46 }
 0x551   :  { %v809_v5 = vpop.xlane.xlu0 %808 }
 0x552   :  { %1701 = vrot.lane.b32.xlu0 %v7028_v50, %s6582_s7  ;;  %v836_v50 = vmul.f32 1.442695, %v818_v20  ;;  %v819_v30 = vsub.f32 %v7641_v8, %v809_v5  ;;  %v1118_v24 = vpop.f32.mrf.mxu1  ;;  %v7758_v8 = vadd.f32 %v1115_v0, %v7610_v27  ;;  %v1704_v20 = vpop.permute.xlu2 %1703 }
 0x554   :  { %6130 = vpow2.f32 %v836_v50  ;;  %v838_v19 = vmul.f32 1.442695, %v819_v30  ;;  %v1145_v14 = vsel %vm779_vm6, %v7758_v8, -inf }
 0x556   :  { %1134 = vmax.xlane.f32.xlu1 %v1133_v37  ;;  %1140 = vmax.xlane.f32.xlu2 %v1139_v22 }
 0x55a   :  { %v7735_v48 = vpop.eup %6130 }
 0x55b   :  { %v864_v57 = vsel %vm779_vm6, %v7735_v48, 0.0 }
 0x55e   :  { %1143 = vmax.xlane.f32.xlu2 %v1142_v23 }
 0x56f   :  { %5898 = vrot.lane.b32.xlu1 %v10404_v40, %s10313_s29 }
 0x576   :  { %5908 = vrot.lane.b32.xlu2 %v10405_v2, %s10313_s29 }
 0x577   :  { %5913 = vrot.lane.b32.xlu1 %v10406_v33, %s10313_s29 }
 0x57c   :  { %865 = vadd.xlane.f32.xlu0 %v864_v57 }
 0x584   :  { %1128 = vmax.xlane.f32.xlu0 %v1127_v62  ;;  %v10408_v62 = vld [vmem:[#allocation19_spill] sm:$0xff] }
 0x589   :  { %v842_v7 = vpop.xlane.xlu1 %841 }
 0x58a   :  { %6132 = vrcp.f32 %v842_v7 }
 0x58c   :  { %1137 = vmax.xlane.f32.xlu0 %v1136_v61 }
 0x590   :  { %v6133_v15 = vpop.eup %6132 }
 0x591   :  { %v845_v38 = vpop.xlane.xlu0 %844  ;;  %v880_v45 = vmul.f32 %v6133_v15, %v7661_v63 }
 0x592   :  { %6134 = vrcp.f32 %v845_v38 }
 0x593   :  { %5515 = vmatmul.msk.f32.vlgmr.msrb.gmra.mxu3 %vm779_vm6, %v880_v45  ;;  %6136 = vpow2.f32 %v838_v19 }
 0x598   :  { %v6135_v21 = vpop.eup %6134 }
 0x599   :  { %v848_v13 = vpop.xlane.xlu0 %847  ;;  %v881_v9 = vmul.f32 %v6135_v21, %v7666_v43  ;;  %v7754_v25 = vpop.eup %6136 }
 0x59a   :  { %6138 = vrcp.f32 %v848_v13  ;;  %v867_v63 = vsel %vm779_vm6, %v7754_v25, 0.0  ;;  %v1121_v43 = vpop.f32.mrf.mxu1 }
 0x59b   :  { %5516 = vmatmul.msk.f32.gmra.mxu3 %vm779_vm6, %v881_v9  ;;  %v7769_v46 = vadd.f32 %v1121_v43, %v7638_v12 }
 0x59d   :  { %v1151_v22 = vsel %vm779_vm6, %v7769_v46, -inf }
 0x59f   :  { %868 = vadd.xlane.f32.xlu2 %v867_v63 }
 0x5a0   :  { %v6139_v29 = vpop.eup %6138  ;;  %5903 = vrot.lane.b32.xlu0 %v10407_v44, %s10313_s29 }
 0x5a1   :  { %1146 = vmax.xlane.f32.xlu1 %v1145_v14  ;;  %v851_v47 = vpop.xlane.xlu1 %850  ;;  %v882_v32 = vmul.f32 %v6139_v29, %v7671_v53  ;;  %v7794_v14 = vadd.f32 %v1118_v24, %v7624_v4 }
 0x5a2   :  { %6140 = vrcp.f32 %v851_v47 }
 0x5a3   :  { %5517 = vmatmul.msk.f32.gmra.mxu3 %vm779_vm6, %v882_v32 }
 0x5a8   :  { %v6141_v37 = vpop.eup %6140 }
 0x5a9   :  { %1152 = vmax.xlane.f32.xlu1 %v1151_v22  ;;  %v854_v54 = vpop.xlane.xlu1 %853  ;;  %v883_v23 = vmul.f32 %v6141_v37, %v7678_v59 }
 0x5aa   :  { %6142 = vrcp.f32 %v854_v54 }
 0x5ab   :  { %5518 = vmatmul.msk.f32.gmra.mxu3 %vm779_vm6, %v883_v23 }
 0x5b0   :  { %v6143_v35 = vpop.eup %6142 }
 0x5b1   :  { %v857_v53 = vpop.xlane.xlu0 %856  ;;  %v884_v50 = vmul.f32 %v6143_v35, %v7683_v11  ;;  %v1126_v57 = vpop.xlane.xlu1 %1125 }
 0x5b2   :  { %6144 = vrcp.f32 %v857_v53  ;;  %v1154_v7 = vsub.f32 %v7688_v36, %v1126_v57  ;;  %v1782_v57 = vpop.f32.mrf.mxu1 }
 0x5b3   :  { %5519 = vmatmul.msk.f32.gmra.mxu3 %vm779_vm6, %v884_v50 }
 0x5b4   :  { %v1164_v0 = vmul.f32 1.442695, %v1154_v7 }
 0x5b7   :  { %5918 = vrot.lane.b32.xlu2 %v10408_v62, %s10313_s29  ;;  %s10437_s29 = smov 64  }
 0x5b8   :  { %v6145_v5 = vpop.eup %6144 }
 0x5b9   :  { %v860_v61 = vpop.xlane.xlu2 %859  ;;  %v885_v59 = vmul.f32 %v6145_v5, %v7691_v51 }
 0x5ba   :  { %6146 = vrcp.f32 %v860_v61 }
 0x5bb   :  { %5520 = vmatmul.msk.f32.gmra.mxu3 %vm779_vm6, %v885_v59  ;;  %6148 = vpow2.f32 %v1164_v0 }
 0x5c0   :  { %v6147_v30 = vpop.eup %6146 }
 0x5c1   :  { %v863_v11 = vpop.xlane.xlu1 %862  ;;  %v886_v15 = vmul.f32 %v6147_v30, %v7698_v39  ;;  %v1132_v38 = vpop.xlane.xlu2 %1131 }
 0x5c2   :  { %6150 = vrcp.f32 %v863_v11  ;;  %v7785_v36 = vpop.eup %6148  ;;  %v1156_v51 = vsub.f32 %v7703_v31, %v1132_v38  ;;  %v1148_v31 = vsel %vm779_vm6, %v7794_v14, -inf }
 0x5c3   :  { %5521 = vmatmul.msk.f32.gmra.mxu3 %vm779_vm6, %v886_v15  ;;  %v1184_v13 = vsel %vm779_vm6, %v7785_v36, 0.0  ;;  %v7823_v15 = vadd.f32 %v1782_v57, %v7508_v42 }
 0x5c4   :  { %v1702_v19 = vpop.permute.xlu0 %1701  ;;  %v1168_v63 = vmul.f32 1.442695, %v1156_v51 }
 0x5c5   :  { %5603 = vmatmul.msk.f32.gmra.mxu1 %vm691_vm1, %v1702_v19 }
 0x5c8   :  { %v6151_v45 = vpop.eup %6150 }
 0x5c9   :  { %v1135_v21 = vpop.xlane.xlu1 %1134  ;;  %v887_v9 = vmul.f32 %v6151_v45, %v7705_v41  ;;  %v1141_v23 = vpop.xlane.xlu2 %1140 }
 0x5ca   :  { %v1157_v39 = vsub.f32 %v7712_v56, %v1135_v21  ;;  %1185 = vadd.xlane.f32.xlu0 %v1184_v13  ;;  %v1159_v0 = vsub.f32 %v7715_v34, %v1141_v23  ;;  %v1812_v34 = vsel %vm779_vm6, %v7823_v15, -inf }
 0x5cb   :  { %5522 = vmatmul.msk.f32.gmra.mxu3 %vm779_vm6, %v887_v9 }
 0x5cc   :  { %v1170_v29 = vmul.f32 1.442695, %v1157_v39  ;;  %v1174_v11 = vmul.f32 1.442695, %v1159_v0 }
 0x5cd   :  { %5604 = vmatmul.msk.f32.gmra.mxu1 %vm691_vm1, %v1704_v20 }
 0x5ce   :  { %6152 = vpow2.f32 %v1170_v29 }
 0x5cf   :  { %6154 = vpow2.f32 %v1168_v63 }
 0x5d1   :  { %v1144_v7 = vpop.xlane.xlu2 %1143 }
 0x5d2   :  { %1149 = vmax.xlane.f32.xlu0 %v1148_v31 }
 0x5d4   :  { %v7799_v43 = vpop.eup %6152 }
 0x5d5   :  { %v1193_v41 = vsel %vm779_vm6, %v7799_v43, 0.0  ;;  %v7803_v56 = vpop.eup %6154 }
 0x5d6   :  { %1194 = vadd.xlane.f32.xlu1 %v1193_v41  ;;  %v1190_v24 = vsel %vm779_vm6, %v7803_v56, 0.0 }
 0x5d9   :  { %v5909_v38 = vpop.permute.xlu2 %5908 }
 0x5da   :  { %1191 = vadd.xlane.f32.xlu0 %v1190_v24 }
 0x5e1   :  { %v5899_v47 = vpop.permute.xlu1 %5898 }
 0x5e2   :  { %v5900_v32 = vunpack.i.l.bf16 %v5899_v47  ;;  %v5901_v37 = vunpack.i.h.bf16 %v5899_v47 }
 0x5e4   :  { %1300 = vmatpush.msrb.mxu0 %v5900_v32 }
 0x5e6   :  { %1301 = vmatpush.msrb.mxu0 %v5901_v37 }
 0x5e9   :  { %v5914_v51 = vpop.permute.xlu1 %5913 }
 0x5ee   :  { %5928 = vrot.lane.b32.xlu0 %v10407_v44, %s10309_s24 }
 0x5ef   :  { %v866_v22 = vpop.xlane.xlu0 %865 }
 0x5f0   :  { %6156 = vrcp.f32 %v866_v22 }
 0x5f6   :  { %v6157_v54 = vpop.eup %6156  ;;  %5938 = vrot.lane.b32.xlu0 %v10405_v2, %s10309_s24 }
 0x5f7   :  { %v1129_v35 = vpop.xlane.xlu0 %1128  ;;  %v888_v20 = vmul.f32 %v6157_v54, %v7735_v48  ;;  %v5910_v54 = vunpack.i.l.bf16 %v5909_v38 }
 0x5f8   :  { %v1155_v53 = vsub.f32 %v7741_v28, %v1129_v35  ;;  %v1785_v28 = vpop.f32.mrf.mxu1 }
 0x5f9   :  { %5523 = vmatmul.msk.f32.gmra.mxu3 %vm779_vm6, %v888_v20  ;;  %v7833_v13 = vadd.f32 %v1785_v28, %v7527_v58  ;;  %v5911_v20 = vunpack.i.h.bf16 %v5909_v38  ;;  %v10409_v38 = vld [vmem:[#allocation21_spill] sm:$0xff] }
 0x5fa   :  { %v1166_v50 = vmul.f32 1.442695, %v1155_v53 }
 0x5fb   :  { %v1815_v29 = vsel %vm779_vm6, %v7833_v13, -inf }
 0x5fc   :  { %6158 = vpow2.f32 %v1166_v50 }
 0x5fe   :  { %5958 = vrot.lane.b32.xlu0 %v10408_v62, %s10309_s24 }
 0x5ff   :  { %v1138_v5 = vpop.xlane.xlu0 %1137 }
 0x600   :  { %v1158_v61 = vsub.f32 %v7746_v1, %v1138_v5  ;;  %v1160_v1 = vsub.f32 %v7724_v26, %v1144_v7  ;;  %v1788_v39 = vpop.f32.mrf.mxu1  ;;  %v5915_v5 = vunpack.i.l.bf16 %v5914_v51 }
 0x601   :  { %v7843_v37 = vadd.f32 %v1788_v39, %v7541_v18 }
 0x602   :  { %v7817_v59 = vpop.eup %6158  ;;  %v1172_v30 = vmul.f32 1.442695, %v1158_v61  ;;  %v1176_v21 = vmul.f32 1.442695, %v1160_v1  ;;  %v5916_v61 = vunpack.i.h.bf16 %v5914_v51  ;;  %v10410_v51 = vld [vmem:[#allocation22_spill] sm:$0xff] }
 0x603   :  { %v1187_v48 = vsel %vm779_vm6, %v7817_v59, 0.0 }
 0x604   :  { %6160 = vpow2.f32 %v1172_v30  ;;  %1188 = vadd.xlane.f32.xlu2 %v1187_v48 }
 0x605   :  { %6162 = vpow2.f32 %v1174_v11 }
 0x606   :  { %6164 = vpow2.f32 %v1176_v21  ;;  %v10411_v21 = vld [vmem:[#allocation23_spill] sm:$0xff] }
 0x608   :  { %v1791_v53 = vpop.f32.mrf.mxu1 }
 0x609   :  { %v7854_v0 = vadd.f32 %v1791_v53, %v7555_v3 }
 0x60a   :  { %v7825_v19 = vpop.eup %6160 }
 0x60b   :  { %v1196_v45 = vsel %vm779_vm6, %v7825_v19, 0.0  ;;  %v7835_v9 = vpop.eup %6162  ;;  %v1821_v28 = vsel %vm779_vm6, %v7854_v0, -inf }
 0x60c   :  { %1813 = vmax.xlane.f32.xlu2 %v1812_v34  ;;  %1197 = vadd.xlane.f32.xlu1 %v1196_v45  ;;  %v1199_v31 = vsel %vm779_vm6, %v7835_v9, 0.0  ;;  %v7845_v23 = vpop.eup %6164 }
 0x60d   :  { %v1202_v57 = vsel %vm779_vm6, %v7845_v23, 0.0 }
 0x610   :  { %v1794_v1 = vpop.f32.mrf.mxu1 }
 0x611   :  { %v7865_v34 = vadd.f32 %v1794_v1, %v7569_v17 }
 0x612   :  { %v869_v63 = vpop.xlane.xlu2 %868  ;;  %v5904_v26 = vpop.permute.xlu0 %5903 }
 0x613   :  { %6166 = vrcp.f32 %v869_v63  ;;  %v5905_v41 = vunpack.i.l.bf16 %v5904_v26  ;;  %v5906_v32 = vunpack.i.h.bf16 %v5904_v26  ;;  %v1824_v45 = vsel %vm779_vm6, %v7865_v34, -inf }
 0x614   :  { %v1147_v24 = vpop.xlane.xlu1 %1146  ;;  %1816 = vmax.xlane.f32.xlu2 %v1815_v29  ;;  %1200 = vadd.xlane.f32.xlu1 %v1199_v31 }
 0x615   :  { %v1161_v47 = vsub.f32 %v7758_v8, %v1147_v24  ;;  %1302 = vmatpush.msrb.mxu0 %v5905_v41  ;;  %v1818_v8 = vsel %vm779_vm6, %v7843_v37, -inf }
 0x616   :  { %v7882_v24 = vpop.f32.mrf.mxu3 }
 0x617   :  { %v1178_v22 = vmul.f32 1.442695, %v1161_v47  ;;  %1303 = vmatpush.msrb.mxu0 %v5906_v32 }
 0x619   :  { %v6167_v35 = vpop.eup %6166  ;;  %1304 = vmatpush.msrb.mxu0 %v5910_v54  ;;  %6168 = vpow2.f32 %v1178_v22 }
 0x61a   :  { %v889_v50 = vmul.f32 %v6167_v35, %v7754_v25  ;;  %v5919_v7 = vpop.permute.xlu2 %5918 }
 0x61b   :  { %1305 = vmatpush.msrb.mxu0 %v5911_v20  ;;  %v5920_v25 = vunpack.i.l.bf16 %v5919_v7  ;;  %v5921_v48 = vunpack.i.h.bf16 %v5919_v7 }
 0x61c   :  { %1819 = vmax.xlane.f32.xlu2 %v1818_v8  ;;  %1203 = vadd.xlane.f32.xlu1 %v1202_v57 }
 0x61d   :  { %5524 = vmatmul.msk.f32.gmra.mxu3 %vm779_vm6, %v889_v50  ;;  %1306 = vmatpush.msrb.mxu0 %v5915_v5  ;;  %v10413_v50 = vld [vmem:[#allocation26_spill] sm:$0xff] }
 0x61e   :  { %v7890_v22 = vpop.f32.mrf.mxu3 }
 0x61f   :  { %1307 = vmatpush.msrb.mxu0 %v5916_v61  ;;  %v7856_v30 = vpop.eup %6168 }
 0x620   :  { %v1205_v11 = vsel %vm779_vm6, %v7856_v30, 0.0 }
 0x621   :  { %1308 = vmatpush.msrb.mxu0 %v5920_v25 }
 0x623   :  { %1309 = vmatpush.msrb.mxu0 %v5921_v48 }
 0x624   :  { %1822 = vmax.xlane.f32.xlu2 %v1821_v28  ;;  %1206 = vadd.xlane.f32.xlu1 %v1205_v11 }
 0x625   :  { %5565 = vmatmul.msk.f32.vlgmr.msra.gmra.mxu3 %vm691_vm1, %v10409_v38 }
 0x626   :  { %v7902_v20 = vpop.f32.mrf.mxu3 }
 0x62c   :  { %1825 = vmax.xlane.f32.xlu2 %v1824_v45 }
 0x62d   :  { %5566 = vmatmul.msk.f32.gmra.mxu3 %vm691_vm1, %v10410_v51 }
 0x62e   :  { %v7906_v8 = vpop.f32.mrf.mxu3 }
 0x635   :  { %5567 = vmatmul.msk.f32.gmra.mxu3 %vm691_vm1, %v10411_v21 }
 0x63d   :  { %5568 = vmatmul.msk.f32.gmra.mxu3 %vm691_vm1, %v7420_v60  ;;  %v1186_v39 = vpop.xlane.xlu0 %1185  ;;  %v10412_v60 = vld [vmem:[#allocation24_spill] sm:$0xff] }
 0x63e   :  { %6170 = vrcp.f32 %v1186_v39 }
 0x644   :  { %v6171_v63 = vpop.eup %6170  ;;  %5923 = vrot.lane.b32.xlu2 %v10404_v40, %s10309_s24 }
 0x645   :  { %5569 = vmatmul.msk.f32.gmra.mxu3 %vm691_vm1, %v7397_v55  ;;  %v1150_v26 = vpop.xlane.xlu0 %1149  ;;  %v1224_v29 = vmul.f32 %v6171_v63, %v7785_v36  ;;  %v1797_v55 = vpop.f32.mrf.mxu1 }
 0x646   :  { %v1162_v31 = vsub.f32 %v7794_v14, %v1150_v26  ;;  %v7893_v36 = vadd.f32 %v1797_v55, %v7583_v16  ;;  %v1153_v14 = vpop.xlane.xlu1 %1152 }
 0x647   :  { %5545 = vmatmul.msk.f32.vlgmr.msrb.gmra.mxu0 %vm779_vm6, %v1224_v29  ;;  %v1163_v35 = vsub.f32 %v7769_v46, %v1153_v14  ;;  %v7914_v46 = vpop.f32.mrf.mxu3 }
 0x648   :  { %v1180_v41 = vmul.f32 1.442695, %v1162_v31  ;;  %v1827_v54 = vsel %vm779_vm6, %v7893_v36, -inf }
 0x649   :  { %v1182_v53 = vmul.f32 1.442695, %v1163_v35 }
 0x64a   :  { %6172 = vpow2.f32 %v1180_v41 }
 0x64b   :  { %6174 = vpow2.f32 %v1182_v53 }
 0x64d   :  { %5570 = vmatmul.msk.f32.gmra.mxu3 %vm691_vm1, %v10412_v60  ;;  %v1192_v5 = vpop.xlane.xlu0 %1191  ;;  %v1800_v53 = vpop.f32.mrf.mxu1 }
 0x64e   :  { %v1195_v61 = vpop.xlane.xlu1 %1194 }
 0x64f   :  { %v7920_v7 = vpop.f32.mrf.mxu3 }
 0x650   :  { %v7886_v47 = vpop.eup %6172 }
 0x651   :  { %v1208_v32 = vsel %vm779_vm6, %v7886_v47, 0.0 }
 0x652   :  { %1209 = vadd.xlane.f32.xlu1 %v1208_v32 }
 0x655   :  { %5571 = vmatmul.msk.f32.gmra.mxu3 %vm691_vm1, %v7435_v49  ;;  %v7908_v49 = vpop.eup %6174 }
 0x656   :  { %v1211_v57 = vsel %vm779_vm6, %v7908_v49, 0.0 }
 0x65a   :  { %1828 = vmax.xlane.f32.xlu1 %v1827_v54 }
 0x65d   :  { %5572 = vmatmul.msk.f32.gmra.mxu3 %vm691_vm1, %v7410_v10 }
 0x660   :  { %v5929_v14 = vpop.permute.xlu0 %5928 }
 0x665   :  { %5573 = vmatmul.msk.f32.gmra.mxu3 %vm691_vm1, %v10413_v50 }
 0x66d   :  { %5574 = vmatmul.msk.f32.gmra.mxu3 %vm691_vm1, %v7658_v6  ;;  %1212 = vadd.xlane.f32.xlu2 %v1211_v57  ;;  %v7959_v57 = vadd.f32 %v1800_v53, %v7596_v52 }
 0x673   :  { %5933 = vrot.lane.b32.xlu1 %v10404_v40, %s10307_s3 }
 0x677   :  { %v1189_v10 = vpop.xlane.xlu2 %1188 }
 0x678   :  { %6176 = vrcp.f32 %v1189_v10 }
 0x679   :  { %6178 = vrcp.f32 %v1192_v5 }
 0x67b   :  { %5943 = vrot.lane.b32.xlu1 %v10407_v44, %s10307_s3  ;;  %v7929_v44 = vpop.f32.mrf.mxu3 }
 0x67e   :  { %v6177_v25 = vpop.eup %6176 }
 0x67f   :  { %v1814_v48 = vpop.xlane.xlu2 %1813  ;;  %v1225_v6 = vmul.f32 %v6177_v25, %v7817_v59  ;;  %v6179_v40 = vpop.eup %6178 }
 0x680   :  { %v1842_v28 = vsub.f32 %v7823_v15, %v1814_v48  ;;  %v1198_v1 = vpop.xlane.xlu1 %1197  ;;  %v1226_v59 = vmul.f32 %v6179_v40, %v7803_v56 }
 0x681   :  { %5546 = vmatmul.msk.f32.gmra.mxu0 %vm779_vm6, %v1225_v6  ;;  %v5930_v6 = vunpack.i.l.bf16 %v5929_v14 }
 0x682   :  { %v1852_v11 = vmul.f32 1.442695, %v1842_v28  ;;  %v5939_v28 = vpop.permute.xlu0 %5938 }
 0x683   :  { %5948 = vrot.lane.b32.xlu1 %v10406_v33, %s10309_s24  ;;  %v7942_v63 = vpop.f32.mrf.mxu3 }
 0x684   :  { %6180 = vpow2.f32 %v1852_v11  ;;  %v5931_v11 = vunpack.i.h.bf16 %v5929_v14 }
 0x685   :  { %5953 = vrot.lane.b32.xlu2 %v10405_v2, %s10307_s3  ;;  %6182 = vrcp.f32 %v1195_v61 }
 0x686   :  { %6184 = vrcp.f32 %v1198_v1 }
 0x687   :  { %v7931_v38 = vpop.xlane.xlu2 %1816 }
 0x688   :  { %v1201_v21 = vpop.xlane.xlu1 %1200 }
 0x689   :  { %5547 = vmatmul.msk.f32.gmra.mxu0 %vm779_vm6, %v1226_v59  ;;  %6186 = vrcp.f32 %v1201_v21  ;;  %v5940_v59 = vunpack.i.l.bf16 %v5939_v28 }
 0x68a   :  { %v7935_v15 = vpop.eup %6180 }
 0x68b   :  { %v1872_v45 = vsel %vm779_vm6, %v7935_v15, 0.0  ;;  %v6183_v51 = vpop.eup %6182  ;;  %v7948_v31 = vpop.f32.mrf.mxu3 }
 0x68c   :  { %1873 = vadd.xlane.f32.xlu0 %v1872_v45  ;;  %v1227_v2 = vmul.f32 %v6183_v51, %v7799_v43  ;;  %v6185_v56 = vpop.eup %6184  ;;  %v5941_v51 = vunpack.i.h.bf16 %v5939_v28 }
 0x68d   :  { %v1228_v29 = vmul.f32 %v6185_v56, %v7825_v19 }
 0x68f   :  { %v7939_v39 = vpop.xlane.xlu2 %1819  ;;  %v6187_v60 = vpop.eup %6186 }
 0x690   :  { %v1204_v41 = vpop.xlane.xlu1 %1203  ;;  %v1229_v43 = vmul.f32 %v6187_v60, %v7835_v9 }
 0x691   :  { %5548 = vmatmul.msk.f32.gmra.mxu0 %vm779_vm6, %v1227_v2  ;;  %6188 = vrcp.f32 %v1204_v41 }
 0x697   :  { %v7945_v26 = vpop.xlane.xlu2 %1822  ;;  %v6189_v35 = vpop.eup %6188 }
 0x698   :  { %v1207_v54 = vpop.xlane.xlu1 %1206  ;;  %v1230_v50 = vmul.f32 %v6189_v35, %v7845_v23  ;;  %v1830_v23 = vsel %vm779_vm6, %v7959_v57, -inf }
 0x699   :  { %5549 = vmatmul.msk.f32.gmra.mxu0 %vm779_vm6, %v1228_v29  ;;  %6190 = vrcp.f32 %v1207_v54 }
 0x69f   :  { %v7951_v32 = vpop.xlane.xlu2 %1825  ;;  %v6191_v48 = vpop.eup %6190 }
 0x6a0   :  { %v7954_v55 = vpop.f32.mrf.mxu3  ;;  %v1231_v40 = vmul.f32 %v6191_v48, %v7856_v30 }
 0x6a1   :  { %5550 = vmatmul.msk.f32.gmra.mxu0 %vm779_vm6, %v1229_v43 }
 0x6a7   :  { %v5924_v19 = vpop.permute.xlu2 %5923 }
 0x6a8   :  { %v1438_v10 = vpop.f32.mrf.mxu3  ;;  %v5925_v5 = vunpack.i.l.bf16 %v5924_v19  ;;  %v5926_v9 = vunpack.i.h.bf16 %v5924_v19 }
 0x6a9   :  { %v7962_v61 = vadd.f32 %v1438_v10, %v7508_v42  ;;  %5551 = vmatmul.msk.f32.gmra.mxu0 %vm779_vm6, %v1230_v50 }
 0x6aa   :  { %1644 = vmatpush.msrb.mxu2 %v5925_v5 }
 0x6ab   :  { %v1468_v25 = vsel %vm779_vm6, %v7962_v61, -inf }
 0x6ac   :  { %1469 = vmax.xlane.f32.xlu0 %v1468_v25  ;;  %1645 = vmatpush.msrb.mxu2 %v5926_v9 }
 0x6ad   :  { %1831 = vmax.xlane.f32.xlu1 %v1830_v23 }
 0x6ae   :  { %1646 = vmatpush.msrb.mxu2 %v5930_v6 }
 0x6b0   :  { %v1441_v1 = vpop.f32.mrf.mxu3  ;;  %1647 = vmatpush.msrb.mxu2 %v5931_v11 }
 0x6b1   :  { %v7971_v45 = vadd.f32 %v1441_v1, %v7527_v58  ;;  %5552 = vmatmul.msk.f32.gmra.mxu0 %vm779_vm6, %v1231_v40 }
 0x6b2   :  { %1648 = vmatpush.msrb.mxu2 %v5940_v59 }
 0x6b3   :  { %v1471_v21 = vsel %vm779_vm6, %v7971_v45, -inf }
 0x6b4   :  { %1472 = vmax.xlane.f32.xlu0 %v1471_v21  ;;  %1649 = vmatpush.msrb.mxu2 %v5941_v51 }
 0x6b8   :  { %v1444_v2 = vpop.f32.mrf.mxu3 }
 0x6b9   :  { %v7977_v56 = vadd.f32 %v1444_v2, %v7541_v18 }
 0x6bb   :  { %v1474_v30 = vsel %vm779_vm6, %v7977_v56, -inf }
 0x6bc   :  { %1475 = vmax.xlane.f32.xlu0 %v1474_v30 }
 0x6c0   :  { %v1447_v29 = vpop.f32.mrf.mxu3 }
 0x6c1   :  { %v7982_v41 = vadd.f32 %v1447_v29, %v7555_v3 }
 0x6c3   :  { %v1477_v60 = vsel %vm779_vm6, %v7982_v41, -inf }
 0x6c4   :  { %1478 = vmax.xlane.f32.xlu0 %v1477_v60 }
 0x6c5   :  { %v1210_v43 = vpop.xlane.xlu1 %1209 }
 0x6c6   :  { %6192 = vrcp.f32 %v1210_v43 }
 0x6c8   :  { %v1450_v14 = vpop.f32.mrf.mxu3 }
 0x6c9   :  { %v7987_v54 = vadd.f32 %v1450_v14, %v7569_v17 }
 0x6cb   :  { %v1480_v35 = vsel %vm779_vm6, %v7987_v54, -inf }
 0x6cc   :  { %v6193_v53 = vpop.eup %6192  ;;  %1481 = vmax.xlane.f32.xlu0 %v1480_v35 }
 0x6cd   :  { %v1232_v19 = vmul.f32 %v6193_v53, %v7886_v47  ;;  %v8003_v23 = vpop.xlane.xlu1 %1828 }
 0x6cf   :  { %5553 = vmatmul.msk.f32.gmra.mxu0 %vm779_vm6, %v1232_v19 }
 0x6d0   :  { %v1453_v50 = vpop.f32.mrf.mxu3 }
 0x6d1   :  { %v7994_v10 = vadd.f32 %v1453_v50, %v7583_v16 }
 0x6d3   :  { %v1483_v5 = vsel %vm779_vm6, %v7994_v10, -inf }
 0x6d4   :  { %1484 = vmax.xlane.f32.xlu0 %v1483_v5  ;;  %v5959_v5 = vpop.permute.xlu0 %5958 }
 0x6d8   :  { %v1456_v9 = vpop.f32.mrf.mxu3 }
 0x6d9   :  { %v7999_v25 = vadd.f32 %v1456_v9, %v7596_v52 }
 0x6db   :  { %v1486_v48 = vsel %vm779_vm6, %v7999_v25, -inf }
 0x6dc   :  { %1487 = vmax.xlane.f32.xlu1 %v1486_v48  ;;  %v5960_v48 = vunpack.i.l.bf16 %v5959_v5 }
 0x6e0   :  { %v1459_v47 = vpop.f32.mrf.mxu3  ;;  %v1213_v6 = vpop.xlane.xlu2 %1212 }
 0x6e1   :  { %v8006_v28 = vadd.f32 %v1459_v47, %v7610_v27  ;;  %6194 = vrcp.f32 %v1213_v6  ;;  %v5961_v47 = vunpack.i.h.bf16 %v5959_v5  ;;  %v1803_v6 = vpop.f32.mrf.mxu1 }
 0x6e3   :  { %v1489_v11 = vsel %vm779_vm6, %v8006_v28, -inf }
 0x6e4   :  { %1490 = vmax.xlane.f32.xlu2 %v1489_v11 }
 0x6e5   :  { %v5934_v40 = vpop.permute.xlu1 %5933 }
 0x6e6   :  { %v5935_v1 = vunpack.i.l.bf16 %v5934_v40  ;;  %v5936_v2 = vunpack.i.h.bf16 %v5934_v40  ;;  %v8022_v40 = vadd.f32 %v1803_v6, %v7610_v27 }
 0x6e7   :  { %v6195_v59 = vpop.eup %6194 }
 0x6e8   :  { %v1462_v51 = vpop.f32.mrf.mxu3  ;;  %1988 = vmatpush.msra.mxu0 %v5935_v1  ;;  %v1233_v21 = vmul.f32 %v6195_v59, %v7908_v49  ;;  %v5954_v14 = vpop.permute.xlu2 %5953 }
 0x6e9   :  { %v8012_v30 = vadd.f32 %v1462_v51, %v7624_v4  ;;  %v5955_v53 = vunpack.i.l.bf16 %v5954_v14  ;;  %v5956_v19 = vunpack.i.h.bf16 %v5954_v14  ;;  %v1843_v51 = vsub.f32 %v7833_v13, %v7931_v38 }
 0x6ea   :  { %5554 = vmatmul.msk.f32.gmra.mxu0 %vm779_vm6, %v1233_v21  ;;  %v1844_v13 = vsub.f32 %v7843_v37, %v7939_v39  ;;  %v1845_v39 = vsub.f32 %v7854_v0, %v7945_v26 }
 0x6eb   :  { %1989 = vmatpush.msra.mxu0 %v5936_v2  ;;  %v1492_v29 = vsel %vm779_vm6, %v8012_v30, -inf  ;;  %v1854_v2 = vmul.f32 1.442695, %v1843_v51 }
 0x6ec   :  { %1493 = vmax.xlane.f32.xlu0 %v1492_v29 }
 0x6ed   :  { %v5944_v60 = vpop.permute.xlu1 %5943 }
 0x6ee   :  { %v5945_v43 = vunpack.i.l.bf16 %v5944_v60  ;;  %v5946_v35 = vunpack.i.h.bf16 %v5944_v60 }
 0x6f0   :  { %1990 = vmatpush.msra.mxu0 %v5945_v43 }
 0x6f2   :  { %1991 = vmatpush.msra.mxu0 %v5946_v35 }
 0x6f4   :  { %1992 = vmatpush.msra.mxu0 %v5955_v53 }
 0x6f5   :  { %5963 = vrot.lane.b32.xlu1 %v10406_v33, %s10307_s3  ;;  %v5949_v49 = vpop.permute.xlu1 %5948  ;;  %v1833_v33 = vsel %vm779_vm6, %v8022_v40, -inf }
 0x6f6   :  { %1993 = vmatpush.msra.mxu0 %v5956_v19  ;;  %v5950_v50 = vunpack.i.l.bf16 %v5949_v49  ;;  %v5951_v9 = vunpack.i.h.bf16 %v5949_v49  ;;  %v1806_v49 = vpop.f32.mrf.mxu1 }
 0x6f7   :  { %v8045_v5 = vadd.f32 %v1806_v49, %v7624_v4 }
 0x6f8   :  { %1650 = vmatpush.msrb.mxu2 %v5950_v50  ;;  %v1856_v50 = vmul.f32 1.442695, %v1844_v13 }
 0x6f9   :  { %v1836_v6 = vsel %vm779_vm6, %v8045_v5, -inf }
 0x6fa   :  { %1651 = vmatpush.msrb.mxu2 %v5951_v9 }
 0x6fc   :  { %1652 = vmatpush.msrb.mxu2 %v5960_v48 }
 0x6fe   :  { %1653 = vmatpush.msrb.mxu2 %v5961_v47 }
 0x6ff   :  { %v8019_v11 = vpop.xlane.xlu0 %1873 }
 0x71f   :  { %1834 = vmax.xlane.f32.xlu1 %v1833_v33  ;;  %v1470_v1 = vpop.xlane.xlu0 %1469 }
 0x720   :  { %v1498_v59 = vsub.f32 %v7962_v61, %v1470_v1  ;;  %v1858_v1 = vmul.f32 1.442695, %v1845_v39 }
 0x722   :  { %v1508_v21 = vmul.f32 1.442695, %v1498_v59 }
 0x724   :  { %6196 = vpow2.f32 %v1508_v21 }
 0x725   :  { %6198 = vpow2.f32 %v1854_v2 }
 0x727   :  { %v1473_v29 = vpop.xlane.xlu0 %1472 }
 0x728   :  { %v1499_v60 = vsub.f32 %v7971_v45, %v1473_v29 }
 0x72a   :  { %v8030_v43 = vpop.eup %6196  ;;  %v1510_v14 = vmul.f32 1.442695, %v1499_v60 }
 0x72b   :  { %v1528_v35 = vsel %vm779_vm6, %v8030_v43, 0.0  ;;  %v8034_v61 = vpop.eup %6198 }
 0x72c   :  { %6200 = vpow2.f32 %v1510_v14  ;;  %1529 = vadd.xlane.f32.xlu0 %v1528_v35  ;;  %v1875_v38 = vsel %vm779_vm6, %v8034_v61, 0.0  ;;  %v1809_v14 = vpop.f32.mrf.mxu1 }
 0x72d   :  { %6202 = vpow2.f32 %v1856_v50  ;;  %v8077_v13 = vadd.f32 %v1809_v14, %v7638_v12 }
 0x72f   :  { %v1476_v53 = vpop.xlane.xlu0 %1475  ;;  %v1839_v49 = vsel %vm779_vm6, %v8077_v13, -inf }
 0x730   :  { %v1500_v47 = vsub.f32 %v7977_v56, %v1476_v53  ;;  %v1846_v56 = vsub.f32 %v7865_v34, %v7951_v32  ;;  %v1847_v34 = vsub.f32 %v7893_v36, %v8003_v23 }
 0x732   :  { %v8036_v19 = vpop.eup %6200  ;;  %v1512_v33 = vmul.f32 1.442695, %v1500_v47  ;;  %v1860_v21 = vmul.f32 1.442695, %v1846_v56 }
 0x733   :  { %v1531_v45 = vsel %vm779_vm6, %v8036_v19, 0.0  ;;  %v8053_v59 = vpop.eup %6202 }
 0x734   :  { %1876 = vadd.xlane.f32.xlu0 %v1875_v38  ;;  %1532 = vadd.xlane.f32.xlu2 %v1531_v45  ;;  %v1832_v38 = vpop.xlane.xlu1 %1831 }
 0x737   :  { %v1479_v9 = vpop.xlane.xlu0 %1478 }
 0x738   :  { %v1501_v48 = vsub.f32 %v7982_v41, %v1479_v9  ;;  %v1878_v41 = vsel %vm779_vm6, %v8053_v59, 0.0 }
 0x73a   :  { %v1514_v37 = vmul.f32 1.442695, %v1501_v48 }
 0x73c   :  { %6204 = vpow2.f32 %v1514_v37  ;;  %1837 = vmax.xlane.f32.xlu0 %v1836_v6 }
 0x73d   :  { %6206 = vpow2.f32 %v1512_v33 }
 0x73e   :  { %6208 = vpow2.f32 %v1858_v1 }
 0x73f   :  { %v1482_v26 = vpop.xlane.xlu0 %1481  ;;  %6210 = vpow2.f32 %v1860_v21 }
 0x740   :  { %v1502_v60 = vsub.f32 %v7987_v54, %v1482_v26  ;;  %v1862_v54 = vmul.f32 1.442695, %v1847_v34 }
 0x742   :  { %v8055_v51 = vpop.eup %6204  ;;  %v1516_v53 = vmul.f32 1.442695, %v1502_v60 }
 0x743   :  { %v1537_v0 = vsel %vm779_vm6, %v8055_v51, 0.0  ;;  %v8063_v2 = vpop.eup %6206 }
 0x744   :  { %1879 = vadd.xlane.f32.xlu0 %v1878_v41  ;;  %1538 = vadd.xlane.f32.xlu1 %v1537_v0  ;;  %v8065_v29 = vpop.eup %6208  ;;  %v1534_v32 = vsel %vm779_vm6, %v8063_v2, 0.0  ;;  %6212 = vpow2.f32 %v1516_v53 }
 0x745   :  { %v1881_v35 = vsel %vm779_vm6, %v8065_v29, 0.0  ;;  %v8079_v36 = vpop.eup %6210  ;;  %6214 = vpow2.f32 %v1862_v54 }
 0x746   :  { %v1884_v50 = vsel %vm779_vm6, %v8079_v36, 0.0 }
 0x747   :  { %v1485_v45 = vpop.xlane.xlu0 %1484 }
 0x748   :  { %v1503_v23 = vsub.f32 %v7994_v10, %v1485_v45  ;;  %v1465_v45 = vpop.f32.mrf.mxu3 }
 0x74a   :  { %v1518_v9 = vmul.f32 1.442695, %v1503_v23  ;;  %v8087_v37 = vpop.eup %6212 }
 0x74b   :  { %v8089_v39 = vpop.eup %6214 }
 0x74c   :  { %5968 = vrot.lane.b32.xlu2 %v10408_v62, %s10307_s3  ;;  %1535 = vadd.xlane.f32.xlu0 %v1534_v32  ;;  %v1848_v62 = vsub.f32 %v7959_v57, %v1832_v38  ;;  %6216 = vpow2.f32 %v1518_v9  ;;  %v1540_v57 = vsel %vm779_vm6, %v8087_v37, 0.0  ;;  %v1887_v6 = vsel %vm779_vm6, %v8089_v39, 0.0  ;;  %s6590_s3 = smov [#allocation2]  }
 0x74d   :  { %1882 = vadd.xlane.f32.xlu1 %v1881_v35 }
 0x74e   :  { %v1864_v48 = vmul.f32 1.442695, %v1848_v62  ;;  %v8115_v62 = vadd.f32 %v1465_v45, %v7638_v12 }
 0x74f   :  { %v1488_v47 = vpop.xlane.xlu1 %1487 }
 0x750   :  { %v1504_v10 = vsub.f32 %v7999_v25, %v1488_v47  ;;  %6218 = vpow2.f32 %v1864_v48 }
 0x752   :  { %v1520_v33 = vmul.f32 1.442695, %v1504_v10  ;;  %v8096_v56 = vpop.eup %6216 }
 0x753   :  { %v1543_v25 = vsel %vm779_vm6, %v8096_v56, 0.0 }
 0x754   :  { %1840 = vmax.xlane.f32.xlu0 %v1839_v49  ;;  %6220 = vpow2.f32 %v1520_v33  ;;  %v1495_v49 = vsel %vm779_vm6, %v8115_v62, -inf }
 0x755   :  { %1885 = vadd.xlane.f32.xlu1 %v1884_v50 }
 0x756   :  { %v8099_v0 = vpop.eup %6218 }
 0x757   :  { %v1890_v21 = vsel %vm779_vm6, %v8099_v0, 0.0  ;;  %v1491_v32 = vpop.xlane.xlu2 %1490 }
 0x758   :  { %v1505_v53 = vsub.f32 %v8006_v28, %v1491_v32 }
 0x75a   :  { %v8105_v34 = vpop.eup %6220  ;;  %v1522_v23 = vmul.f32 1.442695, %v1505_v53 }
 0x75b   :  { %v1546_v54 = vsel %vm779_vm6, %v8105_v34, 0.0 }
 0x75c   :  { %1541 = vadd.xlane.f32.xlu0 %v1540_v57 }
 0x75d   :  { %1888 = vadd.xlane.f32.xlu1 %v1887_v6 }
 0x75f   :  { %v1494_v1 = vpop.xlane.xlu0 %1493 }
 0x760   :  { %v1506_v41 = vsub.f32 %v8012_v30, %v1494_v1 }
 0x762   :  { %v1524_v26 = vmul.f32 1.442695, %v1506_v41 }
 0x764   :  { %6222 = vpow2.f32 %v1524_v26  ;;  %1544 = vadd.xlane.f32.xlu0 %v1543_v25 }
 0x765   :  { %1891 = vadd.xlane.f32.xlu1 %v1890_v21  ;;  %6224 = vpow2.f32 %v1522_v23 }
 0x767   :  { %v5964_v60 = vpop.permute.xlu1 %5963 }
 0x768   :  { %v5965_v14 = vunpack.i.l.bf16 %v5964_v60  ;;  %v5966_v30 = vunpack.i.h.bf16 %v5964_v60 }
 0x76a   :  { %v8107_v35 = vpop.eup %6222  ;;  %1994 = vmatpush.msra.mxu0 %v5965_v14 }
 0x76b   :  { %v1552_v38 = vsel %vm779_vm6, %v8107_v35, 0.0  ;;  %v8119_v28 = vpop.eup %6224 }
 0x76c   :  { %1995 = vmatpush.msra.mxu0 %v5966_v30  ;;  %1547 = vadd.xlane.f32.xlu0 %v1546_v54  ;;  %v1549_v50 = vsel %vm779_vm6, %v8119_v28, 0.0 }
 0x76d   :  { %1553 = vadd.xlane.f32.xlu1 %v1552_v38 }
 0x775   :  { %1496 = vmax.xlane.f32.xlu2 %v1495_v49 }
 0x77d   :  { %1550 = vadd.xlane.f32.xlu2 %v1549_v50 }
 0x792   :  { %v1835_v9 = vpop.xlane.xlu1 %1834 }
 0x793   :  { %v1849_v48 = vsub.f32 %v8022_v40, %v1835_v9 }
 0x795   :  { %v1866_v47 = vmul.f32 1.442695, %v1849_v48 }
 0x797   :  { %6226 = vpow2.f32 %v1866_v47 }
 0x79d   :  { %v8124_v10 = vpop.eup %6226 }
 0x79e   :  { %v1893_v57 = vsel %vm779_vm6, %v8124_v10, 0.0 }
 0x79f   :  { %1894 = vadd.xlane.f32.xlu0 %v1893_v57  ;;  %v1530_v6 = vpop.xlane.xlu0 %1529 }
 0x7a0   :  { %6228 = vrcp.f32 %v1530_v6 }
 0x7a6   :  { %v6229_v33 = vpop.eup %6228 }
 0x7a7   :  { %v1533_v1 = vpop.xlane.xlu2 %1532  ;;  %v1877_v41 = vpop.xlane.xlu0 %1876  ;;  %v1568_v26 = vmul.f32 %v6229_v33, %v8030_v43 }
 0x7a8   :  { %6230 = vrcp.f32 %v1533_v1 }
 0x7a9   :  { %5575 = vmatmul.msk.f32.vlgmr.msrb.gmra.mxu2 %vm779_vm6, %v1568_v26  ;;  %6232 = vrcp.f32 %v8019_v11 }
 0x7aa   :  { %6234 = vrcp.f32 %v1877_v41 }
 0x7ae   :  { %v6231_v40 = vpop.eup %6230 }
 0x7af   :  { %v5969_v25 = vpop.permute.xlu2 %5968  ;;  %v1838_v21 = vpop.xlane.xlu0 %1837  ;;  %v1569_v60 = vmul.f32 %v6231_v40, %v8036_v19 }
 0x7b0   :  { %v6233_v32 = vpop.eup %6232  ;;  %v5970_v14 = vunpack.i.l.bf16 %v5969_v25  ;;  %v1850_v30 = vsub.f32 %v8045_v5, %v1838_v21  ;;  %v5971_v53 = vunpack.i.h.bf16 %v5969_v25 }
 0x7b1   :  { %5576 = vmatmul.msk.f32.gmra.mxu2 %vm779_vm6, %v1569_v60  ;;  %v1912_v43 = vmul.f32 %v6233_v32, %v7935_v15  ;;  %v6235_v45 = vpop.eup %6234 }
 0x7b2   :  { %v1868_v54 = vmul.f32 1.442695, %v1850_v30  ;;  %1996 = vmatpush.msra.mxu0 %v5970_v14  ;;  %v1913_v23 = vmul.f32 %v6235_v45, %v8034_v61 }
 0x7b4   :  { %6236 = vpow2.f32 %v1868_v54  ;;  %1997 = vmatpush.msra.mxu0 %v5971_v53 }
 0x7b5   :  { %5605 = vmatmul.msk.f32.vlgmr.msra.gmra.mxu0 %vm779_vm6, %v1912_v43 }
 0x7b7   :  { %v1539_v11 = vpop.xlane.xlu1 %1538  ;;  %v1880_v38 = vpop.xlane.xlu0 %1879 }
 0x7b8   :  { %6238 = vrcp.f32 %v1880_v38 }
 0x7ba   :  { %v8136_v19 = vpop.eup %6236 }
 0x7bb   :  { %v1896_v5 = vsel %vm779_vm6, %v8136_v19, 0.0 }
 0x7bc   :  { %1897 = vadd.xlane.f32.xlu2 %v1896_v5 }
 0x7bd   :  { %5606 = vmatmul.msk.f32.gmra.mxu0 %vm779_vm6, %v1913_v23 }
 0x7be   :  { %v6239_v15 = vpop.eup %6238 }
 0x7bf   :  { %v1536_v49 = vpop.xlane.xlu0 %1535  ;;  %v1914_v9 = vmul.f32 %v6239_v15, %v8053_v59 }
 0x7c0   :  { %v1883_v50 = vpop.xlane.xlu1 %1882  ;;  %6240 = vrcp.f32 %v1536_v49 }
 0x7c1   :  { %6242 = vrcp.f32 %v1883_v50 }
 0x7c2   :  { %6244 = vrcp.f32 %v1539_v11 }
 0x7c5   :  { %5607 = vmatmul.msk.f32.gmra.mxu0 %vm779_vm6, %v1914_v9 }
 0x7c6   :  { %v6241_v48 = vpop.eup %6240 }
 0x7c7   :  { %v1841_v47 = vpop.xlane.xlu0 %1840  ;;  %v1570_v57 = vmul.f32 %v6241_v48, %v8063_v2  ;;  %v6243_v6 = vpop.eup %6242 }
 0x7c8   :  { %v1886_v33 = vpop.xlane.xlu1 %1885  ;;  %v1851_v61 = vsub.f32 %v8077_v13, %v1841_v47  ;;  %v1915_v41 = vmul.f32 %v6243_v6, %v8065_v29  ;;  %v6245_v26 = vpop.eup %6244 }
 0x7c9   :  { %5577 = vmatmul.msk.f32.gmra.mxu2 %vm779_vm6, %v1570_v57  ;;  %6246 = vrcp.f32 %v1886_v33  ;;  %v1571_v40 = vmul.f32 %v6245_v26, %v8055_v51  ;;  %v1311_v13 = vpop.f32.mrf.mxu0 }
 0x7ca   :  { %v1870_v1 = vmul.f32 1.442695, %v1851_v61 }
 0x7cc   :  { %6248 = vpow2.f32 %v1870_v1 }
 0x7cd   :  { %5608 = vmatmul.msk.f32.gmra.mxu0 %vm779_vm6, %v1915_v41 }
 0x7cf   :  { %v1542_v59 = vpop.xlane.xlu0 %1541  ;;  %v6247_v25 = vpop.eup %6246 }
 0x7d0   :  { %v1889_v21 = vpop.xlane.xlu1 %1888  ;;  %6250 = vrcp.f32 %v1542_v59  ;;  %v1916_v29 = vmul.f32 %v6247_v25, %v8079_v36 }
 0x7d1   :  { %5578 = vmatmul.msk.f32.gmra.mxu2 %vm779_vm6, %v1571_v40  ;;  %6252 = vrcp.f32 %v1889_v21  ;;  %v1314_v54 = vpop.f32.mrf.mxu0 }
 0x7d2   :  { %v8151_v2 = vpop.eup %6248 }
 0x7d3   :  { %v1899_v60 = vsel %vm779_vm6, %v8151_v2, 0.0 }
 0x7d4   :  { %2039 = vrot.lane.b32.xlu2 %v1311_v13, %s6587_s30  ;;  %1900 = vadd.xlane.f32.xlu1 %v1899_v60 }
 0x7d5   :  { %5609 = vmatmul.msk.f32.gmra.mxu0 %vm779_vm6, %v1916_v29 }
 0x7d6   :  { %v6251_v51 = vpop.eup %6250 }
 0x7d7   :  { %v1545_v32 = vpop.xlane.xlu0 %1544  ;;  %v1572_v14 = vmul.f32 %v6251_v51, %v8087_v37  ;;  %v6253_v30 = vpop.eup %6252 }
 0x7d8   :  { %v1892_v53 = vpop.xlane.xlu1 %1891  ;;  %6254 = vrcp.f32 %v1545_v32  ;;  %v1917_v43 = vmul.f32 %v6253_v30, %v8089_v39 }
 0x7d9   :  { %5579 = vmatmul.msk.f32.gmra.mxu2 %vm779_vm6, %v1572_v14  ;;  %6256 = vrcp.f32 %v1892_v53  ;;  %v1317_v39 = vpop.f32.mrf.mxu0 }
 0x7dc   :  { %2041 = vrot.lane.b32.xlu2 %v1314_v54, %s6587_s30 }
 0x7dd   :  { %5610 = vmatmul.msk.f32.gmra.mxu0 %vm779_vm6, %v1917_v43 }
 0x7de   :  { %v6255_v36 = vpop.eup %6254 }
 0x7df   :  { %v1548_v11 = vpop.xlane.xlu0 %1547  ;;  %v1573_v38 = vmul.f32 %v6255_v36, %v8096_v56  ;;  %v6257_v45 = vpop.eup %6256 }
 0x7e0   :  { %6258 = vrcp.f32 %v1548_v11  ;;  %v1918_v37 = vmul.f32 %v6257_v45, %v8099_v0  ;;  %v1554_v47 = vpop.xlane.xlu1 %1553 }
 0x7e1   :  { %5580 = vmatmul.msk.f32.gmra.mxu2 %vm779_vm6, %v1573_v38  ;;  %v1320_v9 = vpop.f32.mrf.mxu0 }
 0x7e5   :  { %5611 = vmatmul.msk.f32.gmra.mxu0 %vm779_vm6, %v1918_v37 }
 0x7e6   :  { %v6259_v5 = vpop.eup %6258 }
 0x7e7   :  { %v1574_v23 = vmul.f32 %v6259_v5, %v8105_v34 }
 0x7e8   :  { %v1497_v49 = vpop.xlane.xlu2 %1496 }
 0x7e9   :  { %v1507_v15 = vsub.f32 %v8115_v62, %v1497_v49  ;;  %5581 = vmatmul.msk.f32.gmra.mxu2 %vm779_vm6, %v1574_v23  ;;  %v1323_v62 = vpop.f32.mrf.mxu0 }
 0x7eb   :  { %v1526_v50 = vmul.f32 1.442695, %v1507_v15  ;;  %v2183_v15 = vld [vmem:[%s10267_s10 + $0x10] sm:$0xff] }
 0x7ed   :  { %6260 = vpow2.f32 %v1526_v50 }
 0x7f0   :  { %v1551_v56 = vpop.xlane.xlu2 %1550 }
 0x7f1   :  { %6262 = vrcp.f32 %v1551_v56  ;;  %v1326_v61 = vpop.f32.mrf.mxu0  ;;  %v2182_v56 = vld [vmem:[%s10267_s10 + $0x8] sm:$0xff] }
 0x7f2   :  { %6264 = vrcp.f32 %v1554_v47 }
 0x7f3   :  { %v8170_v48 = vpop.eup %6260 }
 0x7f4   :  { %v1555_v0 = vsel %vm779_vm6, %v8170_v48, 0.0 }
 0x7f5   :  { %1556 = vadd.xlane.f32.xlu0 %v1555_v0 }
 0x7f7   :  { %v6263_v57 = vpop.eup %6262 }
 0x7f8   :  { %v1575_v34 = vmul.f32 %v6263_v57, %v8119_v28  ;;  %v6265_v6 = vpop.eup %6264 }
 0x7f9   :  { %v1576_v33 = vmul.f32 %v6265_v6, %v8107_v35  ;;  %v1329_v1 = vpop.f32.mrf.mxu0 }
 0x7fa   :  { %5582 = vmatmul.msk.f32.gmra.mxu2 %vm779_vm6, %v1575_v34 }
 0x801   :  { %v1332_v59 = vpop.f32.mrf.mxu0 }
 0x802   :  { %5583 = vmatmul.msk.f32.gmra.mxu2 %vm779_vm6, %v1576_v33 }
 0x809   :  { %v1335_v25 = vpop.f32.mrf.mxu0 }
 0x811   :  { %v1338_v28 = vpop.f32.mrf.mxu0 }
 0x812   :  { %v1895_v41 = vpop.xlane.xlu0 %1894 }
 0x813   :  { %6266 = vrcp.f32 %v1895_v41 }
 0x819   :  { %v6267_v26 = vpop.eup %6266 }
 0x81a   :  { %v1919_v40 = vmul.f32 %v6267_v26, %v8124_v10 }
 0x81c   :  { %5612 = vmatmul.msk.f32.gmra.mxu0 %vm779_vm6, %v1919_v40 }
 0x82c   :  { %v1655_v21 = vpop.f32.mrf.mxu2 }
 0x82d   :  { %2079 = vrot.lane.b32.xlu0 %v1655_v21, %s10315_s0 }
 0x82f   :  { %v1898_v13 = vpop.xlane.xlu2 %1897 }
 0x830   :  { %6268 = vrcp.f32 %v1898_v13 }
 0x832   :  { %v1999_v35 = vpop.f32.mrf.mxu0 }
 0x833   :  { %2119 = vrot.lane.b32.xlu1 %v1999_v35, %s10317_s23 }
 0x834   :  { %v1658_v60 = vpop.f32.mrf.mxu2 }
 0x835   :  { %2081 = vrot.lane.b32.xlu0 %v1658_v60, %s10315_s0 }
 0x836   :  { %v6269_v29 = vpop.eup %6268 }
 0x837   :  { %v1920_v10 = vmul.f32 %v6269_v29, %v8136_v19  ;;  %v2040_v0 = vpop.permute.xlu2 %2039 }
 0x838   :  { %v2149_v34 = vsel %vm691_vm1, %v7882_v24, %v2040_v0 }
 0x839   :  { %5613 = vmatmul.msk.f32.gmra.mxu0 %vm779_vm6, %v1920_v10 }
 0x83a   :  { %v2002_v51 = vpop.f32.mrf.mxu0 }
 0x83b   :  { %2121 = vrot.lane.b32.xlu2 %v2002_v51, %s10317_s23  ;;  %2043 = vrot.lane.b32.xlu1 %v1317_v39, %s6587_s30 }
 0x842   :  { %v2005_v32 = vpop.f32.mrf.mxu0 }
 0x843   :  { %2123 = vrot.lane.b32.xlu2 %v2005_v32, %s10317_s23  ;;  %2045 = vrot.lane.b32.xlu1 %v1320_v9, %s6587_s30 }
 0x847   :  { %v1901_v14 = vpop.xlane.xlu1 %1900 }
 0x848   :  { %6270 = vrcp.f32 %v1901_v14 }
 0x84a   :  { %v2008_v30 = vpop.f32.mrf.mxu0 }
 0x84b   :  { %2125 = vrot.lane.b32.xlu2 %v2008_v30, %s10317_s23  ;;  %2047 = vrot.lane.b32.xlu1 %v1323_v62, %s6587_s30  ;;  %v2042_v62 = vpop.permute.xlu2 %2041 }
 0x84c   :  { %v1661_v19 = vpop.f32.mrf.mxu2  ;;  %v2150_v41 = vsel %vm691_vm1, %v7890_v22, %v2042_v62 }
 0x84d   :  { %2083 = vrot.lane.b32.xlu0 %v1661_v19, %s10315_s0 }
 0x84e   :  { %v6271_v53 = vpop.eup %6270 }
 0x84f   :  { %v1921_v54 = vmul.f32 %v6271_v53, %v8151_v2  ;;  %v2184_v2 = vld [vmem:[%s10267_s10 + $0x18] sm:$0xff] }
 0x850   :  { %2231 = vmatpush.msrb.mxu3 %v2184_v2 }
 0x851   :  { %5614 = vmatmul.msk.f32.gmra.mxu0 %vm779_vm6, %v1921_v54 }
 0x852   :  { %v2011_v43 = vpop.f32.mrf.mxu0  ;;  %2232 = vmatpush.msrb.mxu3 %v2183_v15 }
 0x853   :  { %2127 = vrot.lane.b32.xlu2 %v2011_v43, %s10317_s23  ;;  %2049 = vrot.lane.b32.xlu1 %v1326_v61, %s6587_s30 }
 0x854   :  { %v1664_v36 = vpop.f32.mrf.mxu2  ;;  %2233 = vmatpush.msrb.mxu3 %v2182_v56 }
 0x855   :  { %2085 = vrot.lane.b32.xlu0 %v1664_v36, %s10315_s0 }
 0x85a   :  { %v2014_v11 = vpop.f32.mrf.mxu0 }
 0x85b   :  { %2129 = vrot.lane.b32.xlu2 %v2014_v11, %s10317_s23  ;;  %2051 = vrot.lane.b32.xlu1 %v1329_v1, %s6587_s30 }
 0x85c   :  { %v1667_v38 = vpop.f32.mrf.mxu2 }
 0x85d   :  { %2087 = vrot.lane.b32.xlu0 %v1667_v38, %s10315_s0 }
 0x862   :  { %v2017_v45 = vpop.f32.mrf.mxu0 }
 0x863   :  { %2131 = vrot.lane.b32.xlu2 %v2017_v45, %s10317_s23  ;;  %2053 = vrot.lane.b32.xlu1 %v1332_v59, %s6587_s30 }
 0x864   :  { %v1670_v37 = vpop.f32.mrf.mxu2 }
 0x865   :  { %2089 = vrot.lane.b32.xlu0 %v1670_v37, %s10315_s0 }
 0x868   :  { %v1557_v5 = vpop.xlane.xlu0 %1556 }
 0x869   :  { %6272 = vrcp.f32 %v1557_v5 }
 0x86b   :  { %2055 = vrot.lane.b32.xlu1 %v1335_v25, %s6587_s30 }
 0x86c   :  { %v1673_v23 = vpop.f32.mrf.mxu2 }
 0x86d   :  { %2091 = vrot.lane.b32.xlu0 %v1673_v23, %s10315_s0 }
 0x86f   :  { %v6273_v39 = vpop.eup %6272 }
 0x870   :  { %v1577_v49 = vmul.f32 %v6273_v39, %v8170_v48  ;;  %v2181_v48 = vld [vmem:[%s10267_s10] sm:$0xff] }
 0x871   :  { %2234 = vmatpush.msrb.mxu3 %v2181_v48 }
 0x872   :  { %5584 = vmatmul.msk.f32.gmra.mxu2 %vm779_vm6, %v1577_v49 }
 0x873   :  { %2057 = vrot.lane.b32.xlu1 %v1338_v28, %s6587_s30 }
 0x87d   :  { %v1676_v50 = vpop.f32.mrf.mxu2 }
 0x87e   :  { %2093 = vrot.lane.b32.xlu0 %v1676_v50, %s10315_s0 }
 0x885   :  { %v1679_v9 = vpop.f32.mrf.mxu2 }
 0x886   :  { %2095 = vrot.lane.b32.xlu0 %v1679_v9, %s10315_s0 }
 0x895   :  { %v2122_v59 = vpop.permute.xlu2 %2121 }
 0x899   :  { %v2020_v47 = vpop.f32.mrf.mxu0 }
 0x89a   :  { %2133 = vrot.lane.b32.xlu2 %v2020_v47, %s10317_s23 }
 0x89d   :  { %v2124_v28 = vpop.permute.xlu2 %2123 }
 0x89f   :  { %v2080_v57 = vpop.permute.xlu0 %2079 }
 0x8a0   :  { %v2160_v6 = vsel %vm2159_vm3, %v2149_v34, %v2080_v57 }
 0x8a5   :  { %v2120_v33 = vpop.permute.xlu1 %2119  ;;  %v2126_v29 = vpop.permute.xlu2 %2125 }
 0x8a6   :  { %v2171_v61 = vsel %vm2170_vm15, %v2160_v6, %v2120_v33  ;;  %v8274_v33 = vld [vmem:[%s10268_s11] ss:$0 sm:$0xff] }
 0x8a7   :  { %5615 = vmatmul.msk.f32.vlgmr.msrb.gmra.mxu3 %vm245_vm12, %v2171_v61  ;;  %v2082_v1 = vpop.permute.xlu0 %2081 }
 0x8a8   :  { %v2161_v26 = vsel %vm2159_vm3, %v2150_v41, %v2082_v1  ;;  %v10414_v41 = vld [vmem:[#allocation8_spill] sm:$0xff] }
 0x8a9   :  { %v2172_v40 = vsel %vm2170_vm15, %v2161_v26, %v2122_v59 }
 0x8ad   :  { %v2044_v24 = vpop.permute.xlu1 %2043 }
 0x8ae   :  { %v2151_v13 = vsel %vm691_vm1, %v7902_v20, %v2044_v24  ;;  %v2128_v20 = vpop.permute.xlu2 %2127  ;;  %v10415_v24 = vld [vmem:[#allocation11_spill] sm:$0xff] }
 0x8af   :  { %5616 = vmatmul.msk.f32.gmra.mxu3 %vm245_vm12, %v2172_v40 }
 0x8b5   :  { %v2046_v21 = vpop.permute.xlu1 %2045 }
 0x8b6   :  { %v2023_v25 = vpop.f32.mrf.mxu0  ;;  %v2152_v10 = vsel %vm691_vm1, %v7906_v8, %v2046_v21  ;;  %v2130_v11 = vpop.permute.xlu2 %2129 }
 0x8b7   :  { %2135 = vrot.lane.b32.xlu2 %v2023_v25, %s10317_s23 }
 0x8bd   :  { %v2048_v32 = vpop.permute.xlu1 %2047 }
 0x8be   :  { %v2153_v53 = vsel %vm691_vm1, %v7914_v46, %v2048_v32  ;;  %v2132_v39 = vpop.permute.xlu2 %2131 }
 0x8bf   :  { %v2084_v35 = vpop.permute.xlu0 %2083 }
 0x8c0   :  { %v2162_v60 = vsel %vm2159_vm3, %v2151_v13, %v2084_v35  ;;  %v10416_v35 = vld [vmem:[#allocation13_spill] sm:$0xff] }
 0x8c1   :  { %v2173_v22 = vsel %vm2170_vm15, %v2162_v60, %v2124_v28 }
 0x8c2   :  { %5617 = vmatmul.msk.f32.gmra.mxu3 %vm245_vm12, %v2173_v22 }
 0x8c5   :  { %v2050_v36 = vpop.permute.xlu1 %2049 }
 0x8c6   :  { %v2154_v38 = vsel %vm691_vm1, %v7920_v7, %v2050_v36  ;;  %v10419_v36 = vld [vmem:[#allocation6_spill] sm:$0xff] }
 0x8c7   :  { %v2086_v51 = vpop.permute.xlu0 %2085 }
 0x8c8   :  { %v2163_v14 = vsel %vm2159_vm3, %v2152_v10, %v2086_v51  ;;  %v10417_v51 = vld [vmem:[#allocation14_spill] sm:$0xff] }
 0x8c9   :  { %v2174_v30 = vsel %vm2170_vm15, %v2163_v14, %v2126_v29 }
 0x8ca   :  { %5618 = vmatmul.msk.f32.gmra.mxu3 %vm245_vm12, %v2174_v30 }
 0x8cd   :  { %v2052_v46 = vpop.permute.xlu1 %2051 }
 0x8ce   :  { %v2026_v19 = vpop.f32.mrf.mxu0  ;;  %v2155_v5 = vsel %vm691_vm1, %v7929_v44, %v2052_v46 }
 0x8cf   :  { %2137 = vrot.lane.b32.xlu2 %v2026_v19, %s10317_s23  ;;  %v2088_v54 = vpop.permute.xlu0 %2087  ;;  %v10418_v19 = vld [vmem:[#allocation15_spill] sm:$0xff] }
 0x8d0   :  { %v2164_v43 = vsel %vm2159_vm3, %v2153_v53, %v2088_v54 }
 0x8d1   :  { %v2175_v8 = vsel %vm2170_vm15, %v2164_v43, %v2128_v20 }
 0x8d2   :  { %5619 = vmatmul.msk.f32.gmra.mxu3 %vm245_vm12, %v2175_v8 }
 0x8d5   :  { %v2054_v7 = vpop.permute.xlu1 %2053 }
 0x8d6   :  { %v2156_v56 = vsel %vm691_vm1, %v7942_v63, %v2054_v7 }
 0x8d7   :  { %v2090_v2 = vpop.permute.xlu0 %2089 }
 0x8d8   :  { %v2165_v45 = vsel %vm2159_vm3, %v2154_v38, %v2090_v2 }
 0x8d9   :  { %v2176_v37 = vsel %vm2170_vm15, %v2165_v45, %v2130_v11 }
 0x8da   :  { %5620 = vmatmul.msk.f32.gmra.mxu3 %vm245_vm12, %v2176_v37 }
 0x8dd   :  { %v2056_v44 = vpop.permute.xlu1 %2055 }
 0x8de   :  { %v2157_v34 = vsel %vm691_vm1, %v7948_v31, %v2056_v44 }
 0x8df   :  { %v2092_v23 = vpop.permute.xlu0 %2091 }
 0x8e0   :  { %v2166_v49 = vsel %vm2159_vm3, %v2155_v5, %v2092_v23  ;;  %v10420_v23 = vld [vmem:[#allocation7_spill] sm:$0xff] }
 0x8e1   :  { %v2177_v15 = vsel %vm2170_vm15, %v2166_v49, %v2132_v39 }
 0x8e2   :  { %5621 = vmatmul.msk.f32.gmra.mxu3 %vm245_vm12, %v2177_v15 }
 0x8e5   :  { %v2058_v2 = vpop.permute.xlu1 %2057 }
 0x8e6   :  { %v2158_v46 = vsel %vm691_vm1, %v7954_v55, %v2058_v2  ;;  %v2527_v2 = vld [vmem:[%s10271_s14 + $0x18] sm:$0xff] }
 0x8e7   :  { %2574 = vmatpush.msra.mxu2 %v2527_v2 }
 0x8f0   :  { %v2094_v50 = vpop.permute.xlu0 %2093 }
 0x8f1   :  { %v2167_v9 = vsel %vm2159_vm3, %v2156_v56, %v2094_v50 }
 0x8f4   :  { %v2134_v48 = vpop.permute.xlu2 %2133 }
 0x8f5   :  { %v2178_v47 = vsel %vm2170_vm15, %v2167_v9, %v2134_v48  ;;  %v1682_v0 = vpop.f32.mrf.mxu2  ;;  %v10421_v9 = vld [vmem:[#allocation5_spill] sm:$0xff] }
 0x8f6   :  { %2097 = vrot.lane.b32.xlu0 %v1682_v0, %s10315_s0  ;;  %5622 = vmatmul.msk.f32.gmra.mxu3 %vm245_vm12, %v2178_v47 }
 0x8f8   :  { %v2096_v57 = vpop.permute.xlu0 %2095 }
 0x8f9   :  { %v2168_v62 = vsel %vm2159_vm3, %v2157_v34, %v2096_v57 }
 0x911   :  { %v2136_v6 = vpop.permute.xlu2 %2135 }
 0x912   :  { %v2179_v63 = vsel %vm2170_vm15, %v2168_v62, %v2136_v6 }
 0x913   :  { %5623 = vmatmul.msk.f32.gmra.mxu3 %vm245_vm12, %v2179_v63  ;;  %v10422_v63 = vld [vmem:[#allocation9_spill] sm:$0xff] }
 0x929   :  { %v2138_v49 = vpop.permute.xlu2 %2137 }
 0x92a   :  { %v2236_v61 = vpop.f32.mrf.mxu3 }
 0x92b   :  { %v2237_v1 = vadd.f32 %v8274_v33, %v2236_v61 }
 0x92d   :  { %v2266_v26 = vadd.f32 %v2237_v1, %v10414_v41 }
 0x92f   :  { %v2278_v59 = vsel %vm245_vm12, %v2266_v26, 0.0 }
 0x930   :  { %2279 = vadd.xlane.f32.xlu1 %v2278_v59 }
 0x932   :  { %v2239_v31 = vpop.f32.mrf.mxu3 }
 0x933   :  { %v2240_v40 = vadd.f32 %v8274_v33, %v2239_v31 }
 0x935   :  { %v2267_v25 = vadd.f32 %v2240_v40, %v10415_v24  ;;  %v10423_v40 = vld [vmem:[#allocation10_spill] sm:$0xff] }
 0x937   :  { %v2281_v28 = vsel %vm245_vm12, %v2267_v25, 0.0 }
 0x938   :  { %2282 = vadd.xlane.f32.xlu0 %v2281_v28 }
 0x945   :  { %v2242_v21 = vpop.f32.mrf.mxu3 }
 0x946   :  { %v2243_v13 = vadd.f32 %v8274_v33, %v2242_v21 }
 0x948   :  { %v2268_v60 = vadd.f32 %v2243_v13, %v10416_v35 }
 0x94a   :  { %v2284_v22 = vsel %vm245_vm12, %v2268_v60, 0.0 }
 0x94b   :  { %2285 = vadd.xlane.f32.xlu2 %v2284_v22 }
 0x94d   :  { %v2245_v29 = vpop.f32.mrf.mxu3 }
 0x94e   :  { %v2246_v10 = vadd.f32 %v8274_v33, %v2245_v29 }
 0x950   :  { %v2269_v32 = vadd.f32 %v2246_v10, %v10417_v51 }
 0x952   :  { %v2287_v14 = vsel %vm245_vm12, %v2269_v32, 0.0 }
 0x953   :  { %2288 = vadd.xlane.f32.xlu1 %v2287_v14 }
 0x955   :  { %v2248_v30 = vpop.f32.mrf.mxu3 }
 0x956   :  { %v2249_v20 = vadd.f32 %v8274_v33, %v2248_v30 }
 0x958   :  { %v2270_v53 = vadd.f32 %v2249_v20, %v10418_v19 }
 0x95a   :  { %v2290_v54 = vsel %vm245_vm12, %v2270_v53, 0.0 }
 0x95b   :  { %2291 = vadd.xlane.f32.xlu0 %v2290_v54 }
 0x95d   :  { %v2251_v43 = vpop.f32.mrf.mxu3 }
 0x95e   :  { %v2252_v8 = vadd.f32 %v8274_v33, %v2251_v43 }
 0x960   :  { %v2271_v11 = vadd.f32 %v2252_v8, %v10419_v36 }
 0x962   :  { %v2293_v38 = vsel %vm245_vm12, %v2271_v11, 0.0 }
 0x963   :  { %2294 = vadd.xlane.f32.xlu2 %v2293_v38 }
 0x965   :  { %v2254_v45 = vpop.f32.mrf.mxu3 }
 0x966   :  { %v2255_v37 = vadd.f32 %v8274_v33, %v2254_v45 }
 0x968   :  { %v2098_v5 = vpop.permute.xlu0 %2097  ;;  %v2272_v39 = vadd.f32 %v2255_v37, %v10420_v23  ;;  %v10424_v23 = vld [vmem:[#allocation12_spill] sm:$0xff] }
 0x969   :  { %v2169_v15 = vsel %vm2159_vm3, %v2158_v46, %v2098_v5 }
 0x96a   :  { %v2296_v7 = vsel %vm245_vm12, %v2272_v39, 0.0  ;;  %v2180_v50 = vsel %vm2170_vm15, %v2169_v15, %v2138_v49 }
 0x96b   :  { %2297 = vadd.xlane.f32.xlu0 %v2296_v7  ;;  %5624 = vmatmul.msk.f32.gmra.mxu3 %vm245_vm12, %v2180_v50 }
 0x979   :  { %v2257_v0 = vpop.f32.mrf.mxu3 }
 0x97a   :  { %v2258_v44 = vadd.f32 %v8274_v33, %v2257_v0 }
 0x97c   :  { %v8313_v61 = vadd.f32 %v2258_v44, %v10422_v63 }
 0x97e   :  { %v2299_v59 = vsel %vm245_vm12, %v8313_v61, 0.0 }
 0x996   :  { %v2260_v1 = vpop.f32.mrf.mxu3 }
 0x9a3   :  { %v2280_v56 = vpop.xlane.xlu1 %2279 }
 0x9a4   :  { %v2308_v48 = vmul.f32 %v2280_v56, %v10421_v9  ;;  %v2526_v56 = vld [vmem:[%s10271_s14 + $0x10] sm:$0xff] }
 0x9a5   :  { %2575 = vmatpush.msra.mxu2 %v2526_v56 }
 0x9a6   :  { %v8303_v47 = vsub.f32 %v2266_v26, %v2308_v48  ;;  %v2261_v26 = vadd.f32 %v8274_v33, %v2260_v1 }
 0x9a8   :  { %v2328_v55 = vmul.f32 %v8303_v47, %v8303_v47  ;;  %v8322_v24 = vadd.f32 %v2261_v26, %v10423_v40 }
 0x9aa   :  { %v2338_v57 = vsel %vm245_vm12, %v2328_v55, 0.0 }
 0x9ab   :  { %2339 = vadd.xlane.f32.xlu1 %v2338_v57  ;;  %v2283_v34 = vpop.xlane.xlu0 %2282 }
 0x9ac   :  { %v2309_v62 = vmul.f32 %v2283_v34, %v10421_v9 }
 0x9ae   :  { %v8310_v6 = vsub.f32 %v2267_v25, %v2309_v62  ;;  %v2302_v25 = vsel %vm245_vm12, %v8322_v24, 0.0 }
 0x9b0   :  { %v2329_v41 = vmul.f32 %v8310_v6, %v8310_v6 }
 0x9b2   :  { %v2341_v31 = vsel %vm245_vm12, %v2329_v41, 0.0 }
 0x9b3   :  { %2300 = vadd.xlane.f32.xlu1 %v2299_v59  ;;  %2342 = vadd.xlane.f32.xlu2 %v2341_v31 }
 0x9bb   :  { %2303 = vadd.xlane.f32.xlu2 %v2302_v25 }
 0x9be   :  { %v2286_v28 = vpop.xlane.xlu2 %2285 }
 0x9bf   :  { %v2310_v21 = vmul.f32 %v2286_v28, %v10421_v9 }
 0x9c1   :  { %v8327_v13 = vsub.f32 %v2268_v60, %v2310_v21 }
 0x9c3   :  { %v2330_v35 = vmul.f32 %v8327_v13, %v8327_v13 }
 0x9c5   :  { %v2344_v22 = vsel %vm245_vm12, %v2330_v35, 0.0 }
 0x9c6   :  { %v2289_v29 = vpop.xlane.xlu1 %2288  ;;  %2345 = vadd.xlane.f32.xlu0 %v2344_v22 }
 0x9c7   :  { %v2311_v10 = vmul.f32 %v2289_v29, %v10421_v9 }
 0x9c9   :  { %v8333_v51 = vsub.f32 %v2269_v32, %v2311_v10 }
 0x9cb   :  { %v2331_v14 = vmul.f32 %v8333_v51, %v8333_v51 }
 0x9cd   :  { %v2347_v30 = vsel %vm245_vm12, %v2331_v14, 0.0  ;;  %v8390_v14 = vld [vmem:[%s10269_s12] ss:$0 sm:$0xff] }
 0x9ce   :  { %2348 = vadd.xlane.f32.xlu1 %v2347_v30  ;;  %v2292_v20 = vpop.xlane.xlu0 %2291 }
 0x9cf   :  { %v2312_v60 = vmul.f32 %v2292_v20, %v10421_v9 }
 0x9d1   :  { %v8339_v19 = vsub.f32 %v2270_v53, %v2312_v60 }
 0x9d3   :  { %v2332_v54 = vmul.f32 %v8339_v19, %v8339_v19 }
 0x9d5   :  { %v2350_v43 = vsel %vm245_vm12, %v2332_v54, 0.0 }
 0x9d6   :  { %v2295_v8 = vpop.xlane.xlu2 %2294  ;;  %2351 = vadd.xlane.f32.xlu2 %v2350_v43 }
 0x9d7   :  { %v2313_v32 = vmul.f32 %v2295_v8, %v10421_v9 }
 0x9d9   :  { %v8345_v36 = vsub.f32 %v2271_v11, %v2313_v32 }
 0x9db   :  { %v2333_v38 = vmul.f32 %v8345_v36, %v8345_v36 }
 0x9dd   :  { %v2353_v53 = vsel %vm245_vm12, %v2333_v38, 0.0 }
 0x9de   :  { %2354 = vadd.xlane.f32.xlu1 %v2353_v53  ;;  %v2298_v45 = vpop.xlane.xlu0 %2297 }
 0x9df   :  { %v2314_v46 = vmul.f32 %v2298_v45, %v10421_v9 }
 0x9e1   :  { %v8358_v49 = vsub.f32 %v2272_v39, %v2314_v46  ;;  %v2524_v39 = vld [vmem:[%s10271_s14] sm:$0xff] }
 0x9e3   :  { %v2334_v7 = vmul.f32 %v8358_v49, %v8358_v49 }
 0x9e5   :  { %v2356_v50 = vsel %vm245_vm12, %v2334_v7, 0.0 }
 0x9ee   :  { %v2263_v37 = vpop.f32.mrf.mxu3 }
 0x9ef   :  { %v2264_v5 = vadd.f32 %v8274_v33, %v2263_v37  ;;  %v2525_v33 = vld [vmem:[%s10271_s14 + $0x8] sm:$0xff] }
 0x9f0   :  { %2576 = vmatpush.msra.mxu2 %v2525_v33 }
 0x9f1   :  { %v8356_v11 = vadd.f32 %v2264_v5, %v10424_v23 }
 0x9f2   :  { %2577 = vmatpush.msra.mxu2 %v2524_v39 }
 0x9f3   :  { %v2305_v15 = vsel %vm245_vm12, %v8356_v11, 0.0 }
 0x9f4   :  { %2306 = vadd.xlane.f32.xlu0 %v2305_v15 }
 0x9fc   :  { %2357 = vadd.xlane.f32.xlu0 %v2356_v50 }
 0xa1e   :  { %v2340_v48 = vpop.xlane.xlu1 %2339 }
 0xa1f   :  { %v2368_v0 = vmul.f32 %v2340_v48, %v10421_v9 }
 0xa21   :  { %v2378_v55 = vadd.f32 1e-05, %v2368_v0 }
 0xa23   :  { %6274 = vrsqrt.f32 %v2378_v55  ;;  %vm2394_vm4 = vweird.f32 %v2378_v55 }
 0xa26   :  { %v2301_v44 = vpop.xlane.xlu1 %2300  ;;  %v2343_v57 = vpop.xlane.xlu2 %2342 }
 0xa27   :  { %v2315_v34 = vmul.f32 %v2301_v44, %v10421_v9  ;;  %v2369_v62 = vmul.f32 %v2343_v57, %v10421_v9 }
 0xa29   :  { %v6275_v63 = vpop.eup %6274  ;;  %v8378_v1 = vsub.f32 %v8313_v61, %v2315_v34  ;;  %v2379_v41 = vadd.f32 1e-05, %v2369_v62 }
 0xa2a   :  { %v2389_v26 = vmul.f32 %v6275_v63, %v2378_v55  ;;  %vm2395_vm2 = vweird.f32 %v6275_v63 }
 0xa2b   :  { %6276 = vrsqrt.f32 %v2379_v41  ;;  %v2335_v59 = vmul.f32 %v8378_v1, %v8378_v1  ;;  %vm2396_vm5 = vmor %vm2394_vm4, %vm2395_vm2  ;;  %vm2404_vm8 = vweird.f32 %v2379_v41 }
 0xa2c   :  { %v2390_v31 = vmul.f32 %v6275_v63, %v2389_v26 }
 0xa2d   :  { %v2359_v40 = vsel %vm245_vm12, %v2335_v59, 0.0 }
 0xa2e   :  { %v2391_v25 = vmul.f32 0.5, %v2390_v31  ;;  %v2304_v28 = vpop.xlane.xlu2 %2303  ;;  %2360 = vadd.xlane.f32.xlu2 %v2359_v40 }
 0xa2f   :  { %v2316_v21 = vmul.f32 %v2304_v28, %v10421_v9 }
 0xa30   :  { %v2392_v35 = vsub.f32 1.5, %v2391_v25 }
 0xa31   :  { %v6277_v22 = vpop.eup %6276  ;;  %v8385_v61 = vsub.f32 %v8322_v24, %v2316_v21  ;;  %v8399_v24 = vld [vmem:[%s10270_s13] ss:$0 sm:$0xff] }
 0xa32   :  { %v2393_v29 = vmul.f32 %v6275_v63, %v2392_v35  ;;  %v2399_v10 = vmul.f32 %v6277_v22, %v2379_v41  ;;  %vm2405_vm7 = vweird.f32 %v6277_v22 }
 0xa33   :  { %v2336_v30 = vmul.f32 %v8385_v61, %v8385_v61  ;;  %vm2406_vm9 = vmor %vm2404_vm8, %vm2405_vm7 }
 0xa34   :  { %v2397_v20 = vsel %vm2396_vm5, %v6275_v63, %v2393_v29  ;;  %v2400_v60 = vmul.f32 %v6277_v22, %v2399_v10 }
 0xa35   :  { %v2488_v54 = vmul.f32 %v2397_v20, %v8303_v47  ;;  %v2362_v43 = vsel %vm245_vm12, %v2336_v30, 0.0 }
 0xa36   :  { %v2401_v8 = vmul.f32 0.5, %v2400_v60  ;;  %2363 = vadd.xlane.f32.xlu1 %v2362_v43 }
 0xa37   :  { %v2501_v32 = vmul.f32 %v8390_v14, %v2488_v54 }
 0xa38   :  { %v2402_v38 = vsub.f32 1.5, %v2401_v8 }
 0xa39   :  { %v2346_v2 = vpop.xlane.xlu0 %2345  ;;  %v8403_v53 = vadd.f32 %v8399_v24, %v2501_v32 }
 0xa3a   :  { %v2403_v45 = vmul.f32 %v6277_v22, %v2402_v38  ;;  %v2370_v47 = vmul.f32 %v2346_v2, %v10421_v9 }
 0xa3b   :  { %5625 = vmatmul.msk.f32.vlgmr.msra.gmra.mxu2 %vm245_vm12, %v8403_v53 }
 0xa3c   :  { %v2380_v37 = vadd.f32 1e-05, %v2370_v47  ;;  %v2407_v46 = vsel %vm2406_vm9, %v6277_v22, %v2403_v45 }
 0xa3d   :  { %v2489_v5 = vmul.f32 %v2407_v46, %v8310_v6 }
 0xa3e   :  { %6278 = vrsqrt.f32 %v2380_v37  ;;  %vm2414_vm11 = vweird.f32 %v2380_v37 }
 0xa3f   :  { %v2502_v23 = vmul.f32 %v8390_v14, %v2489_v5 }
 0xa41   :  { %v2349_v15 = vpop.xlane.xlu1 %2348  ;;  %v8411_v7 = vadd.f32 %v8399_v24, %v2502_v23 }
 0xa42   :  { %v2371_v50 = vmul.f32 %v2349_v15, %v10421_v9 }
 0xa43   :  { %5626 = vmatmul.msk.f32.gmra.mxu2 %vm245_vm12, %v8411_v7 }
 0xa44   :  { %v6279_v56 = vpop.eup %6278  ;;  %v2381_v33 = vadd.f32 1e-05, %v2371_v50 }
 0xa45   :  { %v2409_v39 = vmul.f32 %v6279_v56, %v2380_v37  ;;  %vm2415_vm10 = vweird.f32 %v6279_v56 }
 0xa46   :  { %6280 = vrsqrt.f32 %v2381_v33  ;;  %vm2416_vm13 = vmor %vm2414_vm11, %vm2415_vm10  ;;  %vm2424_vm2 = vweird.f32 %v2381_v33 }
 0xa47   :  { %v2410_v48 = vmul.f32 %v6279_v56, %v2409_v39 }
 0xa49   :  { %v2411_v0 = vmul.f32 0.5, %v2410_v48  ;;  %v2352_v55 = vpop.xlane.xlu2 %2351 }
 0xa4a   :  { %v2372_v6 = vmul.f32 %v2352_v55, %v10421_v9 }
 0xa4b   :  { %v2412_v44 = vsub.f32 1.5, %v2411_v0 }
 0xa4c   :  { %v6281_v57 = vpop.eup %6280  ;;  %v2382_v34 = vadd.f32 1e-05, %v2372_v6 }
 0xa4d   :  { %v2413_v62 = vmul.f32 %v6279_v56, %v2412_v44  ;;  %v2419_v63 = vmul.f32 %v6281_v57, %v2381_v33  ;;  %vm2425_vm14 = vweird.f32 %v6281_v57 }
 0xa4e   :  { %6282 = vrsqrt.f32 %v2382_v34  ;;  %vm2426_vm4 = vmor %vm2424_vm2, %vm2425_vm14  ;;  %vm2434_vm7 = vweird.f32 %v2382_v34 }
 0xa4f   :  { %v2420_v41 = vmul.f32 %v6281_v57, %v2419_v63  ;;  %v2417_v26 = vsel %vm2416_vm13, %v6279_v56, %v2413_v62 }
 0xa50   :  { %v2490_v59 = vmul.f32 %v2417_v26, %v8327_v13 }
 0xa51   :  { %v2421_v31 = vmul.f32 0.5, %v2420_v41  ;;  %v2355_v40 = vpop.xlane.xlu1 %2354 }
 0xa52   :  { %v2373_v25 = vmul.f32 %v2355_v40, %v10421_v9  ;;  %v2503_v28 = vmul.f32 %v8390_v14, %v2490_v59 }
 0xa53   :  { %v2422_v21 = vsub.f32 1.5, %v2421_v31 }
 0xa54   :  { %v6283_v35 = vpop.eup %6282  ;;  %v2383_v22 = vadd.f32 1e-05, %v2373_v25  ;;  %v8421_v29 = vadd.f32 %v8399_v24, %v2503_v28 }
 0xa55   :  { %v2423_v10 = vmul.f32 %v6281_v57, %v2422_v21  ;;  %v2429_v30 = vmul.f32 %v6283_v35, %v2382_v34  ;;  %vm2435_vm5 = vweird.f32 %v6283_v35  ;;  %v2706_v21 = vld [vmem:[%s10273_s16 + $0x38] sm:$0xff] }
 0xa56   :  { %6284 = vrsqrt.f32 %v2383_v22  ;;  %5627 = vmatmul.msk.f32.gmra.mxu2 %vm245_vm12, %v8421_v29  ;;  %vm2436_vm8 = vmor %vm2434_vm7, %vm2435_vm5  ;;  %vm2444_vm10 = vweird.f32 %v2383_v22  ;;  %2750 = vmatpush.msrb.mxu0 %v2706_v21 }
 0xa57   :  { %v2430_v13 = vmul.f32 %v6283_v35, %v2429_v30  ;;  %v2427_v20 = vsel %vm2426_vm4, %v6281_v57, %v2423_v10  ;;  %5838 = vmatpush.msrb.mxu1 %v2706_v21 }
 0xa58   :  { %v2491_v60 = vmul.f32 %v2427_v20, %v8333_v51 }
 0xa59   :  { %v2431_v54 = vmul.f32 0.5, %v2430_v13 }
 0xa5a   :  { %v2504_v43 = vmul.f32 %v8390_v14, %v2491_v60  ;;  %v2705_v60 = vld [vmem:[%s10273_s16 + $0x30] sm:$0xff] }
 0xa5b   :  { %v2432_v8 = vsub.f32 1.5, %v2431_v54  ;;  %2751 = vmatpush.msrb.mxu0 %v2705_v60  ;;  %5839 = vmatpush.msrb.mxu1 %v2705_v60 }
 0xa5c   :  { %v6285_v32 = vpop.eup %6284  ;;  %v8428_v38 = vadd.f32 %v8399_v24, %v2504_v43  ;;  %v2704_v43 = vld [vmem:[%s10273_s16 + $0x28] sm:$0xff] }
 0xa5d   :  { %v2433_v2 = vmul.f32 %v6283_v35, %v2432_v8  ;;  %v2439_v45 = vmul.f32 %v6285_v32, %v2383_v22  ;;  %vm2445_vm9 = vweird.f32 %v6285_v32  ;;  %2752 = vmatpush.msrb.mxu0 %v2704_v43  ;;  %5840 = vmatpush.msrb.mxu1 %v2704_v43 }
 0xa5e   :  { %5628 = vmatmul.msk.f32.gmra.mxu2 %vm245_vm12, %v8428_v38  ;;  %vm2446_vm11 = vmor %vm2444_vm10, %vm2445_vm9 }
 0xa5f   :  { %v2437_v47 = vsel %vm2436_vm8, %v6283_v35, %v2433_v2  ;;  %v2440_v37 = vmul.f32 %v6285_v32, %v2439_v45  ;;  %v2702_v45 = vld [vmem:[%s10273_s16 + $0x18] sm:$0xff] }
 0xa60   :  { %v2492_v51 = vmul.f32 %v2437_v47, %v8339_v19 }
 0xa61   :  { %v2441_v46 = vmul.f32 0.5, %v2440_v37 }
 0xa62   :  { %v2505_v5 = vmul.f32 %v8390_v14, %v2492_v51  ;;  %v2701_v51 = vld [vmem:[%s10273_s16 + $0x10] sm:$0xff] }
 0xa63   :  { %v2442_v23 = vsub.f32 1.5, %v2441_v46 }
 0xa64   :  { %v8435_v15 = vadd.f32 %v8399_v24, %v2505_v5 }
 0xa65   :  { %v2443_v50 = vmul.f32 %v6285_v32, %v2442_v23  ;;  %v2700_v23 = vld [vmem:[%s10273_s16 + $0x8] sm:$0xff] }
 0xa66   :  { %5629 = vmatmul.msk.f32.gmra.mxu2 %vm245_vm12, %v8435_v15 }
 0xa67   :  { %v2447_v56 = vsel %vm2446_vm11, %v6285_v32, %v2443_v50  ;;  %v2307_v33 = vpop.xlane.xlu0 %2306  ;;  %v2703_v32 = vld [vmem:[%s10273_s16 + $0x20] sm:$0xff]  ;;  %vm2711_vm11 = vcmask 523264  }
 0xa68   :  { %v2493_v39 = vmul.f32 %v2447_v56, %v8345_v36  ;;  %v2317_v19 = vmul.f32 %v2307_v33, %v10421_v9  ;;  %2753 = vmatpush.msrb.mxu0 %v2703_v32  ;;  %5841 = vmatpush.msrb.mxu1 %v2703_v32 }
 0xa6a   :  { %v8442_v48 = vsub.f32 %v8356_v11, %v2317_v19  ;;  %v2506_v0 = vmul.f32 %v8390_v14, %v2493_v39  ;;  %2754 = vmatpush.msrb.mxu0 %v2702_v45  ;;  %5842 = vmatpush.msrb.mxu1 %v2702_v45  ;;  %v2699_v39 = vld [vmem:[%s10273_s16] sm:$0xff] }
 0xa6c   :  { %v8446_v55 = vadd.f32 %v8399_v24, %v2506_v0  ;;  %v2337_v6 = vmul.f32 %v8442_v48, %v8442_v48  ;;  %2755 = vmatpush.msrb.mxu0 %v2701_v51  ;;  %5843 = vmatpush.msrb.mxu1 %v2701_v51 }
 0xa6e   :  { %5630 = vmatmul.msk.f32.gmra.mxu2 %vm245_vm12, %v8446_v55  ;;  %v2365_v44 = vsel %vm245_vm12, %v2337_v6, 0.0  ;;  %2756 = vmatpush.msrb.mxu0 %v2700_v23 }
 0xa6f   :  { %2366 = vadd.xlane.f32.xlu0 %v2365_v44  ;;  %v2358_v36 = vpop.xlane.xlu0 %2357  ;;  %5844 = vmatpush.msrb.mxu1 %v2700_v23  ;;  %v8492_v44 = vld [vmem:[%s10272_s15] ss:$0 sm:$0xff] }
 0xa70   :  { %v2374_v57 = vmul.f32 %v2358_v36, %v10421_v9  ;;  %2757 = vmatpush.msrb.mxu0 %v2699_v39 }
 0xa71   :  { %5845 = vmatpush.msrb.mxu1 %v2699_v39 }
 0xa72   :  { %v2384_v34 = vadd.f32 1e-05, %v2374_v57 }
 0xa74   :  { %6286 = vrsqrt.f32 %v2384_v34  ;;  %vm2454_vm14 = vweird.f32 %v2384_v34 }
 0xa7a   :  { %v6287_v11 = vpop.eup %6286 }
 0xa7b   :  { %v2449_v62 = vmul.f32 %v6287_v11, %v2384_v34  ;;  %vm2455_vm13 = vweird.f32 %v6287_v11 }
 0xa7c   :  { %vm2456_vm2 = vmor %vm2454_vm14, %vm2455_vm13 }
 0xa7d   :  { %v2450_v63 = vmul.f32 %v6287_v11, %v2449_v62 }
 0xa7f   :  { %v2451_v41 = vmul.f32 0.5, %v2450_v63 }
 0xa81   :  { %v2452_v26 = vsub.f32 1.5, %v2451_v41 }
 0xa83   :  { %v2453_v59 = vmul.f32 %v6287_v11, %v2452_v26 }
 0xa85   :  { %v2457_v31 = vsel %vm2456_vm2, %v6287_v11, %v2453_v59 }
 0xa86   :  { %v2494_v40 = vmul.f32 %v2457_v31, %v8358_v49 }
 0xa88   :  { %v2507_v25 = vmul.f32 %v8390_v14, %v2494_v40 }
 0xa8a   :  { %v8457_v28 = vadd.f32 %v8399_v24, %v2507_v25 }
 0xa8c   :  { %5631 = vmatmul.msk.f32.gmra.mxu2 %vm245_vm12, %v8457_v28 }
 0xaa1   :  { %v2361_v35 = vpop.xlane.xlu2 %2360 }
 0xaa2   :  { %v2375_v22 = vmul.f32 %v2361_v35, %v10421_v9 }
 0xaa4   :  { %v2385_v10 = vadd.f32 1e-05, %v2375_v22 }
 0xaa6   :  { %6288 = vrsqrt.f32 %v2385_v10  ;;  %vm2464_vm5 = vweird.f32 %v2385_v10 }
 0xaa9   :  { %v2364_v49 = vpop.xlane.xlu1 %2363 }
 0xaaa   :  { %v2376_v30 = vmul.f32 %v2364_v49, %v10421_v9 }
 0xaac   :  { %v6289_v13 = vpop.eup %6288  ;;  %v2386_v20 = vadd.f32 1e-05, %v2376_v30 }
 0xaad   :  { %v2459_v54 = vmul.f32 %v6289_v13, %v2385_v10  ;;  %vm2465_vm4 = vweird.f32 %v6289_v13 }
 0xaae   :  { %6290 = vrsqrt.f32 %v2386_v20  ;;  %vm2466_vm7 = vmor %vm2464_vm5, %vm2465_vm4  ;;  %vm2474_vm9 = vweird.f32 %v2386_v20 }
 0xaaf   :  { %v2460_v8 = vmul.f32 %v6289_v13, %v2459_v54 }
 0xab1   :  { %v2461_v2 = vmul.f32 0.5, %v2460_v8 }
 0xab3   :  { %v2462_v47 = vsub.f32 1.5, %v2461_v2 }
 0xab4   :  { %v6291_v37 = vpop.eup %6290 }
 0xab5   :  { %v2463_v46 = vmul.f32 %v6289_v13, %v2462_v47  ;;  %v2469_v5 = vmul.f32 %v6291_v37, %v2386_v20  ;;  %vm2475_vm8 = vweird.f32 %v6291_v37 }
 0xab6   :  { %vm2476_vm10 = vmor %vm2474_vm9, %vm2475_vm8 }
 0xab7   :  { %v2467_v50 = vsel %vm2466_vm7, %v6289_v13, %v2463_v46  ;;  %v2470_v56 = vmul.f32 %v6291_v37, %v2469_v5 }
 0xab8   :  { %v2495_v33 = vmul.f32 %v2467_v50, %v8378_v1 }
 0xab9   :  { %v2471_v19 = vmul.f32 0.5, %v2470_v56 }
 0xaba   :  { %v2508_v0 = vmul.f32 %v8390_v14, %v2495_v33 }
 0xabb   :  { %v2472_v6 = vsub.f32 1.5, %v2471_v19 }
 0xabc   :  { %v8495_v36 = vadd.f32 %v8399_v24, %v2508_v0 }
 0xabd   :  { %v2473_v1 = vmul.f32 %v6291_v37, %v2472_v6 }
 0xabe   :  { %v2579_v57 = vpop.f32.mrf.mxu2  ;;  %5632 = vmatmul.msk.f32.gmra.mxu2 %vm245_vm12, %v8495_v36 }
 0xabf   :  { %v2477_v34 = vsel %vm2476_vm10, %v6291_v37, %v2473_v1  ;;  %v2580_v11 = vadd.f32 %v8492_v44, %v2579_v57 }
 0xac0   :  { %v2496_v62 = vmul.f32 %v2477_v34, %v8385_v61 }
 0xac1   :  { %v2609_v63 = vmul.f32 %v2580_v11, %v2580_v11 }
 0xac2   :  { %v2509_v41 = vmul.f32 %v8390_v14, %v2496_v62 }
 0xac3   :  { %v2619_v26 = vmul.f32 %v2609_v63, %v2580_v11 }
 0xac4   :  { %v8503_v59 = vadd.f32 %v8399_v24, %v2509_v41 }
 0xac5   :  { %v2629_v31 = vmul.f32 0.044715, %v2619_v26 }
 0xac6   :  { %v2582_v40 = vpop.f32.mrf.mxu2  ;;  %5633 = vmatmul.msk.f32.gmra.mxu2 %vm245_vm12, %v8503_v59 }
 0xac7   :  { %v2639_v25 = vadd.f32 %v2629_v31, %v2580_v11  ;;  %v2583_v21 = vadd.f32 %v8492_v44, %v2582_v40 }
 0xac9   :  { %v2649_v35 = vmul.f32 0.7978846, %v2639_v25  ;;  %v2610_v22 = vmul.f32 %v2583_v21, %v2583_v21 }
 0xacb   :  { %6292 = vtanh.f32 %v2649_v35  ;;  %v2620_v10 = vmul.f32 %v2610_v22, %v2583_v21 }
 0xacd   :  { %v2630_v61 = vmul.f32 0.044715, %v2620_v10 }
 0xacf   :  { %v2640_v49 = vadd.f32 %v2630_v61, %v2583_v21 }
 0xad1   :  { %v6293_v30 = vpop.eup %6292  ;;  %v2650_v13 = vmul.f32 0.7978846, %v2640_v49 }
 0xad2   :  { %v2669_v20 = vadd.f32 1.0, %v6293_v30 }
 0xad3   :  { %6294 = vtanh.f32 %v2650_v13 }
 0xad4   :  { %v2679_v60 = vmul.f32 0.5, %v2669_v20 }
 0xad6   :  { %v2689_v54 = vmul.f32 %v2679_v60, %v2580_v11 }
 0xad8   :  { %5635 = vmatmul.msk.f32.vlgmr.msrb.gmra.mxu0 %vm2711_vm11, %v2689_v54 }
 0xad9   :  { %v6295_v43 = vpop.eup %6294  ;;  %v2585_v8 = vpop.f32.mrf.mxu2 }
 0xada   :  { %v2670_v32 = vadd.f32 1.0, %v6295_v43  ;;  %v2586_v2 = vadd.f32 %v8492_v44, %v2585_v8 }
 0xadc   :  { %v2680_v45 = vmul.f32 0.5, %v2670_v32  ;;  %v2611_v47 = vmul.f32 %v2586_v2, %v2586_v2 }
 0xade   :  { %v2690_v37 = vmul.f32 %v2680_v45, %v2583_v21  ;;  %v2621_v51 = vmul.f32 %v2611_v47, %v2586_v2 }
 0xae0   :  { %v2631_v46 = vmul.f32 0.044715, %v2621_v51  ;;  %5636 = vmatmul.msk.f32.vlgmr.msrb.gmra.mxu1 %vm2711_vm11, %v2690_v37 }
 0xae1   :  { %v2588_v5 = vpop.f32.mrf.mxu2 }
 0xae2   :  { %v2641_v23 = vadd.f32 %v2631_v46, %v2586_v2  ;;  %v2589_v50 = vadd.f32 %v8492_v44, %v2588_v5  ;;  %v2367_v56 = vpop.xlane.xlu0 %2366 }
 0xae3   :  { %v2377_v33 = vmul.f32 %v2367_v56, %v10421_v9 }
 0xae4   :  { %v2651_v39 = vmul.f32 0.7978846, %v2641_v23  ;;  %v2612_v19 = vmul.f32 %v2589_v50, %v2589_v50 }
 0xae5   :  { %v2387_v0 = vadd.f32 1e-05, %v2377_v33 }
 0xae6   :  { %6296 = vtanh.f32 %v2651_v39  ;;  %v2622_v6 = vmul.f32 %v2612_v19, %v2589_v50 }
 0xae7   :  { %6298 = vrsqrt.f32 %v2387_v0  ;;  %vm2484_vm14 = vweird.f32 %v2387_v0 }
 0xae8   :  { %v2632_v1 = vmul.f32 0.044715, %v2622_v6 }
 0xae9   :  { %v2591_v57 = vpop.f32.mrf.mxu2 }
 0xaea   :  { %v2642_v34 = vadd.f32 %v2632_v1, %v2589_v50  ;;  %v2592_v11 = vadd.f32 %v8492_v44, %v2591_v57 }
 0xaec   :  { %v6297_v62 = vpop.eup %6296  ;;  %v2652_v63 = vmul.f32 0.7978846, %v2642_v34  ;;  %v2613_v41 = vmul.f32 %v2592_v11, %v2592_v11 }
 0xaed   :  { %v6299_v26 = vpop.eup %6298  ;;  %v2671_v31 = vadd.f32 1.0, %v6297_v62 }
 0xaee   :  { %6300 = vtanh.f32 %v2652_v63  ;;  %v2479_v40 = vmul.f32 %v6299_v26, %v2387_v0  ;;  %v2623_v25 = vmul.f32 %v2613_v41, %v2592_v11  ;;  %vm2485_vm13 = vweird.f32 %v6299_v26 }
 0xaef   :  { %v2681_v21 = vmul.f32 0.5, %v2671_v31  ;;  %vm2486_vm2 = vmor %vm2484_vm14, %vm2485_vm13 }
 0xaf0   :  { %v2480_v35 = vmul.f32 %v6299_v26, %v2479_v40  ;;  %v2633_v22 = vmul.f32 0.044715, %v2623_v25 }
 0xaf1   :  { %v2594_v10 = vpop.f32.mrf.mxu2  ;;  %v2691_v61 = vmul.f32 %v2681_v21, %v2586_v2 }
 0xaf2   :  { %v2481_v49 = vmul.f32 0.5, %v2480_v35  ;;  %v2643_v30 = vadd.f32 %v2633_v22, %v2592_v11  ;;  %v2595_v13 = vadd.f32 %v8492_v44, %v2594_v10 }
 0xaf3   :  { %5637 = vmatmul.msk.f32.gmra.mxu1 %vm2711_vm11, %v2691_v61 }
 0xaf4   :  { %v6301_v20 = vpop.eup %6300  ;;  %v2482_v60 = vsub.f32 1.5, %v2481_v49  ;;  %v2653_v54 = vmul.f32 0.7978846, %v2643_v30  ;;  %v2614_v43 = vmul.f32 %v2595_v13, %v2595_v13 }
 0xaf5   :  { %v2672_v8 = vadd.f32 1.0, %v6301_v20 }
 0xaf6   :  { %v2483_v32 = vmul.f32 %v6299_v26, %v2482_v60  ;;  %6302 = vtanh.f32 %v2653_v54  ;;  %v2624_v45 = vmul.f32 %v2614_v43, %v2595_v13 }
 0xaf7   :  { %v2682_v47 = vmul.f32 0.5, %v2672_v8 }
 0xaf8   :  { %v2487_v37 = vsel %vm2486_vm2, %v6299_v26, %v2483_v32  ;;  %v2634_v2 = vmul.f32 0.044715, %v2624_v45  ;;  %v8533_v32 = vld [vmem:[%s10274_s17] ss:$0 sm:$0xff] }
 0xaf9   :  { %v2497_v51 = vmul.f32 %v2487_v37, %v8442_v48  ;;  %v2692_v46 = vmul.f32 %v2682_v47, %v2589_v50 }
 0xafa   :  { %v2644_v5 = vadd.f32 %v2634_v2, %v2595_v13 }
 0xafb   :  { %5638 = vmatmul.msk.f32.gmra.mxu1 %vm2711_vm11, %v2692_v46  ;;  %v2510_v23 = vmul.f32 %v8390_v14, %v2497_v51 }
 0xafc   :  { %v6303_v56 = vpop.eup %6302  ;;  %v2654_v33 = vmul.f32 0.7978846, %v2644_v5 }
 0xafd   :  { %v8520_v39 = vadd.f32 %v8399_v24, %v2510_v23  ;;  %v2673_v19 = vadd.f32 1.0, %v6303_v56 }
 0xafe   :  { %6304 = vtanh.f32 %v2654_v33 }
 0xaff   :  { %5634 = vmatmul.msk.f32.gmra.mxu2 %vm245_vm12, %v8520_v39  ;;  %v2683_v0 = vmul.f32 0.5, %v2673_v19 }
 0xb01   :  { %v2693_v6 = vmul.f32 %v2683_v0, %v2592_v11 }
 0xb03   :  { %5639 = vmatmul.msk.f32.gmra.mxu1 %vm2711_vm11, %v2693_v6 }
 0xb04   :  { %v6305_v48 = vpop.eup %6304 }
 0xb05   :  { %v2674_v50 = vadd.f32 1.0, %v6305_v48 }
 0xb07   :  { %v2684_v1 = vmul.f32 0.5, %v2674_v50 }
 0xb09   :  { %v2694_v57 = vmul.f32 %v2684_v1, %v2595_v13 }
 0xb0b   :  { %5640 = vmatmul.msk.f32.gmra.mxu1 %vm2711_vm11, %v2694_v57 }
 0xb0f   :  { %v2597_v14 = vpop.f32.mrf.mxu2 }
 0xb10   :  { %v2598_v34 = vadd.f32 %v8492_v44, %v2597_v14 }
 0xb12   :  { %v2615_v24 = vmul.f32 %v2598_v34, %v2598_v34 }
 0xb14   :  { %v2625_v62 = vmul.f32 %v2615_v24, %v2598_v34 }
 0xb16   :  { %v2635_v63 = vmul.f32 0.044715, %v2625_v62 }
 0xb18   :  { %v2645_v41 = vadd.f32 %v2635_v63, %v2598_v34 }
 0xb1a   :  { %v2655_v26 = vmul.f32 0.7978846, %v2645_v41 }
 0xb1c   :  { %6306 = vtanh.f32 %v2655_v26 }
 0xb22   :  { %v6307_v31 = vpop.eup %6306 }
 0xb23   :  { %v2675_v40 = vadd.f32 1.0, %v6307_v31 }
 0xb25   :  { %v2685_v11 = vmul.f32 0.5, %v2675_v40 }
 0xb27   :  { %v2695_v25 = vmul.f32 %v2685_v11, %v2598_v34 }
 0xb29   :  { %5641 = vmatmul.msk.f32.gmra.mxu1 %vm2711_vm11, %v2695_v25 }
 0xb41   :  { %v2600_v21 = vpop.f32.mrf.mxu2 }
 0xb42   :  { %v2601_v35 = vadd.f32 %v8492_v44, %v2600_v21 }
 0xb44   :  { %v2616_v22 = vmul.f32 %v2601_v35, %v2601_v35 }
 0xb46   :  { %v2626_v10 = vmul.f32 %v2616_v22, %v2601_v35 }
 0xb48   :  { %v2636_v61 = vmul.f32 0.044715, %v2626_v10 }
 0xb49   :  { %v2603_v49 = vpop.f32.mrf.mxu2 }
 0xb4a   :  { %v2646_v30 = vadd.f32 %v2636_v61, %v2601_v35  ;;  %v2604_v13 = vadd.f32 %v8492_v44, %v2603_v49 }
 0xb4c   :  { %v2656_v20 = vmul.f32 0.7978846, %v2646_v30  ;;  %v2617_v60 = vmul.f32 %v2604_v13, %v2604_v13 }
 0xb4e   :  { %6308 = vtanh.f32 %v2656_v20  ;;  %v2627_v54 = vmul.f32 %v2617_v60, %v2604_v13 }
 0xb50   :  { %v2637_v43 = vmul.f32 0.044715, %v2627_v54 }
 0xb52   :  { %v2647_v8 = vadd.f32 %v2637_v43, %v2604_v13 }
 0xb54   :  { %v6309_v45 = vpop.eup %6308  ;;  %v2657_v47 = vmul.f32 0.7978846, %v2647_v8 }
 0xb55   :  { %v2759_v37 = vpop.f32.mrf.mxu0  ;;  %v2676_v2 = vadd.f32 1.0, %v6309_v45 }
 0xb56   :  { %6310 = vtanh.f32 %v2657_v47  ;;  %v2760_v51 = vadd.f32 %v8533_v32, %v2759_v37 }
 0xb57   :  { %v2686_v46 = vmul.f32 0.5, %v2676_v2 }
 0xb58   :  { %v2789_v5 = vadd.f32 %v2760_v51, %v8403_v53 }
 0xb59   :  { %v2696_v23 = vmul.f32 %v2686_v46, %v2601_v35 }
 0xb5a   :  { %v2801_v56 = vsel %vm245_vm12, %v2789_v5, 0.0 }
 0xb5b   :  { %2802 = vadd.xlane.f32.xlu2 %v2801_v56  ;;  %5642 = vmatmul.msk.f32.gmra.mxu1 %vm2711_vm11, %v2696_v23 }
 0xb5c   :  { %v6311_v33 = vpop.eup %6310 }
 0xb5d   :  { %v2762_v19 = vpop.f32.mrf.mxu1  ;;  %v2677_v0 = vadd.f32 1.0, %v6311_v33 }
 0xb5e   :  { %v2763_v6 = vadd.f32 %v8533_v32, %v2762_v19 }
 0xb5f   :  { %v2687_v48 = vmul.f32 0.5, %v2677_v0 }
 0xb60   :  { %v2790_v50 = vadd.f32 %v2763_v6, %v8411_v7 }
 0xb61   :  { %v2697_v1 = vmul.f32 %v2687_v48, %v2604_v13 }
 0xb62   :  { %v2804_v57 = vsel %vm245_vm12, %v2790_v50, 0.0 }
 0xb63   :  { %2805 = vadd.xlane.f32.xlu1 %v2804_v57  ;;  %5643 = vmatmul.msk.f32.gmra.mxu1 %vm2711_vm11, %v2697_v1 }
 0xb70   :  { %v2765_v53 = vpop.f32.mrf.mxu1 }
 0xb71   :  { %v2766_v14 = vadd.f32 %v8533_v32, %v2765_v53 }
 0xb73   :  { %v2791_v34 = vadd.f32 %v2766_v14, %v8421_v29 }
 0xb75   :  { %v2807_v24 = vsel %vm245_vm12, %v2791_v34, 0.0 }
 0xb76   :  { %2808 = vadd.xlane.f32.xlu0 %v2807_v24 }
 0xb78   :  { %v2768_v62 = vpop.f32.mrf.mxu1 }
 0xb79   :  { %v2769_v63 = vadd.f32 %v8533_v32, %v2768_v62 }
 0xb7b   :  { %v2792_v41 = vadd.f32 %v2769_v63, %v8428_v38 }
 0xb7d   :  { %v2810_v7 = vsel %vm245_vm12, %v2792_v41, 0.0 }
 0xb7e   :  { %2811 = vadd.xlane.f32.xlu2 %v2810_v7 }
 0xb80   :  { %v2771_v26 = vpop.f32.mrf.mxu1 }
 0xb81   :  { %v2772_v31 = vadd.f32 %v8533_v32, %v2771_v26 }
 0xb82   :  { %v2606_v40 = vpop.f32.mrf.mxu2 }
 0xb83   :  { %v2607_v11 = vadd.f32 %v8492_v44, %v2606_v40  ;;  %v2793_v25 = vadd.f32 %v2772_v31, %v8435_v15 }
 0xb85   :  { %v2618_v29 = vmul.f32 %v2607_v11, %v2607_v11  ;;  %v2813_v21 = vsel %vm245_vm12, %v2793_v25, 0.0 }
 0xb86   :  { %2814 = vadd.xlane.f32.xlu1 %v2813_v21 }
 0xb87   :  { %v2628_v35 = vmul.f32 %v2618_v29, %v2607_v11 }
 0xb88   :  { %v2774_v22 = vpop.f32.mrf.mxu1 }
 0xb89   :  { %v2638_v10 = vmul.f32 0.044715, %v2628_v35  ;;  %v2775_v38 = vadd.f32 %v8533_v32, %v2774_v22 }
 0xb8b   :  { %v2648_v61 = vadd.f32 %v2638_v10, %v2607_v11  ;;  %v2794_v49 = vadd.f32 %v2775_v38, %v8446_v55 }
 0xb8d   :  { %v2658_v30 = vmul.f32 0.7978846, %v2648_v61  ;;  %v2816_v13 = vsel %vm245_vm12, %v2794_v49, 0.0 }
 0xb8e   :  { %2817 = vadd.xlane.f32.xlu0 %v2816_v13 }
 0xb8f   :  { %6312 = vtanh.f32 %v2658_v30 }
 0xb95   :  { %v6313_v44 = vpop.eup %6312 }
 0xb96   :  { %v2678_v20 = vadd.f32 1.0, %v6313_v44 }
 0xb98   :  { %v2688_v15 = vmul.f32 0.5, %v2678_v20 }
 0xb9a   :  { %v2698_v60 = vmul.f32 %v2688_v15, %v2607_v11 }
 0xb9c   :  { %5644 = vmatmul.msk.f32.gmra.mxu1 %vm2711_vm11, %v2698_v60 }
 0xba6   :  { %v2777_v54 = vpop.f32.mrf.mxu1 }
 0xba7   :  { %v2778_v43 = vadd.f32 %v8533_v32, %v2777_v54  ;;  %v5646_v54 = vld [vmem:[%s10265_s8 + $0x28] sm:$0xff] }
 0xba9   :  { %v2795_v8 = vadd.f32 %v2778_v43, %v8457_v28  ;;  %v5645_v43 = vld [vmem:[%s10265_s8 + $0x20] sm:$0xff] }
 0xbab   :  { %v2819_v45 = vsel %vm245_vm12, %v2795_v8, 0.0 }
 0xbac   :  { %2820 = vadd.xlane.f32.xlu1 %v2819_v45 }
 0xbce   :  { %v2803_v55 = vpop.xlane.xlu2 %2802 }
 0xbcf   :  { %v2831_v47 = vmul.f32 %v2803_v55, %v10421_v9 }
 0xbd1   :  { %v8561_v37 = vsub.f32 %v2789_v5, %v2831_v47 }
 0xbd3   :  { %v2851_v2 = vmul.f32 %v8561_v37, %v8561_v37 }
 0xbd5   :  { %v2861_v51 = vsel %vm245_vm12, %v2851_v2, 0.0 }
 0xbd6   :  { %v2806_v46 = vpop.xlane.xlu1 %2805  ;;  %2862 = vadd.xlane.f32.xlu2 %v2861_v51 }
 0xbd7   :  { %v2832_v23 = vmul.f32 %v2806_v46, %v10421_v9 }
 0xbd8   :  { %v2780_v56 = vpop.f32.mrf.mxu1 }
 0xbd9   :  { %v8567_v33 = vsub.f32 %v2790_v50, %v2832_v23  ;;  %v2781_v28 = vadd.f32 %v8533_v32, %v2780_v56 }
 0xbdb   :  { %v2852_v19 = vmul.f32 %v8567_v33, %v8567_v33  ;;  %v2796_v5 = vadd.f32 %v2781_v28, %v8495_v36 }
 0xbdd   :  { %v2864_v0 = vsel %vm245_vm12, %v2852_v19, 0.0  ;;  %v2822_v6 = vsel %vm245_vm12, %v2796_v5, 0.0 }
 0xbde   :  { %2865 = vadd.xlane.f32.xlu0 %v2864_v0  ;;  %2823 = vadd.xlane.f32.xlu2 %v2822_v6 }
 0xbe0   :  { %v2783_v48 = vpop.f32.mrf.mxu1 }
 0xbe1   :  { %v2784_v1 = vadd.f32 %v8533_v32, %v2783_v48 }
 0xbe3   :  { %v8577_v57 = vadd.f32 %v2784_v1, %v8503_v59 }
 0xbe5   :  { %v2825_v50 = vsel %vm245_vm12, %v8577_v57, 0.0 }
 0xbe6   :  { %2826 = vadd.xlane.f32.xlu0 %v2825_v50 }
 0xbe9   :  { %v2809_v53 = vpop.xlane.xlu0 %2808 }
 0xbea   :  { %v2833_v14 = vmul.f32 %v2809_v53, %v10421_v9 }
 0xbec   :  { %v8582_v36 = vsub.f32 %v2791_v34, %v2833_v14 }
 0xbee   :  { %v2853_v24 = vmul.f32 %v8582_v36, %v8582_v36 }
 0xbf0   :  { %v2867_v62 = vsel %vm245_vm12, %v2853_v24, 0.0 }
 0xbf1   :  { %v2812_v63 = vpop.xlane.xlu2 %2811  ;;  %2868 = vadd.xlane.f32.xlu1 %v2867_v62 }
 0xbf2   :  { %v2834_v7 = vmul.f32 %v2812_v63, %v10421_v9 }
 0xbf4   :  { %v8588_v59 = vsub.f32 %v2792_v41, %v2834_v7  ;;  %v8644_v7 = vld [vmem:[%s10275_s18] ss:$0 sm:$0xff] }
 0xbf6   :  { %v2854_v26 = vmul.f32 %v8588_v59, %v8588_v59 }
 0xbf8   :  { %v2870_v31 = vsel %vm245_vm12, %v2854_v26, 0.0 }
 0xbf9   :  { %v2815_v40 = vpop.xlane.xlu1 %2814  ;;  %2871 = vadd.xlane.f32.xlu2 %v2870_v31 }
 0xbfa   :  { %v2835_v34 = vmul.f32 %v2815_v40, %v10421_v9 }
 0xbfc   :  { %v8594_v11 = vsub.f32 %v2793_v25, %v2835_v34  ;;  %v8651_v34 = vld [vmem:[%s10276_s19] ss:$0 sm:$0xff] }
 0xbfe   :  { %v2855_v29 = vmul.f32 %v8594_v11, %v8594_v11 }
 0xc00   :  { %v2873_v21 = vsel %vm245_vm12, %v2855_v29, 0.0 }
 0xc01   :  { %2874 = vadd.xlane.f32.xlu0 %v2873_v21  ;;  %v2818_v35 = vpop.xlane.xlu0 %2817 }
 0xc02   :  { %v2836_v41 = vmul.f32 %v2818_v35, %v10421_v9 }
 0xc04   :  { %v8600_v22 = vsub.f32 %v2794_v49, %v2836_v41 }
 0xc06   :  { %v2856_v10 = vmul.f32 %v8600_v22, %v8600_v22 }
 0xc08   :  { %v2876_v38 = vsel %vm245_vm12, %v2856_v10, 0.0 }
 0xc09   :  { %2877 = vadd.xlane.f32.xlu2 %v2876_v38 }
 0xc19   :  { %v2786_v61 = vpop.f32.mrf.mxu1 }
 0xc1a   :  { %v2787_v25 = vadd.f32 %v8533_v32, %v2786_v61  ;;  %v5647_v32 = vld [vmem:[%s10265_s8 + $0x30] sm:$0xff] }
 0xc1c   :  { %v8607_v30 = vadd.f32 %v2787_v25, %v8520_v39  ;;  %v5648_v39 = vld [vmem:[%s10265_s8 + $0x38] sm:$0xff]  ;;  %s5453_s8 = sshll.u32 %s6590_s3, 4  ;;  %s5454_s8 = int_to_ptr.vmem [resolvable:$true] %s5453_s8 }
 0xc1d   :  { %3099 = vmatpush.msra.mxu0 %v5648_v39 }
 0xc1e   :  { %v2828_v13 = vsel %vm245_vm12, %v8607_v30, 0.0 }
 0xc1f   :  { %v2821_v44 = vpop.xlane.xlu1 %2820  ;;  %2829 = vadd.xlane.f32.xlu1 %v2828_v13  ;;  %3100 = vmatpush.msra.mxu0 %v5647_v32 }
 0xc20   :  { %v2837_v49 = vmul.f32 %v2821_v44, %v10421_v9 }
 0xc21   :  { %3101 = vmatpush.msra.mxu0 %v5646_v54 }
 0xc22   :  { %v8612_v20 = vsub.f32 %v2795_v8, %v2837_v49 }
 0xc23   :  { %3102 = vmatpush.msra.mxu0 %v5645_v43 }
 0xc24   :  { %v2857_v15 = vmul.f32 %v8612_v20, %v8612_v20 }
 0xc26   :  { %v2879_v60 = vsel %vm245_vm12, %v2857_v15, 0.0 }
 0xc27   :  { %2880 = vadd.xlane.f32.xlu1 %v2879_v60 }
 0xc49   :  { %v2863_v8 = vpop.xlane.xlu2 %2862 }
 0xc4a   :  { %v2891_v45 = vmul.f32 %v2863_v8, %v10421_v9 }
 0xc4c   :  { %v2901_v55 = vadd.f32 1e-05, %v2891_v45 }
 0xc4e   :  { %6314 = vrsqrt.f32 %v2901_v55  ;;  %vm2917_vm5 = vweird.f32 %v2901_v55 }
 0xc51   :  { %v2824_v47 = vpop.xlane.xlu2 %2823  ;;  %v2866_v2 = vpop.xlane.xlu0 %2865 }
 0xc52   :  { %v2838_v51 = vmul.f32 %v2824_v47, %v10421_v9  ;;  %v2892_v46 = vmul.f32 %v2866_v2, %v10421_v9 }
 0xc54   :  { %v6315_v23 = vpop.eup %6314  ;;  %v8632_v56 = vsub.f32 %v2796_v5, %v2838_v51  ;;  %v2902_v28 = vadd.f32 1e-05, %v2892_v46 }
 0xc55   :  { %v2912_v19 = vmul.f32 %v6315_v23, %v2901_v55  ;;  %vm2918_vm4 = vweird.f32 %v6315_v23 }
 0xc56   :  { %6316 = vrsqrt.f32 %v2902_v28  ;;  %v2858_v0 = vmul.f32 %v8632_v56, %v8632_v56  ;;  %vm2919_vm7 = vmor %vm2917_vm5, %vm2918_vm4  ;;  %vm2927_vm9 = vweird.f32 %v2902_v28 }
 0xc57   :  { %v2913_v6 = vmul.f32 %v6315_v23, %v2912_v19 }
 0xc58   :  { %v2882_v48 = vsel %vm245_vm12, %v2858_v0, 0.0 }
 0xc59   :  { %v2914_v1 = vmul.f32 0.5, %v2913_v6  ;;  %2883 = vadd.xlane.f32.xlu0 %v2882_v48  ;;  %v2827_v50 = vpop.xlane.xlu0 %2826 }
 0xc5a   :  { %v2839_v53 = vmul.f32 %v2827_v50, %v10421_v9 }
 0xc5b   :  { %v2915_v14 = vsub.f32 1.5, %v2914_v1 }
 0xc5c   :  { %v6317_v24 = vpop.eup %6316  ;;  %v8639_v5 = vsub.f32 %v8577_v57, %v2839_v53 }
 0xc5d   :  { %v2916_v62 = vmul.f32 %v6315_v23, %v2915_v14  ;;  %v2922_v63 = vmul.f32 %v6317_v24, %v2902_v28  ;;  %vm2928_vm8 = vweird.f32 %v6317_v24 }
 0xc5e   :  { %v2859_v26 = vmul.f32 %v8639_v5, %v8639_v5  ;;  %vm2929_vm10 = vmor %vm2927_vm9, %vm2928_vm8 }
 0xc5f   :  { %v2920_v31 = vsel %vm2919_vm7, %v6315_v23, %v2916_v62  ;;  %v2923_v40 = vmul.f32 %v6317_v24, %v2922_v63 }
 0xc60   :  { %v3011_v57 = vmul.f32 %v2920_v31, %v8561_v37  ;;  %v2885_v29 = vsel %vm245_vm12, %v2859_v26, 0.0 }
 0xc61   :  { %v2924_v21 = vmul.f32 0.5, %v2923_v40  ;;  %2886 = vadd.xlane.f32.xlu2 %v2885_v29 }
 0xc62   :  { %v3024_v35 = vmul.f32 %v8644_v7, %v3011_v57 }
 0xc63   :  { %v2925_v41 = vsub.f32 1.5, %v2924_v21 }
 0xc64   :  { %v8657_v10 = vadd.f32 %v8651_v34, %v3024_v35  ;;  %v2869_v38 = vpop.xlane.xlu1 %2868 }
 0xc65   :  { %v2926_v61 = vmul.f32 %v6317_v24, %v2925_v41  ;;  %v2893_v25 = vmul.f32 %v2869_v38, %v10421_v9 }
 0xc66   :  { %10425 = vst [vmem:[#allocation25_spill] sm:$0xff] %v8657_v10  ;;  %5650 = vmatmul.msk.f32.vlgmr.msra.gmra.mxu0 %vm245_vm12, %v8657_v10 }
 0xc67   :  { %v2930_v37 = vsel %vm2929_vm10, %v6317_v24, %v2926_v61  ;;  %v2903_v13 = vadd.f32 1e-05, %v2893_v25 }
 0xc68   :  { %v3012_v44 = vmul.f32 %v2930_v37, %v8567_v33 }
 0xc69   :  { %6318 = vrsqrt.f32 %v2903_v13  ;;  %vm2937_vm14 = vweird.f32 %v2903_v13 }
 0xc6a   :  { %v3025_v49 = vmul.f32 %v8644_v7, %v3012_v44 }
 0xc6c   :  { %v2872_v15 = vpop.xlane.xlu2 %2871  ;;  %v8665_v60 = vadd.f32 %v8651_v34, %v3025_v49 }
 0xc6d   :  { %v2894_v39 = vmul.f32 %v2872_v15, %v10421_v9 }
 0xc6e   :  { %10426 = vst [vmem:[#allocation20_spill] sm:$0xff] %v8665_v60  ;;  %5651 = vmatmul.msk.f32.gmra.mxu0 %vm245_vm12, %v8665_v60 }
 0xc6f   :  { %v6319_v32 = vpop.eup %6318  ;;  %v2904_v54 = vadd.f32 1e-05, %v2894_v39 }
 0xc70   :  { %v2932_v43 = vmul.f32 %v6319_v32, %v2903_v13  ;;  %vm2938_vm13 = vweird.f32 %v6319_v32 }
 0xc71   :  { %6320 = vrsqrt.f32 %v2904_v54  ;;  %vm2939_vm2 = vmor %vm2937_vm14, %vm2938_vm13  ;;  %vm2947_vm5 = vweird.f32 %v2904_v54 }
 0xc72   :  { %v2933_v8 = vmul.f32 %v6319_v32, %v2932_v43 }
 0xc74   :  { %v2934_v45 = vmul.f32 0.5, %v2933_v8  ;;  %v2875_v55 = vpop.xlane.xlu0 %2874 }
 0xc75   :  { %v2895_v33 = vmul.f32 %v2875_v55, %v10421_v9 }
 0xc76   :  { %v2935_v47 = vsub.f32 1.5, %v2934_v45 }
 0xc77   :  { %v6321_v2 = vpop.eup %6320  ;;  %v2905_v51 = vadd.f32 1e-05, %v2895_v33 }
 0xc78   :  { %v2936_v46 = vmul.f32 %v6319_v32, %v2935_v47  ;;  %v2942_v23 = vmul.f32 %v6321_v2, %v2904_v54  ;;  %vm2948_vm4 = vweird.f32 %v6321_v2 }
 0xc79   :  { %6322 = vrsqrt.f32 %v2905_v51  ;;  %vm2949_vm7 = vmor %vm2947_vm5, %vm2948_vm4  ;;  %vm2957_vm9 = vweird.f32 %v2905_v51 }
 0xc7a   :  { %v2940_v28 = vsel %vm2939_vm2, %v6319_v32, %v2936_v46  ;;  %v2943_v19 = vmul.f32 %v6321_v2, %v2942_v23 }
 0xc7b   :  { %v3013_v0 = vmul.f32 %v2940_v28, %v8582_v36 }
 0xc7c   :  { %v2944_v6 = vmul.f32 0.5, %v2943_v19  ;;  %v2878_v48 = vpop.xlane.xlu2 %2877 }
 0xc7d   :  { %v2896_v1 = vmul.f32 %v2878_v48, %v10421_v9  ;;  %v3026_v50 = vmul.f32 %v8644_v7, %v3013_v0 }
 0xc7e   :  { %v2945_v53 = vsub.f32 1.5, %v2944_v6 }
 0xc7f   :  { %v6323_v14 = vpop.eup %6322  ;;  %v2906_v24 = vadd.f32 1e-05, %v2896_v1  ;;  %v8675_v62 = vadd.f32 %v8651_v34, %v3026_v50 }
 0xc80   :  { %v2946_v63 = vmul.f32 %v6321_v2, %v2945_v53  ;;  %v2952_v26 = vmul.f32 %v6323_v14, %v2905_v51  ;;  %vm2958_vm8 = vweird.f32 %v6323_v14 }
 0xc81   :  { %10427 = vst [vmem:[#allocation17_spill] sm:$0xff] %v8675_v62  ;;  %6324 = vrsqrt.f32 %v2906_v24  ;;  %5652 = vmatmul.msk.f32.gmra.mxu0 %vm245_vm12, %v8675_v62  ;;  %vm2959_vm10 = vmor %vm2957_vm9, %vm2958_vm8  ;;  %vm2967_vm14 = vweird.f32 %v2906_v24 }
 0xc82   :  { %v2950_v36 = vsel %vm2949_vm7, %v6321_v2, %v2946_v63  ;;  %v2953_v31 = vmul.f32 %v6323_v14, %v2952_v26 }
 0xc83   :  { %v3014_v40 = vmul.f32 %v2950_v36, %v8588_v59 }
 0xc84   :  { %v2954_v57 = vmul.f32 0.5, %v2953_v31 }
 0xc85   :  { %v3027_v29 = vmul.f32 %v8644_v7, %v3014_v40 }
 0xc86   :  { %v2955_v21 = vsub.f32 1.5, %v2954_v57 }
 0xc87   :  { %v6325_v35 = vpop.eup %6324  ;;  %v8682_v41 = vadd.f32 %v8651_v34, %v3027_v29 }
 0xc88   :  { %v2956_v38 = vmul.f32 %v6323_v14, %v2955_v21  ;;  %v2962_v61 = vmul.f32 %v6325_v35, %v2906_v24  ;;  %vm2968_vm13 = vweird.f32 %v6325_v35 }
 0xc89   :  { %10428 = vst [vmem:[#allocation18_spill] sm:$0xff] %v8682_v41  ;;  %5653 = vmatmul.msk.f32.gmra.mxu0 %vm245_vm12, %v8682_v41  ;;  %vm2969_vm2 = vmor %vm2967_vm14, %vm2968_vm13 }
 0xc8a   :  { %v2960_v25 = vsel %vm2959_vm10, %v6323_v14, %v2956_v38  ;;  %v2963_v37 = vmul.f32 %v6325_v35, %v2962_v61  ;;  %v8720_v61 = vld [vmem:[%s10266_s9 + $0x1] ss:$0 sm:$0xff]  ;;  %s10435_s9 = smov 56  }
 0xc8b   :  { %v3015_v59 = vmul.f32 %v2960_v25, %v8594_v11 }
 0xc8c   :  { %v2964_v13 = vmul.f32 0.5, %v2963_v37 }
 0xc8d   :  { %v3028_v44 = vmul.f32 %v8644_v7, %v3015_v59 }
 0xc8e   :  { %v2965_v49 = vsub.f32 1.5, %v2964_v13 }
 0xc8f   :  { %v8689_v15 = vadd.f32 %v8651_v34, %v3028_v44 }
 0xc90   :  { %v2966_v39 = vmul.f32 %v6325_v35, %v2965_v49 }
 0xc91   :  { %10429 = vst [vmem:[#allocation16_spill] sm:$0xff] %v8689_v15  ;;  %5654 = vmatmul.msk.f32.gmra.mxu0 %vm245_vm12, %v8689_v15 }
 0xc92   :  { %v2970_v32 = vsel %vm2969_vm2, %v6325_v35, %v2966_v39  ;;  %v2830_v54 = vpop.xlane.xlu1 %2829 }
 0xc93   :  { %v3016_v43 = vmul.f32 %v2970_v32, %v8600_v22  ;;  %v2840_v11 = vmul.f32 %v2830_v54, %v10421_v9 }
 0xc95   :  { %v8696_v8 = vsub.f32 %v8607_v30, %v2840_v11  ;;  %v3029_v45 = vmul.f32 %v8644_v7, %v3016_v43 }
 0xc97   :  { %v8700_v55 = vadd.f32 %v8651_v34, %v3029_v45  ;;  %v2860_v33 = vmul.f32 %v8696_v8, %v8696_v8 }
 0xc99   :  { %10430 = vst [vmem:[#allocation19_spill] sm:$0xff] %v8700_v55  ;;  %5655 = vmatmul.msk.f32.gmra.mxu0 %vm245_vm12, %v8700_v55  ;;  %v2888_v47 = vsel %vm245_vm12, %v2860_v33, 0.0 }
 0xc9a   :  { %2889 = vadd.xlane.f32.xlu1 %v2888_v47  ;;  %v2881_v22 = vpop.xlane.xlu1 %2880 }
 0xc9b   :  { %v2897_v2 = vmul.f32 %v2881_v22, %v10421_v9 }
 0xc9d   :  { %v2907_v51 = vadd.f32 1e-05, %v2897_v2 }
 0xc9f   :  { %6326 = vrsqrt.f32 %v2907_v51  ;;  %vm2977_vm5 = vweird.f32 %v2907_v51 }
 0xca5   :  { %v6327_v30 = vpop.eup %6326 }
 0xca6   :  { %v2972_v46 = vmul.f32 %v6327_v30, %v2907_v51  ;;  %vm2978_vm4 = vweird.f32 %v6327_v30 }
 0xca7   :  { %vm2979_vm7 = vmor %vm2977_vm5, %vm2978_vm4 }
 0xca8   :  { %v2973_v23 = vmul.f32 %v6327_v30, %v2972_v46 }
 0xcaa   :  { %v2974_v28 = vmul.f32 0.5, %v2973_v23 }
 0xcac   :  { %v2975_v19 = vsub.f32 1.5, %v2974_v28 }
 0xcae   :  { %v2976_v0 = vmul.f32 %v6327_v30, %v2975_v19 }
 0xcb0   :  { %v2980_v6 = vsel %vm2979_vm7, %v6327_v30, %v2976_v0 }
 0xcb1   :  { %v3017_v48 = vmul.f32 %v2980_v6, %v8612_v20 }
 0xcb3   :  { %v3030_v1 = vmul.f32 %v8644_v7, %v3017_v48 }
 0xcb5   :  { %v8711_v50 = vadd.f32 %v8651_v34, %v3030_v1 }
 0xcb7   :  { %10431 = vst [vmem:[#allocation21_spill] sm:$0xff] %v8711_v50  ;;  %5656 = vmatmul.msk.f32.gmra.mxu0 %vm245_vm12, %v8711_v50 }
 0xccc   :  { %v2884_v53 = vpop.xlane.xlu0 %2883 }
 0xccd   :  { %v2898_v14 = vmul.f32 %v2884_v53, %v10421_v9 }
 0xccf   :  { %v2908_v24 = vadd.f32 1e-05, %v2898_v14 }
 0xcd1   :  { %6328 = vrsqrt.f32 %v2908_v24  ;;  %vm2987_vm9 = vweird.f32 %v2908_v24 }
 0xcd4   :  { %v2887_v63 = vpop.xlane.xlu2 %2886 }
 0xcd5   :  { %v2899_v26 = vmul.f32 %v2887_v63, %v10421_v9 }
 0xcd7   :  { %v6329_v36 = vpop.eup %6328  ;;  %v2909_v31 = vadd.f32 1e-05, %v2899_v26 }
 0xcd8   :  { %v2982_v40 = vmul.f32 %v6329_v36, %v2908_v24  ;;  %vm2988_vm8 = vweird.f32 %v6329_v36 }
 0xcd9   :  { %6330 = vrsqrt.f32 %v2909_v31  ;;  %vm2989_vm10 = vmor %vm2987_vm9, %vm2988_vm8  ;;  %vm2997_vm14 = vweird.f32 %v2909_v31 }
 0xcda   :  { %v2983_v20 = vmul.f32 %v6329_v36, %v2982_v40 }
 0xcdc   :  { %v2984_v57 = vmul.f32 0.5, %v2983_v20 }
 0xcde   :  { %v2985_v29 = vsub.f32 1.5, %v2984_v57 }
 0xcdf   :  { %v6331_v21 = vpop.eup %6330 }
 0xce0   :  { %v2986_v35 = vmul.f32 %v6329_v36, %v2985_v29  ;;  %v2992_v38 = vmul.f32 %v6331_v21, %v2909_v31  ;;  %vm2998_vm13 = vweird.f32 %v6331_v21 }
 0xce1   :  { %vm2999_vm2 = vmor %vm2997_vm14, %vm2998_vm13 }
 0xce2   :  { %v2990_v25 = vsel %vm2989_vm10, %v6329_v36, %v2986_v35  ;;  %v2993_v37 = vmul.f32 %v6331_v21, %v2992_v38 }
 0xce3   :  { %v3018_v59 = vmul.f32 %v2990_v25, %v8632_v56  ;;  %v3104_v13 = vpop.f32.mrf.mxu0 }
 0xce4   :  { %v2994_v44 = vmul.f32 0.5, %v2993_v37  ;;  %v8724_v49 = vadd.f32 %v8720_v61, %v3104_v13 }
 0xce5   :  { %v3031_v39 = vmul.f32 %v8644_v7, %v3018_v59 }
 0xce6   :  { %v2995_v32 = vsub.f32 1.5, %v2994_v44  ;;  %3488 = vrot.lane.b32.xlu0 %v8724_v49, %s6577_s2  ;;  %3144 = vrot.lane.b32.xlu1 %v8724_v49, %s6575_s27 }
 0xce7   :  { %3468 = vrot.lane.b32.xlu2 %v8724_v49, %s6578_s6  ;;  %v8734_v56 = vadd.f32 %v8651_v34, %v3031_v39 }
 0xce8   :  { %v2996_v54 = vmul.f32 %v6331_v21, %v2995_v32 }
 0xce9   :  { %10432 = vst [vmem:[#allocation22_spill] sm:$0xff] %v8734_v56  ;;  %5657 = vmatmul.msk.f32.gmra.mxu0 %vm245_vm12, %v8734_v56 }
 0xcea   :  { %v3000_v43 = vsel %vm2999_vm2, %v6331_v21, %v2996_v54 }
 0xceb   :  { %v3019_v11 = vmul.f32 %v3000_v43, %v8639_v5  ;;  %v3107_v45 = vpop.f32.mrf.mxu0 }
 0xcec   :  { %v8740_v33 = vadd.f32 %v8720_v61, %v3107_v45 }
 0xced   :  { %v3032_v47 = vmul.f32 %v8644_v7, %v3019_v11 }
 0xcee   :  { %3490 = vrot.lane.b32.xlu1 %v8740_v33, %s6577_s2  ;;  %3146 = vrot.lane.b32.xlu0 %v8740_v33, %s6575_s27 }
 0xcef   :  { %v8748_v22 = vadd.f32 %v8651_v34, %v3032_v47 }
 0xcf1   :  { %10433 = vst [vmem:[#allocation23_spill] sm:$0xff] %v8748_v22  ;;  %5658 = vmatmul.msk.f32.gmra.mxu0 %vm245_vm12, %v8748_v22 }
 0xcf6   :  { %3470 = vrot.lane.b32.xlu1 %v8740_v33, %s6578_s6 }
 0xcfe   :  { %v3110_v5 = vpop.f32.mrf.mxu0 }
 0xcff   :  { %v8755_v2 = vadd.f32 %v8720_v61, %v3110_v5 }
 0xd01   :  { %3472 = vrot.lane.b32.xlu0 %v8755_v2, %s6578_s6  ;;  %3148 = vrot.lane.b32.xlu2 %v8755_v2, %s6575_s27 }
 0xd06   :  { %v3113_v51 = vpop.f32.mrf.mxu0 }
 0xd07   :  { %v8762_v30 = vadd.f32 %v8720_v61, %v3113_v51 }
 0xd09   :  { %3150 = vrot.lane.b32.xlu1 %v8762_v30, %s6575_s27  ;;  %3494 = vrot.lane.b32.xlu0 %v8762_v30, %s6577_s2 }
 0xd0a   :  { %3492 = vrot.lane.b32.xlu2 %v8755_v2, %s6577_s2 }
 0xd0d   :  { %v2890_v46 = vpop.xlane.xlu1 %2889 }
 0xd0e   :  { %v2900_v23 = vmul.f32 %v2890_v46, %v10421_v9  ;;  %v3116_v28 = vpop.f32.mrf.mxu0 }
 0xd0f   :  { %v8772_v19 = vadd.f32 %v8720_v61, %v3116_v28 }
 0xd10   :  { %v2910_v0 = vadd.f32 1e-05, %v2900_v23 }
 0xd11   :  { %3838 = vrot.lane.b32.xlu1 %v8762_v30, %s6579_s4  ;;  %3152 = vrot.lane.b32.xlu0 %v8772_v19, %s6575_s27 }
 0xd12   :  { %6332 = vrsqrt.f32 %v2910_v0  ;;  %3474 = vrot.lane.b32.xlu2 %v8762_v30, %s6578_s6  ;;  %vm3007_vm5 = vweird.f32 %v2910_v0 }
 0xd16   :  { %v3119_v6 = vpop.f32.mrf.mxu0 }
 0xd17   :  { %v8781_v48 = vadd.f32 %v8720_v61, %v3119_v6 }
 0xd18   :  { %v6333_v1 = vpop.eup %6332 }
 0xd19   :  { %v3002_v53 = vmul.f32 %v6333_v1, %v2910_v0  ;;  %3498 = vrot.lane.b32.xlu1 %v8781_v48, %s6577_s2  ;;  %3476 = vrot.lane.b32.xlu0 %v8772_v19, %s6578_s6  ;;  %vm3008_vm4 = vweird.f32 %v6333_v1 }
 0xd1a   :  { %3496 = vrot.lane.b32.xlu2 %v8772_v19, %s6577_s2  ;;  %vm3009_vm7 = vmor %vm3007_vm5, %vm3008_vm4 }
 0xd1b   :  { %v3003_v14 = vmul.f32 %v6333_v1, %v3002_v53 }
 0xd1d   :  { %v3004_v24 = vmul.f32 0.5, %v3003_v14 }
 0xd1f   :  { %v3005_v63 = vsub.f32 1.5, %v3004_v24 }
 0xd21   :  { %v3006_v26 = vmul.f32 %v6333_v1, %v3005_v63  ;;  %3840 = vrot.lane.b32.xlu0 %v8772_v19, %s6579_s4 }
 0xd22   :  { %3154 = vrot.lane.b32.xlu2 %v8781_v48, %s6575_s27 }
 0xd23   :  { %v3010_v36 = vsel %vm3009_vm7, %v6333_v1, %v3006_v26  ;;  %v8928_v1 = vpack.i.bf16 %v8755_v2, %v8762_v30  ;;  %v8954_v26 = vpack.i.bf16 %v8724_v49, %v8740_v33 }
 0xd24   :  { %v3020_v31 = vmul.f32 %v3010_v36, %v8696_v8 }
 0xd25   :  { %10436 = vst [vmem:[#allocation26_spill] sm:$0xff] %v8928_v1 }
 0xd26   :  { %v3033_v40 = vmul.f32 %v8644_v7, %v3020_v31  ;;  %10438 = vst [vmem:[#allocation8_spill] sm:$0xff] %v8954_v26 }
 0xd28   :  { %v8796_v20 = vadd.f32 %v8651_v34, %v3033_v40 }
 0xd29   :  { %3478 = vrot.lane.b32.xlu0 %v8781_v48, %s6578_s6 }
 0xd2a   :  { %10434 = vst [vmem:[#allocation24_spill] sm:$0xff] %v8796_v20  ;;  %5659 = vmatmul.msk.f32.gmra.mxu0 %vm245_vm12, %v8796_v20 }
 0xd31   :  { %3842 = vrot.lane.b32.xlu0 %v8781_v48, %s6579_s4 }
 0xd34   :  { %v3122_v57 = vpop.f32.mrf.mxu0 }
 0xd35   :  { %v8805_v29 = vadd.f32 %v8720_v61, %v3122_v57  ;;  %v8970_v57 = vpack.i.bf16 %v8772_v19, %v8781_v48 }
 0xd37   :  { %3480 = vrot.lane.b32.xlu1 %v8805_v29, %s6578_s6  ;;  %3844 = vrot.lane.b32.xlu2 %v8805_v29, %s6579_s4  ;;  %10439 = vst [vmem:[#allocation11_spill] sm:$0xff] %v8970_v57 }
 0xd39   :  { %3156 = vrot.lane.b32.xlu0 %v8805_v29, %s6575_s27 }
 0xd41   :  { %3500 = vrot.lane.b32.xlu0 %v8805_v29, %s6577_s2  ;;  %v8861_v59 = vpop.permute.xlu2 %3468 }
 0xd49   :  { %4188 = vrot.lane.b32.xlu0 %v8805_v29, %s6581_s26 }
 0xd51   :  { %4186 = vrot.lane.b32.xlu0 %v8781_v48, %s6581_s26 }
 0xd58   :  { %v8821_v7 = vpop.permute.xlu0 %3488  ;;  %v8897_v45 = vpop.permute.xlu1 %3144 }
 0xd59   :  { %3812 = vrot.lane.b32.xlu0 %v8724_v49, %s6580_s28 }
 0xd5b   :  { %v8871_v44 = vpop.permute.xlu2 %3148 }
 0xd60   :  { %v8834_v21 = vpop.permute.xlu0 %3146  ;;  %v8909_v51 = vpop.permute.xlu1 %3490 }
 0xd61   :  { %4178 = vrot.lane.b32.xlu0 %v8740_v33, %s6581_s26 }
 0xd64   :  { %v8887_v43 = vpop.permute.xlu2 %3492 }
 0xd66   :  { %v3125_v34 = vpop.f32.mrf.mxu0 }
 0xd67   :  { %v8826_v8 = vadd.f32 %v8720_v61, %v3125_v34 }
 0xd68   :  { %v8924_v6 = vpop.permute.xlu1 %3470 }
 0xd69   :  { %4156 = vrot.lane.b32.xlu0 %v8724_v49, %s6582_s7  ;;  %3502 = vrot.lane.b32.xlu2 %v8826_v8, %s6577_s2  ;;  %v8877_v32 = vpack.i.bf16 %v8805_v29, %v8826_v8 }
 0xd6a   :  { %3158 = vrot.lane.b32.xlu1 %v8826_v8, %s6575_s27 }
 0xd6c   :  { %v8899_v47 = vpop.permute.xlu2 %3474 }
 0xd6e   :  { %v3128_v38 = vpop.f32.mrf.mxu0 }
 0xd6f   :  { %v8845_v25 = vadd.f32 %v8720_v61, %v3128_v38 }
 0xd71   :  { %3818 = vrot.lane.b32.xlu0 %v8762_v30, %s6580_s28  ;;  %4190 = vrot.lane.b32.xlu2 %v8826_v8, %s6581_s26 }
 0xd72   :  { %3846 = vrot.lane.b32.xlu1 %v8826_v8, %s6579_s4 }
 0xd73   :  { %v8842_v35 = vpop.permute.xlu0 %3472 }
 0xd74   :  { %v8914_v28 = vpop.permute.xlu2 %3496 }
 0xd79   :  { %4162 = vrot.lane.b32.xlu0 %v8762_v30, %s6582_s7  ;;  %3160 = vrot.lane.b32.xlu2 %v8845_v25, %s6575_s27 }
 0xd7a   :  { %3836 = vrot.lane.b32.xlu1 %v8755_v2, %s6579_s4 }
 0xd7b   :  { %v8853_v37 = vpop.permute.xlu0 %3494  ;;  %v8940_v14 = vpop.permute.xlu1 %3150 }
 0xd81   :  { %3824 = vrot.lane.b32.xlu0 %v8805_v29, %s6580_s28  ;;  %3482 = vrot.lane.b32.xlu2 %v8826_v8, %s6578_s6 }
 0xd82   :  { %4184 = vrot.lane.b32.xlu1 %v8772_v19, %s6581_s26 }
 0xd83   :  { %v8863_v13 = vpop.permute.xlu0 %3152  ;;  %v8958_v36 = vpop.permute.xlu1 %3838 }
 0xd89   :  { %4168 = vrot.lane.b32.xlu0 %v8805_v29, %s6582_s7  ;;  %3834 = vrot.lane.b32.xlu2 %v8740_v33, %s6579_s4 }
 0xd8a   :  { %4182 = vrot.lane.b32.xlu1 %v8762_v30, %s6581_s26 }
 0xd8b   :  { %v8873_v39 = vpop.permute.xlu0 %3476 }
 0xd91   :  { %5983 = vrot.lane.b32.xlu0 %v8877_v32, %s10435_s9  ;;  %3832 = vrot.lane.b32.xlu2 %v8724_v49, %s6579_s4 }
 0xd92   :  { %4176 = vrot.lane.b32.xlu1 %v8724_v49, %s6581_s26 }
 0xd93   :  { %v8885_v54 = vpop.permute.xlu0 %3840 }
 0xd99   :  { %3484 = vrot.lane.b32.xlu0 %v8845_v25, %s6578_s6  ;;  %4180 = vrot.lane.b32.xlu2 %v8755_v2, %s6581_s26 }
 0xd9a   :  { %3504 = vrot.lane.b32.xlu1 %v8845_v25, %s6577_s2 }
 0xd9b   :  { %v8895_v11 = vpop.permute.xlu0 %3478 }
 0xda1   :  { %4172 = vrot.lane.b32.xlu0 %v8845_v25, %s6582_s7  ;;  %3814 = vrot.lane.b32.xlu2 %v8740_v33, %s6580_s28 }
 0xda2   :  { %4158 = vrot.lane.b32.xlu1 %v8740_v33, %s6582_s7 }
 0xda3   :  { %v8907_v5 = vpop.permute.xlu0 %3842 }
 0xda7   :  { %v3131_v46 = vpop.f32.mrf.mxu0 }
 0xda8   :  { %v8912_v23 = vadd.f32 %v8720_v61, %v3131_v46  ;;  %v8936_v61 = vpop.permute.xlu2 %3154  ;;  %v8982_v46 = vpop.permute.xlu1 %3498 }
 0xda9   :  { %3816 = vrot.lane.b32.xlu2 %v8755_v2, %s6580_s28 }
 0xdaa   :  { %3820 = vrot.lane.b32.xlu1 %v8772_v19, %s6580_s28  ;;  %3162 = vrot.lane.b32.xlu0 %v8912_v23, %s6575_s27  ;;  %s10440_s27 = smov 48   ;;  %v6032_v9 = vpack.i.bf16 %v8845_v25, %v8912_v23 }
 0xdab   :  { %v8922_v0 = vpop.permute.xlu0 %3156 }
 0xdb0   :  { %v8948_v24 = vpop.permute.xlu2 %3844  ;;  %v8992_v22 = vpop.permute.xlu1 %3480 }
 0xdb1   :  { %4160 = vrot.lane.b32.xlu2 %v8755_v2, %s6582_s7 }
 0xdb2   :  { %4164 = vrot.lane.b32.xlu1 %v8772_v19, %s6582_s7  ;;  %5988 = vrot.lane.b32.xlu0 %v8928_v1, %s10437_s29 }
 0xdb3   :  { %v8938_v53 = vpop.permute.xlu0 %3500 }
 0xdb9   :  { %3822 = vrot.lane.b32.xlu2 %v8781_v48, %s6580_s28 }
 0xdba   :  { %3826 = vrot.lane.b32.xlu1 %v8826_v8, %s6580_s28  ;;  %3506 = vrot.lane.b32.xlu0 %v8912_v23, %s6577_s2  ;;  %s10442_s2 = smov 40  }
 0xdbb   :  { %v8950_v63 = vpop.permute.xlu0 %4188 }
 0xdc1   :  { %4166 = vrot.lane.b32.xlu2 %v8781_v48, %s6582_s7 }
 0xdc2   :  { %4170 = vrot.lane.b32.xlu1 %v8826_v8, %s6582_s7  ;;  %5998 = vrot.lane.b32.xlu0 %v8954_v26, %s10437_s29 }
 0xdc3   :  { %v8964_v31 = vpop.permute.xlu2 %3502  ;;  %v8966_v40 = vpop.permute.xlu0 %4186 }
 0xdc9   :  { %3848 = vrot.lane.b32.xlu2 %v8845_v25, %s6579_s4 }
 0xdca   :  { %5978 = vrot.lane.b32.xlu1 %v8970_v57, %s10437_s29  ;;  %6018 = vrot.lane.b32.xlu0 %v8970_v57, %s10440_s27 }
 0xdcb   :  { %v8978_v34 = vpop.permute.xlu2 %4190  ;;  %v8980_v38 = vpop.permute.xlu0 %3812 }
 0xdd1   :  { %5973 = vrot.lane.b32.xlu2 %v8877_v32, %s10437_s29 }
 0xdd2   :  { %6003 = vrot.lane.b32.xlu1 %v8928_v1, %s10435_s9  ;;  %6028 = vrot.lane.b32.xlu0 %v8928_v1, %s10440_s27 }
 0xdd3   :  { %v3161_v20 = vpop.permute.xlu2 %3160  ;;  %v8990_v56 = vpop.permute.xlu0 %4178 }
 0xdd9   :  { %4192 = vrot.lane.b32.xlu2 %v8845_v25, %s6581_s26 }
 0xdda   :  { %3850 = vrot.lane.b32.xlu1 %v8912_v23, %s6579_s4  ;;  %6033 = vrot.lane.b32.xlu0 %v6032_v9, %s10437_s29  ;;  %s10476_s4 = smov 16  }
 0xddb   :  { %v9001_v50 = vpop.permute.xlu2 %3482  ;;  %v9003_v55 = vpop.permute.xlu0 %4156 }
 0xddc   :  { %10441 = vst [vmem:[#allocation13_spill] sm:$0xff] %v9003_v55  ;;  %v3159_v15 = vpop.permute.xlu1 %3158 }
 0xde1   :  { %3828 = vrot.lane.b32.xlu2 %v8845_v25, %s6580_s28 }
 0xde2   :  { %6023 = vrot.lane.b32.xlu1 %v8877_v32, %s10442_s2  ;;  %6038 = vrot.lane.b32.xlu0 %v6032_v9, %s10435_s9 }
 0xde3   :  { %v9010_v41 = vpop.permute.xlu2 %3834  ;;  %v9012_v62 = vpop.permute.xlu0 %3818 }
 0xde4   :  { %10443 = vst [vmem:[#allocation14_spill] sm:$0xff] %v9012_v62  ;;  %v9014_v10 = vpop.permute.xlu1 %3846 }
 0xde9   :  { %5993 = vrot.lane.b32.xlu2 %v8970_v57, %s10435_s9 }
 0xdea   :  { %4194 = vrot.lane.b32.xlu1 %v8912_v23, %s6581_s26  ;;  %6043 = vrot.lane.b32.xlu0 %v6032_v9, %s10440_s27 }
 0xdeb   :  { %v9021_v60 = vpop.permute.xlu2 %3832  ;;  %v9023_v1 = vpop.permute.xlu0 %4162 }
 0xdec   :  { %10444 = vst [vmem:[#allocation15_spill] sm:$0xff] %v9023_v1  ;;  %v9025_v12 = vpop.permute.xlu1 %3836 }
 0xdf1   :  { %6008 = vrot.lane.b32.xlu2 %v8954_v26, %s10435_s9 }
 0xdf2   :  { %3486 = vrot.lane.b32.xlu1 %v8912_v23, %s6578_s6  ;;  %6048 = vrot.lane.b32.xlu0 %v6032_v9, %s10442_s2  ;;  %s10475_s6 = smov 24  }
 0xdf3   :  { %v9032_v57 = vpop.permute.xlu2 %4180  ;;  %v9034_v4 = vpop.permute.xlu0 %3824 }
 0xdf4   :  { %10445 = vst [vmem:[#allocation6_spill] sm:$0xff] %v9034_v4  ;;  %v9036_v27 = vpop.permute.xlu1 %4184 }
 0xdf9   :  { %6013 = vrot.lane.b32.xlu2 %v8877_v32, %s10440_s27 }
 0xdfa   :  { %4174 = vrot.lane.b32.xlu1 %v8912_v23, %s6582_s7 }
 0xdfb   :  { %v9042_v52 = vpop.permute.xlu2 %3814  ;;  %v9044_v26 = vpop.permute.xlu0 %4168 }
 0xdfc   :  { %10446 = vst [vmem:[#allocation7_spill] sm:$0xff] %v9044_v26  ;;  %v9046_v16 = vpop.permute.xlu1 %4182 }
 0xe03   :  { %v9048_v17 = vpop.permute.xlu2 %3816  ;;  %v9050_v9 = vpop.permute.xlu0 %5983 }
 0xe04   :  { %10447 = vst [vmem:[#allocation9_spill] sm:$0xff] %v9048_v17  ;;  %v9052_v3 = vpop.permute.xlu1 %4176 }
 0xe0b   :  { %v9054_v18 = vpop.permute.xlu2 %4160  ;;  %v9056_v58 = vpop.permute.xlu0 %3484 }
 0xe0c   :  { %10448 = vst [vmem:[#allocation10_spill] sm:$0xff] %v9054_v18  ;;  %v3505_v32 = vpop.permute.xlu1 %3504 }
 0xe13   :  { %v9058_v42 = vpop.permute.xlu2 %3822  ;;  %v9060_v4 = vpop.permute.xlu0 %4172 }
 0xe14   :  { %10449 = vst [vmem:[#allocation12_spill] sm:$0xff] %v9058_v42  ;;  %v9062_v1 = vpop.permute.xlu1 %4158 }
 0xe15   :  { %10450 = vst [vmem:[#allocation37_spill] sm:$0xff] %v9060_v4 }
 0xe1b   :  { %v9066_v55 = vpop.permute.xlu2 %4166 }
 0xe1c   :  { %v9064_v26 = vpop.permute.xlu1 %3820  ;;  %v3163_v62 = vpop.permute.xlu0 %3162 }
 0xe1d   :  { %10451 = vst [vmem:[#allocation38_spill] sm:$0xff] %v9064_v26  ;;  %5660 = vmatpush.xpose.msk.msra.mxu3 %vm691_vm1, %v3163_v62 }
 0xe21   :  { %5661 = vmatpush.xpose.msk.msra.mxu3 %vm691_vm1, %v3161_v20 }
 0xe23   :  { %v3849_v42 = vpop.permute.xlu2 %3848 }
 0xe24   :  { %v9070_v17 = vpop.permute.xlu1 %4164  ;;  %v9072_v18 = vpop.permute.xlu0 %5988 }
 0xe25   :  { %5662 = vmatpush.xpose.msk.msra.mxu3 %vm691_vm1, %v3159_v15 }
 0xe29   :  { %5663 = vmatpush.xpose.msk.msra.mxu3 %vm691_vm1, %v8922_v0 }
 0xe2b   :  { %v5974_v62 = vpop.permute.xlu2 %5973 }
 0xe2c   :  { %v9077_v4 = vpop.permute.xlu1 %3826  ;;  %v3507_v26 = vpop.permute.xlu0 %3506 }
 0xe2d   :  { %5664 = vmatpush.xpose.msk.msra.mxu3 %vm691_vm1, %v8936_v61  ;;  %5690 = vmatpush.xpose.msk.msra.mxu1 %vm691_vm1, %v3507_v26 }
 0xe31   :  { %5665 = vmatpush.xpose.msk.msra.mxu3 %vm691_vm1, %v8863_v13  ;;  %5691 = vmatpush.xpose.msk.msra.mxu1 %vm691_vm1, %v3505_v32  ;;  %v5985_v32 = vunpack.i.l.bf16 %v9050_v9 }
 0xe33   :  { %v9097_v0 = vpop.permute.xlu2 %4192 }
 0xe34   :  { %v9085_v20 = vpop.permute.xlu1 %4170  ;;  %v9087_v15 = vpop.permute.xlu0 %5998 }
 0xe35   :  { %5666 = vmatpush.xpose.msk.msra.mxu3 %vm691_vm1, %v8940_v14  ;;  %5692 = vmatpush.xpose.msk.msra.mxu1 %vm691_vm1, %v8964_v31 }
 0xe39   :  { %5667 = vmatpush.xpose.msk.msra.mxu3 %vm691_vm1, %v8871_v44  ;;  %5693 = vmatpush.xpose.msk.msra.mxu1 %vm691_vm1, %v8938_v53 }
 0xe3c   :  { %v5979_v13 = vpop.permute.xlu1 %5978  ;;  %v9099_v61 = vpop.permute.xlu0 %6018 }
 0xe3d   :  { %5668 = vmatpush.xpose.msk.msra.mxu3 %vm691_vm1, %v8834_v21  ;;  %5694 = vmatpush.xpose.msk.msra.mxu1 %vm691_vm1, %v8982_v46  ;;  %v9117_v21 = vpop.permute.xlu2 %3828 }
 0xe41   :  { %5669 = vmatpush.xpose.msk.msra.mxu3 %vm691_vm1, %v8897_v45  ;;  %5695 = vmatpush.xpose.msk.msra.mxu1 %vm691_vm1, %v8914_v28 }
 0xe44   :  { %v9109_v44 = vpop.permute.xlu1 %6003  ;;  %5670 = vmatmul.msk.f32.vlgmr.msra.gmra.mxu3 %vm691_vm1, %v8724_v49  ;;  %v9113_v53 = vpop.permute.xlu0 %6028 }
 0xe45   :  { %5696 = vmatpush.xpose.msk.msra.mxu1 %vm691_vm1, %v8853_v37  ;;  %v5994_v26 = vpop.permute.xlu2 %5993  ;;  %v5975_v37 = vunpack.i.l.bf16 %v5974_v62 }
 0xe49   :  { %5697 = vmatpush.xpose.msk.msra.mxu1 %vm691_vm1, %v8887_v43  ;;  %v5976_v43 = vunpack.i.h.bf16 %v5974_v62 }
 0xe4c   :  { %v3851_v14 = vpop.permute.xlu1 %3850  ;;  %5671 = vmatmul.msk.f32.gmra.mxu3 %vm691_vm1, %v8740_v33  ;;  %v6034_v45 = vpop.permute.xlu0 %6033 }
 0xe4d   :  { %5720 = vmatpush.xpose.msk.msrb.mxu3 %vm691_vm1, %v3851_v14  ;;  %v6035_v28 = vunpack.i.l.bf16 %v6034_v45  ;;  %5698 = vmatpush.xpose.msk.msra.mxu1 %vm691_vm1, %v8909_v51  ;;  %v6036_v49 = vunpack.i.h.bf16 %v6034_v45  ;;  %v6009_v62 = vpop.permute.xlu2 %6008  ;;  %v6000_v14 = vunpack.i.l.bf16 %v9087_v15  ;;  %v6001_v45 = vunpack.i.h.bf16 %v9087_v15 }
 0xe4f   :  { %3427 = vmatpush.msrb.mxu2 %v6035_v28 }
 0xe51   :  { %5721 = vmatpush.xpose.msk.msrb.mxu3 %vm691_vm1, %v3849_v42  ;;  %3428 = vmatpush.msrb.mxu2 %v6036_v49  ;;  %v5980_v42 = vunpack.i.l.bf16 %v5979_v13 }
 0xe52   :  { %5699 = vmatpush.xpose.msk.msra.mxu1 %vm691_vm1, %v8821_v7  ;;  %v5981_v7 = vunpack.i.h.bf16 %v5979_v13  ;;  %v5986_v13 = vunpack.i.h.bf16 %v9050_v9  ;;  %v6006_v9 = vunpack.i.h.bf16 %v9109_v44 }
 0xe53   :  { %3429 = vmatpush.msrb.mxu2 %v5975_v37 }
 0xe54   :  { %v9129_v33 = vpop.permute.xlu1 %6023  ;;  %5672 = vmatmul.msk.f32.gmra.mxu3 %vm691_vm1, %v8755_v2  ;;  %v6039_v31 = vpop.permute.xlu0 %6038  ;;  %v5990_v2 = vunpack.i.l.bf16 %v9072_v18 }
 0xe55   :  { %5700 = vmatmul.msk.f32.vlgmr.msra.gmra.mxu1 %vm691_vm1, %v8861_v59  ;;  %5722 = vmatpush.xpose.msk.msrb.mxu3 %vm691_vm1, %v9014_v10  ;;  %v6040_v51 = vunpack.i.l.bf16 %v6039_v31  ;;  %v6041_v46 = vunpack.i.h.bf16 %v6039_v31  ;;  %v5991_v10 = vunpack.i.h.bf16 %v9072_v18  ;;  %v5995_v18 = vunpack.i.l.bf16 %v5994_v26 }
 0xe56   :  { %3430 = vmatpush.msrb.mxu2 %v5976_v43 }
 0xe57   :  { %3771 = vmatpush.msrb.mxu0 %v6040_v51  ;;  %v10464_v51 = vld [vmem:[#allocation30_spill] sm:$0xff] }
 0xe58   :  { %3431 = vmatpush.msrb.mxu2 %v5980_v42 }
 0xe59   :  { %5723 = vmatpush.xpose.msk.msrb.mxu3 %vm691_vm1, %v8948_v24  ;;  %3772 = vmatpush.msrb.mxu0 %v6041_v46 }
 0xe5a   :  { %3432 = vmatpush.msrb.mxu2 %v5981_v7 }
 0xe5b   :  { %3773 = vmatpush.msrb.mxu0 %v5985_v32  ;;  %v10465_v32 = vld [vmem:[#allocation37_spill] sm:$0xff] }
 0xe5c   :  { %v4195_v59 = vpop.permute.xlu1 %4194  ;;  %3433 = vmatpush.msrb.mxu2 %v5990_v2  ;;  %5673 = vmatmul.msk.f32.gmra.mxu3 %vm691_vm1, %v8762_v30  ;;  %v6044_v24 = vpop.permute.xlu0 %6043  ;;  %v5996_v30 = vunpack.i.h.bf16 %v5994_v26  ;;  %v6011_v26 = vunpack.i.h.bf16 %v6009_v62 }
 0xe5d   :  { %5701 = vmatmul.msk.f32.gmra.mxu1 %vm691_vm1, %v8924_v6  ;;  %5724 = vmatpush.xpose.msk.msrb.mxu3 %vm691_vm1, %v8907_v5  ;;  %v6045_v28 = vunpack.i.l.bf16 %v6044_v24  ;;  %v6005_v5 = vunpack.i.l.bf16 %v9109_v44  ;;  %v6014_v6 = vpop.permute.xlu2 %6013  ;;  %v6046_v15 = vunpack.i.h.bf16 %v6044_v24 }
 0xe5e   :  { %5750 = vmatpush.xpose.msk.msrb.mxu1 %vm691_vm1, %v4195_v59  ;;  %3434 = vmatpush.msrb.mxu2 %v5991_v10  ;;  %v10466_v10 = vld [vmem:[#allocation31_spill] sm:$0xff] }
 0xe5f   :  { %3774 = vmatpush.msrb.mxu0 %v5986_v13 }
 0xe60   :  { %3435 = vmatpush.msrb.mxu2 %v6000_v14 }
 0xe61   :  { %3775 = vmatpush.msrb.mxu0 %v5995_v18  ;;  %5725 = vmatpush.xpose.msk.msrb.mxu3 %vm691_vm1, %v8885_v54  ;;  %v6010_v54 = vunpack.i.l.bf16 %v6009_v62 }
 0xe62   :  { %5751 = vmatpush.xpose.msk.msrb.mxu1 %vm691_vm1, %v9097_v0  ;;  %3436 = vmatpush.msrb.mxu2 %v6001_v45  ;;  %v6015_v0 = vunpack.i.l.bf16 %v6014_v6 }
 0xe63   :  { %3776 = vmatpush.msrb.mxu0 %v5996_v30 }
 0xe64   :  { %4115 = vmatpush.msra.mxu2 %v6045_v28  ;;  %5674 = vmatmul.msk.f32.gmra.mxu3 %vm691_vm1, %v8772_v19  ;;  %v6049_v49 = vpop.permute.xlu0 %6048  ;;  %v6016_v19 = vunpack.i.h.bf16 %v6014_v6 }
 0xe65   :  { %3777 = vmatpush.msrb.mxu0 %v6005_v5  ;;  %5702 = vmatmul.msk.f32.gmra.mxu1 %vm691_vm1, %v8842_v35  ;;  %v6050_v44 = vunpack.i.l.bf16 %v6049_v49  ;;  %v6020_v35 = vunpack.i.l.bf16 %v9099_v61 }
 0xe66   :  { %5726 = vmatpush.xpose.msk.msrb.mxu3 %vm691_vm1, %v8958_v36  ;;  %5752 = vmatpush.xpose.msk.msrb.mxu1 %vm691_vm1, %v8978_v34  ;;  %v6021_v36 = vunpack.i.h.bf16 %v9099_v61  ;;  %v6051_v34 = vunpack.i.h.bf16 %v6049_v49  ;;  %v6026_v61 = vunpack.i.h.bf16 %v9129_v33 }
 0xe67   :  { %4116 = vmatpush.msra.mxu2 %v6046_v15  ;;  %3778 = vmatpush.msrb.mxu0 %v6006_v9 }
 0xe69   :  { %4117 = vmatpush.msra.mxu2 %v6015_v0  ;;  %3779 = vmatpush.msrb.mxu0 %v6010_v54  ;;  %v10467_v54 = vld [vmem:[#allocation32_spill] sm:$0xff] }
 0xe6a   :  { %5727 = vmatpush.xpose.msk.msrb.mxu3 %vm691_vm1, %v9025_v12  ;;  %5753 = vmatpush.xpose.msk.msrb.mxu1 %vm691_vm1, %v8950_v63  ;;  %v6030_v12 = vunpack.i.l.bf16 %v9113_v53  ;;  %v6025_v63 = vunpack.i.l.bf16 %v9129_v33 }
 0xe6b   :  { %4118 = vmatpush.msra.mxu2 %v6016_v19  ;;  %3780 = vmatpush.msrb.mxu0 %v6011_v26 }
 0xe6c   :  { %5675 = vmatmul.msk.f32.gmra.mxu3 %vm691_vm1, %v8781_v48  ;;  %v6031_v48 = vunpack.i.h.bf16 %v9113_v53 }
 0xe6d   :  { %4459 = vmatpush.msra.mxu0 %v6050_v44  ;;  %4119 = vmatpush.msra.mxu2 %v6020_v35  ;;  %v10468_v35 = vld [vmem:[#allocation33_spill] sm:$0xff] }
 0xe6e   :  { %5703 = vmatmul.msk.f32.gmra.mxu1 %vm691_vm1, %v8899_v47  ;;  %5728 = vmatpush.xpose.msk.msrb.mxu3 %vm691_vm1, %v9010_v41  ;;  %v10455_v41 = vld [vmem:[#allocation38_spill] sm:$0xff] }
 0xe6f   :  { %5754 = vmatpush.xpose.msk.msrb.mxu1 %vm691_vm1, %v8966_v40  ;;  %4120 = vmatpush.msra.mxu2 %v6021_v36 }
 0xe70   :  { %4460 = vmatpush.msra.mxu0 %v6051_v34 }
 0xe71   :  { %4121 = vmatpush.msra.mxu2 %v6030_v12 }
 0xe72   :  { %4461 = vmatpush.msra.mxu0 %v6025_v63  ;;  %5729 = vmatpush.xpose.msk.msrb.mxu3 %vm691_vm1, %v9021_v60  ;;  %v10454_v60 = vld [vmem:[#allocation14_spill] sm:$0xff] }
 0xe73   :  { %5755 = vmatpush.xpose.msk.msrb.mxu1 %vm691_vm1, %v9036_v27  ;;  %4122 = vmatpush.msra.mxu2 %v6031_v48  ;;  %v10453_v27 = vld [vmem:[#allocation13_spill] sm:$0xff] }
 0xe74   :  { %4462 = vmatpush.msra.mxu0 %v6026_v61  ;;  %5676 = vmatmul.msk.f32.gmra.mxu3 %vm691_vm1, %v8805_v29  ;;  %v10460_v29 = vld [vmem:[#allocation27_spill] sm:$0xff] }
 0xe76   :  { %5704 = vmatmul.msk.f32.gmra.mxu1 %vm691_vm1, %v8873_v39 }
 0xe77   :  { %5756 = vmatpush.xpose.msk.msrb.mxu1 %vm691_vm1, %v9046_v16  ;;  %v3487_v16 = vpop.permute.xlu1 %3486 }
 0xe7b   :  { %5757 = vmatpush.xpose.msk.msrb.mxu1 %vm691_vm1, %v9032_v57  ;;  %v10462_v57 = vld [vmem:[#allocation7_spill] sm:$0xff] }
 0xe7c   :  { %5677 = vmatmul.msk.f32.gmra.mxu3 %vm691_vm1, %v8826_v8 }
 0xe7e   :  { %5705 = vmatmul.msk.f32.gmra.mxu1 %vm691_vm1, %v8895_v11  ;;  %v10461_v11 = vld [vmem:[#allocation28_spill] sm:$0xff] }
 0xe7f   :  { %5758 = vmatpush.xpose.msk.msrb.mxu1 %vm691_vm1, %v8990_v56  ;;  %v10459_v56 = vld [vmem:[#allocation6_spill] sm:$0xff]  ;;  %v4175_v14 = vpop.permute.xlu1 %4174 }
 0xe83   :  { %5759 = vmatpush.xpose.msk.msrb.mxu1 %vm691_vm1, %v9052_v3  ;;  %v10452_v3 = vld [vmem:[#allocation9_spill] sm:$0xff] }
 0xe84   :  { %5678 = vmatmul.msk.f32.gmra.mxu3 %vm691_vm1, %v8845_v25 }
 0xe86   :  { %5706 = vmatmul.msk.f32.gmra.mxu1 %vm691_vm1, %v8992_v22 }
 0xe8c   :  { %5679 = vmatmul.msk.f32.gmra.mxu3 %vm691_vm1, %v8912_v23 }
 0xe8e   :  { %5707 = vmatmul.msk.f32.gmra.mxu1 %vm691_vm1, %v9001_v50  ;;  %v10458_v50 = vld [vmem:[#allocation15_spill] sm:$0xff] }
 0xe94   :  { %5730 = vmatmul.msk.f32.vlgmr.msrb.gmra.mxu3 %vm691_vm1, %v8980_v38  ;;  %v10463_v38 = vld [vmem:[#allocation29_spill] sm:$0xff] }
 0xe96   :  { %5708 = vmatmul.msk.f32.gmra.mxu1 %vm691_vm1, %v9056_v58  ;;  %v10456_v58 = vld [vmem:[#allocation10_spill] sm:$0xff] }
 0xe9c   :  { %5731 = vmatmul.msk.f32.gmra.mxu3 %vm691_vm1, %v9042_v52  ;;  %v10457_v52 = vld [vmem:[#allocation12_spill] sm:$0xff] }
 0xe9e   :  { %5709 = vmatmul.msk.f32.gmra.mxu1 %vm691_vm1, %v3487_v16  ;;  %v10469_v16 = vld [vmem:[#allocation34_spill] sm:$0xff] }
 0xea4   :  { %5732 = vmatmul.msk.f32.gmra.mxu3 %vm691_vm1, %v10452_v3 }
 0xea6   :  { %5760 = vmatmul.msk.f32.vlgmr.msrb.gmra.mxu1 %vm691_vm1, %v10453_v27 }
 0xeac   :  { %5733 = vmatmul.msk.f32.gmra.mxu3 %vm691_vm1, %v10454_v60 }
 0xeae   :  { %5761 = vmatmul.msk.f32.gmra.mxu1 %vm691_vm1, %v9062_v1 }
 0xeb4   :  { %5734 = vmatmul.msk.f32.gmra.mxu3 %vm691_vm1, %v10455_v41 }
 0xeb6   :  { %5762 = vmatmul.msk.f32.gmra.mxu1 %vm691_vm1, %v10456_v58 }
 0xebc   :  { %5735 = vmatmul.msk.f32.gmra.mxu3 %vm691_vm1, %v10457_v52 }
 0xebe   :  { %5763 = vmatmul.msk.f32.gmra.mxu1 %vm691_vm1, %v10458_v50  ;;  %v10470_v50 = vld [vmem:[#allocation35_spill] sm:$0xff] }
 0xec4   :  { %5736 = vmatmul.msk.f32.gmra.mxu3 %vm691_vm1, %v10459_v56 }
 0xec6   :  { %5764 = vmatmul.msk.f32.gmra.mxu1 %vm691_vm1, %v9070_v17 }
 0xec7   :  { %v3221_v22 = vpop.f32.mrf.mxu3 }
 0xec8   :  { %v9240_v8 = vadd.f32 %v3221_v22, %v10460_v29 }
 0xeca   :  { %v3251_v25 = vsel %vm779_vm6, %v9240_v8, -inf }
 0xecb   :  { %3252 = vmax.xlane.f32.xlu2 %v3251_v25 }
 0xecc   :  { %5737 = vmatmul.msk.f32.gmra.mxu3 %vm691_vm1, %v9077_v4 }
 0xece   :  { %5765 = vmatmul.msk.f32.gmra.mxu1 %vm691_vm1, %v9066_v55 }
 0xecf   :  { %v3224_v39 = vpop.f32.mrf.mxu3 }
 0xed0   :  { %v9249_v47 = vadd.f32 %v3224_v39, %v10461_v11 }
 0xed2   :  { %v3565_v1 = vpop.f32.mrf.mxu1  ;;  %v3254_v17 = vsel %vm779_vm6, %v9249_v47, -inf }
 0xed3   :  { %v9254_v40 = vadd.f32 %v3565_v1, %v10460_v29  ;;  %3255 = vmax.xlane.f32.xlu0 %v3254_v17 }
 0xed4   :  { %5738 = vmatmul.msk.f32.gmra.mxu3 %vm691_vm1, %v9117_v21 }
 0xed5   :  { %v3595_v4 = vsel %vm779_vm6, %v9254_v40, -inf }
 0xed6   :  { %5766 = vmatmul.msk.f32.gmra.mxu1 %vm691_vm1, %v10462_v57  ;;  %3596 = vmax.xlane.f32.xlu1 %v3595_v4  ;;  %v10471_v57 = vld [vmem:[#allocation36_spill] sm:$0xff] }
 0xed7   :  { %v3227_v55 = vpop.f32.mrf.mxu3 }
 0xed8   :  { %v9263_v53 = vadd.f32 %v3227_v55, %v10463_v38 }
 0xeda   :  { %v3568_v37 = vpop.f32.mrf.mxu1  ;;  %v3257_v33 = vsel %vm779_vm6, %v9263_v53, -inf }
 0xedb   :  { %v9266_v43 = vadd.f32 %v3568_v37, %v10461_v11 }
 0xedd   :  { %v3598_v21 = vsel %vm779_vm6, %v9266_v43, -inf }
 0xede   :  { %5767 = vmatmul.msk.f32.gmra.mxu1 %vm691_vm1, %v9085_v20  ;;  %3599 = vmax.xlane.f32.xlu2 %v3598_v21 }
 0xedf   :  { %3258 = vmax.xlane.f32.xlu1 %v3257_v33  ;;  %v3230_v31 = vpop.f32.mrf.mxu3 }
 0xee0   :  { %v9275_v42 = vadd.f32 %v3230_v31, %v10464_v51 }
 0xee2   :  { %v3571_v46 = vpop.f32.mrf.mxu1  ;;  %v3260_v2 = vsel %vm779_vm6, %v9275_v42, -inf }
 0xee3   :  { %v9278_v7 = vadd.f32 %v3571_v46, %v10463_v38 }
 0xee5   :  { %v3601_v20 = vsel %vm779_vm6, %v9278_v7, -inf }
 0xee6   :  { %5768 = vmatmul.msk.f32.gmra.mxu1 %vm691_vm1, %v10465_v32  ;;  %3602 = vmax.xlane.f32.xlu0 %v3601_v20 }
 0xee7   :  { %3261 = vmax.xlane.f32.xlu2 %v3260_v2  ;;  %v3233_v62 = vpop.f32.mrf.mxu3 }
 0xee8   :  { %v9287_v59 = vadd.f32 %v3233_v62, %v10466_v10 }
 0xeea   :  { %v3263_v18 = vsel %vm779_vm6, %v9287_v59, -inf }
 0xeeb   :  { %v3574_v13 = vpop.f32.mrf.mxu1 }
 0xeec   :  { %v9290_v24 = vadd.f32 %v3574_v13, %v10464_v51 }
 0xeee   :  { %5769 = vmatmul.msk.f32.gmra.mxu1 %vm691_vm1, %v4175_v14  ;;  %v3604_v45 = vsel %vm779_vm6, %v9290_v24, -inf  ;;  %3264 = vmax.xlane.f32.xlu0 %v3263_v18 }
 0xeef   :  { %3605 = vmax.xlane.f32.xlu1 %v3604_v45  ;;  %v3236_v30 = vpop.f32.mrf.mxu3 }
 0xef0   :  { %v9308_v19 = vadd.f32 %v3236_v30, %v10467_v54 }
 0xef2   :  { %v3266_v12 = vsel %vm779_vm6, %v9308_v19, -inf }
 0xef3   :  { %v3577_v28 = vpop.f32.mrf.mxu1 }
 0xef4   :  { %v9298_v5 = vadd.f32 %v3577_v28, %v10466_v10 }
 0xef6   :  { %v3607_v6 = vsel %vm779_vm6, %v9298_v5, -inf }
 0xef7   :  { %3608 = vmax.xlane.f32.xlu2 %v3607_v6  ;;  %v3239_v9 = vpop.f32.mrf.mxu3 }
 0xef8   :  { %v9318_v48 = vadd.f32 %v3239_v9, %v10468_v35 }
 0xefa   :  { %v3269_v60 = vsel %vm779_vm6, %v9318_v48, -inf }
 0xefb   :  { %v3580_v15 = vpop.f32.mrf.mxu1 }
 0xefc   :  { %v9303_v0 = vadd.f32 %v3580_v15, %v10467_v54 }
 0xefe   :  { %v3610_v49 = vsel %vm779_vm6, %v9303_v0, -inf }
 0xeff   :  { %3611 = vmax.xlane.f32.xlu1 %v3610_v49  ;;  %v3242_v26 = vpop.f32.mrf.mxu3 }
 0xf00   :  { %v9328_v58 = vadd.f32 %v3242_v26, %v10469_v16 }
 0xf02   :  { %v3272_v25 = vsel %vm779_vm6, %v9328_v58, -inf }
 0xf03   :  { %v3583_v44 = vpop.f32.mrf.mxu1 }
 0xf04   :  { %v9311_v36 = vadd.f32 %v3583_v44, %v10468_v35 }
 0xf06   :  { %v3613_v34 = vsel %vm779_vm6, %v9311_v36, -inf }
 0xf07   :  { %3614 = vmax.xlane.f32.xlu0 %v3613_v34  ;;  %3267 = vmax.xlane.f32.xlu1 %v3266_v12  ;;  %v3245_v63 = vpop.f32.mrf.mxu3 }
 0xf08   :  { %v9338_v1 = vadd.f32 %v3245_v63, %v10470_v50 }
 0xf0a   :  { %v3275_v37 = vsel %vm779_vm6, %v9338_v1, -inf }
 0xf0b   :  { %v3586_v61 = vpop.f32.mrf.mxu1 }
 0xf0c   :  { %v9321_v3 = vadd.f32 %v3586_v61, %v10469_v16 }
 0xf0e   :  { %v3616_v27 = vsel %vm779_vm6, %v9321_v3, -inf }
 0xf0f   :  { %3617 = vmax.xlane.f32.xlu0 %v3616_v27  ;;  %3270 = vmax.xlane.f32.xlu1 %v3269_v60  ;;  %v3248_v41 = vpop.f32.mrf.mxu3 }
 0xf10   :  { %v9351_v31 = vadd.f32 %v3248_v41, %v10471_v57 }
 0xf12   :  { %v3278_v62 = vsel %vm779_vm6, %v9351_v31, -inf }
 0xf13   :  { %v3589_v52 = vpop.f32.mrf.mxu1 }
 0xf14   :  { %v9331_v56 = vadd.f32 %v3589_v52, %v10470_v50 }
 0xf16   :  { %v3619_v22 = vsel %vm779_vm6, %v9331_v56, -inf }
 0xf17   :  { %3620 = vmax.xlane.f32.xlu0 %v3619_v22  ;;  %3273 = vmax.xlane.f32.xlu1 %v3272_v25  ;;  %v3909_v39 = vpop.f32.mrf.mxu3 }
 0xf18   :  { %v9366_v18 = vadd.f32 %v3909_v39, %v10460_v29 }
 0xf1a   :  { %v3939_v28 = vsel %vm779_vm6, %v9366_v18, -inf }
 0xf1b   :  { %v3592_v17 = vpop.f32.mrf.mxu1 }
 0xf1c   :  { %v9341_v4 = vadd.f32 %v3592_v17, %v10471_v57 }
 0xf1e   :  { %v3622_v55 = vsel %vm779_vm6, %v9341_v4, -inf }
 0xf1f   :  { %3623 = vmax.xlane.f32.xlu0 %v3622_v55  ;;  %3276 = vmax.xlane.f32.xlu1 %v3275_v37  ;;  %v3912_v21 = vpop.f32.mrf.mxu3 }
 0xf20   :  { %v9348_v33 = vadd.f32 %v3912_v21, %v10461_v11 }
 0xf22   :  { %v3942_v20 = vsel %vm779_vm6, %v9348_v33, -inf }
 0xf23   :  { %v4253_v46 = vpop.f32.mrf.mxu1 }
 0xf24   :  { %v9354_v32 = vadd.f32 %v4253_v46, %v10460_v29 }
 0xf26   :  { %v4283_v2 = vsel %vm779_vm6, %v9354_v32, -inf }
 0xf27   :  { %3943 = vmax.xlane.f32.xlu0 %v3942_v20  ;;  %4284 = vmax.xlane.f32.xlu2 %v4283_v2  ;;  %v3915_v13 = vpop.f32.mrf.mxu3 }
 0xf28   :  { %3279 = vmax.xlane.f32.xlu1 %v3278_v62  ;;  %v9363_v14 = vadd.f32 %v3915_v13, %v10463_v38 }
 0xf2a   :  { %v3945_v30 = vsel %vm779_vm6, %v9363_v14, -inf }
 0xf2b   :  { %v4256_v45 = vpop.f32.mrf.mxu1 }
 0xf2c   :  { %v9376_v15 = vadd.f32 %v4256_v45, %v10461_v11 }
 0xf2e   :  { %v4286_v34 = vsel %vm779_vm6, %v9376_v15, -inf }
 0xf2f   :  { %3946 = vmax.xlane.f32.xlu2 %v3945_v30  ;;  %v3918_v6 = vpop.f32.mrf.mxu3 }
 0xf30   :  { %3940 = vmax.xlane.f32.xlu1 %v3939_v28  ;;  %v9373_v9 = vadd.f32 %v3918_v6, %v10464_v51 }
 0xf32   :  { %v3948_v44 = vsel %vm779_vm6, %v9373_v9, -inf }
 0xf33   :  { %v4259_v49 = vpop.f32.mrf.mxu1 }
 0xf34   :  { %v9379_v29 = vadd.f32 %v4259_v49, %v10463_v38 }
 0xf36   :  { %v4289_v26 = vsel %vm779_vm6, %v9379_v29, -inf }
 0xf37   :  { %4290 = vmax.xlane.f32.xlu0 %v4289_v26  ;;  %3949 = vmax.xlane.f32.xlu2 %v3948_v44  ;;  %v3921_v12 = vpop.f32.mrf.mxu3 }
 0xf38   :  { %4287 = vmax.xlane.f32.xlu1 %v4286_v34  ;;  %v9388_v11 = vadd.f32 %v3921_v12, %v10466_v10 }
 0xf3a   :  { %v3951_v27 = vsel %vm779_vm6, %v9388_v11, -inf }
 0xf3b   :  { %v4262_v63 = vpop.f32.mrf.mxu1 }
 0xf3c   :  { %v9391_v38 = vadd.f32 %v4262_v63, %v10464_v51 }
 0xf3e   :  { %v4292_v61 = vsel %vm779_vm6, %v9391_v38, -inf  ;;  %v3253_v60 = vpop.xlane.xlu2 %3252 }
 0xf3f   :  { %4293 = vmax.xlane.f32.xlu0 %v4292_v61  ;;  %3952 = vmax.xlane.f32.xlu2 %v3951_v27  ;;  %v3281_v41 = vsub.f32 %v9240_v8, %v3253_v60  ;;  %v3924_v62 = vpop.f32.mrf.mxu3 }
 0xf40   :  { %v9417_v45 = vadd.f32 %v3924_v62, %v10467_v54 }
 0xf41   :  { %v3291_v52 = vmul.f32 1.442695, %v3281_v41 }
 0xf42   :  { %v3954_v63 = vsel %vm779_vm6, %v9417_v45, -inf }
 0xf43   :  { %v4265_v22 = vpop.f32.mrf.mxu1  ;;  %6334 = vpow2.f32 %v3291_v52 }
 0xf44   :  { %v9399_v25 = vadd.f32 %v4265_v22, %v10466_v10 }
 0xf46   :  { %v4295_v51 = vsel %vm779_vm6, %v9399_v25, -inf  ;;  %v3256_v39 = vpop.xlane.xlu0 %3255 }
 0xf47   :  { %4296 = vmax.xlane.f32.xlu0 %v4295_v51  ;;  %v3282_v17 = vsub.f32 %v9249_v47, %v3256_v39  ;;  %v3927_v60 = vpop.f32.mrf.mxu3 }
 0xf49   :  { %v9404_v55 = vpop.eup %6334  ;;  %v3293_v37 = vmul.f32 1.442695, %v3282_v17  ;;  %v3597_v21 = vpop.xlane.xlu1 %3596 }
 0xf4a   :  { %v3311_v8 = vsel %vm779_vm6, %v9404_v55, 0.0  ;;  %v3625_v10 = vsub.f32 %v9254_v40, %v3597_v21 }
 0xf4b   :  { %v4268_v46 = vpop.f32.mrf.mxu1  ;;  %6336 = vpow2.f32 %v3293_v37  ;;  %3312 = vadd.xlane.f32.xlu2 %v3311_v8 }
 0xf4c   :  { %v9409_v20 = vadd.f32 %v4268_v46, %v10467_v54  ;;  %v3635_v47 = vmul.f32 1.442695, %v3625_v10 }
 0xf4e   :  { %v4298_v2 = vsel %vm779_vm6, %v9409_v20, -inf  ;;  %6338 = vpow2.f32 %v3635_v47 }
 0xf4f   :  { %4299 = vmax.xlane.f32.xlu1 %v4298_v2  ;;  %v3930_v8 = vpop.f32.mrf.mxu3 }
 0xf50   :  { %v9454_v62 = vadd.f32 %v3930_v8, %v10469_v16 }
 0xf51   :  { %v9414_v13 = vpop.eup %6336  ;;  %v3600_v30 = vpop.xlane.xlu2 %3599 }
 0xf52   :  { %v3259_v28 = vpop.xlane.xlu1 %3258  ;;  %v3626_v6 = vsub.f32 %v9266_v43, %v3600_v30  ;;  %v3314_v40 = vsel %vm779_vm6, %v9414_v13, 0.0 }
 0xf53   :  { %v3283_v49 = vsub.f32 %v9263_v53, %v3259_v28  ;;  %v4271_v26 = vpop.f32.mrf.mxu1  ;;  %3315 = vadd.xlane.f32.xlu2 %v3314_v40 }
 0xf54   :  { %v9424_v44 = vadd.f32 %v4271_v26, %v10468_v35  ;;  %v3637_v34 = vmul.f32 1.442695, %v3626_v6  ;;  %v9430_v43 = vpop.eup %6338  ;;  %v10472_v26 = vld [vmem:[#allocation11_spill] sm:$0xff] }
 0xf55   :  { %v3295_v12 = vmul.f32 1.442695, %v3283_v49  ;;  %v3655_v51 = vsel %vm779_vm6, %v9430_v43, 0.0 }
 0xf56   :  { %v4301_v54 = vsel %vm779_vm6, %v9424_v44, -inf  ;;  %6340 = vpow2.f32 %v3637_v34 }
 0xf57   :  { %4302 = vmax.xlane.f32.xlu0 %v4301_v54  ;;  %3955 = vmax.xlane.f32.xlu1 %v3954_v63  ;;  %6342 = vpow2.f32 %v3295_v12  ;;  %v10473_v54 = vld [vmem:[#allocation8_spill] sm:$0xff] }
 0xf59   :  { %v3603_v53 = vpop.xlane.xlu0 %3602 }
 0xf5a   :  { %v3627_v61 = vsub.f32 %v9278_v7, %v3603_v53  ;;  %v9444_v7 = vadd.f32 %v3927_v60, %v10468_v35  ;;  %v3262_v17 = vpop.xlane.xlu2 %3261 }
 0xf5b   :  { %v3284_v37 = vsub.f32 %v9275_v42, %v3262_v17  ;;  %v3960_v42 = vsel %vm779_vm6, %v9454_v62, -inf  ;;  %v4274_v49 = vpop.f32.mrf.mxu1 }
 0xf5c   :  { %v9433_v27 = vpop.eup %6340  ;;  %v3639_v41 = vmul.f32 1.442695, %v3627_v61  ;;  %v3957_v46 = vsel %vm779_vm6, %v9444_v7, -inf  ;;  %v9465_v40 = vadd.f32 %v4274_v49, %v10469_v16 }
 0xf5d   :  { %v9435_v52 = vpop.eup %6342  ;;  %v3658_v22 = vsel %vm779_vm6, %v9433_v27, 0.0  ;;  %v3297_v2 = vmul.f32 1.442695, %v3284_v37 }
 0xf5e   :  { %v3317_v39 = vsel %vm779_vm6, %v9435_v52, 0.0  ;;  %6344 = vpow2.f32 %v3639_v41  ;;  %v4304_v63 = vsel %vm779_vm6, %v9465_v40, -inf }
 0xf5f   :  { %3659 = vadd.xlane.f32.xlu0 %v3658_v22  ;;  %3656 = vadd.xlane.f32.xlu1 %v3655_v51  ;;  %6346 = vpow2.f32 %v3297_v2 }
 0xf60   :  { %3318 = vadd.xlane.f32.xlu2 %v3317_v39 }
 0xf61   :  { %v3265_v47 = vpop.xlane.xlu0 %3264 }
 0xf62   :  { %v3606_v35 = vpop.xlane.xlu1 %3605 }
 0xf64   :  { %v9447_v21 = vpop.eup %6344 }
 0xf65   :  { %v3661_v10 = vsel %vm779_vm6, %v9447_v21, 0.0  ;;  %v9458_v28 = vpop.eup %6346 }
 0xf66   :  { %v3320_v6 = vsel %vm779_vm6, %v9458_v28, 0.0 }
 0xf67   :  { %3958 = vmax.xlane.f32.xlu1 %v3957_v46  ;;  %3662 = vadd.xlane.f32.xlu0 %v3661_v10  ;;  %v3628_v46 = vsub.f32 %v9290_v24, %v3606_v35 }
 0xf69   :  { %v3641_v2 = vmul.f32 1.442695, %v3628_v46 }
 0xf6a   :  { %v3609_v22 = vpop.xlane.xlu2 %3608 }
 0xf6b   :  { %v3629_v16 = vsub.f32 %v9298_v5, %v3609_v22  ;;  %v3285_v5 = vsub.f32 %v9287_v59, %v3265_v47 }
 0xf6d   :  { %v3643_v17 = vmul.f32 1.442695, %v3629_v16 }
 0xf6f   :  { %3961 = vmax.xlane.f32.xlu1 %v3960_v42  ;;  %6348 = vpow2.f32 %v3643_v17 }
 0xf72   :  { %v3612_v30 = vpop.xlane.xlu1 %3611 }
 0xf73   :  { %v3630_v16 = vsub.f32 %v9303_v0, %v3612_v30 }
 0xf77   :  { %3321 = vadd.xlane.f32.xlu1 %v3320_v6 }
 0xf78   :  { %6053 = vrot.lane.b32.xlu2 %v10472_v26, %s10442_s2 }
 0xf7a   :  { %v9467_v34 = vpop.xlane.xlu1 %3267  ;;  %v9469_v12 = vpop.xlane.xlu0 %3614 }
 0xf7b   :  { %6058 = vrot.lane.b32.xlu0 %v10473_v54, %s10440_s27 }
 0xf7f   :  { %4305 = vmax.xlane.f32.xlu1 %v4304_v63  ;;  %v9485_v63 = vpop.eup %6348 }
 0xf80   :  { %v3667_v22 = vsel %vm779_vm6, %v9485_v63, 0.0 }
 0xf82   :  { %v3271_v53 = vpop.xlane.xlu1 %3270  ;;  %v9475_v61 = vpop.xlane.xlu0 %3617 }
 0xf83   :  { %v3287_v10 = vsub.f32 %v9318_v48, %v3271_v53  ;;  %v3299_v53 = vmul.f32 1.442695, %v3285_v5 }
 0xf85   :  { %v3303_v6 = vmul.f32 1.442695, %v3287_v10 }
 0xf8a   :  { %v3274_v60 = vpop.xlane.xlu1 %3273  ;;  %v3621_v41 = vpop.xlane.xlu0 %3620 }
 0xf8b   :  { %v3288_v35 = vsub.f32 %v9328_v58, %v3274_v60 }
 0xf92   :  { %v3277_v51 = vpop.xlane.xlu1 %3276  ;;  %v3624_v39 = vpop.xlane.xlu0 %3623 }
 0xf93   :  { %v3634_v37 = vsub.f32 %v9341_v4, %v3624_v39  ;;  %v3289_v5 = vsub.f32 %v9338_v1, %v3277_v51 }
 0xf95   :  { %v3653_v8 = vmul.f32 1.442695, %v3634_v37  ;;  %v3633_v37 = vsub.f32 %v9331_v56, %v3621_v41 }
 0xf97   :  { %6350 = vpow2.f32 %v3653_v8  ;;  %v3645_v8 = vmul.f32 1.442695, %v3630_v16  ;;  %v3651_v10 = vmul.f32 1.442695, %v3633_v37 }
 0xf98   :  { %6352 = vpow2.f32 %v3641_v2  ;;  %v3286_v2 = vsub.f32 %v9308_v19, %v9467_v34  ;;  %v3307_v34 = vmul.f32 1.442695, %v3289_v5 }
 0xf99   :  { %6354 = vpow2.f32 %v3303_v6 }
 0xf9a   :  { %v9481_v42 = vpop.xlane.xlu2 %4284  ;;  %v9505_v17 = vpop.xlane.xlu0 %3943 }
 0xf9b   :  { %v3280_v49 = vpop.xlane.xlu1 %3279  ;;  %v4313_v1 = vsub.f32 %v9354_v32, %v9481_v42 }
 0xf9c   :  { %v3290_v26 = vsub.f32 %v9351_v31, %v3280_v49  ;;  %v3305_v31 = vmul.f32 1.442695, %v3288_v35 }
 0xf9d   :  { %v9487_v4 = vpop.eup %6350  ;;  %v4323_v37 = vmul.f32 1.442695, %v4313_v1 }
 0xf9e   :  { %v3309_v24 = vmul.f32 1.442695, %v3290_v26  ;;  %v3682_v48 = vsel %vm779_vm6, %v9487_v4, 0.0  ;;  %v9494_v59 = vpop.eup %6352  ;;  %v3301_v26 = vmul.f32 1.442695, %v3286_v2 }
 0xf9f   :  { %3683 = vadd.xlane.f32.xlu1 %v3682_v48  ;;  %v9499_v39 = vpop.eup %6354  ;;  %v3664_v58 = vsel %vm779_vm6, %v9494_v59, 0.0  ;;  %v3631_v48 = vsub.f32 %v9311_v36, %v9469_v12 }
 0xfa0   :  { %6356 = vpow2.f32 %v3309_v24  ;;  %v3329_v0 = vsel %vm779_vm6, %v9499_v39, 0.0 }
 0xfa1   :  { %3668 = vadd.xlane.f32.xlu2 %v3667_v22  ;;  %6358 = vpow2.f32 %v3299_v53 }
 0xfa2   :  { %v9496_v47 = vpop.xlane.xlu2 %3946  ;;  %6360 = vpow2.f32 %v3305_v31  ;;  %v3647_v31 = vmul.f32 1.442695, %v3631_v48 }
 0xfa3   :  { %6362 = vpow2.f32 %v3645_v8  ;;  %v3941_v24 = vpop.xlane.xlu1 %3940 }
 0xfa4   :  { %6364 = vpow2.f32 %v3651_v10  ;;  %v3969_v42 = vsub.f32 %v9366_v18, %v3941_v24 }
 0xfa5   :  { %3665 = vadd.xlane.f32.xlu0 %v3664_v58  ;;  %6366 = vpow2.f32 %v3301_v26 }
 0xfa6   :  { %v9503_v60 = vpop.eup %6356  ;;  %6368 = vpow2.f32 %v3307_v34  ;;  %v3979_v5 = vmul.f32 1.442695, %v3969_v42 }
 0xfa7   :  { %v3338_v46 = vsel %vm779_vm6, %v9503_v60, 0.0  ;;  %v9512_v30 = vpop.eup %6358  ;;  %6370 = vpow2.f32 %v3647_v31 }
 0xfa8   :  { %3339 = vadd.xlane.f32.xlu1 %v3338_v46  ;;  %v9516_v6 = vpop.eup %6360  ;;  %v3323_v56 = vsel %vm779_vm6, %v9512_v30, 0.0  ;;  %v3632_v46 = vsub.f32 %v9321_v3, %v9475_v61  ;;  %6372 = vpow2.f32 %v4323_v37 }
 0xfa9   :  { %3330 = vadd.xlane.f32.xlu2 %v3329_v0  ;;  %v3332_v35 = vsel %vm779_vm6, %v9516_v6, 0.0  ;;  %v9527_v19 = vpop.eup %6362 }
 0xfaa   :  { %v9518_v49 = vpop.xlane.xlu2 %3949  ;;  %v9522_v41 = vpop.xlane.xlu0 %4290  ;;  %v3670_v22 = vsel %vm779_vm6, %v9527_v19, 0.0  ;;  %v3649_v10 = vmul.f32 1.442695, %v3632_v46 }
 0xfab   :  { %v9531_v53 = vpop.eup %6364  ;;  %v4288_v12 = vpop.xlane.xlu1 %4287 }
 0xfac   :  { %v3679_v58 = vsel %vm779_vm6, %v9531_v53, 0.0  ;;  %v9543_v36 = vpop.eup %6366 }
 0xfad   :  { %3324 = vadd.xlane.f32.xlu0 %v3323_v56  ;;  %v9547_v8 = vpop.eup %6368  ;;  %v3326_v32 = vsel %vm779_vm6, %v9543_v36, 0.0 }
 0xfae   :  { %v3335_v2 = vsel %vm779_vm6, %v9547_v8, 0.0  ;;  %v9556_v3 = vpop.eup %6370 }
 0xfaf   :  { %v9562_v26 = vpop.eup %6372  ;;  %v3673_v18 = vsel %vm779_vm6, %v9556_v3, 0.0 }
 0xfb0   :  { %v4343_v48 = vsel %vm779_vm6, %v9562_v26, 0.0 }
 0xfb1   :  { %3333 = vadd.xlane.f32.xlu2 %v3332_v35  ;;  %v4314_v35 = vsub.f32 %v9376_v15, %v4288_v12 }
 0xfb2   :  { %v9537_v51 = vpop.xlane.xlu2 %3952  ;;  %v9539_v16 = vpop.xlane.xlu0 %4293 }
 0xfb5   :  { %3671 = vadd.xlane.f32.xlu0 %v3670_v22 }
 0xfb9   :  { %3680 = vadd.xlane.f32.xlu2 %v3679_v58  ;;  %v4325_v58 = vmul.f32 1.442695, %v4314_v35 }
 0xfba   :  { %v9558_v61 = vpop.xlane.xlu0 %4296 }
 0xfbd   :  { %3327 = vadd.xlane.f32.xlu0 %v3326_v32 }
 0xfbe   :  { %v3313_v0 = vpop.xlane.xlu2 %3312 }
 0xfbf   :  { %6374 = vrcp.f32 %v3313_v0 }
 0xfc0   :  { %6376 = vpow2.f32 %v3649_v10 }
 0xfc1   :  { %3336 = vadd.xlane.f32.xlu2 %v3335_v2  ;;  %6068 = vrot.lane.b32.xlu1 %v10473_v54, %s10442_s2  ;;  %6378 = vpow2.f32 %v3979_v5  ;;  %v4315_v2 = vsub.f32 %v9379_v29, %v9522_v41  ;;  %v3970_v5 = vsub.f32 %v9348_v33, %v9505_v17 }
 0xfc2   :  { %v9560_v56 = vpop.xlane.xlu1 %4299 }
 0xfc3   :  { %v3981_v33 = vmul.f32 1.442695, %v3970_v5 }
 0xfc5   :  { %v6375_v24 = vpop.eup %6374  ;;  %3674 = vadd.xlane.f32.xlu0 %v3673_v18 }
 0xfc6   :  { %v3351_v54 = vmul.f32 %v6375_v24, %v9404_v55  ;;  %v3316_v34 = vpop.xlane.xlu2 %3315  ;;  %v9571_v22 = vpop.eup %6376 }
 0xfc7   :  { %6380 = vrcp.f32 %v3316_v34  ;;  %v9577_v37 = vpop.eup %6378  ;;  %v3676_v15 = vsel %vm779_vm6, %v9571_v22, 0.0  ;;  %v4277_v24 = vpop.f32.mrf.mxu1 }
 0xfc8   :  { %5680 = vmatmul.msk.f32.vlgmr.msrb.gmra.mxu2 %vm779_vm6, %v3351_v54  ;;  %6382 = vpow2.f32 %v4325_v58  ;;  %v3999_v46 = vsel %vm779_vm6, %v9577_v37, 0.0  ;;  %v9598_v29 = vadd.f32 %v4277_v24, %v10470_v50 }
 0xfc9   :  { %4344 = vadd.xlane.f32.xlu2 %v4343_v48  ;;  %v4327_v48 = vmul.f32 1.442695, %v4315_v2 }
 0xfca   :  { %v9573_v1 = vpop.xlane.xlu1 %3955  ;;  %v9575_v31 = vpop.xlane.xlu0 %4302 }
 0xfcd   :  { %v6381_v55 = vpop.eup %6380  ;;  %3677 = vadd.xlane.f32.xlu0 %v3676_v15 }
 0xfce   :  { %v3352_v12 = vmul.f32 %v6381_v55, %v9414_v13  ;;  %v9585_v10 = vpop.eup %6382 }
 0xfcf   :  { %v4346_v13 = vsel %vm779_vm6, %v9585_v10, 0.0 }
 0xfd0   :  { %5681 = vmatmul.msk.f32.gmra.mxu2 %vm779_vm6, %v3352_v12 }
 0xfd1   :  { %4000 = vadd.xlane.f32.xlu2 %v3999_v46  ;;  %v3971_v46 = vsub.f32 %v9363_v14, %v9496_v47  ;;  %v4317_v14 = vsub.f32 %v9399_v25, %v9558_v61 }
 0xfd2   :  { %v3657_v32 = vpop.xlane.xlu1 %3656  ;;  %v3660_v0 = vpop.xlane.xlu0 %3659 }
 0xfd3   :  { %6384 = vrcp.f32 %v3657_v32  ;;  %v3319_v42 = vpop.xlane.xlu2 %3318  ;;  %v10474_v32 = vld [vmem:[#allocation26_spill] sm:$0xff] }
 0xfd4   :  { %6386 = vrcp.f32 %v3319_v42 }
 0xfd5   :  { %6388 = vrcp.f32 %v3660_v0 }
 0xfd6   :  { %6390 = vpow2.f32 %v4327_v48 }
 0xfd7   :  { %6392 = vpow2.f32 %v3981_v33 }
 0xfd9   :  { %v6385_v18 = vpop.eup %6384  ;;  %4347 = vadd.xlane.f32.xlu2 %v4346_v13 }
 0xfda   :  { %v6387_v35 = vpop.eup %6386  ;;  %v3695_v54 = vmul.f32 %v6385_v18, %v9430_v43  ;;  %v9594_v34 = vpop.xlane.xlu1 %3958  ;;  %v4316_v43 = vsub.f32 %v9391_v38, %v9539_v16  ;;  %v3983_v16 = vmul.f32 1.442695, %v3971_v46 }
 0xfdb   :  { %v6054_v58 = vpop.permute.xlu2 %6053  ;;  %v3353_v15 = vmul.f32 %v6387_v35, %v9435_v52  ;;  %v3663_v55 = vpop.xlane.xlu0 %3662  ;;  %v4307_v52 = vsel %vm779_vm6, %v9598_v29, -inf }
 0xfdc   :  { %v6055_v17 = vunpack.i.l.bf16 %v6054_v58  ;;  %5710 = vmatmul.msk.f32.vlgmr.msrb.gmra.mxu0 %vm779_vm6, %v3695_v54  ;;  %v6056_v41 = vunpack.i.h.bf16 %v6054_v58  ;;  %v6389_v12 = vpop.eup %6388  ;;  %6394 = vrcp.f32 %v3663_v55  ;;  %v4329_v2 = vmul.f32 1.442695, %v4316_v43 }
 0xfdd   :  { %5682 = vmatmul.msk.f32.gmra.mxu2 %vm779_vm6, %v3353_v15  ;;  %v3696_v0 = vmul.f32 %v6389_v12, %v9433_v27  ;;  %v9612_v38 = vpop.eup %6390  ;;  %v4319_v27 = vsub.f32 %v9424_v44, %v9575_v31  ;;  %v4331_v54 = vmul.f32 1.442695, %v4317_v14  ;;  %v4318_v44 = vsub.f32 %v9409_v20, %v9560_v56 }
 0xfde   :  { %4463 = vmatpush.msra.mxu0 %v6055_v17  ;;  %v9614_v5 = vpop.eup %6392  ;;  %6396 = vpow2.f32 %v4329_v2  ;;  %v4349_v47 = vsel %vm779_vm6, %v9612_v38, 0.0  ;;  %v3973_v14 = vsub.f32 %v9388_v11, %v9537_v51  ;;  %v3975_v11 = vsub.f32 %v9444_v7, %v9594_v34 }
 0xfdf   :  { %6398 = vpow2.f32 %v3983_v16  ;;  %v4002_v24 = vsel %vm779_vm6, %v9614_v5, 0.0  ;;  %v4335_v61 = vmul.f32 1.442695, %v4319_v27  ;;  %v4333_v55 = vmul.f32 1.442695, %v4318_v44 }
 0xfe0   :  { %4464 = vmatpush.msra.mxu0 %v6056_v41  ;;  %v3974_v27 = vsub.f32 %v9417_v45, %v9573_v1  ;;  %v3991_v45 = vmul.f32 1.442695, %v3975_v11 }
 0xfe1   :  { %4308 = vmax.xlane.f32.xlu2 %v4307_v52  ;;  %6063 = vrot.lane.b32.xlu0 %v10474_v32, %s10442_s2 }
 0xfe2   :  { %v3962_v42 = vpop.xlane.xlu1 %3961  ;;  %v6395_v13 = vpop.eup %6394 }
 0xfe3   :  { %v3697_v35 = vmul.f32 %v6395_v13, %v9447_v21  ;;  %v3976_v12 = vsub.f32 %v9454_v62, %v3962_v42  ;;  %v3933_v62 = vpop.f32.mrf.mxu3 }
 0xfe4   :  { %5711 = vmatmul.msk.f32.gmra.mxu0 %vm779_vm6, %v3696_v0  ;;  %v9626_v25 = vpop.eup %6396  ;;  %v3972_v0 = vsub.f32 %v9373_v9, %v9518_v49  ;;  %v9656_v16 = vadd.f32 %v3933_v62, %v10470_v50  ;;  %v3987_v9 = vmul.f32 1.442695, %v3973_v14 }
 0xfe5   :  { %v9628_v58 = vpop.eup %6398  ;;  %v4352_v15 = vsel %vm779_vm6, %v9626_v25, 0.0 }
 0xfe6   :  { %v4005_v17 = vsel %vm779_vm6, %v9628_v58, 0.0  ;;  %v3985_v2 = vmul.f32 1.442695, %v3972_v0 }
 0xfe9   :  { %4350 = vadd.xlane.f32.xlu2 %v4349_v47  ;;  %v3963_v47 = vsel %vm779_vm6, %v9656_v16, -inf }
 0xfea   :  { %v3322_v18 = vpop.xlane.xlu1 %3321 }
 0xfeb   :  { %6400 = vrcp.f32 %v3322_v18  ;;  %4003 = vadd.xlane.f32.xlu1 %v4002_v24  ;;  %v3989_v24 = vmul.f32 1.442695, %v3974_v27 }
 0xfec   :  { %5712 = vmatmul.msk.f32.gmra.mxu0 %vm779_vm6, %v3697_v35  ;;  %6402 = vpow2.f32 %v4331_v54 }
 0xfed   :  { %v6059_v48 = vpop.permute.xlu0 %6058  ;;  %6404 = vpow2.f32 %v4335_v61 }
 0xfee   :  { %v6060_v31 = vunpack.i.l.bf16 %v6059_v48  ;;  %v6061_v33 = vunpack.i.h.bf16 %v6059_v48  ;;  %6406 = vpow2.f32 %v4333_v55 }
 0xff0   :  { %4123 = vmatpush.msra.mxu2 %v6060_v31 }
 0xff1   :  { %v6401_v21 = vpop.eup %6400  ;;  %4353 = vadd.xlane.f32.xlu2 %v4352_v15 }
 0xff2   :  { %v3354_v41 = vmul.f32 %v6401_v21, %v9458_v28  ;;  %4124 = vmatpush.msra.mxu2 %v6061_v33  ;;  %v9638_v20 = vpop.eup %6402  ;;  %v3993_v28 = vmul.f32 1.442695, %v3976_v12  ;;  %v4306_v1 = vpop.xlane.xlu1 %4305 }
 0xff3   :  { %4006 = vadd.xlane.f32.xlu1 %v4005_v17  ;;  %v9640_v56 = vpop.eup %6404  ;;  %v4355_v43 = vsel %vm779_vm6, %v9638_v20, 0.0  ;;  %v4320_v31 = vsub.f32 %v9465_v40, %v4306_v1 }
 0xff4   :  { %5683 = vmatmul.msk.f32.gmra.mxu2 %vm779_vm6, %v3354_v41  ;;  %v4361_v52 = vsel %vm779_vm6, %v9640_v56, 0.0  ;;  %v9647_v46 = vpop.eup %6406  ;;  %6408 = vpow2.f32 %v3993_v28 }
 0xff5   :  { %v4358_v32 = vsel %vm779_vm6, %v9647_v46, 0.0  ;;  %6410 = vpow2.f32 %v3985_v2  ;;  %v4337_v33 = vmul.f32 1.442695, %v4320_v31 }
 0xff6   :  { %6412 = vpow2.f32 %v3987_v9 }
 0xff7   :  { %6414 = vpow2.f32 %v3989_v24 }
 0xff9   :  { %4356 = vadd.xlane.f32.xlu2 %v4355_v43 }
 0xffa   :  { %v9653_v42 = vpop.eup %6408 }
 0xffb   :  { %4362 = vadd.xlane.f32.xlu1 %v4361_v52  ;;  %v4020_v13 = vsel %vm779_vm6, %v9653_v42, 0.0  ;;  %v9664_v49 = vpop.eup %6410 }
 0xffc   :  { %v4008_v50 = vsel %vm779_vm6, %v9664_v49, 0.0  ;;  %v9670_v35 = vpop.eup %6412 }
 0xffd   :  { %v4011_v54 = vsel %vm779_vm6, %v9670_v35, 0.0  ;;  %v9676_v48 = vpop.eup %6414 }
 0xffe   :  { %v4014_v7 = vsel %vm779_vm6, %v9676_v48, 0.0 }
0x1001   :  { %4359 = vadd.xlane.f32.xlu2 %v4358_v32 }
0x1009   :  { %4021 = vadd.xlane.f32.xlu2 %v4020_v13 }
0x100b   :  { %3964 = vmax.xlane.f32.xlu0 %v3963_v47 }
0x1012   :  { %v3684_v24 = vpop.xlane.xlu1 %3683 }
0x1013   :  { %4009 = vadd.xlane.f32.xlu0 %v4008_v50 }
0x1014   :  { %v3669_v18 = vpop.xlane.xlu2 %3668 }
0x1018   :  { %v3666_v51 = vpop.xlane.xlu0 %3665 }
0x1019   :  { %6416 = vrcp.f32 %v3666_v51 }
0x101a   :  { %6418 = vrcp.f32 %v3669_v18 }
0x101b   :  { %4012 = vadd.xlane.f32.xlu0 %v4011_v54  ;;  %6420 = vpow2.f32 %v3991_v45  ;;  %v3340_v45 = vpop.xlane.xlu1 %3339 }
0x101c   :  { %v3331_v61 = vpop.xlane.xlu2 %3330 }
0x101f   :  { %v6417_v44 = vpop.eup %6416 }
0x1020   :  { %v3325_v15 = vpop.xlane.xlu0 %3324  ;;  %v3698_v21 = vmul.f32 %v6417_v44, %v9494_v59  ;;  %v6419_v17 = vpop.eup %6418 }
0x1021   :  { %6422 = vrcp.f32 %v3325_v15  ;;  %v9683_v41 = vpop.eup %6420  ;;  %v3699_v43 = vmul.f32 %v6419_v17, %v9485_v63 }
0x1022   :  { %5713 = vmatmul.msk.f32.gmra.mxu0 %vm779_vm6, %v3698_v21  ;;  %6424 = vpow2.f32 %v4337_v33  ;;  %v4017_v59 = vsel %vm779_vm6, %v9683_v41, 0.0 }
0x1023   :  { %4015 = vadd.xlane.f32.xlu0 %v4014_v7 }
0x1024   :  { %v3334_v34 = vpop.xlane.xlu2 %3333 }
0x1027   :  { %v6423_v55 = vpop.eup %6422 }
0x1028   :  { %v3672_v12 = vpop.xlane.xlu0 %3671  ;;  %v3355_v40 = vmul.f32 %v6423_v55, %v9512_v30  ;;  %v9691_v28 = vpop.eup %6424 }
0x1029   :  { %6426 = vrcp.f32 %v3672_v12  ;;  %v4364_v63 = vsel %vm779_vm6, %v9691_v28, 0.0 }
0x102a   :  { %5684 = vmatmul.msk.f32.gmra.mxu2 %vm779_vm6, %v3355_v40  ;;  %5714 = vmatmul.msk.f32.gmra.mxu0 %vm779_vm6, %v3699_v43 }
0x102b   :  { %4018 = vadd.xlane.f32.xlu0 %v4017_v59 }
0x102c   :  { %v3681_v52 = vpop.xlane.xlu2 %3680 }
0x102f   :  { %v6427_v32 = vpop.eup %6426 }
0x1030   :  { %v3328_v0 = vpop.xlane.xlu0 %3327  ;;  %v3700_v62 = vmul.f32 %v6427_v32, %v9527_v19 }
0x1031   :  { %6428 = vrcp.f32 %v3328_v0 }
0x1032   :  { %5715 = vmatmul.msk.f32.gmra.mxu0 %vm779_vm6, %v3700_v62  ;;  %6430 = vrcp.f32 %v3331_v61 }
0x1033   :  { %4365 = vadd.xlane.f32.xlu0 %v4364_v63 }
0x1034   :  { %v3337_v30 = vpop.xlane.xlu2 %3336 }
0x1037   :  { %v6429_v2 = vpop.eup %6428 }
0x1038   :  { %v3675_v13 = vpop.xlane.xlu0 %3674  ;;  %v3356_v14 = vmul.f32 %v6429_v2, %v9543_v36  ;;  %v6431_v9 = vpop.eup %6430 }
0x1039   :  { %6432 = vrcp.f32 %v3675_v13  ;;  %v3357_v50 = vmul.f32 %v6431_v9, %v9499_v39 }
0x103a   :  { %5685 = vmatmul.msk.f32.gmra.mxu2 %vm779_vm6, %v3356_v14  ;;  %6434 = vrcp.f32 %v3334_v34  ;;  %v6069_v34 = vpop.permute.xlu1 %6068 }
0x103b   :  { %v6070_v12 = vunpack.i.l.bf16 %v6069_v34 }
0x103c   :  { %v4345_v47 = vpop.xlane.xlu2 %4344 }
0x103f   :  { %v6433_v27 = vpop.eup %6432 }
0x1040   :  { %v3678_v19 = vpop.xlane.xlu0 %3677  ;;  %v3701_v18 = vmul.f32 %v6433_v27, %v9556_v3  ;;  %v6435_v36 = vpop.eup %6434 }
0x1041   :  { %6436 = vrcp.f32 %v3678_v19  ;;  %v3358_v54 = vmul.f32 %v6435_v36, %v9516_v6 }
0x1042   :  { %5686 = vmatmul.msk.f32.gmra.mxu2 %vm779_vm6, %v3357_v50  ;;  %5716 = vmatmul.msk.f32.gmra.mxu0 %vm779_vm6, %v3701_v18  ;;  %6438 = vrcp.f32 %v3681_v52 }
0x1043   :  { %6440 = vrcp.f32 %v3337_v30 }
0x1044   :  { %v4001_v11 = vpop.xlane.xlu2 %4000  ;;  %6442 = vrcp.f32 %v3684_v24 }
0x1045   :  { %6444 = vrcp.f32 %v3340_v45 }
0x1046   :  { %6446 = vrcp.f32 %v4345_v47 }
0x1047   :  { %v6437_v51 = vpop.eup %6436  ;;  %3830 = vrot.lane.b32.xlu0 %v8912_v23, %s6580_s28  ;;  %6448 = vrcp.f32 %v4001_v11 }
0x1048   :  { %v3702_v39 = vmul.f32 %v6437_v51, %v9571_v22  ;;  %v6439_v61 = vpop.eup %6438 }
0x1049   :  { %v6441_v1 = vpop.eup %6440  ;;  %v3703_v31 = vmul.f32 %v6439_v61, %v9531_v53 }
0x104a   :  { %5687 = vmatmul.msk.f32.gmra.mxu2 %vm779_vm6, %v3358_v54  ;;  %5717 = vmatmul.msk.f32.gmra.mxu0 %vm779_vm6, %v3702_v39  ;;  %v3359_v44 = vmul.f32 %v6441_v1, %v9547_v8  ;;  %v6443_v22 = vpop.eup %6442 }
0x104b   :  { %v6445_v7 = vpop.eup %6444  ;;  %v3704_v55 = vmul.f32 %v6443_v22, %v9487_v4 }
0x104c   :  { %v4348_v3 = vpop.xlane.xlu2 %4347  ;;  %v3360_v8 = vmul.f32 %v6445_v7, %v9503_v60  ;;  %v6447_v40 = vpop.eup %6446 }
0x104d   :  { %v6449_v43 = vpop.eup %6448  ;;  %v4383_v4 = vmul.f32 %v6447_v40, %v9562_v26 }
0x104e   :  { %v4039_v0 = vmul.f32 %v6449_v43, %v9577_v37 }
0x1052   :  { %5688 = vmatmul.msk.f32.gmra.mxu2 %vm779_vm6, %v3359_v44  ;;  %5718 = vmatmul.msk.f32.gmra.mxu0 %vm779_vm6, %v3703_v31 }
0x1053   :  { %v6064_v6 = vpop.permute.xlu0 %6063 }
0x1054   :  { %v4309_v23 = vpop.xlane.xlu2 %4308  ;;  %v6065_v21 = vunpack.i.l.bf16 %v6064_v6  ;;  %v6066_v17 = vunpack.i.h.bf16 %v6064_v6 }
0x1055   :  { %v4321_v15 = vsub.f32 %v9598_v29, %v4309_v23  ;;  %v6071_v29 = vunpack.i.h.bf16 %v6069_v34  ;;  %v9757_v23 = vpop.f32.mrf.mxu2 }
0x1056   :  { %4465 = vmatpush.msra.mxu0 %v6065_v21 }
0x1057   :  { %v4339_v33 = vmul.f32 1.442695, %v4321_v15 }
0x1058   :  { %4466 = vmatpush.msra.mxu0 %v6066_v17 }
0x1059   :  { %6450 = vpow2.f32 %v4339_v33  ;;  %v9714_v53 = vpop.f32.mrf.mxu0 }
0x105a   :  { %5689 = vmatmul.msk.f32.gmra.mxu2 %vm779_vm6, %v3360_v8  ;;  %5719 = vmatmul.msk.f32.gmra.mxu0 %vm779_vm6, %v3704_v55  ;;  %6452 = vrcp.f32 %v4348_v3  ;;  %v4280_v3 = vpop.f32.mrf.mxu1 }
0x105b   :  { %4467 = vmatpush.msra.mxu0 %v6070_v12  ;;  %v9749_v45 = vadd.f32 %v4280_v3, %v10471_v57 }
0x105c   :  { %v4351_v32 = vpop.xlane.xlu2 %4350 }
0x105d   :  { %4468 = vmatpush.msra.mxu0 %v6071_v29  ;;  %v4310_v31 = vsel %vm779_vm6, %v9749_v45, -inf  ;;  %v9763_v7 = vpop.f32.mrf.mxu2 }
0x105e   :  { %v4004_v59 = vpop.xlane.xlu1 %4003 }
0x105f   :  { %v9720_v52 = vpop.eup %6450  ;;  %6454 = vrcp.f32 %v4004_v59 }
0x1060   :  { %v4367_v60 = vsel %vm779_vm6, %v9720_v52, 0.0  ;;  %v6453_v63 = vpop.eup %6452  ;;  %6456 = vrcp.f32 %v4351_v32 }
0x1061   :  { %4368 = vadd.xlane.f32.xlu2 %v4367_v60  ;;  %v3785_v62 = vpop.f32.mrf.mxu0  ;;  %v4384_v26 = vmul.f32 %v6453_v63, %v9585_v10 }
0x1062   :  { %4512 = vrot.lane.b32.xlu0 %v3785_v62, %s6587_s30  ;;  %5740 = vmatmul.msk.f32.vlgmr.msra.gmra.mxu2 %vm779_vm6, %v4039_v0 }
0x1063   :  { %5770 = vmatmul.msk.f32.vlgmr.msra.gmra.mxu0 %vm779_vm6, %v4383_v4 }
0x1064   :  { %v4354_v13 = vpop.xlane.xlu2 %4353 }
0x1065   :  { %v6455_v30 = vpop.eup %6454  ;;  %v9769_v55 = vpop.f32.mrf.mxu2 }
0x1066   :  { %v4007_v2 = vpop.xlane.xlu1 %4006  ;;  %v4040_v14 = vmul.f32 %v6455_v30, %v9614_v5  ;;  %v6457_v37 = vpop.eup %6456 }
0x1067   :  { %6458 = vrcp.f32 %v4007_v2  ;;  %v4385_v27 = vmul.f32 %v6457_v37, %v9612_v38 }
0x1068   :  { %6460 = vrcp.f32 %v4354_v13 }
0x106a   :  { %5741 = vmatmul.msk.f32.gmra.mxu2 %vm779_vm6, %v4040_v14 }
0x106b   :  { %5771 = vmatmul.msk.f32.gmra.mxu0 %vm779_vm6, %v4384_v26 }
0x106c   :  { %v4357_v19 = vpop.xlane.xlu2 %4356 }
0x106d   :  { %v6459_v47 = vpop.eup %6458  ;;  %6462 = vrcp.f32 %v4357_v19 }
0x106e   :  { %v4041_v9 = vmul.f32 %v6459_v47, %v9628_v58  ;;  %v6461_v50 = vpop.eup %6460  ;;  %v4363_v36 = vpop.xlane.xlu1 %4362 }
0x106f   :  { %v4386_v10 = vmul.f32 %v6461_v50, %v9626_v25 }
0x1072   :  { %5742 = vmatmul.msk.f32.gmra.mxu2 %vm779_vm6, %v4041_v9 }
0x1073   :  { %5772 = vmatmul.msk.f32.gmra.mxu0 %vm779_vm6, %v4385_v27  ;;  %v6463_v18 = vpop.eup %6462 }
0x1074   :  { %v4360_v5 = vpop.xlane.xlu2 %4359  ;;  %v4387_v58 = vmul.f32 %v6463_v18, %v9638_v20 }
0x1075   :  { %6464 = vrcp.f32 %v4360_v5 }
0x1077   :  { %v9775_v40 = vpop.f32.mrf.mxu2 }
0x107b   :  { %5773 = vmatmul.msk.f32.gmra.mxu0 %vm779_vm6, %v4386_v10  ;;  %v6465_v51 = vpop.eup %6464 }
0x107c   :  { %v4388_v25 = vmul.f32 %v6465_v51, %v9647_v46  ;;  %v4022_v33 = vpop.xlane.xlu2 %4021 }
0x107e   :  { %v3965_v24 = vpop.xlane.xlu0 %3964 }
0x107f   :  { %v3977_v11 = vsub.f32 %v9656_v16, %v3965_v24 }
0x1081   :  { %v3995_v38 = vmul.f32 1.442695, %v3977_v11 }
0x1083   :  { %5774 = vmatmul.msk.f32.gmra.mxu0 %vm779_vm6, %v4387_v58  ;;  %6466 = vpow2.f32 %v3995_v38 }
0x1084   :  { %6468 = vrcp.f32 %v4363_v36 }
0x1086   :  { %v4010_v54 = vpop.xlane.xlu0 %4009 }
0x1087   :  { %6470 = vrcp.f32 %v4010_v54 }
0x1089   :  { %v9743_v39 = vpop.eup %6466 }
0x108a   :  { %v4023_v16 = vsel %vm779_vm6, %v9743_v39, 0.0  ;;  %v6469_v20 = vpop.eup %6468 }
0x108b   :  { %5775 = vmatmul.msk.f32.gmra.mxu0 %vm779_vm6, %v4388_v25  ;;  %4024 = vadd.xlane.f32.xlu1 %v4023_v16  ;;  %v4389_v46 = vmul.f32 %v6469_v20, %v9640_v56 }
0x108d   :  { %v6471_v61 = vpop.eup %6470 }
0x108e   :  { %v4013_v1 = vpop.xlane.xlu0 %4012  ;;  %v4042_v44 = vmul.f32 %v6471_v61, %v9664_v49  ;;  %v9761_v49 = vpop.f32.mrf.mxu0 }
0x108f   :  { %6472 = vrcp.f32 %v4013_v1 }
0x1090   :  { %5743 = vmatmul.msk.f32.gmra.mxu2 %vm779_vm6, %v4042_v44  ;;  %v5783_v44 = vld [vmem:[%s10267_s10 + $0x38] sm:$0xff] }
0x1091   :  { %5846 = vmatpush.msra.mxu3 %v5783_v44  ;;  %4702 = vmatpush.msrb.mxu0 %v5783_v44 }
0x1093   :  { %5776 = vmatmul.msk.f32.gmra.mxu0 %vm779_vm6, %v4389_v46  ;;  %4311 = vmax.xlane.f32.xlu1 %v4310_v31  ;;  %v5782_v46 = vld [vmem:[%s10267_s10 + $0x30] sm:$0xff]  ;;  %v5781_v31 = vld [vmem:[%s10267_s10 + $0x28] sm:$0xff] }
0x1094   :  { %5847 = vmatpush.msra.mxu3 %v5782_v46  ;;  %4703 = vmatpush.msrb.mxu0 %v5782_v46 }
0x1095   :  { %v6473_v6 = vpop.eup %6472 }
0x1096   :  { %v4016_v22 = vpop.xlane.xlu0 %4015  ;;  %v4043_v15 = vmul.f32 %v6473_v6, %v9670_v35  ;;  %5848 = vmatpush.msra.mxu3 %v5781_v31  ;;  %4704 = vmatpush.msrb.mxu0 %v5781_v31  ;;  %v5780_v6 = vld [vmem:[%s10267_s10 + $0x20] sm:$0xff]  ;;  %s5455_s10 = sshll.u32 %s10279_s22, 4  ;;  %s5456_s10 = int_to_ptr.hbm [resolvable:$true] %s5455_s10 }
0x1097   :  { %6474 = vrcp.f32 %v4016_v22 }
0x1098   :  { %5744 = vmatmul.msk.f32.gmra.mxu2 %vm779_vm6, %v4043_v15  ;;  %5849 = vmatpush.msra.mxu3 %v5780_v6 }
0x1099   :  { %4705 = vmatpush.msrb.mxu0 %v5780_v6  ;;  %v10477_v6 = vld [vmem:[#allocation20_spill] sm:$0xff] }
0x109d   :  { %v6475_v21 = vpop.eup %6474 }
0x109e   :  { %v4019_v56 = vpop.xlane.xlu0 %4018  ;;  %v4044_v34 = vmul.f32 %v6475_v21, %v9676_v48 }
0x109f   :  { %6476 = vrcp.f32 %v4019_v56  ;;  %v9767_v17 = vpop.f32.mrf.mxu0 }
0x10a0   :  { %5745 = vmatmul.msk.f32.gmra.mxu2 %vm779_vm6, %v4044_v34  ;;  %6478 = vrcp.f32 %v4022_v33 }
0x10a5   :  { %v6477_v8 = vpop.eup %6476 }
0x10a6   :  { %v4366_v35 = vpop.xlane.xlu0 %4365  ;;  %v4045_v12 = vmul.f32 %v6477_v8, %v9683_v41  ;;  %v6479_v29 = vpop.eup %6478 }
0x10a7   :  { %6480 = vrcp.f32 %v4366_v35  ;;  %v9777_v43 = vpop.f32.mrf.mxu0  ;;  %v4046_v59 = vmul.f32 %v6479_v29, %v9653_v42 }
0x10a8   :  { %5746 = vmatmul.msk.f32.gmra.mxu2 %vm779_vm6, %v4045_v12 }
0x10ac   :  { %4510 = vrot.lane.b32.xlu1 %v9714_v53, %s6587_s30 }
0x10ad   :  { %v6481_v48 = vpop.eup %6480  ;;  %v9783_v41 = vpop.f32.mrf.mxu2 }
0x10ae   :  { %v4390_v32 = vmul.f32 %v6481_v48, %v9691_v28 }
0x10af   :  { %v9785_v60 = vpop.f32.mrf.mxu0 }
0x10b0   :  { %5747 = vmatmul.msk.f32.gmra.mxu2 %vm779_vm6, %v4046_v59  ;;  %5777 = vmatmul.msk.f32.gmra.mxu0 %vm779_vm6, %v4390_v32 }
0x10b9   :  { %v3831_v4 = vpop.permute.xlu0 %3830 }
0x10ba   :  { %5739 = vmatmul.msk.f32.gmra.mxu3 %vm691_vm1, %v3831_v4 }
0x10bd   :  { %v9788_v53 = vpop.f32.mrf.mxu2 }
0x10bf   :  { %v9790_v0 = vpop.f32.mrf.mxu0 }
0x10c5   :  { %v9792_v62 = vpop.f32.mrf.mxu2 }
0x10c7   :  { %v9794_v42 = vpop.f32.mrf.mxu0 }
0x10cd   :  { %v9796_v28 = vpop.f32.mrf.mxu2 }
0x10cf   :  { %v9798_v63 = vpop.f32.mrf.mxu0 }
0x10d4   :  { %v4369_v30 = vpop.xlane.xlu2 %4368  ;;  %v4513_v22 = vpop.permute.xlu0 %4512 }
0x10d5   :  { %6482 = vrcp.f32 %v4369_v30  ;;  %v9800_v2 = vpop.f32.mrf.mxu2  ;;  %v4621_v56 = vsel %vm691_vm1, %v9763_v7, %v4513_v22 }
0x10d7   :  { %v9802_v13 = vpop.f32.mrf.mxu0 }
0x10db   :  { %v6483_v14 = vpop.eup %6482 }
0x10dc   :  { %v4391_v26 = vmul.f32 %v6483_v14, %v9720_v52 }
0x10dd   :  { %v9805_v37 = vpop.f32.mrf.mxu2 }
0x10de   :  { %5778 = vmatmul.msk.f32.gmra.mxu0 %vm779_vm6, %v4391_v26 }
0x10e0   :  { %v4470_v47 = vpop.f32.mrf.mxu0 }
0x10e1   :  { %4590 = vrot.lane.b32.xlu0 %v4470_v47, %s10475_s6 }
0x10e5   :  { %v4126_v9 = vpop.f32.mrf.mxu2 }
0x10e8   :  { %v4473_v27 = vpop.f32.mrf.mxu0 }
0x10e9   :  { %4592 = vrot.lane.b32.xlu1 %v4473_v27, %s10475_s6 }
0x10ed   :  { %v4129_v19 = vpop.f32.mrf.mxu2 }
0x10ee   :  { %4552 = vrot.lane.b32.xlu0 %v4129_v19, %s10476_s4 }
0x10f0   :  { %v4476_v50 = vpop.f32.mrf.mxu0 }
0x10f1   :  { %4594 = vrot.lane.b32.xlu1 %v4476_v50, %s10475_s6 }
0x10f5   :  { %v4132_v10 = vpop.f32.mrf.mxu2 }
0x10f6   :  { %4554 = vrot.lane.b32.xlu0 %v4132_v10, %s10476_s4 }
0x10f8   :  { %v4479_v52 = vpop.f32.mrf.mxu0 }
0x10f9   :  { %4596 = vrot.lane.b32.xlu1 %v4479_v52, %s10475_s6 }
0x10fe   :  { %v4025_v5 = vpop.xlane.xlu1 %4024 }
0x10ff   :  { %6484 = vrcp.f32 %v4025_v5 }
0x1100   :  { %v4482_v18 = vpop.f32.mrf.mxu0 }
0x1101   :  { %4598 = vrot.lane.b32.xlu1 %v4482_v18, %s10475_s6 }
0x1105   :  { %v6485_v24 = vpop.eup %6484 }
0x1106   :  { %v4312_v11 = vpop.xlane.xlu1 %4311  ;;  %v4047_v58 = vmul.f32 %v6485_v24, %v9743_v39 }
0x1107   :  { %v4322_v38 = vsub.f32 %v9749_v45, %v4312_v11 }
0x1108   :  { %v4485_v36 = vpop.f32.mrf.mxu0  ;;  %5748 = vmatmul.msk.f32.gmra.mxu2 %vm779_vm6, %v4047_v58 }
0x1109   :  { %4600 = vrot.lane.b32.xlu1 %v4485_v36, %s10475_s6  ;;  %v4341_v51 = vmul.f32 1.442695, %v4322_v38 }
0x110b   :  { %6486 = vpow2.f32 %v4341_v51 }
0x1110   :  { %v4488_v54 = vpop.f32.mrf.mxu0 }
0x1111   :  { %4602 = vrot.lane.b32.xlu1 %v4488_v54, %s10475_s6  ;;  %v6487_v25 = vpop.eup %6486 }
0x1112   :  { %v4370_v16 = vsel %vm779_vm6, %v6487_v25, 0.0 }
0x1113   :  { %4371 = vadd.xlane.f32.xlu2 %v4370_v16  ;;  %v4135_v3 = vpop.f32.mrf.mxu2 }
0x1114   :  { %4556 = vrot.lane.b32.xlu0 %v4135_v3, %s10476_s4 }
0x111b   :  { %v4138_v39 = vpop.f32.mrf.mxu2 }
0x111c   :  { %4558 = vrot.lane.b32.xlu0 %v4138_v39, %s10476_s4 }
0x1123   :  { %v4141_v20 = vpop.f32.mrf.mxu2 }
0x1124   :  { %4560 = vrot.lane.b32.xlu0 %v4141_v20, %s10476_s4 }
0x112b   :  { %4550 = vrot.lane.b32.xlu2 %v4126_v9, %s10476_s4  ;;  %v4144_v61 = vpop.f32.mrf.mxu2 }
0x112c   :  { %4562 = vrot.lane.b32.xlu0 %v4144_v61, %s10476_s4 }
0x112d   :  { %v4491_v45 = vpop.f32.mrf.mxu0 }
0x112e   :  { %4604 = vrot.lane.b32.xlu1 %v4491_v45, %s10475_s6 }
0x1133   :  { %v4147_v1 = vpop.f32.mrf.mxu2  ;;  %4514 = vrot.lane.b32.xlu2 %v9761_v49, %s6587_s30  ;;  %v4511_v49 = vpop.permute.xlu1 %4510 }
0x1134   :  { %4564 = vrot.lane.b32.xlu0 %v4147_v1, %s10476_s4 }
0x113b   :  { %4516 = vrot.lane.b32.xlu2 %v9767_v17, %s6587_s30 }
0x113d   :  { %v3936_v35 = vpop.f32.mrf.mxu3 }
0x113e   :  { %v9861_v29 = vadd.f32 %v3936_v35, %v10471_v57 }
0x1140   :  { %v3966_v7 = vsel %vm779_vm6, %v9861_v29, -inf }
0x1143   :  { %4518 = vrot.lane.b32.xlu2 %v9777_v43, %s6587_s30 }
0x114b   :  { %4520 = vrot.lane.b32.xlu2 %v9785_v60, %s6587_s30 }
0x1153   :  { %4522 = vrot.lane.b32.xlu2 %v9790_v0, %s6587_s30  ;;  %v4591_v15 = vpop.permute.xlu0 %4590  ;;  %v4620_v0 = vsel %vm691_vm1, %v9757_v23, %v4511_v49 }
0x115b   :  { %v4494_v21 = vpop.f32.mrf.mxu0  ;;  %4524 = vrot.lane.b32.xlu2 %v9794_v42, %s6587_s30  ;;  %v4593_v33 = vpop.permute.xlu1 %4592 }
0x115c   :  { %4606 = vrot.lane.b32.xlu1 %v4494_v21, %s10475_s6 }
0x1160   :  { %v4553_v34 = vpop.permute.xlu0 %4552 }
0x1161   :  { %v4631_v17 = vsel %vm2159_vm3, %v4621_v56, %v4553_v34 }
0x1162   :  { %v4641_v8 = vsel %vm2170_vm15, %v4631_v17, %v4593_v33 }
0x1163   :  { %4526 = vrot.lane.b32.xlu2 %v9798_v63, %s6587_s30  ;;  %5786 = vmatmul.msk.f32.vlgmr.msra.gmra.mxu3 %vm245_vm12, %v4641_v8  ;;  %v4595_v4 = vpop.permute.xlu1 %4594 }
0x1168   :  { %v4555_v60 = vpop.permute.xlu0 %4554 }
0x116b   :  { %v4597_v9 = vpop.permute.xlu1 %4596 }
0x1186   :  { %v4372_v12 = vpop.xlane.xlu2 %4371  ;;  %v4557_v63 = vpop.permute.xlu0 %4556 }
0x1187   :  { %6488 = vrcp.f32 %v4372_v12 }
0x118b   :  { %v4150_v48 = vpop.f32.mrf.mxu2 }
0x118c   :  { %3967 = vmax.xlane.f32.xlu2 %v3966_v7  ;;  %4566 = vrot.lane.b32.xlu0 %v4150_v48, %s10476_s4 }
0x118d   :  { %v6489_v43 = vpop.eup %6488 }
0x118e   :  { %v4551_v59 = vpop.permute.xlu2 %4550  ;;  %v4392_v32 = vmul.f32 %v6489_v43, %v6487_v25  ;;  %v4559_v50 = vpop.permute.xlu0 %4558 }
0x118f   :  { %v4630_v57 = vsel %vm2159_vm3, %v4620_v0, %v4551_v59  ;;  %v10478_v59 = vld [vmem:[#allocation25_spill] sm:$0xff] }
0x1190   :  { %5779 = vmatmul.msk.f32.gmra.mxu0 %vm779_vm6, %v4392_v32  ;;  %v4640_v30 = vsel %vm2170_vm15, %v4630_v57, %v4591_v15  ;;  %v10479_v0 = vld [vmem:[#allocation17_spill] sm:$0xff] }
0x1196   :  { %v4515_v42 = vpop.permute.xlu2 %4514  ;;  %v4561_v11 = vpop.permute.xlu0 %4560 }
0x1197   :  { %v4622_v14 = vsel %vm691_vm1, %v9769_v55, %v4515_v42  ;;  %v4599_v55 = vpop.permute.xlu1 %4598 }
0x1198   :  { %v4632_v26 = vsel %vm2159_vm3, %v4622_v14, %v4555_v60  ;;  %5785 = vmatmul.msk.f32.vlgmr.msrb.gmra.mxu0 %vm245_vm12, %v4640_v30  ;;  %v10480_v14 = vld [vmem:[#allocation18_spill] sm:$0xff] }
0x1199   :  { %v4642_v47 = vsel %vm2170_vm15, %v4632_v26, %v4595_v4 }
0x119a   :  { %5787 = vmatmul.msk.f32.gmra.mxu3 %vm245_vm12, %v4642_v47 }
0x119e   :  { %v4517_v27 = vpop.permute.xlu2 %4516  ;;  %v4563_v54 = vpop.permute.xlu0 %4562 }
0x119f   :  { %v4623_v23 = vsel %vm691_vm1, %v9775_v40, %v4517_v27  ;;  %v4601_v40 = vpop.permute.xlu1 %4600 }
0x11a0   :  { %v4633_v19 = vsel %vm2159_vm3, %v4623_v23, %v4557_v63  ;;  %v10481_v23 = vld [vmem:[#allocation16_spill] sm:$0xff] }
0x11a1   :  { %v4643_v10 = vsel %vm2170_vm15, %v4633_v19, %v4597_v9 }
0x11a2   :  { %5788 = vmatmul.msk.f32.gmra.mxu3 %vm245_vm12, %v4643_v10 }
0x11a6   :  { %v4519_v52 = vpop.permute.xlu2 %4518 }
0x11a7   :  { %v4624_v5 = vsel %vm691_vm1, %v9783_v41, %v4519_v52  ;;  %v4603_v16 = vpop.permute.xlu1 %4602  ;;  %v10482_v52 = vld [vmem:[#allocation19_spill] sm:$0xff] }
0x11a8   :  { %v4634_v18 = vsel %vm2159_vm3, %v4624_v5, %v4559_v50 }
0x11a9   :  { %v4644_v24 = vsel %vm2170_vm15, %v4634_v18, %v4599_v55 }
0x11aa   :  { %5789 = vmatmul.msk.f32.gmra.mxu3 %vm245_vm12, %v4644_v24 }
0x11ae   :  { %v4521_v58 = vpop.permute.xlu2 %4520 }
0x11af   :  { %v4625_v38 = vsel %vm691_vm1, %v9788_v53, %v4521_v58  ;;  %v4565_v53 = vpop.permute.xlu0 %4564  ;;  %v4605_v45 = vpop.permute.xlu1 %4604 }
0x11b0   :  { %v4635_v36 = vsel %vm2159_vm3, %v4625_v38, %v4561_v11 }
0x11b1   :  { %v4645_v51 = vsel %vm2170_vm15, %v4635_v36, %v4601_v40  ;;  %v10483_v40 = vld [vmem:[#allocation21_spill] sm:$0xff] }
0x11b2   :  { %5790 = vmatmul.msk.f32.gmra.mxu3 %vm245_vm12, %v4645_v51  ;;  %v10484_v51 = vld [vmem:[#allocation5_spill] sm:$0xff] }
0x11b6   :  { %v4523_v41 = vpop.permute.xlu2 %4522 }
0x11b7   :  { %v4626_v25 = vsel %vm691_vm1, %v9792_v62, %v4523_v41  ;;  %v9905_v62 = vld [vmem:[%s10268_s11 + $0x1] ss:$0 sm:$0xff] }
0x11b8   :  { %v4636_v3 = vsel %vm2159_vm3, %v4626_v25, %v4563_v54 }
0x11b9   :  { %v4646_v39 = vsel %vm2170_vm15, %v4636_v3, %v4603_v16 }
0x11ba   :  { %5791 = vmatmul.msk.f32.gmra.mxu3 %vm245_vm12, %v4646_v39 }
0x11be   :  { %v4525_v20 = vpop.permute.xlu2 %4524 }
0x11bf   :  { %v4627_v61 = vsel %vm691_vm1, %v9796_v28, %v4525_v20 }
0x11c0   :  { %v4637_v1 = vsel %vm2159_vm3, %v4627_v61, %v4565_v53 }
0x11c1   :  { %v4647_v44 = vsel %vm2170_vm15, %v4637_v1, %v4605_v45  ;;  %v10485_v45 = vld [vmem:[#allocation23_spill] sm:$0xff] }
0x11c2   :  { %5792 = vmatmul.msk.f32.gmra.mxu3 %vm245_vm12, %v4647_v44 }
0x11c6   :  { %v4527_v28 = vpop.permute.xlu2 %4526 }
0x11c7   :  { %v4628_v49 = vsel %vm691_vm1, %v9800_v2, %v4527_v28 }
0x11ce   :  { %v4607_v56 = vpop.permute.xlu1 %4606 }
0x11e6   :  { %v4710_v46 = vpop.f32.mrf.mxu3 }
0x11e7   :  { %v4711_v31 = vadd.f32 %v9905_v62, %v4710_v46 }
0x11e9   :  { %v4738_v22 = vadd.f32 %v4711_v31, %v10477_v6 }
0x11eb   :  { %v4754_v15 = vsel %vm245_vm12, %v4738_v22, 0.0 }
0x11ec   :  { %4755 = vadd.xlane.f32.xlu2 %v4754_v15 }
0x11fe   :  { %v4567_v21 = vpop.permute.xlu0 %4566 }
0x11ff   :  { %v4638_v34 = vsel %vm2159_vm3, %v4628_v49, %v4567_v21  ;;  %v3968_v33 = vpop.xlane.xlu2 %3967 }
0x1200   :  { %v3978_v17 = vsub.f32 %v9861_v29, %v3968_v33  ;;  %v4648_v8 = vsel %vm2170_vm15, %v4638_v34, %v4607_v56  ;;  %v10486_v34 = vld [vmem:[#allocation22_spill] sm:$0xff] }
0x1201   :  { %5793 = vmatmul.msk.f32.gmra.mxu3 %vm245_vm12, %v4648_v8 }
0x1202   :  { %v3997_v35 = vmul.f32 1.442695, %v3978_v17 }
0x1204   :  { %6490 = vpow2.f32 %v3997_v35 }
0x120a   :  { %v6491_v12 = vpop.eup %6490 }
0x120b   :  { %v4026_v48 = vsel %vm779_vm6, %v6491_v12, 0.0 }
0x120c   :  { %4027 = vadd.xlane.f32.xlu0 %v4026_v48 }
0x120d   :  { %v9917_v7 = vpop.f32.mrf.mxu0 }
0x1215   :  { %v4707_v2 = vpop.f32.mrf.mxu0 }
0x1216   :  { %v4708_v43 = vadd.f32 %v9905_v62, %v4707_v2 }
0x1218   :  { %v4737_v32 = vadd.f32 %v4708_v43, %v10478_v59 }
0x121a   :  { %v4751_v60 = vsel %vm245_vm12, %v4737_v32, 0.0 }
0x121b   :  { %4752 = vadd.xlane.f32.xlu1 %v4751_v60 }
0x121d   :  { %v4713_v29 = vpop.f32.mrf.mxu3 }
0x121e   :  { %v4714_v4 = vadd.f32 %v9905_v62, %v4713_v29 }
0x1220   :  { %v4739_v57 = vadd.f32 %v4714_v4, %v10479_v0 }
0x1222   :  { %v4757_v42 = vsel %vm245_vm12, %v4739_v57, 0.0 }
0x1223   :  { %4758 = vadd.xlane.f32.xlu0 %v4757_v42 }
0x1225   :  { %v4716_v63 = vpop.f32.mrf.mxu3 }
0x1226   :  { %v4717_v30 = vadd.f32 %v9905_v62, %v4716_v63 }
0x1228   :  { %v4740_v26 = vadd.f32 %v4717_v30, %v10480_v14 }
0x122a   :  { %v4760_v47 = vsel %vm245_vm12, %v4740_v26, 0.0 }
0x122b   :  { %4761 = vadd.xlane.f32.xlu1 %v4760_v47 }
0x122d   :  { %v4719_v9 = vpop.f32.mrf.mxu3 }
0x122e   :  { %v4720_v27 = vadd.f32 %v9905_v62, %v4719_v9 }
0x1230   :  { %v4741_v19 = vadd.f32 %v4720_v27, %v10481_v23 }
0x1232   :  { %v4763_v50 = vsel %vm245_vm12, %v4741_v19, 0.0 }
0x1233   :  { %4764 = vadd.xlane.f32.xlu2 %v4763_v50 }
0x1235   :  { %v4722_v10 = vpop.f32.mrf.mxu3 }
0x1236   :  { %v4723_v55 = vadd.f32 %v9905_v62, %v4722_v10 }
0x1238   :  { %v4742_v5 = vadd.f32 %v4723_v55, %v10482_v52 }
0x123a   :  { %v4766_v18 = vsel %vm245_vm12, %v4742_v5, 0.0 }
0x123b   :  { %4767 = vadd.xlane.f32.xlu0 %v4766_v18 }
0x123d   :  { %v4725_v24 = vpop.f32.mrf.mxu3 }
0x123e   :  { %v4726_v11 = vadd.f32 %v9905_v62, %v4725_v24 }
0x1240   :  { %v4743_v58 = vadd.f32 %v4726_v11, %v10483_v40  ;;  %v5799_v11 = vld [vmem:[%s10271_s14 + $0x30] sm:$0xff]  ;;  %v5798_v40 = vld [vmem:[%s10271_s14 + $0x28] sm:$0xff] }
0x1242   :  { %v4769_v38 = vsel %vm245_vm12, %v4743_v58, 0.0 }
0x1243   :  { %4770 = vadd.xlane.f32.xlu2 %v4769_v38  ;;  %v5797_v38 = vld [vmem:[%s10271_s14 + $0x20] sm:$0xff] }
0x1245   :  { %v4728_v3 = vpop.f32.mrf.mxu3 }
0x1246   :  { %v4729_v28 = vadd.f32 %v9905_v62, %v4728_v3 }
0x1248   :  { %v9956_v33 = vadd.f32 %v4729_v28, %v10486_v34 }
0x125f   :  { %v4756_v36 = vpop.xlane.xlu2 %4755 }
0x1260   :  { %v4782_v54 = vmul.f32 %v4756_v36, %v10484_v51 }
0x1262   :  { %v9938_v41 = vsub.f32 %v4738_v22, %v4782_v54 }
0x1264   :  { %v4802_v25 = vmul.f32 %v9938_v41, %v9938_v41 }
0x1266   :  { %v4814_v16 = vsel %vm245_vm12, %v4802_v25, 0.0 }
0x1267   :  { %4815 = vadd.xlane.f32.xlu0 %v4814_v16 }
0x127f   :  { %v4028_v39 = vpop.xlane.xlu0 %4027 }
0x1280   :  { %6492 = vrcp.f32 %v4028_v39 }
0x1284   :  { %v4731_v20 = vpop.f32.mrf.mxu3 }
0x1285   :  { %v4732_v53 = vadd.f32 %v9905_v62, %v4731_v20 }
0x1286   :  { %v6493_v61 = vpop.eup %6492 }
0x1287   :  { %v4745_v1 = vadd.f32 %v4732_v53, %v10485_v45  ;;  %v4048_v44 = vmul.f32 %v6493_v61, %v6491_v12  ;;  %v4772_v12 = vsel %vm245_vm12, %v9956_v33, 0.0 }
0x1289   :  { %5749 = vmatmul.msk.f32.gmra.mxu2 %vm779_vm6, %v4048_v44  ;;  %v4775_v46 = vsel %vm245_vm12, %v4745_v1, 0.0 }
0x128a   :  { %4776 = vadd.xlane.f32.xlu0 %v4775_v46 }
0x128e   :  { %v4753_v31 = vpop.xlane.xlu1 %4752 }
0x128f   :  { %v4781_v6 = vmul.f32 %v4753_v31, %v10484_v51 }
0x1291   :  { %v9948_v22 = vsub.f32 %v4737_v32, %v4781_v6 }
0x1293   :  { %v4801_v15 = vmul.f32 %v9948_v22, %v9948_v22 }
0x1295   :  { %v4811_v49 = vsel %vm245_vm12, %v4801_v15, 0.0 }
0x1296   :  { %v4759_v21 = vpop.xlane.xlu0 %4758  ;;  %4812 = vadd.xlane.f32.xlu1 %v4811_v49 }
0x1297   :  { %v4783_v56 = vmul.f32 %v4759_v21, %v10484_v51 }
0x1299   :  { %v9958_v17 = vsub.f32 %v4739_v57, %v4783_v56 }
0x129b   :  { %v4803_v8 = vmul.f32 %v9958_v17, %v9958_v17 }
0x129d   :  { %v4817_v35 = vsel %vm245_vm12, %v4803_v8, 0.0 }
0x129e   :  { %4818 = vadd.xlane.f32.xlu2 %v4817_v35  ;;  %4773 = vadd.xlane.f32.xlu1 %v4772_v12  ;;  %v4762_v48 = vpop.xlane.xlu1 %4761 }
0x129f   :  { %v4784_v2 = vmul.f32 %v4762_v48, %v10484_v51 }
0x12a1   :  { %v9966_v43 = vsub.f32 %v4740_v26, %v4784_v2 }
0x12a3   :  { %v4804_v59 = vmul.f32 %v9966_v43, %v9966_v43 }
0x12a5   :  { %v4820_v32 = vsel %vm245_vm12, %v4804_v59, 0.0 }
0x12a6   :  { %v4765_v60 = vpop.xlane.xlu2 %4764  ;;  %4821 = vadd.xlane.f32.xlu1 %v4820_v32 }
0x12a7   :  { %v4785_v29 = vmul.f32 %v4765_v60, %v10484_v51 }
0x12a9   :  { %v9972_v4 = vsub.f32 %v4741_v19, %v4785_v29 }
0x12ab   :  { %v4805_v0 = vmul.f32 %v9972_v4, %v9972_v4 }
0x12ad   :  { %v4823_v57 = vsel %vm245_vm12, %v4805_v0, 0.0 }
0x12ae   :  { %v4768_v42 = vpop.xlane.xlu0 %4767  ;;  %4824 = vadd.xlane.f32.xlu2 %v4823_v57 }
0x12af   :  { %v4786_v63 = vmul.f32 %v4768_v42, %v10484_v51 }
0x12b1   :  { %v9978_v30 = vsub.f32 %v4742_v5, %v4786_v63  ;;  %v5800_v5 = vld [vmem:[%s10271_s14 + $0x38] sm:$0xff]  ;;  %v10031_v63 = vld [vmem:[%s10270_s13 + $0x1] ss:$0 sm:$0xff] }
0x12b2   :  { %5049 = vmatpush.msrb.mxu2 %v5800_v5 }
0x12b3   :  { %v4806_v14 = vmul.f32 %v9978_v30, %v9978_v30 }
0x12b4   :  { %5050 = vmatpush.msrb.mxu2 %v5799_v11 }
0x12b5   :  { %v4826_v26 = vsel %vm245_vm12, %v4806_v14, 0.0 }
0x12b6   :  { %v4771_v47 = vpop.xlane.xlu2 %4770  ;;  %4827 = vadd.xlane.f32.xlu0 %v4826_v26  ;;  %5051 = vmatpush.msrb.mxu2 %v5798_v40 }
0x12b7   :  { %v4787_v9 = vmul.f32 %v4771_v47, %v10484_v51 }
0x12b8   :  { %5052 = vmatpush.msrb.mxu2 %v5797_v38 }
0x12b9   :  { %v9984_v27 = vsub.f32 %v4743_v58, %v4787_v9 }
0x12bb   :  { %v4807_v23 = vmul.f32 %v9984_v27, %v9984_v27 }
0x12bd   :  { %v4829_v19 = vsel %vm245_vm12, %v4807_v23, 0.0 }
0x12be   :  { %4830 = vadd.xlane.f32.xlu1 %v4829_v19 }
0x12d7   :  { %4528 = vrot.lane.b32.xlu1 %v9802_v13, %s6587_s30 }
0x12da   :  { %v4816_v50 = vpop.xlane.xlu0 %4815 }
0x12db   :  { %v4842_v10 = vmul.f32 %v4816_v50, %v10484_v51 }
0x12dd   :  { %v4852_v18 = vadd.f32 1e-05, %v4842_v10 }
0x12df   :  { %6494 = vrsqrt.f32 %v4852_v18  ;;  %vm4877_vm13 = vweird.f32 %v4852_v18 }
0x12e5   :  { %v6495_v54 = vpop.eup %6494 }
0x12e6   :  { %v4872_v3 = vmul.f32 %v6495_v54, %v4852_v18  ;;  %vm4878_vm8 = vweird.f32 %v6495_v54 }
0x12e7   :  { %vm4879_vm14 = vmor %vm4877_vm13, %vm4878_vm8 }
0x12e8   :  { %v4873_v39 = vmul.f32 %v6495_v54, %v4872_v3 }
0x12ea   :  { %v4874_v31 = vmul.f32 0.5, %v4873_v39 }
0x12ec   :  { %v4875_v21 = vsub.f32 1.5, %v4874_v31 }
0x12ee   :  { %v4876_v48 = vmul.f32 %v6495_v54, %v4875_v21 }
0x12f0   :  { %v4880_v0 = vsel %vm4879_vm14, %v6495_v54, %v4876_v48 }
0x12f1   :  { %v4962_v23 = vmul.f32 %v4880_v0, %v9938_v41 }
0x12fd   :  { %v4777_v55 = vpop.xlane.xlu0 %4776 }
0x12fe   :  { %v4789_v52 = vmul.f32 %v4777_v55, %v10484_v51 }
0x1300   :  { %v9996_v24 = vsub.f32 %v4745_v1, %v4789_v52 }
0x1302   :  { %v4809_v13 = vmul.f32 %v9996_v24, %v9996_v24 }
0x1304   :  { %v4835_v58 = vsel %vm245_vm12, %v4809_v13, 0.0 }
0x1305   :  { %4836 = vadd.xlane.f32.xlu0 %v4835_v58 }
0x1309   :  { %v4813_v36 = vpop.xlane.xlu1 %4812 }
0x130a   :  { %v4841_v25 = vmul.f32 %v4813_v36, %v10484_v51 }
0x130c   :  { %v4851_v16 = vadd.f32 1e-05, %v4841_v25  ;;  %v4153_v3 = vpop.f32.mrf.mxu2 }
0x130e   :  { %6496 = vrsqrt.f32 %v4851_v16  ;;  %vm4867_vm9 = vweird.f32 %v4851_v16 }
0x1311   :  { %v4819_v20 = vpop.xlane.xlu2 %4818  ;;  %v4774_v53 = vpop.xlane.xlu1 %4773 }
0x1312   :  { %v4843_v61 = vmul.f32 %v4819_v20, %v10484_v51  ;;  %v4788_v45 = vmul.f32 %v4774_v53, %v10484_v51 }
0x1314   :  { %v6497_v1 = vpop.eup %6496  ;;  %v4853_v44 = vadd.f32 1e-05, %v4843_v61  ;;  %v10014_v46 = vsub.f32 %v9956_v33, %v4788_v45 }
0x1315   :  { %v4862_v6 = vmul.f32 %v6497_v1, %v4851_v16  ;;  %vm4868_vm6 = vweird.f32 %v6497_v1 }
0x1316   :  { %6498 = vrsqrt.f32 %v4853_v44  ;;  %v4808_v15 = vmul.f32 %v10014_v46, %v10014_v46  ;;  %vm4869_vm10 = vmor %vm4867_vm9, %vm4868_vm6  ;;  %vm4887_vm4 = vweird.f32 %v4853_v44 }
0x1317   :  { %v4863_v28 = vmul.f32 %v6497_v1, %v4862_v6 }
0x1318   :  { %v4832_v49 = vsel %vm245_vm12, %v4808_v15, 0.0 }
0x1319   :  { %v4864_v56 = vmul.f32 0.5, %v4863_v28  ;;  %4608 = vrot.lane.b32.xlu0 %v9917_v7, %s10475_s6  ;;  %4833 = vadd.xlane.f32.xlu2 %v4832_v49  ;;  %v4822_v34 = vpop.xlane.xlu1 %4821  ;;  %v10025_v7 = vld [vmem:[%s10269_s12 + $0x1] ss:$0 sm:$0xff] }
0x131a   :  { %v4844_v8 = vmul.f32 %v4822_v34, %v10484_v51  ;;  %v4975_v52 = vmul.f32 %v10025_v7, %v4962_v23 }
0x131b   :  { %v4865_v33 = vsub.f32 1.5, %v4864_v56 }
0x131c   :  { %v6499_v35 = vpop.eup %6498  ;;  %v4854_v12 = vadd.f32 1e-05, %v4844_v8  ;;  %v4988_v36 = vadd.f32 %v10031_v63, %v4975_v52 }
0x131d   :  { %v4866_v2 = vmul.f32 %v6497_v1, %v4865_v33  ;;  %v4882_v59 = vmul.f32 %v6499_v35, %v4853_v44  ;;  %vm4888_vm2 = vweird.f32 %v6499_v35 }
0x131e   :  { %6500 = vrsqrt.f32 %v4854_v12  ;;  %vm4889_vm5 = vmor %vm4887_vm4, %vm4888_vm2  ;;  %vm4897_vm6 = vweird.f32 %v4854_v12 }
0x131f   :  { %v4870_v32 = vsel %vm4869_vm10, %v6497_v1, %v4866_v2  ;;  %v4883_v60 = vmul.f32 %v6499_v35, %v4882_v59 }
0x1320   :  { %v4961_v29 = vmul.f32 %v4870_v32, %v9948_v22 }
0x1321   :  { %v4884_v57 = vmul.f32 0.5, %v4883_v60  ;;  %v4825_v42 = vpop.xlane.xlu2 %4824 }
0x1322   :  { %v4974_v14 = vmul.f32 %v10025_v7, %v4961_v29  ;;  %v4845_v26 = vmul.f32 %v4825_v42, %v10484_v51 }
0x1323   :  { %v4885_v47 = vsub.f32 1.5, %v4884_v57 }
0x1324   :  { %v6501_v9 = vpop.eup %6500  ;;  %v10037_v19 = vadd.f32 %v10031_v63, %v4974_v14  ;;  %v4855_v22 = vadd.f32 1e-05, %v4845_v26 }
0x1325   :  { %v4886_v50 = vmul.f32 %v6499_v35, %v4885_v47  ;;  %v4892_v10 = vmul.f32 %v6501_v9, %v4854_v12  ;;  %vm4898_vm7 = vweird.f32 %v6501_v9 }
0x1326   :  { %6502 = vrsqrt.f32 %v4855_v22  ;;  %5802 = vmatmul.msk.f32.vlgmr.msrb.gmra.mxu2 %vm245_vm12, %v10037_v19  ;;  %vm4899_vm8 = vmor %vm4897_vm6, %vm4898_vm7  ;;  %vm4907_vm10 = vweird.f32 %v4855_v22 }
0x1327   :  { %v4893_v55 = vmul.f32 %v6501_v9, %v4892_v10  ;;  %v4890_v5 = vsel %vm4889_vm5, %v6499_v35, %v4886_v50 }
0x1328   :  { %v4963_v58 = vmul.f32 %v4890_v5, %v9958_v17 }
0x1329   :  { %v4894_v18 = vmul.f32 0.5, %v4893_v55  ;;  %v4828_v11 = vpop.xlane.xlu0 %4827 }
0x132a   :  { %v4846_v41 = vmul.f32 %v4828_v11, %v10484_v51  ;;  %v4976_v39 = vmul.f32 %v10025_v7, %v4963_v58 }
0x132b   :  { %v4895_v13 = vsub.f32 1.5, %v4894_v18 }
0x132c   :  { %v6503_v40 = vpop.eup %6502  ;;  %v4856_v38 = vadd.f32 1e-05, %v4846_v41  ;;  %v10051_v6 = vadd.f32 %v10031_v63, %v4976_v39 }
0x132d   :  { %v4896_v54 = vmul.f32 %v6501_v9, %v4895_v13  ;;  %v4902_v25 = vmul.f32 %v6503_v40, %v4855_v22  ;;  %vm4908_vm9 = vweird.f32 %v6503_v40 }
0x132e   :  { %6504 = vrsqrt.f32 %v4856_v38  ;;  %5803 = vmatmul.msk.f32.gmra.mxu2 %vm245_vm12, %v4988_v36  ;;  %vm4909_vm13 = vmor %vm4907_vm10, %vm4908_vm9  ;;  %vm4917_vm2 = vweird.f32 %v4856_v38 }
0x132f   :  { %v4903_v16 = vmul.f32 %v6503_v40, %v4902_v25  ;;  %v4900_v20 = vsel %vm4899_vm8, %v6501_v9, %v4896_v54  ;;  %v5818_v54 = vld [vmem:[%s10273_s16 + $0x70] sm:$0xff] }
0x1330   :  { %v4964_v44 = vmul.f32 %v4900_v20, %v9966_v43  ;;  %v5816_v20 = vld [vmem:[%s10273_s16 + $0x60] sm:$0xff] }
0x1331   :  { %v4904_v53 = vmul.f32 0.5, %v4903_v16  ;;  %4568 = vrot.lane.b32.xlu2 %v4153_v3, %s10476_s4  ;;  %v4831_v17 = vpop.xlane.xlu1 %4830  ;;  %v5817_v3 = vld [vmem:[%s10273_s16 + $0x68] sm:$0xff] }
0x1332   :  { %v4847_v61 = vmul.f32 %v4831_v17, %v10484_v51  ;;  %v4977_v21 = vmul.f32 %v10025_v7, %v4964_v44 }
0x1333   :  { %v4905_v45 = vsub.f32 1.5, %v4904_v53 }
0x1334   :  { %v6505_v1 = vpop.eup %6504  ;;  %v4857_v31 = vadd.f32 1e-05, %v4847_v61  ;;  %v4990_v35 = vadd.f32 %v10031_v63, %v4977_v21  ;;  %v5815_v61 = vld [vmem:[%s10273_s16 + $0x58] sm:$0xff] }
0x1335   :  { %v4906_v15 = vmul.f32 %v6503_v40, %v4905_v45  ;;  %v4912_v28 = vmul.f32 %v6505_v1, %v4856_v38  ;;  %vm4918_vm14 = vweird.f32 %v6505_v1 }
0x1336   :  { %6506 = vrsqrt.f32 %v4857_v31  ;;  %5804 = vmatmul.msk.f32.gmra.mxu2 %vm245_vm12, %v10051_v6  ;;  %vm4919_vm4 = vmor %vm4917_vm2, %vm4918_vm14  ;;  %vm4927_vm7 = vweird.f32 %v4857_v31 }
0x1337   :  { %v4913_v49 = vmul.f32 %v6505_v1, %v4912_v28  ;;  %v4910_v56 = vsel %vm4909_vm13, %v6503_v40, %v4906_v15  ;;  %v5819_v40 = vld [vmem:[%s10273_s16 + $0x78] sm:$0xff]  ;;  %v5813_v15 = vld [vmem:[%s10273_s16 + $0x48] sm:$0xff] }
0x1338   :  { %v4965_v33 = vmul.f32 %v4910_v56, %v9972_v4  ;;  %5226 = vmatpush.msra.mxu1 %v5819_v40 }
0x1339   :  { %v4914_v34 = vmul.f32 0.5, %v4913_v49  ;;  %v5812_v49 = vld [vmem:[%s10273_s16 + $0x40] sm:$0xff] }
0x133a   :  { %v4978_v59 = vmul.f32 %v10025_v7, %v4965_v33  ;;  %5227 = vmatpush.msra.mxu1 %v5818_v54 }
0x133b   :  { %v4915_v8 = vsub.f32 1.5, %v4914_v34 }
0x133c   :  { %v6507_v43 = vpop.eup %6506  ;;  %v10062_v57 = vadd.f32 %v10031_v63, %v4978_v59  ;;  %5228 = vmatpush.msra.mxu1 %v5817_v3 }
0x133d   :  { %v4916_v12 = vmul.f32 %v6505_v1, %v4915_v8  ;;  %v4922_v48 = vmul.f32 %v6507_v43, %v4857_v31  ;;  %vm4928_vm5 = vweird.f32 %v6507_v43  ;;  %v10112_v8 = vld [vmem:[%s10272_s15 + $0x1] ss:$0 sm:$0xff] }
0x133e   :  { %5805 = vmatmul.msk.f32.gmra.mxu2 %vm245_vm12, %v4990_v35  ;;  %vm4929_vm6 = vmor %vm4927_vm7, %vm4928_vm5  ;;  %5229 = vmatpush.msra.mxu1 %v5816_v20 }
0x133f   :  { %v4923_v2 = vmul.f32 %v6507_v43, %v4922_v48  ;;  %v4920_v32 = vsel %vm4919_vm4, %v6505_v1, %v4916_v12  ;;  %v5814_v1 = vld [vmem:[%s10273_s16 + $0x50] sm:$0xff] }
0x1340   :  { %v4966_v0 = vmul.f32 %v4920_v32, %v9978_v30  ;;  %5230 = vmatpush.msra.mxu1 %v5815_v61 }
0x1341   :  { %v4924_v60 = vmul.f32 0.5, %v4923_v2 }
0x1342   :  { %v4979_v42 = vmul.f32 %v10025_v7, %v4966_v0  ;;  %5231 = vmatpush.msra.mxu1 %v5814_v1 }
0x1343   :  { %v4925_v29 = vsub.f32 1.5, %v4924_v60 }
0x1344   :  { %v4992_v47 = vadd.f32 %v10031_v63, %v4979_v42  ;;  %5232 = vmatpush.msra.mxu1 %v5813_v15 }
0x1345   :  { %v4926_v4 = vmul.f32 %v6507_v43, %v4925_v29 }
0x1346   :  { %5806 = vmatmul.msk.f32.gmra.mxu2 %vm245_vm12, %v10062_v57  ;;  %5233 = vmatpush.msra.mxu1 %v5812_v49 }
0x1347   :  { %v4930_v14 = vsel %vm4929_vm6, %v6507_v43, %v4926_v4 }
0x1348   :  { %v4967_v26 = vmul.f32 %v4930_v14, %v9984_v27 }
0x1349   :  { %v4529_v18 = vpop.permute.xlu1 %4528 }
0x134a   :  { %v4980_v30 = vmul.f32 %v10025_v7, %v4967_v26  ;;  %v4629_v11 = vsel %vm691_vm1, %v9805_v37, %v4529_v18 }
0x134c   :  { %v10072_v9 = vadd.f32 %v10031_v63, %v4980_v30 }
0x134e   :  { %5807 = vmatmul.msk.f32.gmra.mxu2 %vm245_vm12, %v4992_v47 }
0x1356   :  { %5808 = vmatmul.msk.f32.gmra.mxu2 %vm245_vm12, %v10072_v9 }
0x1378   :  { %v4837_v23 = vpop.xlane.xlu0 %4836 }
0x1379   :  { %v4849_v22 = vmul.f32 %v4837_v23, %v10484_v51 }
0x137b   :  { %v4859_v50 = vadd.f32 1e-05, %v4849_v22 }
0x137d   :  { %6508 = vrsqrt.f32 %v4859_v50  ;;  %vm4947_vm9 = vweird.f32 %v4859_v50 }
0x1383   :  { %v6509_v55 = vpop.eup %6508 }
0x1384   :  { %v4942_v5 = vmul.f32 %v6509_v55, %v4859_v50 }
0x1386   :  { %v4943_v41 = vmul.f32 %v6509_v55, %v4942_v5 }
0x1388   :  { %v4944_v37 = vmul.f32 0.5, %v4943_v41 }
0x138a   :  { %v4945_v53 = vsub.f32 1.5, %v4944_v37 }
0x138b   :  { %v4609_v58 = vpop.permute.xlu0 %4608 }
0x138c   :  { %v4834_v10 = vpop.xlane.xlu2 %4833  ;;  %v4946_v44 = vmul.f32 %v6509_v55, %v4945_v53 }
0x138d   :  { %v4848_v27 = vmul.f32 %v4834_v10, %v10484_v51 }
0x138f   :  { %v4858_v52 = vadd.f32 1e-05, %v4848_v27 }
0x1391   :  { %6510 = vrsqrt.f32 %v4858_v52 }
0x1394   :  { %v4569_v13 = vpop.permute.xlu2 %4568 }
0x1395   :  { %v4639_v38 = vsel %vm2159_vm3, %v4629_v11, %v4569_v13  ;;  %vm4948_vm3 = vweird.f32 %v6509_v55 }
0x1396   :  { %v4649_v36 = vsel %vm2170_vm15, %v4639_v38, %v4609_v58  ;;  %vm4937_vm15 = vweird.f32 %v4858_v52  ;;  %vm4949_vm10 = vmor %vm4947_vm9, %vm4948_vm3 }
0x1397   :  { %v6511_v25 = vpop.eup %6510  ;;  %5794 = vmatmul.msk.f32.gmra.mxu3 %vm245_vm12, %v4649_v36  ;;  %v4950_v56 = vsel %vm4949_vm10, %v6509_v55, %v4946_v44 }
0x1398   :  { %v4932_v16 = vmul.f32 %v6511_v25, %v4858_v52  ;;  %vm4938_vm1 = vweird.f32 %v6511_v25  ;;  %v4969_v43 = vmul.f32 %v4950_v56, %v9996_v24 }
0x1399   :  { %vm4939_vm8 = vmor %vm4937_vm15, %vm4938_vm1 }
0x139a   :  { %v4933_v39 = vmul.f32 %v6511_v25, %v4932_v16 }
0x139c   :  { %v4934_v17 = vmul.f32 0.5, %v4933_v39 }
0x139e   :  { %v4935_v45 = vsub.f32 1.5, %v4934_v17 }
0x13a0   :  { %v4936_v31 = vmul.f32 %v6511_v25, %v4935_v45 }
0x13a2   :  { %v4940_v28 = vsel %vm4939_vm8, %v6511_v25, %v4936_v31 }
0x13a3   :  { %v4968_v21 = vmul.f32 %v4940_v28, %v10014_v46  ;;  %v4982_v46 = vmul.f32 %v10025_v7, %v4969_v43 }
0x13a5   :  { %v4981_v34 = vmul.f32 %v10025_v7, %v4968_v21  ;;  %v10120_v59 = vadd.f32 %v10031_v63, %v4982_v46 }
0x13a7   :  { %v4994_v33 = vadd.f32 %v10031_v63, %v4981_v34 }
0x13a9   :  { %v5054_v35 = vpop.f32.mrf.mxu2  ;;  %5809 = vmatmul.msk.f32.gmra.mxu2 %vm245_vm12, %v4994_v33 }
0x13aa   :  { %v5055_v12 = vadd.f32 %v10112_v8, %v5054_v35 }
0x13ac   :  { %v5084_v48 = vmul.f32 %v5055_v12, %v5055_v12 }
0x13ae   :  { %v5094_v2 = vmul.f32 %v5084_v48, %v5055_v12 }
0x13b0   :  { %v5104_v32 = vmul.f32 0.044715, %v5094_v2 }
0x13b1   :  { %v5057_v60 = vpop.f32.mrf.mxu2  ;;  %5810 = vmatmul.msk.f32.gmra.mxu2 %vm245_vm12, %v10120_v59 }
0x13b2   :  { %v5114_v24 = vadd.f32 %v5104_v32, %v5055_v12  ;;  %v5058_v29 = vadd.f32 %v10112_v8, %v5057_v60 }
0x13b4   :  { %v5124_v0 = vmul.f32 0.7978846, %v5114_v24  ;;  %v5085_v4 = vmul.f32 %v5058_v29, %v5058_v29 }
0x13b6   :  { %6512 = vtanh.f32 %v5124_v0  ;;  %v5095_v42 = vmul.f32 %v5085_v4, %v5058_v29 }
0x13b8   :  { %v5105_v14 = vmul.f32 0.044715, %v5095_v42 }
0x13b9   :  { %v5060_v26 = vpop.f32.mrf.mxu2 }
0x13ba   :  { %v5115_v47 = vadd.f32 %v5105_v14, %v5058_v29  ;;  %v5061_v30 = vadd.f32 %v10112_v8, %v5060_v26 }
0x13bc   :  { %v6513_v23 = vpop.eup %6512  ;;  %v5125_v22 = vmul.f32 0.7978846, %v5115_v47  ;;  %v5086_v50 = vmul.f32 %v5061_v30, %v5061_v30 }
0x13bd   :  { %v5144_v10 = vadd.f32 1.0, %v6513_v23 }
0x13be   :  { %6514 = vtanh.f32 %v5125_v22  ;;  %v5096_v55 = vmul.f32 %v5086_v50, %v5061_v30 }
0x13bf   :  { %v5154_v27 = vmul.f32 0.5, %v5144_v10 }
0x13c0   :  { %v5106_v52 = vmul.f32 0.044715, %v5096_v55 }
0x13c1   :  { %v5164_v5 = vmul.f32 %v5154_v27, %v5055_v12  ;;  %v5063_v18 = vpop.f32.mrf.mxu2 }
0x13c2   :  { %v5116_v11 = vadd.f32 %v5106_v52, %v5061_v30  ;;  %v5064_v41 = vadd.f32 %v10112_v8, %v5063_v18 }
0x13c3   :  { %5821 = vmatmul.msk.f32.vlgmr.msra.gmra.mxu1 %vm2711_vm11, %v5164_v5 }
0x13c4   :  { %v6515_v13 = vpop.eup %6514  ;;  %v5126_v40 = vmul.f32 0.7978846, %v5116_v11  ;;  %v5087_v58 = vmul.f32 %v5064_v41, %v5064_v41 }
0x13c5   :  { %v5145_v38 = vadd.f32 1.0, %v6515_v13 }
0x13c6   :  { %6516 = vtanh.f32 %v5126_v40  ;;  %v5097_v36 = vmul.f32 %v5087_v58, %v5064_v41 }
0x13c7   :  { %v5155_v54 = vmul.f32 0.5, %v5145_v38 }
0x13c8   :  { %v5107_v25 = vmul.f32 0.044715, %v5097_v36 }
0x13c9   :  { %v5066_v37 = vpop.f32.mrf.mxu2  ;;  %v5165_v16 = vmul.f32 %v5155_v54, %v5058_v29 }
0x13ca   :  { %v5117_v3 = vadd.f32 %v5107_v25, %v5064_v41  ;;  %v5067_v39 = vadd.f32 %v10112_v8, %v5066_v37 }
0x13cb   :  { %5822 = vmatmul.msk.f32.gmra.mxu1 %vm2711_vm11, %v5165_v16 }
0x13cc   :  { %v6517_v20 = vpop.eup %6516  ;;  %v5127_v53 = vmul.f32 0.7978846, %v5117_v3  ;;  %v5088_v17 = vmul.f32 %v5067_v39, %v5067_v39 }
0x13cd   :  { %v5146_v61 = vadd.f32 1.0, %v6517_v20 }
0x13ce   :  { %6518 = vtanh.f32 %v5127_v53  ;;  %v5098_v45 = vmul.f32 %v5088_v17, %v5067_v39 }
0x13cf   :  { %v5156_v1 = vmul.f32 0.5, %v5146_v61 }
0x13d0   :  { %v5108_v44 = vmul.f32 0.044715, %v5098_v45 }
0x13d1   :  { %v5069_v31 = vpop.f32.mrf.mxu2  ;;  %v5166_v15 = vmul.f32 %v5156_v1, %v5061_v30 }
0x13d2   :  { %v5118_v28 = vadd.f32 %v5108_v44, %v5067_v39  ;;  %v5070_v49 = vadd.f32 %v10112_v8, %v5069_v31 }
0x13d3   :  { %5823 = vmatmul.msk.f32.gmra.mxu1 %vm2711_vm11, %v5166_v15 }
0x13d4   :  { %v6519_v21 = vpop.eup %6518  ;;  %v5128_v56 = vmul.f32 0.7978846, %v5118_v28  ;;  %v5089_v34 = vmul.f32 %v5070_v49, %v5070_v49 }
0x13d5   :  { %v5147_v43 = vadd.f32 1.0, %v6519_v21 }
0x13d6   :  { %6520 = vtanh.f32 %v5128_v56  ;;  %v5099_v33 = vmul.f32 %v5089_v34, %v5070_v49 }
0x13d7   :  { %v5157_v35 = vmul.f32 0.5, %v5147_v43  ;;  %v6088_v43 = vld [vmem:[%s10274_s17 + $0x1] ss:$0 sm:$0xff] }
0x13d8   :  { %v5109_v12 = vmul.f32 0.044715, %v5099_v33 }
0x13d9   :  { %v5072_v46 = vpop.f32.mrf.mxu2  ;;  %v5167_v48 = vmul.f32 %v5157_v35, %v5064_v41  ;;  %v10487_v41 = vld [vmem:[#allocation24_spill] sm:$0xff] }
0x13da   :  { %v5119_v2 = vadd.f32 %v5109_v12, %v5070_v49  ;;  %v5073_v32 = vadd.f32 %v10112_v8, %v5072_v46 }
0x13db   :  { %5824 = vmatmul.msk.f32.gmra.mxu1 %vm2711_vm11, %v5167_v48 }
0x13dc   :  { %v6521_v60 = vpop.eup %6520  ;;  %v5129_v24 = vmul.f32 0.7978846, %v5119_v2  ;;  %v5090_v29 = vmul.f32 %v5073_v32, %v5073_v32 }
0x13dd   :  { %v5148_v0 = vadd.f32 1.0, %v6521_v60 }
0x13de   :  { %6522 = vtanh.f32 %v5129_v24  ;;  %v5100_v4 = vmul.f32 %v5090_v29, %v5073_v32 }
0x13df   :  { %v5158_v42 = vmul.f32 0.5, %v5148_v0 }
0x13e0   :  { %v5110_v14 = vmul.f32 0.044715, %v5100_v4 }
0x13e1   :  { %v5168_v26 = vmul.f32 %v5158_v42, %v5067_v39 }
0x13e2   :  { %v5120_v47 = vadd.f32 %v5110_v14, %v5073_v32 }
0x13e3   :  { %5825 = vmatmul.msk.f32.gmra.mxu1 %vm2711_vm11, %v5168_v26 }
0x13e4   :  { %v6523_v30 = vpop.eup %6522  ;;  %v5130_v23 = vmul.f32 0.7978846, %v5120_v47 }
0x13e5   :  { %v5149_v22 = vadd.f32 1.0, %v6523_v30 }
0x13e6   :  { %6524 = vtanh.f32 %v5130_v23 }
0x13e7   :  { %v5159_v50 = vmul.f32 0.5, %v5149_v22 }
0x13e9   :  { %v5169_v10 = vmul.f32 %v5159_v50, %v5070_v49 }
0x13eb   :  { %5826 = vmatmul.msk.f32.gmra.mxu1 %vm2711_vm11, %v5169_v10 }
0x13ec   :  { %v6525_v55 = vpop.eup %6524 }
0x13ed   :  { %v5150_v27 = vadd.f32 1.0, %v6525_v55 }
0x13ef   :  { %v5160_v52 = vmul.f32 0.5, %v5150_v27 }
0x13f1   :  { %v5170_v5 = vmul.f32 %v5160_v52, %v5073_v32 }
0x13f3   :  { %5827 = vmatmul.msk.f32.gmra.mxu1 %vm2711_vm11, %v5170_v5 }
0x141a   :  { %v4734_v18 = vpop.f32.mrf.mxu3 }
0x141b   :  { %v4735_v11 = vadd.f32 %v9905_v62, %v4734_v18 }
0x141d   :  { %v4746_v13 = vadd.f32 %v4735_v11, %v10487_v41 }
0x141f   :  { %v4778_v40 = vsel %vm245_vm12, %v4746_v13, 0.0 }
0x1420   :  { %4779 = vadd.xlane.f32.xlu2 %v4778_v40 }
0x142c   :  { %v5075_v58 = vpop.f32.mrf.mxu2 }
0x142d   :  { %v5076_v38 = vadd.f32 %v10112_v8, %v5075_v58 }
0x142f   :  { %v5091_v36 = vmul.f32 %v5076_v38, %v5076_v38 }
0x1431   :  { %v5101_v54 = vmul.f32 %v5091_v36, %v5076_v38 }
0x1433   :  { %v5111_v25 = vmul.f32 0.044715, %v5101_v54 }
0x1434   :  { %v5078_v37 = vpop.f32.mrf.mxu2 }
0x1435   :  { %v5121_v16 = vadd.f32 %v5111_v25, %v5076_v38  ;;  %v5079_v3 = vadd.f32 %v10112_v8, %v5078_v37 }
0x1437   :  { %v5131_v39 = vmul.f32 0.7978846, %v5121_v16  ;;  %v5092_v20 = vmul.f32 %v5079_v3, %v5079_v3 }
0x1439   :  { %6526 = vtanh.f32 %v5131_v39  ;;  %v5102_v53 = vmul.f32 %v5092_v20, %v5079_v3 }
0x143b   :  { %v5112_v62 = vmul.f32 0.044715, %v5102_v53 }
0x143d   :  { %v5122_v17 = vadd.f32 %v5112_v62, %v5079_v3 }
0x143f   :  { %v6527_v61 = vpop.eup %6526  ;;  %v5132_v45 = vmul.f32 0.7978846, %v5122_v17 }
0x1440   :  { %v5235_v1 = vpop.f32.mrf.mxu1  ;;  %v5151_v44 = vadd.f32 1.0, %v6527_v61 }
0x1441   :  { %6528 = vtanh.f32 %v5132_v45  ;;  %v5236_v23 = vadd.f32 %v6088_v43, %v5235_v1 }
0x1442   :  { %v5161_v31 = vmul.f32 0.5, %v5151_v44 }
0x1444   :  { %v5171_v15 = vmul.f32 %v5161_v31, %v5076_v38 }
0x1446   :  { %5828 = vmatmul.msk.f32.gmra.mxu1 %vm2711_vm11, %v5171_v15 }
0x1447   :  { %v6529_v28 = vpop.eup %6528 }
0x1448   :  { %v5238_v49 = vpop.f32.mrf.mxu1  ;;  %v5152_v21 = vadd.f32 1.0, %v6529_v28 }
0x144a   :  { %v5162_v56 = vmul.f32 0.5, %v5152_v21 }
0x144c   :  { %v5172_v34 = vmul.f32 %v5162_v56, %v5079_v3 }
0x144e   :  { %5829 = vmatmul.msk.f32.gmra.mxu1 %vm2711_vm11, %v5172_v34 }
0x1450   :  { %v5240_v33 = vpop.f32.mrf.mxu1 }
0x1451   :  { %v5241_v35 = vadd.f32 %v6088_v43, %v5240_v33 }
0x1453   :  { %v5261_v12 = vadd.f32 %v5241_v35, %v10051_v6 }
0x1455   :  { %v5272_v46 = vsel %vm245_vm12, %v5261_v12, 0.0 }
0x1456   :  { %5273 = vadd.xlane.f32.xlu0 %v5272_v46 }
0x1458   :  { %v5243_v48 = vpop.f32.mrf.mxu1 }
0x1460   :  { %v5245_v2 = vpop.f32.mrf.mxu1 }
0x1461   :  { %v5246_v32 = vadd.f32 %v6088_v43, %v5245_v2 }
0x1463   :  { %v5262_v60 = vadd.f32 %v5246_v32, %v10062_v57  ;;  %v5260_v57 = vadd.f32 %v5236_v23, %v10037_v19 }
0x1465   :  { %v5275_v24 = vsel %vm245_vm12, %v5262_v60, 0.0  ;;  %v5269_v50 = vsel %vm245_vm12, %v5260_v57, 0.0 }
0x1466   :  { %5276 = vadd.xlane.f32.xlu2 %v5275_v24 }
0x1468   :  { %v5248_v29 = vpop.f32.mrf.mxu1 }
0x1470   :  { %v5250_v0 = vpop.f32.mrf.mxu1 }
0x1471   :  { %v5251_v4 = vadd.f32 %v6088_v43, %v5250_v0 }
0x1473   :  { %v5263_v42 = vadd.f32 %v5251_v4, %v10072_v9 }
0x1475   :  { %v5278_v14 = vsel %vm245_vm12, %v5263_v42, 0.0 }
0x1476   :  { %5279 = vadd.xlane.f32.xlu0 %v5278_v14 }
0x1493   :  { %v4780_v6 = vpop.xlane.xlu2 %4779 }
0x1494   :  { %v4790_v26 = vmul.f32 %v4780_v6, %v10484_v51 }
0x1496   :  { %v4800_v47 = vsub.f32 %v4746_v13, %v4790_v26 }
0x1498   :  { %v4810_v30 = vmul.f32 %v4800_v47, %v4800_v47 }
0x149a   :  { %v4838_v22 = vsel %vm245_vm12, %v4810_v30, 0.0 }
0x149b   :  { %4839 = vadd.xlane.f32.xlu1 %v4838_v22 }
0x14a3   :  { %5270 = vadd.xlane.f32.xlu1 %v5269_v50 }
0x14c3   :  { %v5253_v10 = vpop.f32.mrf.mxu1 }
0x14c9   :  { %v5274_v55 = vpop.xlane.xlu0 %5273 }
0x14ca   :  { %v5285_v9 = vmul.f32 %v5274_v55, %v10484_v51 }
0x14cb   :  { %v5255_v27 = vpop.f32.mrf.mxu1 }
0x14cc   :  { %v10158_v52 = vsub.f32 %v5261_v12, %v5285_v9  ;;  %v5256_v5 = vadd.f32 %v6088_v43, %v5255_v27 }
0x14ce   :  { %v5264_v18 = vadd.f32 %v5256_v5, %v10120_v59  ;;  %v5295_v11 = vmul.f32 %v10158_v52, %v10158_v52 }
0x14d0   :  { %v5281_v41 = vsel %vm245_vm12, %v5264_v18, 0.0  ;;  %v5302_v19 = vsel %vm245_vm12, %v5295_v11, 0.0 }
0x14d1   :  { %5282 = vadd.xlane.f32.xlu2 %v5281_v41  ;;  %5303 = vadd.xlane.f32.xlu1 %v5302_v19  ;;  %v5417_v19 = vld [vmem:[%s10277_s20 + $0x18] sm:$0xff] }
0x14d2   :  { %5437 = vmatpush.msra.mxu0 %v5417_v19 }
0x14d9   :  { %v5277_v13 = vpop.xlane.xlu2 %5276 }
0x14da   :  { %v5286_v40 = vmul.f32 %v5277_v13, %v10484_v51  ;;  %v5416_v13 = vld [vmem:[%s10277_s20 + $0x10] sm:$0xff] }
0x14db   :  { %5438 = vmatpush.msra.mxu0 %v5416_v13 }
0x14dc   :  { %v10166_v58 = vsub.f32 %v5262_v60, %v5286_v40 }
0x14de   :  { %v5296_v38 = vmul.f32 %v10166_v58, %v10166_v58 }
0x14e0   :  { %v5305_v36 = vsel %vm245_vm12, %v5296_v38, 0.0 }
0x14e1   :  { %5306 = vadd.xlane.f32.xlu0 %v5305_v36 }
0x14e9   :  { %v5280_v59 = vpop.xlane.xlu0 %5279 }
0x14ea   :  { %v5287_v54 = vmul.f32 %v5280_v59, %v10484_v51  ;;  %v5415_v59 = vld [vmem:[%s10277_s20 + $0x8] sm:$0xff] }
0x14eb   :  { %5439 = vmatpush.msra.mxu0 %v5415_v59 }
0x14ec   :  { %v10172_v25 = vsub.f32 %v5263_v42, %v5287_v54 }
0x14ee   :  { %v5297_v37 = vmul.f32 %v10172_v25, %v10172_v25 }
0x14f0   :  { %v5308_v16 = vsel %vm245_vm12, %v5297_v37, 0.0 }
0x14f1   :  { %5309 = vadd.xlane.f32.xlu1 %v5308_v16  ;;  %v5414_v16 = vld [vmem:[%s10277_s20] sm:$0xff] }
0x14f2   :  { %5440 = vmatpush.msra.mxu0 %v5414_v16 }
0x150e   :  { %v4840_v3 = vpop.xlane.xlu1 %4839 }
0x150f   :  { %v4850_v39 = vmul.f32 %v4840_v3, %v10484_v51 }
0x1511   :  { %v4860_v20 = vadd.f32 1e-05, %v4850_v39 }
0x1513   :  { %6530 = vrsqrt.f32 %v4860_v20  ;;  %vm4957_vm14 = vweird.f32 %v4860_v20 }
0x1516   :  { %v5271_v53 = vpop.xlane.xlu1 %5270 }
0x1517   :  { %v5284_v62 = vmul.f32 %v5271_v53, %v10484_v51 }
0x1519   :  { %v6531_v17 = vpop.eup %6530  ;;  %v10179_v61 = vsub.f32 %v5260_v57, %v5284_v62 }
0x151a   :  { %v4952_v45 = vmul.f32 %v6531_v17, %v4860_v20  ;;  %vm4958_vm13 = vweird.f32 %v6531_v17 }
0x151b   :  { %v5294_v1 = vmul.f32 %v10179_v61, %v10179_v61  ;;  %vm4959_vm2 = vmor %vm4957_vm14, %vm4958_vm13 }
0x151c   :  { %v4953_v44 = vmul.f32 %v6531_v17, %v4952_v45 }
0x151d   :  { %v5299_v31 = vsel %vm245_vm12, %v5294_v1, 0.0 }
0x151e   :  { %v4954_v15 = vmul.f32 0.5, %v4953_v44  ;;  %5300 = vadd.xlane.f32.xlu2 %v5299_v31 }
0x1520   :  { %v4955_v28 = vsub.f32 1.5, %v4954_v15 }
0x1522   :  { %v4956_v49 = vmul.f32 %v6531_v17, %v4955_v28 }
0x1524   :  { %v4960_v21 = vsel %vm4959_vm2, %v6531_v17, %v4956_v49 }
0x1525   :  { %v4970_v56 = vmul.f32 %v4960_v21, %v4800_v47 }
0x1527   :  { %v4983_v34 = vmul.f32 %v10025_v7, %v4970_v56 }
0x1529   :  { %v4996_v43 = vadd.f32 %v10031_v63, %v4983_v34 }
0x152b   :  { %5811 = vmatmul.msk.f32.gmra.mxu2 %vm245_vm12, %v4996_v43 }
0x1544   :  { %v5283_v33 = vpop.xlane.xlu2 %5282  ;;  %v5304_v2 = vpop.xlane.xlu1 %5303 }
0x1545   :  { %v5288_v35 = vmul.f32 %v5283_v33, %v10484_v51  ;;  %v5315_v60 = vmul.f32 %v5304_v2, %v10484_v51 }
0x1547   :  { %v10188_v12 = vsub.f32 %v5264_v18, %v5288_v35  ;;  %v5320_v0 = vadd.f32 1e-05, %v5315_v60  ;;  %v6089_v35 = vld [vmem:[%s10275_s18 + $0x1] ss:$0 sm:$0xff] }
0x1549   :  { %v5298_v46 = vmul.f32 %v10188_v12, %v10188_v12  ;;  %6532 = vrsqrt.f32 %v5320_v0  ;;  %vm5340_vm5 = vweird.f32 %v5320_v0 }
0x154b   :  { %v5311_v48 = vsel %vm245_vm12, %v5298_v46, 0.0 }
0x154c   :  { %5312 = vadd.xlane.f32.xlu0 %v5311_v48 }
0x154f   :  { %v6533_v47 = vpop.eup %6532 }
0x1550   :  { %v5335_v50 = vmul.f32 %v6533_v47, %v5320_v0  ;;  %vm5341_vm4 = vweird.f32 %v6533_v47 }
0x1551   :  { %vm5342_vm6 = vmor %vm5340_vm5, %vm5341_vm4  ;;  %vm5407_vm5 = vcmask 1040384  }
0x1552   :  { %v5336_v18 = vmul.f32 %v6533_v47, %v5335_v50 }
0x1554   :  { %v5307_v7 = vpop.xlane.xlu0 %5306  ;;  %v5337_v36 = vmul.f32 0.5, %v5336_v18 }
0x1555   :  { %v5316_v29 = vmul.f32 %v5307_v7, %v10484_v51 }
0x1556   :  { %v5338_v39 = vsub.f32 1.5, %v5337_v36 }
0x1557   :  { %v5321_v14 = vadd.f32 1e-05, %v5316_v29 }
0x1558   :  { %v5339_v44 = vmul.f32 %v6533_v47, %v5338_v39 }
0x1559   :  { %vm5350_vm15 = vweird.f32 %v5321_v14 }
0x1564   :  { %v5310_v24 = vpop.xlane.xlu1 %5309 }
0x1565   :  { %v5317_v4 = vmul.f32 %v5310_v24, %v10484_v51 }
0x1567   :  { %v10197_v6 = vadd.f32 1e-05, %v5317_v4 }
0x1569   :  { %vm5360_vm13 = vweird.f32 %v10197_v6 }
0x1591   :  { %v5301_v32 = vpop.xlane.xlu2 %5300 }
0x1592   :  { %v5314_v63 = vmul.f32 %v5301_v32, %v10484_v51 }
0x1594   :  { %v5319_v42 = vadd.f32 1e-05, %v5314_v63  ;;  %v6090_v63 = vld [vmem:[%s10276_s19 + $0x1] ss:$0 sm:$0xff] }
0x1596   :  { %6534 = vrsqrt.f32 %v5319_v42  ;;  %vm5330_vm3 = vweird.f32 %v5319_v42 }
0x1597   :  { %6536 = vrsqrt.f32 %v5321_v14 }
0x1598   :  { %6538 = vrsqrt.f32 %v10197_v6 }
0x159c   :  { %v10201_v23 = vpop.eup %6534 }
0x159d   :  { %v10203_v57 = vpop.eup %6536  ;;  %v5325_v9 = vmul.f32 %v10201_v23, %v5319_v42  ;;  %vm5331_vm7 = vweird.f32 %v10201_v23 }
0x159e   :  { %v10205_v55 = vpop.eup %6538  ;;  %v5345_v27 = vmul.f32 %v10203_v57, %v5321_v14  ;;  %vm5351_vm1 = vweird.f32 %v10203_v57  ;;  %vm5332_vm8 = vmor %vm5330_vm3, %vm5331_vm7  ;;  %vm5410_vm7 = vcmask 1042432  }
0x159f   :  { %v5355_v11 = vmul.f32 %v10205_v55, %v10197_v6  ;;  %vm5352_vm9 = vmor %vm5350_vm15, %vm5351_vm1  ;;  %vm5361_vm10 = vweird.f32 %v10205_v55 }
0x15a0   :  { %v5346_v40 = vmul.f32 %v10203_v57, %v5345_v27  ;;  %vm5362_vm14 = vmor %vm5360_vm13, %vm5361_vm10 }
0x15a1   :  { %v5356_v54 = vmul.f32 %v10205_v55, %v5355_v11 }
0x15a2   :  { %v5347_v3 = vmul.f32 0.5, %v5346_v40 }
0x15a3   :  { %v5357_v20 = vmul.f32 0.5, %v5356_v54 }
0x15a4   :  { %v5348_v1 = vsub.f32 1.5, %v5347_v3 }
0x15a5   :  { %v5358_v28 = vsub.f32 1.5, %v5357_v20 }
0x15a6   :  { %v5349_v56 = vmul.f32 %v10203_v57, %v5348_v1 }
0x15a7   :  { %v5359_v43 = vmul.f32 %v10205_v55, %v5358_v28 }
0x15a8   :  { %v5353_v48 = vsel %vm5352_vm9, %v10203_v57, %v5349_v56 }
0x15a9   :  { %v5376_v7 = vmul.f32 %v5353_v48, %v10166_v58  ;;  %v5363_v24 = vsel %vm5362_vm14, %v10205_v55, %v5359_v43 }
0x15ab   :  { %v5384_v14 = vmul.f32 %v6089_v35, %v5376_v7 }
0x15ad   :  { %v5392_v58 = vadd.f32 %v6090_v63, %v5384_v14 }
0x15ae   :  { %v5081_v26 = vpop.f32.mrf.mxu2 }
0x15af   :  { %v5082_v30 = vadd.f32 %v10112_v8, %v5081_v26  ;;  %v5326_v8 = vmul.f32 %v10201_v23, %v5325_v9 }
0x15b1   :  { %v5093_v22 = vmul.f32 %v5082_v30, %v5082_v30  ;;  %v5327_v37 = vmul.f32 0.5, %v5326_v8 }
0x15b3   :  { %v5103_v10 = vmul.f32 %v5093_v22, %v5082_v30  ;;  %v5328_v62 = vsub.f32 1.5, %v5327_v37 }
0x15b5   :  { %v5113_v5 = vmul.f32 0.044715, %v5103_v10  ;;  %v5329_v49 = vmul.f32 %v10201_v23, %v5328_v62 }
0x15b7   :  { %v5123_v41 = vadd.f32 %v5113_v5, %v5082_v30  ;;  %v5333_v33 = vsel %vm5332_vm8, %v10201_v23, %v5329_v49 }
0x15b8   :  { %v5374_v32 = vmul.f32 %v5333_v33, %v10179_v61 }
0x15b9   :  { %v5133_v38 = vmul.f32 0.7978846, %v5123_v41 }
0x15ba   :  { %v5382_v4 = vmul.f32 %v6089_v35, %v5374_v32 }
0x15bb   :  { %6540 = vtanh.f32 %v5133_v38 }
0x15bf   :  { %v5313_v53 = vpop.xlane.xlu0 %5312 }
0x15c0   :  { %v5318_v17 = vmul.f32 %v5313_v53, %v10484_v51  ;;  %v5343_v51 = vsel %vm5342_vm6, %v6533_v47, %v5339_v44  ;;  %v5390_v47 = vadd.f32 %v6090_v63, %v5382_v4  ;;  %vm5412_vm6 = vcmask 1043456  }
0x15c1   :  { %v6541_v45 = vpop.eup %6540  ;;  %v5375_v46 = vmul.f32 %v5343_v51, %v10158_v52  ;;  %v5377_v52 = vmul.f32 %v5363_v24, %v10172_v25  ;;  %v5399_v25 = vrot.slane %v5392_v58, 6 }
0x15c2   :  { %v5323_v31 = vadd.f32 1e-05, %v5318_v17  ;;  %v5153_v15 = vadd.f32 1.0, %v6541_v45 }
0x15c3   :  { %v5383_v29 = vmul.f32 %v6089_v35, %v5375_v46  ;;  %v5385_v61 = vmul.f32 %v6089_v35, %v5377_v52 }
0x15c4   :  { %6542 = vrsqrt.f32 %v5323_v31  ;;  %v5163_v21 = vmul.f32 0.5, %v5153_v15  ;;  %vm5370_vm2 = vweird.f32 %v5323_v31 }
0x15c5   :  { %v5391_v6 = vadd.f32 %v6090_v63, %v5383_v29  ;;  %v5393_v50 = vadd.f32 %v6090_v63, %v5385_v61 }
0x15c6   :  { %v5173_v34 = vmul.f32 %v5163_v21, %v5082_v30 }
0x15c7   :  { %v5396_v23 = vrot.slane %v5391_v6, 7  ;;  %v5402_v5 = vrot.slane %v5393_v50, 5 }
0x15c8   :  { %5830 = vmatmul.msk.f32.gmra.mxu1 %vm2711_vm11, %v5173_v34 }
0x15c9   :  { %v5408_v10 = vsel %vm5407_vm5, %v5390_v47, %v5396_v23 }
0x15ca   :  { %v6543_v2 = vpop.eup %6542  ;;  %v5409_v27 = vsel %vm192_vm0, %v5408_v10, %v5399_v25  ;;  %vm5446_vm0 = vcmask 258048  }
0x15cb   :  { %v5365_v60 = vmul.f32 %v6543_v2, %v5323_v31  ;;  %vm5371_vm11 = vweird.f32 %v6543_v2  ;;  %v5411_v11 = vsel %vm5410_vm7, %v5409_v27, %v5402_v5 }
0x15cc   :  { %vm5372_vm4 = vmor %vm5370_vm2, %vm5371_vm11 }
0x15cd   :  { %v5366_v0 = vmul.f32 %v6543_v2, %v5365_v60 }
0x15cf   :  { %v5367_v42 = vmul.f32 0.5, %v5366_v0 }
0x15d1   :  { %v5368_v26 = vsub.f32 1.5, %v5367_v42 }
0x15d3   :  { %v5369_v30 = vmul.f32 %v6543_v2, %v5368_v26 }
0x15d5   :  { %v5373_v22 = vsel %vm5372_vm4, %v6543_v2, %v5369_v30 }
0x15d6   :  { %v5378_v57 = vmul.f32 %v5373_v22, %v10188_v12  ;;  %v6091_v12 = vld [vmem:[%s10278_s21] ss:$0 sm:$0xff] }
0x15d8   :  { %v5386_v55 = vmul.f32 %v6089_v35, %v5378_v57 }
0x15da   :  { %v5394_v9 = vadd.f32 %v6090_v63, %v5386_v55 }
0x15dc   :  { %v5405_v18 = vrot.slane %v5394_v9, 4 }
0x15de   :  { %v5413_v41 = vsel %vm5412_vm6, %v5411_v11, %v5405_v18 }
0x15df   :  { %5833 = vmatmul.msk.f32.vlgmr.msra.gmra.mxu0 %vm245_vm12, %v5413_v41 }
0x1645   :  { %v5258_v8 = vpop.f32.mrf.mxu1 }
0x165c   :  { %v5442_v19 = vpop.f32.mrf.mxu0 }
0x165d   :  { %v5443_v13 = vadd.f32 %v6091_v12, %v5442_v19 }
0x165f   :  { %6544 = vtanh.f32 %v5443_v13 }
0x1665   :  { %v6545_v40 = vpop.eup %6544 }
0x1666   :  { %5447 = vst.msk [vmem:[#allocation2] sm:$0x1f] %vm5446_vm0, %v6545_v40 }
0x1667   :  { %5458 = dma.vmem_to_hbm [thread:$0]  %s5454_s8, 128, %s5456_s10, [#allocation3]  }
0x1668   :  { %6570 = dma.done.wait [#allocation3], 128  }
0x1669   :  { %6571 = vsyncadd [#allocation3], 4294967168 }
0x166a   :  { %5463 = vsyncpa [#allocation3], 1 }

</bundles_post_ra>
